<compile_context>
chip_gen: v7x
topology: tpu7x:2x2x1
jax: 0.10.0
libtpu: 0.0.40
codegen_flags: <defaults>
</compile_context>

<pallas_src>
import functools

import jax
import jax.numpy as jnp
from jax.experimental import pallas as pl
from jax.experimental.pallas import tpu as pltpu


_VMEM_LIMIT = 32 * 1024 * 1024          # fits v5e/v6e/v7x scoped VMEM
_SINGLE_PASS_BYTES = 4 * 1024 * 1024    # per-tensor budget for 1-pass BN path


# ----------------------------- Pallas kernels ------------------------------

def gemm_kernel(x_ref, w_ref, o_ref):
    """Plain GEMM tile: o = x @ w (f32 accumulation on the MXU)."""
    o_ref[...] = jnp.dot(x_ref[...], w_ref[...],
                         preferred_element_type=jnp.float32)


def bn_relu_kernel(x_ref, g_ref, beta_ref, o_ref, *, inv_m):
    """Single-pass BatchNorm (batch stats) + ReLU.

    The whole (M, C) conv output is resident in VMEM: reduce per-channel
    sum / sumsq, fold into scale/shift (rsqrt on the EUP), apply + ReLU,
    all in one pass.  Conv bias is intentionally absent (cancels under BN).
    """
    x = x_ref[...]
    s = jnp.sum(x, axis=0, keepdims=True)
    sq = jnp.sum(x * x, axis=0, keepdims=True)
    mean = s * inv_m
    var = sq * inv_m - mean * mean
    scale = g_ref[...] * jax.lax.rsqrt(var + 1e-5)
    shift = beta_ref[...] - mean * scale
    o_ref[...] = jnp.maximum(x * scale + shift, 0.0)


def bn_relu_tiled_kernel(x_ref, g_ref, beta_ref, o_ref,
                         sum_ref, sq_ref, scale_ref, shift_ref, *, inv_m):
    """Two-phase tiled fallback (only used if the tensor exceeds VMEM budget).

    grid = (2, nblk):
      phase 0: accumulate per-channel sum / sumsq in scratch, derive the
               folded scale/shift on the last block;
      phase 1: y = max(scale * x + shift, 0)
    """
    ph = pl.program_id(0)
    i = pl.program_id(1)
    last = pl.num_programs(1) - 1

    @pl.when(ph == 0)
    def _stats():
        @pl.when(i == 0)
        def _init():
            sum_ref[...] = jnp.zeros_like(sum_ref)
            sq_ref[...] = jnp.zeros_like(sq_ref)

        x = x_ref[...]
        sum_ref[...] += jnp.sum(x, axis=0, keepdims=True)
        sq_ref[...] += jnp.sum(x * x, axis=0, keepdims=True)

        @pl.when(i == last)
        def _finalize():
            mean = sum_ref[...] * inv_m
            var = sq_ref[...] * inv_m - mean * mean
            inv = g_ref[...] * jax.lax.rsqrt(var + 1e-5)
            scale_ref[...] = inv
            shift_ref[...] = beta_ref[...] - mean * inv

    @pl.when(ph == 1)
    def _apply():
        o_ref[...] = jnp.maximum(x_ref[...] * scale_ref[...] + shift_ref[...],
                                 0.0)


def bias_tanh_kernel(x_ref, b_ref, o_ref):
    """Elementwise bias + tanh (last layer), run on a lane-dense view."""
    o_ref[...] = jnp.tanh(x_ref[...] + b_ref[...])


# ----------------------------- Pallas wrappers ------------------------------

def _pick_tile(m, cap=2048):
    """Largest M-tile: whole array if it fits the cap, else a divisor >= 8."""
    if m <= cap:
        return m
    for t in (2048, 1024, 512, 256, 128, 64, 32, 16, 8):
        if t <= cap and m % t == 0:
            return t
    return m


def gemm(x, w_mat):
    m, k = x.shape
    n = w_mat.shape[1]
    tm = _pick_tile(m)
    return pl.pallas_call(
        gemm_kernel,
        out_shape=jax.ShapeDtypeStruct((m, n), jnp.float32),
        grid_spec=pltpu.PrefetchScalarGridSpec(
            num_scalar_prefetch=0,
            grid=(m // tm,),
            in_specs=[pl.BlockSpec((tm, k), lambda i: (i, 0)),
                      pl.BlockSpec((k, n), lambda i: (0, 0))],
            out_specs=pl.BlockSpec((tm, n), lambda i: (i, 0))),
        compiler_params=pltpu.CompilerParams(
            dimension_semantics=("parallel",),
            vmem_limit_bytes=_VMEM_LIMIT),
    )(x, w_mat)


def bn_relu(x, gamma, beta):
    """x: (M, C) conv output (no bias -- it cancels).  Returns relu(BN(x))."""
    m, c = x.shape

    if m * c * 4 <= _SINGLE_PASS_BYTES:
        kernel = functools.partial(bn_relu_kernel, inv_m=1.0 / float(m))
        return pl.pallas_call(
            kernel,
            out_shape=jax.ShapeDtypeStruct((m, c), jnp.float32),
            grid_spec=pltpu.PrefetchScalarGridSpec(
                num_scalar_prefetch=0,
                grid=(1,),
                in_specs=[pl.BlockSpec((m, c), lambda i: (0, 0)),
                          pl.BlockSpec((1, c), lambda i: (0, 0)),
                          pl.BlockSpec((1, c), lambda i: (0, 0))],
                out_specs=pl.BlockSpec((m, c), lambda i: (0, 0))),
            compiler_params=pltpu.CompilerParams(
                dimension_semantics=("arbitrary",),
                vmem_limit_bytes=_VMEM_LIMIT),
        )(x, gamma.reshape(1, c), beta.reshape(1, c))

    # Tiled two-phase fallback (large shapes only).
    tm = _pick_tile(m)
    nblk = m // tm
    kernel = functools.partial(bn_relu_tiled_kernel, inv_m=1.0 / float(m))
    return pl.pallas_call(
        kernel,
        out_shape=jax.ShapeDtypeStruct((m, c), jnp.float32),
        grid_spec=pltpu.PrefetchScalarGridSpec(
            num_scalar_prefetch=0,
            grid=(2, nblk),
            in_specs=[pl.BlockSpec((tm, c), lambda ph, i: (i, 0)),
                      pl.BlockSpec((1, c), lambda ph, i: (0, 0)),
                      pl.BlockSpec((1, c), lambda ph, i: (0, 0))],
            # phase 0 never produces output; pin its block index to 0 so the
            # only write-backs that matter are the phase-1 ones.
            out_specs=pl.BlockSpec((tm, c), lambda ph, i: (i * ph, 0)),
            scratch_shapes=[pltpu.VMEM((1, c), jnp.float32),
                            pltpu.VMEM((1, c), jnp.float32),
                            pltpu.VMEM((1, c), jnp.float32),
                            pltpu.VMEM((1, c), jnp.float32)]),
        compiler_params=pltpu.CompilerParams(
            dimension_semantics=("arbitrary", "arbitrary"),
            vmem_limit_bytes=_VMEM_LIMIT),
    )(x, gamma.reshape(1, c), beta.reshape(1, c))


def bias_tanh(x2d, bias_row):
    m, c = x2d.shape
    tm = _pick_tile(m)
    return pl.pallas_call(
        bias_tanh_kernel,
        out_shape=jax.ShapeDtypeStruct((m, c), jnp.float32),
        grid_spec=pltpu.PrefetchScalarGridSpec(
            num_scalar_prefetch=0,
            grid=(m // tm,),
            in_specs=[pl.BlockSpec((tm, c), lambda i: (i, 0)),
                      pl.BlockSpec((1, c), lambda i: (0, 0))],
            out_specs=pl.BlockSpec((tm, c), lambda i: (i, 0))),
        compiler_params=pltpu.CompilerParams(
            dimension_semantics=("parallel",),
            vmem_limit_bytes=_VMEM_LIMIT),
    )(x2d, bias_row)


# ------------------------ ConvTranspose2d plumbing --------------------------

def _weight_to_matrix(w_t):
    """PyTorch ConvTranspose weight (Cin, Cout, k, k) -> (Cin, k*k*Cout).

    Input-side (adjoint) form: no spatial flip.  Output columns are ordered
    (kh, kw, cout) so the GEMM result reshapes directly to
    (N, Hin, Win, k, k, Cout) with channels on the last (lane) axis.
    """
    cin, cout, kh, kw = w_t.shape
    return w_t.transpose(0, 2, 3, 1).reshape(cin, kh * kw * cout)


def _col2im_s2k4p1(y6, n, hin, win, cout):
    """col2im for stride=2, k=4, padding=1 (pure slice/pad/add, no scatter).

    y6: (N, Hin, Win, kh, kw, Cout); output position oh = 2*i - 1 + kh, etc.
    Even output rows (oh=2m): kh=1 (i=m) + kh=3 (i=m-1);
    odd  output rows (oh=2m+1): kh=2 (i=m) + kh=0 (i=m+1).  Same for columns.
    """
    def sh_m1(t, ax):   # result[idx] = t[idx-1] (zero at idx=0)
        pad = jnp.zeros_like(jax.lax.slice_in_dim(t, 0, 1, axis=ax))
        return jnp.concatenate(
            [pad, jax.lax.slice_in_dim(t, 0, t.shape[ax] - 1, axis=ax)],
            axis=ax)

    def sh_p1(t, ax):   # result[idx] = t[idx+1] (zero at idx=last)
        pad = jnp.zeros_like(jax.lax.slice_in_dim(t, 0, 1, axis=ax))
        return jnp.concatenate(
            [jax.lax.slice_in_dim(t, 1, t.shape[ax], axis=ax), pad], axis=ax)

    # combine along rows (axis 1 = i, axis 3 = kh) -> (N, Hin, Win, kw, Cout)
    a_even = y6[:, :, :, 1] + sh_m1(y6[:, :, :, 3], 1)
    a_odd = y6[:, :, :, 2] + sh_p1(y6[:, :, :, 0], 1)

    def cols(a):        # combine along cols (axis 2 = j, axis 3 = kw)
        c_even = a[:, :, :, 1] + sh_m1(a[:, :, :, 3], 2)
        c_odd = a[:, :, :, 2] + sh_p1(a[:, :, :, 0], 2)
        return c_even, c_odd

    p00, p01 = cols(a_even)
    p10, p11 = cols(a_odd)
    row0 = jnp.stack([p00, p01], axis=3)          # (N, Hin, Win, 2, Cout)
    row1 = jnp.stack([p10, p11], axis=3)
    out = jnp.stack([row0, row1], axis=2)         # (N, Hin, 2, Win, 2, Cout)
    return out.reshape(n, 2 * hin, 2 * win, cout)


def _col2im(y, n, hin, win, k, cout, stride, padding):
    y6 = y.reshape(n, hin, win, k, k, cout)
    if stride == 1 and padding == 0 and hin == 1 and win == 1:
        return y6.reshape(n, k, k, cout)          # single input pixel
    if stride == 2 and k == 4 and padding == 1:
        return _col2im_s2k4p1(y6, n, hin, win, cout)
    raise NotImplementedError(
        "col2im only implemented for the (stride, k, pad) used by Generator")


def deconv_bn_relu(x_nhwc, w_t, gamma, beta, stride, padding):
    """ConvTranspose2d (bias omitted -- cancels under BN) + BN + ReLU."""
    n, hin, win, cin = x_nhwc.shape
    cout, k = w_t.shape[1], w_t.shape[2]
    h_out = (hin - 1) * stride - 2 * padding + k
    w_out = (win - 1) * stride - 2 * padding + k

    y = gemm(x_nhwc.reshape(n * hin * win, cin), _weight_to_matrix(w_t))
    conv = _col2im(y, n, hin, win, k, cout, stride, padding)
    act = bn_relu(conv.reshape(n * h_out * w_out, cout), gamma, beta)
    return act.reshape(n, h_out, w_out, cout)


def deconv_tanh(x_nhwc, w_t, b, stride, padding):
    n, hin, win, cin = x_nhwc.shape
    cout, k = w_t.shape[1], w_t.shape[2]
    h_out = (hin - 1) * stride - 2 * padding + k
    w_out = (win - 1) * stride - 2 * padding + k

    y = gemm(x_nhwc.reshape(n * hin * win, cin), _weight_to_matrix(w_t))
    conv = _col2im(y, n, hin, win, k, cout, stride, padding)

    total = n * h_out * w_out * cout
    if cout == 1 and total % 128 == 0:
        # lane-dense elementwise pass: (total/128, 128) instead of (M, 1)
        flat = conv.reshape(total // 128, 128)
        brow = jnp.broadcast_to(b.reshape(1, 1), (1, 128))
        out = bias_tanh(flat, brow)
    else:
        out = bias_tanh(conv.reshape(n * h_out * w_out, cout),
                        b.reshape(1, cout))
    return out.reshape(n, h_out, w_out, cout)


# ----------------------------- Generator model ------------------------------

def init_generator_params(key, zdim=20, image_size=16):
    """Deterministic synthetic parameters matching the module's shapes."""
    cfg = [
        # (cin, cout, stride, padding, has_bn)
        (zdim,           image_size * 8, 1, 0, True),
        (image_size * 8, image_size * 4, 2, 1, True),
        (image_size * 4, image_size * 2, 2, 1, True),
        (image_size * 2, image_size,     2, 1, True),
        (image_size,     1,              2, 1, False),
    ]
    params = []
    for (cin, cout, stride, pad, has_bn) in cfg:
        key, kw, kb, kg, kbe = jax.random.split(key, 5)
        w = 0.05 * jax.random.normal(kw, (cin, cout, 4, 4), jnp.float32)
        b = 0.01 * jax.random.normal(kb, (cout,), jnp.float32)
        if has_bn:
            gamma = 1.0 + 0.1 * jax.random.normal(kg, (cout,), jnp.float32)
            beta = 0.1 * jax.random.normal(kbe, (cout,), jnp.float32)
            params.append(dict(w=w, b=b, gamma=gamma, beta=beta,
                               stride=stride, padding=pad, bn=True))
        else:
            params.append(dict(w=w, b=b, stride=stride, padding=pad, bn=False))
    return params


def generator_forward(z_nchw, params):
    x = z_nchw.transpose(0, 2, 3, 1)              # NCHW -> NHWC, once
    for p in params:
        if p["bn"]:
            # p["b"] is intentionally unused: a per-channel constant added
            # before BatchNorm (batch stats) cancels exactly.
            x = deconv_bn_relu(x, p["w"], p["gamma"], p["beta"],
                               p["stride"], p["padding"])
        else:
            x = deconv_tanh(x, p["w"], p["b"], p["stride"], p["padding"])
    return x.transpose(0, 3, 1, 2)                # NHWC -> NCHW, once


# ---------------------------------- main -------------------------------------

if __name__ == "__main__":
    zdim = 20
    image_size = 16   # small channel width (PyTorch default is 64)
    batch = 2

    key = jax.random.PRNGKey(0)
    key, kz = jax.random.split(key)
    z = jax.random.normal(kz, (batch, zdim, 1, 1), jnp.float32)  # NCHW

    params = init_generator_params(key, zdim=zdim, image_size=image_size)

    fwd = jax.jit(lambda zz: generator_forward(zz, params))
    out = fwd(z)
    out = jax.block_until_ready(out)

    assert out.shape == (batch, 1, 64, 64), out.shape
    assert out.dtype == jnp.float32
    assert bool(jnp.all(jnp.isfinite(out)))
    assert bool(jnp.all(jnp.abs(out) <= 1.0 + 1e-6))   # tanh range
    print("KERNEL_OK")
</pallas_src>

<mosaic_0001>
module attributes {stable_mosaic.version = 11 : i64} {
  func.func @gemm_kernel(%arg0: i32, %arg1: memref<32x128xf32, #tpu.memory_space<vmem>>, %arg2: memref<128x1024xf32, #tpu.memory_space<vmem>>, %arg3: memref<32x1024xf32, #tpu.memory_space<vmem>>) attributes {dimension_semantics = [#tpu.dimension_semantics<parallel>], iteration_bounds = array<i64: 1>, scalar_prefetch = 0 : i64, scratch_operands = 0 : i64, tpu.core_type = #tpu.core_type<tc>, window_params = [{transform_indices = @transform_0, window_bounds = array<i64: 32, 128>}, {pipeline_mode = #tpu.pipeline_mode<synchronous>, transform_indices = @transform_1, window_bounds = array<i64: 128, 1024>}, {transform_indices = @transform_2, window_bounds = array<i64: 32, 1024>}]} {
    %c0 = arith.constant 0 : index
    %c0_0 = arith.constant 0 : index
    %0 = vector.load %arg1[%c0, %c0_0] : memref<32x128xf32, #tpu.memory_space<vmem>>, vector<32x128xf32>
    %c0_1 = arith.constant 0 : index
    %c0_2 = arith.constant 0 : index
    %1 = vector.load %arg2[%c0_1, %c0_2] : memref<128x1024xf32, #tpu.memory_space<vmem>>, vector<128x1024xf32>
    %cst = arith.constant dense<0.000000e+00> : vector<32x1024xf32>
    %2 = tpu.matmul %0, %1, %cst {dimension_numbers = #tpu.dot_dimension_numbers<[1], [0], [0], [1], [0, 0, 1, 1], [], []>} : vector<32x128xf32>, vector<128x1024xf32>, vector<32x1024xf32> -> vector<32x1024xf32>
    %c0_3 = arith.constant 0 : index
    %c0_4 = arith.constant 0 : index
    %3 = vector.load %arg3[%c0_3, %c0_4] : memref<32x1024xf32, #tpu.memory_space<vmem>>, vector<32x1024xf32>
    tpu.vector_store %arg3[%c0_3, %c0_4], %2 {strides = array<i32>} : memref<32x1024xf32, #tpu.memory_space<vmem>>, vector<32x1024xf32>,
    return
  }
  func.func @transform_0(%arg0: i32) -> (i32, i32) {
    %c0_i32 = arith.constant 0 : i32
    %c0_i32_0 = arith.constant 0 : i32
    return %arg0, %c0_i32 : i32, i32
  }
  func.func @transform_1(%arg0: i32) -> (i32, i32) {
    %c0_i32 = arith.constant 0 : i32
    %c0_i32_0 = arith.constant 0 : i32
    %c0_i32_1 = arith.constant 0 : i32
    return %c0_i32, %c0_i32_0 : i32, i32
  }
  func.func @transform_2(%arg0: i32) -> (i32, i32) {
    %c0_i32 = arith.constant 0 : i32
    %c0_i32_0 = arith.constant 0 : i32
    return %arg0, %c0_i32 : i32, i32
  }
}

module attributes {stable_mosaic.version = 11 : i64} {
  func.func @gemm_kernel(%arg0: i32, %arg1: memref<2x20xf32, #tpu.memory_space<vmem>>, %arg2: memref<20x2048xf32, #tpu.memory_space<vmem>>, %arg3: memref<2x2048xf32, #tpu.memory_space<vmem>>) attributes {dimension_semantics = [#tpu.dimension_semantics<parallel>], iteration_bounds = array<i64: 1>, scalar_prefetch = 0 : i64, scratch_operands = 0 : i64, tpu.core_type = #tpu.core_type<tc>, window_params = [{transform_indices = @transform_0, window_bounds = array<i64: 2, 20>}, {pipeline_mode = #tpu.pipeline_mode<synchronous>, transform_indices = @transform_1, window_bounds = array<i64: 20, 2048>}, {transform_indices = @transform_2, window_bounds = array<i64: 2, 2048>}]} {
    %c0 = arith.constant 0 : index
    %c0_0 = arith.constant 0 : index
    %0 = vector.load %arg1[%c0, %c0_0] : memref<2x20xf32, #tpu.memory_space<vmem>>, vector<2x20xf32>
    %c0_1 = arith.constant 0 : index
    %c0_2 = arith.constant 0 : index
    %1 = vector.load %arg2[%c0_1, %c0_2] : memref<20x2048xf32, #tpu.memory_space<vmem>>, vector<20x2048xf32>
    %cst = arith.constant dense<0.000000e+00> : vector<2x2048xf32>
    %2 = tpu.matmul %0, %1, %cst {dimension_numbers = #tpu.dot_dimension_numbers<[1], [0], [0], [1], [0, 0, 1, 1], [], []>} : vector<2x20xf32>, vector<20x2048xf32>, vector<2x2048xf32> -> vector<2x2048xf32>
    %c0_3 = arith.constant 0 : index
    %c0_4 = arith.constant 0 : index
    %3 = vector.load %arg3[%c0_3, %c0_4] : memref<2x2048xf32, #tpu.memory_space<vmem>>, vector<2x2048xf32>
    tpu.vector_store %arg3[%c0_3, %c0_4], %2 {strides = array<i32>} : memref<2x2048xf32, #tpu.memory_space<vmem>>, vector<2x2048xf32>,
    return
  }
  func.func @transform_0(%arg0: i32) -> (i32, i32) {
    %c0_i32 = arith.constant 0 : i32
    %c0_i32_0 = arith.constant 0 : i32
    return %arg0, %c0_i32 : i32, i32
  }
  func.func @transform_1(%arg0: i32) -> (i32, i32) {
    %c0_i32 = arith.constant 0 : i32
    %c0_i32_0 = arith.constant 0 : i32
    %c0_i32_1 = arith.constant 0 : i32
    return %c0_i32, %c0_i32_0 : i32, i32
  }
  func.func @transform_2(%arg0: i32) -> (i32, i32) {
    %c0_i32 = arith.constant 0 : i32
    %c0_i32_0 = arith.constant 0 : i32
    return %arg0, %c0_i32 : i32, i32
  }
}

module attributes {stable_mosaic.version = 11 : i64} {
  func.func @bn_relu_kernel(%arg0: i32, %arg1: memref<32x128xf32, #tpu.memory_space<vmem>>, %arg2: memref<1x128xf32, #tpu.memory_space<vmem>>, %arg3: memref<1x128xf32, #tpu.memory_space<vmem>>, %arg4: memref<32x128xf32, #tpu.memory_space<vmem>>) attributes {dimension_semantics = [#tpu.dimension_semantics<arbitrary>], iteration_bounds = array<i64: 1>, scalar_prefetch = 0 : i64, scratch_operands = 0 : i64, tpu.core_type = #tpu.core_type<tc>, window_params = [{pipeline_mode = #tpu.pipeline_mode<synchronous>, transform_indices = @transform_0, window_bounds = array<i64: 32, 128>}, {pipeline_mode = #tpu.pipeline_mode<synchronous>, transform_indices = @transform_1, window_bounds = array<i64: 1, 128>}, {pipeline_mode = #tpu.pipeline_mode<synchronous>, transform_indices = @transform_2, window_bounds = array<i64: 1, 128>}, {pipeline_mode = #tpu.pipeline_mode<synchronous>, transform_indices = @transform_3, window_bounds = array<i64: 32, 128>}]} {
    %c0 = arith.constant 0 : index
    %c0_0 = arith.constant 0 : index
    %0 = vector.load %arg1[%c0, %c0_0] : memref<32x128xf32, #tpu.memory_space<vmem>>, vector<32x128xf32>
    %cst = arith.constant dense<0.000000e+00> : vector<128xf32>
    %1 = vector.multi_reduction <add>, %0, %cst [0] : vector<32x128xf32> to vector<128xf32>
    %2 = vector.shape_cast %1 : vector<128xf32> to vector<1x128xf32>
    %3 = arith.mulf %0, %0 : vector<32x128xf32>
    %cst_1 = arith.constant dense<0.000000e+00> : vector<128xf32>
    %4 = vector.multi_reduction <add>, %3, %cst_1 [0] : vector<32x128xf32> to vector<128xf32>
    %5 = vector.shape_cast %4 : vector<128xf32> to vector<1x128xf32>
    %cst_2 = arith.constant 3.125000e-02 : f32
    %6 = vector.broadcast %cst_2 : f32 to vector<1x128xf32>
    %7 = arith.mulf %2, %6 : vector<1x128xf32>
    %cst_3 = arith.constant 3.125000e-02 : f32
    %8 = vector.broadcast %cst_3 : f32 to vector<1x128xf32>
    %9 = arith.mulf %5, %8 : vector<1x128xf32>
    %10 = arith.mulf %7, %7 : vector<1x128xf32>
    %11 = arith.subf %9, %10 : vector<1x128xf32>
    %c0_4 = arith.constant 0 : index
    %c0_5 = arith.constant 0 : index
    %12 = vector.load %arg2[%c0_4, %c0_5] : memref<1x128xf32, #tpu.memory_space<vmem>>, vector<1x128xf32>
    %cst_6 = arith.constant 9.99999974E-6 : f32
    %13 = vector.broadcast %cst_6 : f32 to vector<1x128xf32>
    %14 = arith.addf %11, %13 : vector<1x128xf32>
    %15 = math.rsqrt %14 : vector<1x128xf32>
    %16 = arith.mulf %12, %15 : vector<1x128xf32>
    %c0_7 = arith.constant 0 : index
    %c0_8 = arith.constant 0 : index
    %17 = vector.load %arg3[%c0_7, %c0_8] : memref<1x128xf32, #tpu.memory_space<vmem>>, vector<1x128xf32>
    %18 = arith.mulf %7, %16 : vector<1x128xf32>
    %19 = arith.subf %17, %18 : vector<1x128xf32>
    %20 = vector.broadcast %16 : vector<1x128xf32> to vector<32x128xf32>
    %21 = arith.mulf %0, %20 : vector<32x128xf32>
    %22 = vector.broadcast %19 : vector<1x128xf32> to vector<32x128xf32>
    %23 = arith.addf %21, %22 : vector<32x128xf32>
    %cst_9 = arith.constant 0.000000e+00 : f32
    %24 = vector.broadcast %cst_9 : f32 to vector<32x128xf32>
    %25 = arith.maximumf %23, %24 : vector<32x128xf32>
    %c0_10 = arith.constant 0 : index
    %c0_11 = arith.constant 0 : index
    %26 = vector.load %arg4[%c0_10, %c0_11] : memref<32x128xf32, #tpu.memory_space<vmem>>, vector<32x128xf32>
    tpu.vector_store %arg4[%c0_10, %c0_11], %25 {strides = array<i32>} : memref<32x128xf32, #tpu.memory_space<vmem>>, vector<32x128xf32>,
    return
  }
  func.func @transform_0(%arg0: i32) -> (i32, i32) {
    %c0_i32 = arith.constant 0 : i32
    %c0_i32_0 = arith.constant 0 : i32
    %c0_i32_1 = arith.constant 0 : i32
    return %c0_i32, %c0_i32_0 : i32, i32
  }
  func.func @transform_1(%arg0: i32) -> (i32, i32) {
    %c0_i32 = arith.constant 0 : i32
    %c0_i32_0 = arith.constant 0 : i32
    %c0_i32_1 = arith.constant 0 : i32
    return %c0_i32, %c0_i32_0 : i32, i32
  }
  func.func @transform_2(%arg0: i32) -> (i32, i32) {
    %c0_i32 = arith.constant 0 : i32
    %c0_i32_0 = arith.constant 0 : i32
    %c0_i32_1 = arith.constant 0 : i32
    return %c0_i32, %c0_i32_0 : i32, i32
  }
  func.func @transform_3(%arg0: i32) -> (i32, i32) {
    %c0_i32 = arith.constant 0 : i32
    %c0_i32_0 = arith.constant 0 : i32
    %c0_i32_1 = arith.constant 0 : i32
    return %c0_i32, %c0_i32_0 : i32, i32
  }
}

module attributes {stable_mosaic.version = 11 : i64} {
  func.func @gemm_kernel(%arg0: i32, %arg1: memref<128x64xf32, #tpu.memory_space<vmem>>, %arg2: memref<64x512xf32, #tpu.memory_space<vmem>>, %arg3: memref<128x512xf32, #tpu.memory_space<vmem>>) attributes {dimension_semantics = [#tpu.dimension_semantics<parallel>], iteration_bounds = array<i64: 1>, scalar_prefetch = 0 : i64, scratch_operands = 0 : i64, tpu.core_type = #tpu.core_type<tc>, window_params = [{transform_indices = @transform_0, window_bounds = array<i64: 128, 64>}, {pipeline_mode = #tpu.pipeline_mode<synchronous>, transform_indices = @transform_1, window_bounds = array<i64: 64, 512>}, {transform_indices = @transform_2, window_bounds = array<i64: 128, 512>}]} {
    %c0 = arith.constant 0 : index
    %c0_0 = arith.constant 0 : index
    %0 = vector.load %arg1[%c0, %c0_0] : memref<128x64xf32, #tpu.memory_space<vmem>>, vector<128x64xf32>
    %c0_1 = arith.constant 0 : index
    %c0_2 = arith.constant 0 : index
    %1 = vector.load %arg2[%c0_1, %c0_2] : memref<64x512xf32, #tpu.memory_space<vmem>>, vector<64x512xf32>
    %cst = arith.constant dense<0.000000e+00> : vector<128x512xf32>
    %2 = tpu.matmul %0, %1, %cst {dimension_numbers = #tpu.dot_dimension_numbers<[1], [0], [0], [1], [0, 0, 1, 1], [], []>} : vector<128x64xf32>, vector<64x512xf32>, vector<128x512xf32> -> vector<128x512xf32>
    %c0_3 = arith.constant 0 : index
    %c0_4 = arith.constant 0 : index
    %3 = vector.load %arg3[%c0_3, %c0_4] : memref<128x512xf32, #tpu.memory_space<vmem>>, vector<128x512xf32>
    tpu.vector_store %arg3[%c0_3, %c0_4], %2 {strides = array<i32>} : memref<128x512xf32, #tpu.memory_space<vmem>>, vector<128x512xf32>,
    return
  }
  func.func @transform_0(%arg0: i32) -> (i32, i32) {
    %c0_i32 = arith.constant 0 : i32
    %c0_i32_0 = arith.constant 0 : i32
    return %arg0, %c0_i32 : i32, i32
  }
  func.func @transform_1(%arg0: i32) -> (i32, i32) {
    %c0_i32 = arith.constant 0 : i32
    %c0_i32_0 = arith.constant 0 : i32
    %c0_i32_1 = arith.constant 0 : i32
    return %c0_i32, %c0_i32_0 : i32, i32
  }
  func.func @transform_2(%arg0: i32) -> (i32, i32) {
    %c0_i32 = arith.constant 0 : i32
    %c0_i32_0 = arith.constant 0 : i32
    return %arg0, %c0_i32 : i32, i32
  }
}

module attributes {stable_mosaic.version = 11 : i64} {
  func.func @bn_relu_kernel(%arg0: i32, %arg1: memref<128x64xf32, #tpu.memory_space<vmem>>, %arg2: memref<1x64xf32, #tpu.memory_space<vmem>>, %arg3: memref<1x64xf32, #tpu.memory_space<vmem>>, %arg4: memref<128x64xf32, #tpu.memory_space<vmem>>) attributes {dimension_semantics = [#tpu.dimension_semantics<arbitrary>], iteration_bounds = array<i64: 1>, scalar_prefetch = 0 : i64, scratch_operands = 0 : i64, tpu.core_type = #tpu.core_type<tc>, window_params = [{pipeline_mode = #tpu.pipeline_mode<synchronous>, transform_indices = @transform_0, window_bounds = array<i64: 128, 64>}, {pipeline_mode = #tpu.pipeline_mode<synchronous>, transform_indices = @transform_1, window_bounds = array<i64: 1, 64>}, {pipeline_mode = #tpu.pipeline_mode<synchronous>, transform_indices = @transform_2, window_bounds = array<i64: 1, 64>}, {pipeline_mode = #tpu.pipeline_mode<synchronous>, transform_indices = @transform_3, window_bounds = array<i64: 128, 64>}]} {
    %c0 = arith.constant 0 : index
    %c0_0 = arith.constant 0 : index
    %0 = vector.load %arg1[%c0, %c0_0] : memref<128x64xf32, #tpu.memory_space<vmem>>, vector<128x64xf32>
    %cst = arith.constant dense<0.000000e+00> : vector<64xf32>
    %1 = vector.multi_reduction <add>, %0, %cst [0] : vector<128x64xf32> to vector<64xf32>
    %2 = vector.shape_cast %1 : vector<64xf32> to vector<1x64xf32>
    %3 = arith.mulf %0, %0 : vector<128x64xf32>
    %cst_1 = arith.constant dense<0.000000e+00> : vector<64xf32>
    %4 = vector.multi_reduction <add>, %3, %cst_1 [0] : vector<128x64xf32> to vector<64xf32>
    %5 = vector.shape_cast %4 : vector<64xf32> to vector<1x64xf32>
    %cst_2 = arith.constant 7.812500e-03 : f32
    %6 = vector.broadcast %cst_2 : f32 to vector<1x64xf32>
    %7 = arith.mulf %2, %6 : vector<1x64xf32>
    %cst_3 = arith.constant 7.812500e-03 : f32
    %8 = vector.broadcast %cst_3 : f32 to vector<1x64xf32>
    %9 = arith.mulf %5, %8 : vector<1x64xf32>
    %10 = arith.mulf %7, %7 : vector<1x64xf32>
    %11 = arith.subf %9, %10 : vector<1x64xf32>
    %c0_4 = arith.constant 0 : index
    %c0_5 = arith.constant 0 : index
    %12 = vector.load %arg2[%c0_4, %c0_5] : memref<1x64xf32, #tpu.memory_space<vmem>>, vector<1x64xf32>
    %cst_6 = arith.constant 9.99999974E-6 : f32
    %13 = vector.broadcast %cst_6 : f32 to vector<1x64xf32>
    %14 = arith.addf %11, %13 : vector<1x64xf32>
    %15 = math.rsqrt %14 : vector<1x64xf32>
    %16 = arith.mulf %12, %15 : vector<1x64xf32>
    %c0_7 = arith.constant 0 : index
    %c0_8 = arith.constant 0 : index
    %17 = vector.load %arg3[%c0_7, %c0_8] : memref<1x64xf32, #tpu.memory_space<vmem>>, vector<1x64xf32>
    %18 = arith.mulf %7, %16 : vector<1x64xf32>
    %19 = arith.subf %17, %18 : vector<1x64xf32>
    %20 = vector.broadcast %16 : vector<1x64xf32> to vector<128x64xf32>
    %21 = arith.mulf %0, %20 : vector<128x64xf32>
    %22 = vector.broadcast %19 : vector<1x64xf32> to vector<128x64xf32>
    %23 = arith.addf %21, %22 : vector<128x64xf32>
    %cst_9 = arith.constant 0.000000e+00 : f32
    %24 = vector.broadcast %cst_9 : f32 to vector<128x64xf32>
    %25 = arith.maximumf %23, %24 : vector<128x64xf32>
    %c0_10 = arith.constant 0 : index
    %c0_11 = arith.constant 0 : index
    %26 = vector.load %arg4[%c0_10, %c0_11] : memref<128x64xf32, #tpu.memory_space<vmem>>, vector<128x64xf32>
    tpu.vector_store %arg4[%c0_10, %c0_11], %25 {strides = array<i32>} : memref<128x64xf32, #tpu.memory_space<vmem>>, vector<128x64xf32>,
    return
  }
  func.func @transform_0(%arg0: i32) -> (i32, i32) {
    %c0_i32 = arith.constant 0 : i32
    %c0_i32_0 = arith.constant 0 : i32
    %c0_i32_1 = arith.constant 0 : i32
    return %c0_i32, %c0_i32_0 : i32, i32
  }
  func.func @transform_1(%arg0: i32) -> (i32, i32) {
    %c0_i32 = arith.constant 0 : i32
    %c0_i32_0 = arith.constant 0 : i32
    %c0_i32_1 = arith.constant 0 : i32
    return %c0_i32, %c0_i32_0 : i32, i32
  }
  func.func @transform_2(%arg0: i32) -> (i32, i32) {
    %c0_i32 = arith.constant 0 : i32
    %c0_i32_0 = arith.constant 0 : i32
    %c0_i32_1 = arith.constant 0 : i32
    return %c0_i32, %c0_i32_0 : i32, i32
  }
  func.func @transform_3(%arg0: i32) -> (i32, i32) {
    %c0_i32 = arith.constant 0 : i32
    %c0_i32_0 = arith.constant 0 : i32
    %c0_i32_1 = arith.constant 0 : i32
    return %c0_i32, %c0_i32_0 : i32, i32
  }
}

module attributes {stable_mosaic.version = 11 : i64} {
  func.func @bn_relu_kernel(%arg0: i32, %arg1: memref<512x32xf32, #tpu.memory_space<vmem>>, %arg2: memref<1x32xf32, #tpu.memory_space<vmem>>, %arg3: memref<1x32xf32, #tpu.memory_space<vmem>>, %arg4: memref<512x32xf32, #tpu.memory_space<vmem>>) attributes {dimension_semantics = [#tpu.dimension_semantics<arbitrary>], iteration_bounds = array<i64: 1>, scalar_prefetch = 0 : i64, scratch_operands = 0 : i64, tpu.core_type = #tpu.core_type<tc>, window_params = [{pipeline_mode = #tpu.pipeline_mode<synchronous>, transform_indices = @transform_0, window_bounds = array<i64: 512, 32>}, {pipeline_mode = #tpu.pipeline_mode<synchronous>, transform_indices = @transform_1, window_bounds = array<i64: 1, 32>}, {pipeline_mode = #tpu.pipeline_mode<synchronous>, transform_indices = @transform_2, window_bounds = array<i64: 1, 32>}, {pipeline_mode = #tpu.pipeline_mode<synchronous>, transform_indices = @transform_3, window_bounds = array<i64: 512, 32>}]} {
    %c0 = arith.constant 0 : index
    %c0_0 = arith.constant 0 : index
    %0 = vector.load %arg1[%c0, %c0_0] : memref<512x32xf32, #tpu.memory_space<vmem>>, vector<512x32xf32>
    %cst = arith.constant dense<0.000000e+00> : vector<32xf32>
    %1 = vector.multi_reduction <add>, %0, %cst [0] : vector<512x32xf32> to vector<32xf32>
    %2 = vector.shape_cast %1 : vector<32xf32> to vector<1x32xf32>
    %3 = arith.mulf %0, %0 : vector<512x32xf32>
    %cst_1 = arith.constant dense<0.000000e+00> : vector<32xf32>
    %4 = vector.multi_reduction <add>, %3, %cst_1 [0] : vector<512x32xf32> to vector<32xf32>
    %5 = vector.shape_cast %4 : vector<32xf32> to vector<1x32xf32>
    %cst_2 = arith.constant 0.001953125 : f32
    %6 = vector.broadcast %cst_2 : f32 to vector<1x32xf32>
    %7 = arith.mulf %2, %6 : vector<1x32xf32>
    %cst_3 = arith.constant 0.001953125 : f32
    %8 = vector.broadcast %cst_3 : f32 to vector<1x32xf32>
    %9 = arith.mulf %5, %8 : vector<1x32xf32>
    %10 = arith.mulf %7, %7 : vector<1x32xf32>
    %11 = arith.subf %9, %10 : vector<1x32xf32>
    %c0_4 = arith.constant 0 : index
    %c0_5 = arith.constant 0 : index
    %12 = vector.load %arg2[%c0_4, %c0_5] : memref<1x32xf32, #tpu.memory_space<vmem>>, vector<1x32xf32>
    %cst_6 = arith.constant 9.99999974E-6 : f32
    %13 = vector.broadcast %cst_6 : f32 to vector<1x32xf32>
    %14 = arith.addf %11, %13 : vector<1x32xf32>
    %15 = math.rsqrt %14 : vector<1x32xf32>
    %16 = arith.mulf %12, %15 : vector<1x32xf32>
    %c0_7 = arith.constant 0 : index
    %c0_8 = arith.constant 0 : index
    %17 = vector.load %arg3[%c0_7, %c0_8] : memref<1x32xf32, #tpu.memory_space<vmem>>, vector<1x32xf32>
    %18 = arith.mulf %7, %16 : vector<1x32xf32>
    %19 = arith.subf %17, %18 : vector<1x32xf32>
    %20 = vector.broadcast %16 : vector<1x32xf32> to vector<512x32xf32>
    %21 = arith.mulf %0, %20 : vector<512x32xf32>
    %22 = vector.broadcast %19 : vector<1x32xf32> to vector<512x32xf32>
    %23 = arith.addf %21, %22 : vector<512x32xf32>
    %cst_9 = arith.constant 0.000000e+00 : f32
    %24 = vector.broadcast %cst_9 : f32 to vector<512x32xf32>
    %25 = arith.maximumf %23, %24 : vector<512x32xf32>
    %c0_10 = arith.constant 0 : index
    %c0_11 = arith.constant 0 : index
    %26 = vector.load %arg4[%c0_10, %c0_11] : memref<512x32xf32, #tpu.memory_space<vmem>>, vector<512x32xf32>
    tpu.vector_store %arg4[%c0_10, %c0_11], %25 {strides = array<i32>} : memref<512x32xf32, #tpu.memory_space<vmem>>, vector<512x32xf32>,
    return
  }
  func.func @transform_0(%arg0: i32) -> (i32, i32) {
    %c0_i32 = arith.constant 0 : i32
    %c0_i32_0 = arith.constant 0 : i32
    %c0_i32_1 = arith.constant 0 : i32
    return %c0_i32, %c0_i32_0 : i32, i32
  }
  func.func @transform_1(%arg0: i32) -> (i32, i32) {
    %c0_i32 = arith.constant 0 : i32
    %c0_i32_0 = arith.constant 0 : i32
    %c0_i32_1 = arith.constant 0 : i32
    return %c0_i32, %c0_i32_0 : i32, i32
  }
  func.func @transform_2(%arg0: i32) -> (i32, i32) {
    %c0_i32 = arith.constant 0 : i32
    %c0_i32_0 = arith.constant 0 : i32
    %c0_i32_1 = arith.constant 0 : i32
    return %c0_i32, %c0_i32_0 : i32, i32
  }
  func.func @transform_3(%arg0: i32) -> (i32, i32) {
    %c0_i32 = arith.constant 0 : i32
    %c0_i32_0 = arith.constant 0 : i32
    %c0_i32_1 = arith.constant 0 : i32
    return %c0_i32, %c0_i32_0 : i32, i32
  }
}

module attributes {stable_mosaic.version = 11 : i64} {
  func.func @gemm_kernel(%arg0: i32, %arg1: memref<512x32xf32, #tpu.memory_space<vmem>>, %arg2: memref<32x256xf32, #tpu.memory_space<vmem>>, %arg3: memref<512x256xf32, #tpu.memory_space<vmem>>) attributes {dimension_semantics = [#tpu.dimension_semantics<parallel>], iteration_bounds = array<i64: 1>, scalar_prefetch = 0 : i64, scratch_operands = 0 : i64, tpu.core_type = #tpu.core_type<tc>, window_params = [{transform_indices = @transform_0, window_bounds = array<i64: 512, 32>}, {pipeline_mode = #tpu.pipeline_mode<synchronous>, transform_indices = @transform_1, window_bounds = array<i64: 32, 256>}, {transform_indices = @transform_2, window_bounds = array<i64: 512, 256>}]} {
    %c0 = arith.constant 0 : index
    %c0_0 = arith.constant 0 : index
    %0 = vector.load %arg1[%c0, %c0_0] : memref<512x32xf32, #tpu.memory_space<vmem>>, vector<512x32xf32>
    %c0_1 = arith.constant 0 : index
    %c0_2 = arith.constant 0 : index
    %1 = vector.load %arg2[%c0_1, %c0_2] : memref<32x256xf32, #tpu.memory_space<vmem>>, vector<32x256xf32>
    %cst = arith.constant dense<0.000000e+00> : vector<512x256xf32>
    %2 = tpu.matmul %0, %1, %cst {dimension_numbers = #tpu.dot_dimension_numbers<[1], [0], [0], [1], [0, 0, 1, 1], [], []>} : vector<512x32xf32>, vector<32x256xf32>, vector<512x256xf32> -> vector<512x256xf32>
    %c0_3 = arith.constant 0 : index
    %c0_4 = arith.constant 0 : index
    %3 = vector.load %arg3[%c0_3, %c0_4] : memref<512x256xf32, #tpu.memory_space<vmem>>, vector<512x256xf32>
    tpu.vector_store %arg3[%c0_3, %c0_4], %2 {strides = array<i32>} : memref<512x256xf32, #tpu.memory_space<vmem>>, vector<512x256xf32>,
    return
  }
  func.func @transform_0(%arg0: i32) -> (i32, i32) {
    %c0_i32 = arith.constant 0 : i32
    %c0_i32_0 = arith.constant 0 : i32
    return %arg0, %c0_i32 : i32, i32
  }
  func.func @transform_1(%arg0: i32) -> (i32, i32) {
    %c0_i32 = arith.constant 0 : i32
    %c0_i32_0 = arith.constant 0 : i32
    %c0_i32_1 = arith.constant 0 : i32
    return %c0_i32, %c0_i32_0 : i32, i32
  }
  func.func @transform_2(%arg0: i32) -> (i32, i32) {
    %c0_i32 = arith.constant 0 : i32
    %c0_i32_0 = arith.constant 0 : i32
    return %arg0, %c0_i32 : i32, i32
  }
}

module attributes {stable_mosaic.version = 11 : i64} {
  func.func @bn_relu_kernel(%arg0: i32, %arg1: memref<2048x16xf32, #tpu.memory_space<vmem>>, %arg2: memref<1x16xf32, #tpu.memory_space<vmem>>, %arg3: memref<1x16xf32, #tpu.memory_space<vmem>>, %arg4: memref<2048x16xf32, #tpu.memory_space<vmem>>) attributes {dimension_semantics = [#tpu.dimension_semantics<arbitrary>], iteration_bounds = array<i64: 1>, scalar_prefetch = 0 : i64, scratch_operands = 0 : i64, tpu.core_type = #tpu.core_type<tc>, window_params = [{pipeline_mode = #tpu.pipeline_mode<synchronous>, transform_indices = @transform_0, window_bounds = array<i64: 2048, 16>}, {pipeline_mode = #tpu.pipeline_mode<synchronous>, transform_indices = @transform_1, window_bounds = array<i64: 1, 16>}, {pipeline_mode = #tpu.pipeline_mode<synchronous>, transform_indices = @transform_2, window_bounds = array<i64: 1, 16>}, {pipeline_mode = #tpu.pipeline_mode<synchronous>, transform_indices = @transform_3, window_bounds = array<i64: 2048, 16>}]} {
    %c0 = arith.constant 0 : index
    %c0_0 = arith.constant 0 : index
    %0 = vector.load %arg1[%c0, %c0_0] : memref<2048x16xf32, #tpu.memory_space<vmem>>, vector<2048x16xf32>
    %cst = arith.constant dense<0.000000e+00> : vector<16xf32>
    %1 = vector.multi_reduction <add>, %0, %cst [0] : vector<2048x16xf32> to vector<16xf32>
    %2 = vector.shape_cast %1 : vector<16xf32> to vector<1x16xf32>
    %3 = arith.mulf %0, %0 : vector<2048x16xf32>
    %cst_1 = arith.constant dense<0.000000e+00> : vector<16xf32>
    %4 = vector.multi_reduction <add>, %3, %cst_1 [0] : vector<2048x16xf32> to vector<16xf32>
    %5 = vector.shape_cast %4 : vector<16xf32> to vector<1x16xf32>
    %cst_2 = arith.constant 4.8828125E-4 : f32
    %6 = vector.broadcast %cst_2 : f32 to vector<1x16xf32>
    %7 = arith.mulf %2, %6 : vector<1x16xf32>
    %cst_3 = arith.constant 4.8828125E-4 : f32
    %8 = vector.broadcast %cst_3 : f32 to vector<1x16xf32>
    %9 = arith.mulf %5, %8 : vector<1x16xf32>
    %10 = arith.mulf %7, %7 : vector<1x16xf32>
    %11 = arith.subf %9, %10 : vector<1x16xf32>
    %c0_4 = arith.constant 0 : index
    %c0_5 = arith.constant 0 : index
    %12 = vector.load %arg2[%c0_4, %c0_5] : memref<1x16xf32, #tpu.memory_space<vmem>>, vector<1x16xf32>
    %cst_6 = arith.constant 9.99999974E-6 : f32
    %13 = vector.broadcast %cst_6 : f32 to vector<1x16xf32>
    %14 = arith.addf %11, %13 : vector<1x16xf32>
    %15 = math.rsqrt %14 : vector<1x16xf32>
    %16 = arith.mulf %12, %15 : vector<1x16xf32>
    %c0_7 = arith.constant 0 : index
    %c0_8 = arith.constant 0 : index
    %17 = vector.load %arg3[%c0_7, %c0_8] : memref<1x16xf32, #tpu.memory_space<vmem>>, vector<1x16xf32>
    %18 = arith.mulf %7, %16 : vector<1x16xf32>
    %19 = arith.subf %17, %18 : vector<1x16xf32>
    %20 = vector.broadcast %16 : vector<1x16xf32> to vector<2048x16xf32>
    %21 = arith.mulf %0, %20 : vector<2048x16xf32>
    %22 = vector.broadcast %19 : vector<1x16xf32> to vector<2048x16xf32>
    %23 = arith.addf %21, %22 : vector<2048x16xf32>
    %cst_9 = arith.constant 0.000000e+00 : f32
    %24 = vector.broadcast %cst_9 : f32 to vector<2048x16xf32>
    %25 = arith.maximumf %23, %24 : vector<2048x16xf32>
    %c0_10 = arith.constant 0 : index
    %c0_11 = arith.constant 0 : index
    %26 = vector.load %arg4[%c0_10, %c0_11] : memref<2048x16xf32, #tpu.memory_space<vmem>>, vector<2048x16xf32>
    tpu.vector_store %arg4[%c0_10, %c0_11], %25 {strides = array<i32>} : memref<2048x16xf32, #tpu.memory_space<vmem>>, vector<2048x16xf32>,
    return
  }
  func.func @transform_0(%arg0: i32) -> (i32, i32) {
    %c0_i32 = arith.constant 0 : i32
    %c0_i32_0 = arith.constant 0 : i32
    %c0_i32_1 = arith.constant 0 : i32
    return %c0_i32, %c0_i32_0 : i32, i32
  }
  func.func @transform_1(%arg0: i32) -> (i32, i32) {
    %c0_i32 = arith.constant 0 : i32
    %c0_i32_0 = arith.constant 0 : i32
    %c0_i32_1 = arith.constant 0 : i32
    return %c0_i32, %c0_i32_0 : i32, i32
  }
  func.func @transform_2(%arg0: i32) -> (i32, i32) {
    %c0_i32 = arith.constant 0 : i32
    %c0_i32_0 = arith.constant 0 : i32
    %c0_i32_1 = arith.constant 0 : i32
    return %c0_i32, %c0_i32_0 : i32, i32
  }
  func.func @transform_3(%arg0: i32) -> (i32, i32) {
    %c0_i32 = arith.constant 0 : i32
    %c0_i32_0 = arith.constant 0 : i32
    %c0_i32_1 = arith.constant 0 : i32
    return %c0_i32, %c0_i32_0 : i32, i32
  }
}

module attributes {stable_mosaic.version = 11 : i64} {
  func.func @gemm_kernel(%arg0: i32, %arg1: memref<2048x16xf32, #tpu.memory_space<vmem>>, %arg2: memref<16x16xf32, #tpu.memory_space<vmem>>, %arg3: memref<2048x16xf32, #tpu.memory_space<vmem>>) attributes {dimension_semantics = [#tpu.dimension_semantics<parallel>], iteration_bounds = array<i64: 1>, scalar_prefetch = 0 : i64, scratch_operands = 0 : i64, tpu.core_type = #tpu.core_type<tc>, window_params = [{transform_indices = @transform_0, window_bounds = array<i64: 2048, 16>}, {pipeline_mode = #tpu.pipeline_mode<synchronous>, transform_indices = @transform_1, window_bounds = array<i64: 16, 16>}, {transform_indices = @transform_2, window_bounds = array<i64: 2048, 16>}]} {
    %c0 = arith.constant 0 : index
    %c0_0 = arith.constant 0 : index
    %0 = vector.load %arg1[%c0, %c0_0] : memref<2048x16xf32, #tpu.memory_space<vmem>>, vector<2048x16xf32>
    %c0_1 = arith.constant 0 : index
    %c0_2 = arith.constant 0 : index
    %1 = vector.load %arg2[%c0_1, %c0_2] : memref<16x16xf32, #tpu.memory_space<vmem>>, vector<16x16xf32>
    %cst = arith.constant dense<0.000000e+00> : vector<2048x16xf32>
    %2 = tpu.matmul %0, %1, %cst {dimension_numbers = #tpu.dot_dimension_numbers<[1], [0], [0], [1], [0, 0, 1, 1], [], []>} : vector<2048x16xf32>, vector<16x16xf32>, vector<2048x16xf32> -> vector<2048x16xf32>
    %c0_3 = arith.constant 0 : index
    %c0_4 = arith.constant 0 : index
    %3 = vector.load %arg3[%c0_3, %c0_4] : memref<2048x16xf32, #tpu.memory_space<vmem>>, vector<2048x16xf32>
    tpu.vector_store %arg3[%c0_3, %c0_4], %2 {strides = array<i32>} : memref<2048x16xf32, #tpu.memory_space<vmem>>, vector<2048x16xf32>,
    return
  }
  func.func @transform_0(%arg0: i32) -> (i32, i32) {
    %c0_i32 = arith.constant 0 : i32
    %c0_i32_0 = arith.constant 0 : i32
    return %arg0, %c0_i32 : i32, i32
  }
  func.func @transform_1(%arg0: i32) -> (i32, i32) {
    %c0_i32 = arith.constant 0 : i32
    %c0_i32_0 = arith.constant 0 : i32
    %c0_i32_1 = arith.constant 0 : i32
    return %c0_i32, %c0_i32_0 : i32, i32
  }
  func.func @transform_2(%arg0: i32) -> (i32, i32) {
    %c0_i32 = arith.constant 0 : i32
    %c0_i32_0 = arith.constant 0 : i32
    return %arg0, %c0_i32 : i32, i32
  }
}

module attributes {stable_mosaic.version = 11 : i64} {
  func.func @bias_tanh_kernel(%arg0: i32, %arg1: memref<64x128xf32, #tpu.memory_space<vmem>>, %arg2: memref<1x128xf32, #tpu.memory_space<vmem>>, %arg3: memref<64x128xf32, #tpu.memory_space<vmem>>) attributes {dimension_semantics = [#tpu.dimension_semantics<parallel>], iteration_bounds = array<i64: 1>, scalar_prefetch = 0 : i64, scratch_operands = 0 : i64, tpu.core_type = #tpu.core_type<tc>, window_params = [{transform_indices = @transform_0, window_bounds = array<i64: 64, 128>}, {pipeline_mode = #tpu.pipeline_mode<synchronous>, transform_indices = @transform_1, window_bounds = array<i64: 1, 128>}, {transform_indices = @transform_2, window_bounds = array<i64: 64, 128>}]} {
    %c0 = arith.constant 0 : index
    %c0_0 = arith.constant 0 : index
    %0 = vector.load %arg1[%c0, %c0_0] : memref<64x128xf32, #tpu.memory_space<vmem>>, vector<64x128xf32>
    %c0_1 = arith.constant 0 : index
    %c0_2 = arith.constant 0 : index
    %1 = vector.load %arg2[%c0_1, %c0_2] : memref<1x128xf32, #tpu.memory_space<vmem>>, vector<1x128xf32>
    %2 = vector.broadcast %1 : vector<1x128xf32> to vector<64x128xf32>
    %3 = arith.addf %0, %2 : vector<64x128xf32>
    %4 = math.tanh %3 : vector<64x128xf32>
    %c0_3 = arith.constant 0 : index
    %c0_4 = arith.constant 0 : index
    %5 = vector.load %arg3[%c0_3, %c0_4] : memref<64x128xf32, #tpu.memory_space<vmem>>, vector<64x128xf32>
    tpu.vector_store %arg3[%c0_3, %c0_4], %4 {strides = array<i32>} : memref<64x128xf32, #tpu.memory_space<vmem>>, vector<64x128xf32>,
    return
  }
  func.func @transform_0(%arg0: i32) -> (i32, i32) {
    %c0_i32 = arith.constant 0 : i32
    %c0_i32_0 = arith.constant 0 : i32
    return %arg0, %c0_i32 : i32, i32
  }
  func.func @transform_1(%arg0: i32) -> (i32, i32) {
    %c0_i32 = arith.constant 0 : i32
    %c0_i32_0 = arith.constant 0 : i32
    %c0_i32_1 = arith.constant 0 : i32
    return %c0_i32, %c0_i32_0 : i32, i32
  }
  func.func @transform_2(%arg0: i32) -> (i32, i32) {
    %c0_i32 = arith.constant 0 : i32
    %c0_i32_0 = arith.constant 0 : i32
    return %arg0, %c0_i32 : i32, i32
  }
}

</mosaic_0001>

<bundles_post_ra>
// kernel: _lambda_.11
= control target key start
LH: loop header
LB: loop body
LE: loop exit
PB: predicated region body
PF: predicated region fallthrough
CT: control target
= control target key end

     0   :  { %8 = vsyncpa [#allocation3], 0  ;;  %s231_s0 = inlined_call_operand.vmem [shape: f32[32,128], index: 0, kind: input, shape index: {}]   ;;  %s232_s1 = inlined_call_operand.hbm [shape: f32[1,128], index: 1, kind: input, shape index: {}]   ;;  %s233_s2 = inlined_call_operand.hbm [shape: f32[1,128], index: 2, kind: input, shape index: {}]   ;;  %s234_s3 = inlined_call_operand.vmem [shape: f32[32,128], index: 3, kind: output, shape index: {}]  }
   0x1   :  { %9 = vsyncpa [#allocation5], 0  ;;  %s161_s12 = smov [#allocation2]   ;;  %s162_s14 = smov [#allocation4]  }
   0x2   :  { %s18_s13 = sshll.u32 %s161_s12, 4  ;;  %s28_s15 = sshll.u32 %s162_s14, 4  ;;  %s19_s13 = int_to_ptr.vmem [resolvable:$true] %s18_s13  ;;  %s29_s15 = int_to_ptr.vmem [resolvable:$true] %s28_s15 }
   0x3   :  { %s113_s18 = scalar_lea.hbm %s232_s1, 16 }
   0x4   :  { %p114_p0 = scmp.ne.s32.totalorder %s232_s1, %s113_s18  ;;  %p117_p1 = scmp.lt.u32.totalorder %s113_s18, %s232_s1 }
   0x6   :  { %p119_p2 = pnand %p117_p1, %p114_p0 }
   0x8   :  { %122 = shalt.err (!%p119_p2)
}
   0x9   :  { %s123_s23 = scalar_lea.vmem %s19_s13, 16  ;;  %s127_s24 = scalar_lea.vmem %s19_s13, 32 }
   0xa   :  { %p124_p3 = scmp.ne.s32.totalorder %s19_s13, %s123_s23  ;;  %p128_p4 = scmp.lt.s32.totalorder %s19_s13, %s19_s13 }
   0xb   :  { %p129_p5 = scmp.lt.s32.totalorder %s127_s24, %s123_s23 }
   0xd   :  { %p130_p6 = por %p129_p5, %p128_p4 }
   0xf   :  { %p131_p7 = pnand %p130_p6, %p124_p3 }
  0x11   :  { %134 = shalt.err (!%p131_p7)
}
  0x12   :  { %21 = dma.hbm_to_vmem [thread:$0]  %s232_s1, 16, %s19_s13, [#allocation3]  }
  0x13   :  { %s135_s29 = scalar_lea.hbm %s233_s2, 16 }
  0x14   :  { %p136_p8 = scmp.ne.s32.totalorder %s233_s2, %s135_s29  ;;  %p139_p9 = scmp.lt.u32.totalorder %s135_s29, %s233_s2 }
  0x16   :  { %p141_p10 = pnand %p139_p9, %p136_p8 }
  0x18   :  { %144 = shalt.err (!%p141_p10)
}
  0x19   :  { %s145_s7 = scalar_lea.vmem %s29_s15, 16  ;;  %s149_s8 = scalar_lea.vmem %s29_s15, 32 }
  0x1a   :  { %p146_p11 = scmp.ne.s32.totalorder %s29_s15, %s145_s7  ;;  %p150_p12 = scmp.lt.s32.totalorder %s29_s15, %s29_s15 }
  0x1b   :  { %p151_p13 = scmp.lt.s32.totalorder %s149_s8, %s145_s7 }
  0x1d   :  { %p152_p0 = por %p151_p13, %p150_p12 }
  0x1f   :  { %p153_p1 = pnand %p152_p0, %p146_p11 }
  0x21   :  { %156 = shalt.err (!%p153_p1)
}
  0x22   :  { %31 = dma.hbm_to_vmem [thread:$0]  %s233_s2, 16, %s29_s15, [#allocation5]  }
  0x23   :  { %157 = dma.done.wait [#allocation3], 16  }
  0x24   :  { %158 = vsyncadd [#allocation3], 4294967280 }
  0x25   :  { %159 = dma.done.wait [#allocation5], 16  }
  0x26   :  { %160 = vsyncadd [#allocation5], 4294967280  ;;  %v38_v0 = vld [vmem:[%s231_s0] sm:$0xff]  ;;  %v39_v1 = vld [vmem:[%s231_s0 + $0x8] sm:$0xff]  ;;  %v76_v31 = vlaneseq }
  0x27   :  { %v40_v2 = vld [vmem:[%s231_s0 + $0x10] sm:$0xff]  ;;  %v41_v3 = vld [vmem:[%s231_s0 + $0x18] sm:$0xff]  ;;  %v42_v4 = vadd.f32 %v39_v1, %v38_v0  ;;  %v51_v5 = vmul.f32 %v38_v0, %v38_v0  ;;  %v52_v6 = vmul.f32 %v39_v1, %v39_v1  ;;  %v68_v33 = vld [vmem:[#allocation2] sm:$0x1] }
  0x28   :  { %v53_v7 = vmul.f32 %v40_v2, %v40_v2  ;;  %v54_v9 = vmul.f32 %v41_v3, %v41_v3  ;;  %v77_v32 = vshrl.u32 %v76_v31, 7  ;;  %v72_v37 = vld [vmem:[#allocation4] sm:$0x1] }
  0x29   :  { %v43_v8 = vadd.f32 %v42_v4, %v40_v2  ;;  %v55_v10 = vadd.f32 %v52_v6, %v51_v5 }
  0x2a   :  { %v78_v34 = vsub.s32 0, %v77_v32 }
  0x2b   :  { %v44_v11 = vadd.f32 %v43_v8, %v41_v3  ;;  %v56_v12 = vadd.f32 %v55_v10, %v53_v7 }
  0x2d   :  { %v45_v13 = vrot.slane %v44_v11, 4  ;;  %v57_v14 = vadd.f32 %v56_v12, %v54_v9 }
  0x2f   :  { %v46_v15 = vadd.f32 %v45_v13, %v44_v11  ;;  %v58_v16 = vrot.slane %v57_v14, 4 }
  0x31   :  { %v47_v17 = vrot.slane %v46_v15, 2  ;;  %v59_v18 = vadd.f32 %v58_v16, %v57_v14 }
  0x33   :  { %v48_v19 = vadd.f32 %v47_v17, %v46_v15  ;;  %v60_v20 = vrot.slane %v59_v18, 2 }
  0x35   :  { %v49_v21 = vrot.slane %v48_v19, 1  ;;  %v61_v22 = vadd.f32 %v60_v20, %v59_v18 }
  0x37   :  { %v50_v23 = vadd.f32 %v49_v21, %v48_v19  ;;  %v62_v24 = vrot.slane %v61_v22, 1 }
  0x39   :  { %v63_v25 = vadd.f32 %v62_v24, %v61_v22  ;;  %v64_v26 = vmul.f32 0.03125, %v50_v23 }
  0x3b   :  { %v65_v27 = vmul.f32 0.03125, %v63_v25  ;;  %v66_v28 = vmul.f32 %v64_v26, %v64_v26 }
  0x3d   :  { %v67_v29 = vsub.f32 %v65_v27, %v66_v28 }
  0x3f   :  { %v69_v30 = vadd.f32 1e-05, %v67_v29 }
  0x41   :  { %111 = vrsqrt.f32 %v69_v30 }
  0x4b   :  { %v112_v35 = vpop.eup %111 }
  0x4c   :  { %v71_v36 = vmul.f32 %v112_v35, %v68_v33 }
  0x4e   :  { %v73_v38 = vmul.f32 %v71_v36, %v64_v26  ;;  %v79_v39 = vrot.slane %v71_v36, %v78_v34 }
  0x50   :  { %v74_v40 = vsub.f32 %v72_v37, %v73_v38  ;;  %v81_v41 = vmul.f32 %v79_v39, %v38_v0  ;;  %v82_v42 = vmul.f32 %v79_v39, %v39_v1  ;;  %v83_v43 = vmul.f32 %v79_v39, %v40_v2 }
  0x51   :  { %v84_v44 = vmul.f32 %v79_v39, %v41_v3 }
  0x52   :  { %v89_v45 = vrot.slane %v74_v40, %v78_v34 }
  0x54   :  { %v91_v46 = vadd.f32 %v89_v45, %v81_v41  ;;  %v92_v47 = vadd.f32 %v89_v45, %v82_v42  ;;  %v93_v48 = vadd.f32 %v89_v45, %v83_v43  ;;  %v94_v49 = vadd.f32 %v89_v45, %v84_v44 }
  0x56   :  { %v95_v50 = vmax.f32 %v91_v46, 0.0  ;;  %v96_v51 = vmax.f32 %v92_v47, 0.0  ;;  %v97_v52 = vmax.f32 %v93_v48, 0.0  ;;  %v98_v53 = vmax.f32 %v94_v49, 0.0 }
  0x58   :  { %99 = vst [vmem:[%s234_s3] sm:$0xff] %v95_v50  ;;  %100 = vst [vmem:[%s234_s3 + $0x8] sm:$0xff] %v96_v51 }
  0x59   :  { %101 = vst [vmem:[%s234_s3 + $0x10] sm:$0xff] %v97_v52  ;;  %102 = vst [vmem:[%s234_s3 + $0x18] sm:$0xff] %v98_v53 }
  0x5a   :  { %107 = vsyncpa [#allocation3], 1 }
  0x5b   :  { %108 = vsyncpa [#allocation5], 1 }

// kernel: _lambda_.10
= control target key start
LH: loop header
LB: loop body
LE: loop exit
PB: predicated region body
PF: predicated region fallthrough
CT: control target
= control target key end

     0   :  { %7 = vsyncpa [#allocation3], 0  ;;  %s1021_s0 = inlined_call_operand.hbm [shape: f32[2,20], index: 0, kind: input, shape index: {}]   ;;  %s1022_s1 = inlined_call_operand.hbm [shape: f32[20,2048], index: 1, kind: input, shape index: {}]   ;;  %s1023_s2 = inlined_call_operand.vmem [shape: f32[2,2048], index: 2, kind: output, shape index: {}]  }
   0x1   :  { %8 = vsyncpa [#allocation5], 0  ;;  %s915_s9 = smov [#allocation2]   ;;  %s916_s11 = smov [#allocation4]  }
   0x2   :  { %s15_s10 = sshll.u32 %s915_s9, 4  ;;  %s24_s12 = sshll.u32 %s916_s11, 4  ;;  %s16_s10 = int_to_ptr.vmem [resolvable:$true] %s15_s10  ;;  %s936_s12 = int_to_ptr.vmem [resolvable:$true] %s24_s12 }
   0x3   :  { %s867_s15 = scalar_lea.hbm %s1021_s0, 32 }
   0x4   :  { %p868_p0 = scmp.ne.s32.totalorder %s1021_s0, %s867_s15  ;;  %p871_p1 = scmp.lt.u32.totalorder %s867_s15, %s1021_s0 }
   0x6   :  { %p873_p2 = pnand %p871_p1, %p868_p0 }
   0x8   :  { %876 = shalt.err (!%p873_p2)
}
   0x9   :  { %s877_s20 = scalar_lea.vmem %s16_s10, 32  ;;  %p882_p4 = scmp.lt.s32.totalorder %s16_s10, %s16_s10 }
   0xa   :  { %p878_p3 = scmp.ne.s32.totalorder %s16_s10, %s877_s20  ;;  %p883_p5 = scmp.lt.s32.totalorder %s877_s20, %s877_s20 }
   0xc   :  { %p884_p6 = por %p883_p5, %p882_p4 }
   0xe   :  { %p885_p7 = pnand %p884_p6, %p878_p3 }
  0x10   :  { %888 = shalt.err (!%p885_p7)
}
  0x11   :  { %18 = dma.hbm_to_vmem [thread:$0]  %s1021_s0, 32, %s16_s10, [#allocation3]  }
  0x12   :  { %s889_s25 = scalar_lea.hbm %s1022_s1, 6144 }
  0x13   :  { %p890_p8 = scmp.ne.s32.totalorder %s1022_s1, %s889_s25  ;;  %p893_p9 = scmp.lt.u32.totalorder %s889_s25, %s1022_s1 }
  0x15   :  { %p895_p10 = pnand %p893_p9, %p890_p8 }
  0x17   :  { %898 = shalt.err (!%p895_p10)
}
  0x18   :  { %s899_s30 = scalar_lea.vmem %s936_s12, 6144  ;;  %p904_p12 = scmp.lt.s32.totalorder %s936_s12, %s936_s12 }
  0x19   :  { %p900_p11 = scmp.ne.s32.totalorder %s936_s12, %s899_s30  ;;  %p905_p13 = scmp.lt.s32.totalorder %s899_s30, %s899_s30 }
  0x1b   :  { %p906_p0 = por %p905_p13, %p904_p12 }
  0x1d   :  { %p907_p1 = pnand %p906_p0, %p900_p11 }
  0x1f   :  { %910 = shalt.err (!%p907_p1)
}
  0x20   :  { %s917_s0 = smov 2048   ;;  %s918_s3 = smov 128  }
  0x21   :  { %30 = dma.hbm_to_vmem [thread:$0]  %s1022_s1, 6144, %s936_s12, [#allocation5], %s917_s0, %s917_s0, %s918_s3  }
  0x22   :  { %911 = dma.done.wait [#allocation3], 32  }
  0x23   :  { %912 = vsyncadd [#allocation3], 4294967264 }
  0x24   :  { %913 = dma.done.wait [#allocation5], 6144  }
  0x25   :  { %914 = vsyncadd [#allocation5], 4294961152  ;;  %v919_v0 = vmov 0.0   ;;  %v39_v1 = vld [vmem:[#allocation4 + $0x8] sm:$0xff]  ;;  %v41_v3 = vld [vmem:[#allocation4 + $0x18] sm:$0xff]  ;;  %vm90_vm0 = vcmask 1043456  }
  0x26   :  { %203 = vmatprep.mubr.f32.mxu0 %v919_v0  ;;  %274 = vmatprep.mubr.f32.mxu1 %v919_v0  ;;  %v55_v2 = vld [vmem:[#allocation4 + $0x88] sm:$0xff]  ;;  %v57_v5 = vld [vmem:[#allocation4 + $0x98] sm:$0xff]  ;;  %v38_v6 = vld [vmem:[#allocation4] sm:$0xff]  ;;  %vm86_vm1 = vcmask 162816  }
  0x27   :  { %v829_v4 = vpack.c.bf16 %v55_v2, %v39_v1  ;;  %v54_v7 = vld [vmem:[#allocation4 + $0x80] sm:$0xff]  ;;  %v833_v8 = vpack.c.bf16 %v57_v5, %v41_v3  ;;  %v40_v10 = vld [vmem:[#allocation4 + $0x10] sm:$0xff]  ;;  %v71_v12 = vld [vmem:[#allocation4 + $0x108] sm:$0xf]  ;;  %v920_v3 = vmov 1983009808   ;;  %v728_v5 = vlaneseq }
  0x28   :  { %v831_v9 = vpack.c.bf16 %v54_v7, %v38_v6  ;;  %v56_v11 = vld [vmem:[#allocation4 + $0x90] sm:$0xff]  ;;  %v73_v14 = vld [vmem:[#allocation4 + $0x118] sm:$0xf]  ;;  %v70_v15 = vld [vmem:[#allocation4 + $0x100] sm:$0xf] }
  0x29   :  { %830 = vmatprep.subr.bf16.mxu0 %v829_v4  ;;  %v835_v13 = vpack.c.bf16 %v56_v11, %v40_v10  ;;  %834 = vmatprep.subr.bf16.mxu1 %v833_v8  ;;  %v72_v16 = vld [vmem:[#allocation4 + $0x110] sm:$0xf]  ;;  %v969_v17 = vld [vmem:[#allocation2] sm:$0x3]  ;;  %v43_v18 = vld [vmem:[#allocation4 + $0x28] sm:$0xff]  ;;  %v726_v4 = vunpack.c.l.s4 %v920_v3  ;;  %v729_v7 = vshrl.u32 %v728_v5, 7 }
  0x2a   :  { %832 = vmatpush1.bf16.msra.mxu0 %v831_v9  ;;  %v59_v19 = vld [vmem:[#allocation4 + $0xa8] sm:$0xff]  ;;  %v45_v20 = vld [vmem:[#allocation4 + $0x38] sm:$0xff]  ;;  %v42_v22 = vld [vmem:[#allocation4 + $0x20] sm:$0xff] }
  0x2b   :  { %836 = vmatpush1.bf16.msra.mxu1 %v835_v13  ;;  %805 = vmatprep.subr.msk.mxu0 %vm90_vm0, %v71_v12  ;;  %v61_v21 = vld [vmem:[#allocation4 + $0xb8] sm:$0xff]  ;;  %v837_v23 = vpack.c.bf16 %v59_v19, %v43_v18  ;;  %v58_v24 = vld [vmem:[#allocation4 + $0xa0] sm:$0xff]  ;;  %v44_v25 = vld [vmem:[#allocation4 + $0x30] sm:$0xff]  ;;  %v727_v6 = vunpack.c.0.s8 %v726_v4 }
  0x2c   :  { %808 = vmatprep.subr.msk.mxu1 %vm90_vm0, %v73_v14  ;;  %v60_v26 = vld [vmem:[#allocation4 + $0xb0] sm:$0xff]  ;;  %v841_v27 = vpack.c.bf16 %v61_v21, %v45_v20  ;;  %v839_v28 = vpack.c.bf16 %v58_v24, %v42_v22  ;;  %v75_v30 = vld [vmem:[#allocation4 + $0x128] sm:$0xf]  ;;  %v77_v31 = vld [vmem:[#allocation4 + $0x138] sm:$0xf] }
  0x2d   :  { %v843_v29 = vpack.c.bf16 %v60_v26, %v44_v25  ;;  %v47_v32 = vld [vmem:[#allocation4 + $0x48] sm:$0xff]  ;;  %v49_v34 = vld [vmem:[#allocation4 + $0x58] sm:$0xff]  ;;  %v46_v36 = vld [vmem:[#allocation4 + $0x40] sm:$0xff]  ;;  %v730_v9 = vsub.s32 %v727_v6, %v729_v7 }
  0x2e   :  { %806 = vmatpush1.msk.msra.mxu0 %vm90_vm0, %v70_v15  ;;  %v63_v33 = vld [vmem:[#allocation4 + $0xc8] sm:$0xff]  ;;  %v65_v35 = vld [vmem:[#allocation4 + $0xd8] sm:$0xff]  ;;  %v62_v37 = vld [vmem:[#allocation4 + $0xc0] sm:$0xff] }
  0x2f   :  { %809 = vmatpush1.msk.msra.mxu1 %vm90_vm0, %v72_v16  ;;  %807 = vmatmul.mubr.msk.f32.vlgmr.msra.gmra.mrb[0].mxu0 %vm86_vm1, %v969_v17  ;;  %v74_v38 = vld [vmem:[#allocation4 + $0x120] sm:$0xf]  ;;  %v48_v39 = vld [vmem:[#allocation4 + $0x50] sm:$0xff]  ;;  %v845_v42 = vpack.c.bf16 %v63_v33, %v47_v32  ;;  %v849_v43 = vpack.c.bf16 %v65_v35, %v49_v34  ;;  %v847_v44 = vpack.c.bf16 %v62_v37, %v46_v36  ;;  %v79_v46 = vld [vmem:[#allocation4 + $0x148] sm:$0xf] }
  0x30   :  { %810 = vmatmul.mubr.msk.f32.vlgmr.msra.gmra.mrb[0].mxu1 %vm86_vm1, %v969_v17  ;;  %838 = vmatprep.subr.bf16.mxu0 %v837_v23  ;;  %v64_v40 = vld [vmem:[#allocation4 + $0xd0] sm:$0xff]  ;;  %v81_v47 = vld [vmem:[#allocation4 + $0x158] sm:$0xf]  ;;  %v51_v48 = vld [vmem:[#allocation4 + $0x68] sm:$0xff] }
  0x31   :  { %842 = vmatprep.subr.bf16.mxu1 %v841_v27  ;;  %840 = vmatpush1.bf16.msra.mxu0 %v839_v28  ;;  %v76_v41 = vld [vmem:[#allocation4 + $0x130] sm:$0xf]  ;;  %v851_v45 = vpack.c.bf16 %v64_v40, %v48_v39  ;;  %v67_v49 = vld [vmem:[#allocation4 + $0xe8] sm:$0xff]  ;;  %v53_v50 = vld [vmem:[#allocation4 + $0x78] sm:$0xff] }
  0x32   :  { %844 = vmatpush1.bf16.msra.mxu1 %v843_v29  ;;  %811 = vmatprep.subr.msk.mxu0 %vm90_vm0, %v75_v30  ;;  %v69_v51 = vld [vmem:[#allocation4 + $0xf8] sm:$0xff]  ;;  %v50_v52 = vld [vmem:[#allocation4 + $0x60] sm:$0xff]  ;;  %v52_v55 = vld [vmem:[#allocation4 + $0x70] sm:$0xff]  ;;  %v853_v58 = vpack.c.bf16 %v67_v49, %v51_v48 }
  0x33   :  { %814 = vmatprep.subr.msk.mxu1 %vm90_vm0, %v77_v31  ;;  %345 = vmatprep.mubr.f32.mxu0 %v919_v0  ;;  %v66_v53 = vld [vmem:[#allocation4 + $0xe0] sm:$0xff]  ;;  %v68_v56 = vld [vmem:[#allocation4 + $0xf0] sm:$0xff]  ;;  %v857_v59 = vpack.c.bf16 %v69_v51, %v53_v50  ;;  %v83_v62 = vld [vmem:[#allocation4 + $0x168] sm:$0xf] }
  0x34   :  { %416 = vmatprep.mubr.f32.mxu1 %v919_v0  ;;  %v78_v54 = vld [vmem:[#allocation4 + $0x140] sm:$0xf]  ;;  %v80_v57 = vld [vmem:[#allocation4 + $0x150] sm:$0xf]  ;;  %v855_v60 = vpack.c.bf16 %v66_v53, %v50_v52  ;;  %v859_v61 = vpack.c.bf16 %v68_v56, %v52_v55  ;;  %v85_v63 = vld [vmem:[#allocation4 + $0x178] sm:$0xf] }
  0x35   :  { %812 = vmatpush1.msk.msra.mxu0 %vm90_vm0, %v74_v38  ;;  %v82_v1 = vld [vmem:[#allocation4 + $0x160] sm:$0xf]  ;;  %v84_v2 = vld [vmem:[#allocation4 + $0x170] sm:$0xf] }
  0x36   :  { %815 = vmatpush1.msk.msra.mxu1 %vm90_vm0, %v76_v41  ;;  %813 = vmatmul.mubr.msk.f32.vlgmr.msra.gmra.mrb[2].mxu0 %vm86_vm1, %v969_v17 }
  0x37   :  { %816 = vmatmul.mubr.msk.f32.vlgmr.msra.gmra.mrb[2].mxu1 %vm86_vm1, %v969_v17  ;;  %846 = vmatprep.subr.bf16.mxu0 %v845_v42 }
  0x38   :  { %850 = vmatprep.subr.bf16.mxu1 %v849_v43  ;;  %848 = vmatpush1.bf16.msra.mxu0 %v847_v44 }
  0x39   :  { %852 = vmatpush1.bf16.msra.mxu1 %v851_v45  ;;  %817 = vmatprep.subr.msk.mxu0 %vm90_vm0, %v79_v46 }
  0x3a   :  { %820 = vmatprep.subr.msk.mxu1 %vm90_vm0, %v81_v47  ;;  %487 = vmatprep.mubr.f32.mxu0 %v919_v0 }
  0x3b   :  { %558 = vmatprep.mubr.f32.mxu1 %v919_v0 }
  0x3c   :  { %818 = vmatpush1.msk.msra.mxu0 %vm90_vm0, %v78_v54 }
  0x3d   :  { %821 = vmatpush1.msk.msra.mxu1 %vm90_vm0, %v80_v57  ;;  %819 = vmatmul.mubr.msk.f32.vlgmr.msra.gmra.mrb[4].mxu0 %vm86_vm1, %v969_v17 }
  0x3e   :  { %822 = vmatmul.mubr.msk.f32.vlgmr.msra.gmra.mrb[4].mxu1 %vm86_vm1, %v969_v17  ;;  %854 = vmatprep.subr.bf16.mxu0 %v853_v58 }
  0x3f   :  { %858 = vmatprep.subr.bf16.mxu1 %v857_v59  ;;  %856 = vmatpush1.bf16.msra.mxu0 %v855_v60 }
  0x40   :  { %860 = vmatpush1.bf16.msra.mxu1 %v859_v61  ;;  %823 = vmatprep.subr.msk.mxu0 %vm90_vm0, %v83_v62 }
  0x41   :  { %826 = vmatprep.subr.msk.mxu1 %vm90_vm0, %v85_v63  ;;  %629 = vmatprep.mubr.f32.mxu0 %v919_v0 }
  0x42   :  { %700 = vmatprep.mubr.f32.mxu1 %v919_v0 }
  0x43   :  { %824 = vmatpush1.msk.msra.mxu0 %vm90_vm0, %v82_v1 }
  0x44   :  { %827 = vmatpush1.msk.msra.mxu1 %vm90_vm0, %v84_v2  ;;  %825 = vmatmul.mubr.msk.f32.vlgmr.msra.gmra.mrb[6].mxu0 %vm86_vm1, %v969_v17 }
  0x45   :  { %828 = vmatmul.mubr.msk.f32.vlgmr.msra.gmra.mrb[6].mxu1 %vm86_vm1, %v969_v17 }
 0x102   :  { %v205_v8 = vpop.f32.mrb[0].mxu0 }
 0x103   :  { %v276_v10 = vpop.f32.mrb[0].mxu1  ;;  %v207_v11 = vpop.f32.mrb[1].mxu0 }
 0x104   :  { %v723_v0 = vcombine.low %v205_v8, %v207_v11  ;;  %v278_v12 = vpop.f32.mrb[1].mxu1 }
 0x105   :  { %v724_v13 = vcombine.low %v276_v10, %v278_v12 }
 0x106   :  { %v731_v14 = vrot.slane %v723_v0, %v730_v9 }
 0x107   :  { %v738_v15 = vrot.slane %v724_v13, %v730_v9 }
 0x109   :  { %v739_v16 = vcombine.low %v731_v14, %v738_v15  ;;  %v347_v18 = vpop.f32.mrb[2].mxu0 }
 0x10a   :  { %v418_v19 = vpop.f32.mrb[2].mxu1  ;;  %v349_v20 = vpop.f32.mrb[3].mxu0 }
 0x10b   :  { %795 = vst [vmem:[%s1023_s2] sm:$0xff] %v739_v16  ;;  %v740_v17 = vcombine.low %v347_v18, %v349_v20  ;;  %v420_v21 = vpop.f32.mrb[3].mxu1 }
 0x10c   :  { %v741_v22 = vcombine.low %v418_v19, %v420_v21 }
 0x10d   :  { %v748_v23 = vrot.slane %v740_v17, %v730_v9 }
 0x10e   :  { %v755_v24 = vrot.slane %v741_v22, %v730_v9 }
 0x110   :  { %v756_v25 = vcombine.low %v748_v23, %v755_v24  ;;  %v489_v26 = vpop.f32.mrb[4].mxu0 }
 0x111   :  { %v560_v27 = vpop.f32.mrb[4].mxu1  ;;  %v491_v28 = vpop.f32.mrb[5].mxu0 }
 0x112   :  { %796 = vst [vmem:[%s1023_s2 + $0x8] sm:$0xff] %v756_v25  ;;  %v757_v29 = vcombine.low %v489_v26, %v491_v28  ;;  %v562_v30 = vpop.f32.mrb[5].mxu1 }
 0x113   :  { %v758_v31 = vcombine.low %v560_v27, %v562_v30 }
 0x114   :  { %v765_v32 = vrot.slane %v757_v29, %v730_v9 }
 0x115   :  { %v772_v33 = vrot.slane %v758_v31, %v730_v9 }
 0x117   :  { %v773_v34 = vcombine.low %v765_v32, %v772_v33  ;;  %v631_v35 = vpop.f32.mrb[6].mxu0 }
 0x118   :  { %v702_v36 = vpop.f32.mrb[6].mxu1  ;;  %v633_v37 = vpop.f32.mrb[7].mxu0 }
 0x119   :  { %797 = vst [vmem:[%s1023_s2 + $0x10] sm:$0xff] %v773_v34  ;;  %v774_v38 = vcombine.low %v631_v35, %v633_v37  ;;  %v704_v39 = vpop.f32.mrb[7].mxu1 }
 0x11a   :  { %v775_v40 = vcombine.low %v702_v36, %v704_v39 }
 0x11b   :  { %v782_v41 = vrot.slane %v774_v38, %v730_v9 }
 0x11c   :  { %v789_v42 = vrot.slane %v775_v40, %v730_v9 }
 0x11e   :  { %v790_v43 = vcombine.low %v782_v41, %v789_v42 }
 0x120   :  { %798 = vst [vmem:[%s1023_s2 + $0x18] sm:$0xff] %v790_v43 }
 0x121   :  { %803 = vsyncpa [#allocation3], 1 }
 0x122   :  { %804 = vsyncpa [#allocation5], 1 }

// kernel: _lambda_.12
= control target key start
LH: loop header
LB: loop body
LE: loop exit
PB: predicated region body
PF: predicated region fallthrough
CT: control target
= control target key end

     0   :  { %7 = vsyncpa [#allocation3], 0  ;;  %s706_s9 = smov [#allocation2]   ;;  %s885_s0 = inlined_call_operand.vmem [shape: f32[32,128], index: 0, kind: input, shape index: {}]   ;;  %s886_s1 = inlined_call_operand.hbm [shape: f32[128,1024], index: 1, kind: input, shape index: {}]   ;;  %s887_s2 = inlined_call_operand.vmem [shape: f32[32,1024], index: 2, kind: output, shape index: {}]  }
   0x1   :  { %s15_s10 = sshll.u32 %s706_s9, 4  ;;  %s682_s13 = scalar_lea.hbm %s886_s1, 16384  ;;  %s16_s10 = int_to_ptr.vmem [resolvable:$true] %s15_s10 }
   0x2   :  { %p683_p0 = scmp.ne.s32.totalorder %s886_s1, %s682_s13  ;;  %p686_p1 = scmp.lt.u32.totalorder %s682_s13, %s886_s1 }
   0x4   :  { %p688_p2 = pnand %p686_p1, %p683_p0 }
   0x6   :  { %691 = shalt.err (!%p688_p2)
}
   0x7   :  { %s692_s18 = scalar_lea.vmem %s16_s10, 16384  ;;  %p697_p4 = scmp.lt.s32.totalorder %s16_s10, %s16_s10 }
   0x8   :  { %p693_p3 = scmp.ne.s32.totalorder %s16_s10, %s692_s18  ;;  %p698_p5 = scmp.lt.s32.totalorder %s692_s18, %s692_s18 }
   0xa   :  { %p699_p6 = por %p698_p5, %p697_p4 }
   0xc   :  { %p700_p7 = pnand %p699_p6, %p693_p3 }
   0xe   :  { %703 = shalt.err (!%p700_p7)
}
   0xf   :  { %s707_s19 = smov 1024   ;;  %s708_s20 = smov 64  }
  0x10   :  { %21 = dma.hbm_to_vmem [thread:$0]  %s886_s1, 16384, %s16_s10, [#allocation3], %s707_s19, %s707_s19, %s708_s20  }
  0x11   :  { %704 = dma.done.wait [#allocation3], 16384  }
  0x12   :  { %705 = vsyncadd [#allocation3], 4294950912  ;;  %v709_v0 = vmov 0.0   ;;  %v30_v1 = vld [vmem:[#allocation2 + $0x8] sm:$0xff]  ;;  %v32_v3 = vld [vmem:[#allocation2 + $0x18] sm:$0xff] }
  0x13   :  { %221 = vmatprep.mubr.f32.mxu0 %v709_v0  ;;  %310 = vmatprep.mubr.f32.mxu1 %v709_v0  ;;  %v38_v2 = vld [vmem:[#allocation2 + $0x48] sm:$0xff]  ;;  %v40_v5 = vld [vmem:[#allocation2 + $0x58] sm:$0xff]  ;;  %v29_v6 = vld [vmem:[#allocation2] sm:$0xff] }
  0x14   :  { %v550_v4 = vpack.c.bf16 %v38_v2, %v30_v1  ;;  %v37_v7 = vld [vmem:[#allocation2 + $0x40] sm:$0xff]  ;;  %v582_v8 = vpack.c.bf16 %v40_v5, %v32_v3  ;;  %v31_v10 = vld [vmem:[#allocation2 + $0x10] sm:$0xff]  ;;  %v46_v12 = vld [vmem:[#allocation2 + $0x88] sm:$0xff] }
  0x15   :  { %v552_v9 = vpack.c.bf16 %v37_v7, %v29_v6  ;;  %v39_v11 = vld [vmem:[#allocation2 + $0x50] sm:$0xff]  ;;  %v54_v14 = vld [vmem:[#allocation2 + $0xc8] sm:$0xff]  ;;  %v48_v15 = vld [vmem:[#allocation2 + $0x98] sm:$0xff] }
  0x16   :  { %551 = vmatprep.subr.bf16.mxu0 %v550_v4  ;;  %v584_v13 = vpack.c.bf16 %v39_v11, %v31_v10  ;;  %v56_v16 = vld [vmem:[#allocation2 + $0xd8] sm:$0xff]  ;;  %583 = vmatprep.subr.bf16.mxu1 %v582_v8  ;;  %v554_v17 = vpack.c.bf16 %v54_v14, %v46_v12  ;;  %v45_v19 = vld [vmem:[#allocation2 + $0x80] sm:$0xff]  ;;  %v47_v21 = vld [vmem:[#allocation2 + $0x90] sm:$0xff] }
  0x17   :  { %553 = vmatpush1.bf16.msra.mxu0 %v552_v9  ;;  %v586_v18 = vpack.c.bf16 %v56_v16, %v48_v15  ;;  %v53_v20 = vld [vmem:[#allocation2 + $0xc0] sm:$0xff]  ;;  %v55_v23 = vld [vmem:[#allocation2 + $0xd0] sm:$0xff]  ;;  %v62_v24 = vld [vmem:[#allocation2 + $0x108] sm:$0xff] }
  0x18   :  { %585 = vmatpush1.bf16.msra.mxu1 %v584_v13  ;;  %v556_v22 = vpack.c.bf16 %v53_v20, %v45_v19  ;;  %v70_v25 = vld [vmem:[#allocation2 + $0x148] sm:$0xff]  ;;  %555 = vmatprep.subr.bf16.mxu0 %v554_v17  ;;  %v588_v26 = vpack.c.bf16 %v55_v23, %v47_v21  ;;  %v64_v28 = vld [vmem:[#allocation2 + $0x118] sm:$0xff]  ;;  %v61_v30 = vld [vmem:[#allocation2 + $0x100] sm:$0xff] }
  0x19   :  { %587 = vmatprep.subr.bf16.mxu1 %v586_v18  ;;  %v558_v27 = vpack.c.bf16 %v70_v25, %v62_v24  ;;  %v72_v29 = vld [vmem:[#allocation2 + $0x158] sm:$0xff]  ;;  %v69_v32 = vld [vmem:[#allocation2 + $0x140] sm:$0xff]  ;;  %v63_v33 = vld [vmem:[#allocation2 + $0x110] sm:$0xff] }
  0x1a   :  { %v590_v31 = vpack.c.bf16 %v72_v29, %v64_v28  ;;  %v71_v34 = vld [vmem:[#allocation2 + $0x150] sm:$0xff]  ;;  %v560_v35 = vpack.c.bf16 %v69_v32, %v61_v30  ;;  %v78_v36 = vld [vmem:[#allocation2 + $0x188] sm:$0xff]  ;;  %v80_v38 = vld [vmem:[#allocation2 + $0x198] sm:$0xff] }
  0x1b   :  { %557 = vmatpush1.bf16.msra.mxu0 %v556_v22  ;;  %v86_v37 = vld [vmem:[#allocation2 + $0x1c8] sm:$0xff]  ;;  %v592_v39 = vpack.c.bf16 %v71_v34, %v63_v33  ;;  %v88_v41 = vld [vmem:[#allocation2 + $0x1d8] sm:$0xff]  ;;  %v77_v42 = vld [vmem:[#allocation2 + $0x180] sm:$0xff] }
  0x1c   :  { %589 = vmatpush1.bf16.msra.mxu1 %v588_v26  ;;  %559 = vmatprep.subr.bf16.mxu0 %v558_v27  ;;  %v562_v40 = vpack.c.bf16 %v86_v37, %v78_v36  ;;  %v85_v43 = vld [vmem:[#allocation2 + $0x1c0] sm:$0xff]  ;;  %v594_v44 = vpack.c.bf16 %v88_v41, %v80_v38  ;;  %v79_v45 = vld [vmem:[#allocation2 + $0x190] sm:$0xff]  ;;  %v94_v47 = vld [vmem:[#allocation2 + $0x208] sm:$0xff] }
  0x1d   :  { %591 = vmatprep.subr.bf16.mxu1 %v590_v31  ;;  %v87_v46 = vld [vmem:[#allocation2 + $0x1d0] sm:$0xff]  ;;  %v102_v48 = vld [vmem:[#allocation2 + $0x248] sm:$0xff]  ;;  %v96_v49 = vld [vmem:[#allocation2 + $0x218] sm:$0xff]  ;;  %v564_v51 = vpack.c.bf16 %v85_v43, %v77_v42 }
  0x1e   :  { %v104_v50 = vld [vmem:[#allocation2 + $0x258] sm:$0xff]  ;;  %v596_v52 = vpack.c.bf16 %v87_v46, %v79_v45  ;;  %v566_v53 = vpack.c.bf16 %v102_v48, %v94_v47  ;;  %v93_v54 = vld [vmem:[#allocation2 + $0x200] sm:$0xff]  ;;  %v95_v56 = vld [vmem:[#allocation2 + $0x210] sm:$0xff] }
  0x1f   :  { %561 = vmatpush1.bf16.msra.mxu0 %v560_v35  ;;  %v101_v55 = vld [vmem:[#allocation2 + $0x240] sm:$0xff]  ;;  %v598_v57 = vpack.c.bf16 %v104_v50, %v96_v49  ;;  %v103_v58 = vld [vmem:[#allocation2 + $0x250] sm:$0xff]  ;;  %v110_v59 = vld [vmem:[#allocation2 + $0x288] sm:$0xff] }
  0x20   :  { %593 = vmatpush1.bf16.msra.mxu1 %v592_v39  ;;  %563 = vmatprep.subr.bf16.mxu0 %v562_v40  ;;  %v118_v60 = vld [vmem:[#allocation2 + $0x2c8] sm:$0xff]  ;;  %v112_v61 = vld [vmem:[#allocation2 + $0x298] sm:$0xff]  ;;  %v568_v63 = vpack.c.bf16 %v101_v55, %v93_v54  ;;  %v600_v1 = vpack.c.bf16 %v103_v58, %v95_v56  ;;  %v109_v3 = vld [vmem:[#allocation2 + $0x280] sm:$0xff] }
  0x21   :  { %595 = vmatprep.subr.bf16.mxu1 %v594_v44  ;;  %v120_v62 = vld [vmem:[#allocation2 + $0x2d8] sm:$0xff]  ;;  %v570_v2 = vpack.c.bf16 %v118_v60, %v110_v59  ;;  %v117_v4 = vld [vmem:[#allocation2 + $0x2c0] sm:$0xff]  ;;  %v111_v5 = vld [vmem:[#allocation2 + $0x290] sm:$0xff] }
  0x22   :  { %v602_v6 = vpack.c.bf16 %v120_v62, %v112_v61  ;;  %v119_v7 = vld [vmem:[#allocation2 + $0x2d0] sm:$0xff]  ;;  %v126_v8 = vld [vmem:[#allocation2 + $0x308] sm:$0xff]  ;;  %v128_v10 = vld [vmem:[#allocation2 + $0x318] sm:$0xff]  ;;  %v572_v12 = vpack.c.bf16 %v117_v4, %v109_v3 }
  0x23   :  { %565 = vmatpush1.bf16.msra.mxu0 %v564_v51  ;;  %v134_v9 = vld [vmem:[#allocation2 + $0x348] sm:$0xff]  ;;  %v136_v11 = vld [vmem:[#allocation2 + $0x358] sm:$0xff]  ;;  %v604_v13 = vpack.c.bf16 %v119_v7, %v111_v5  ;;  %v125_v15 = vld [vmem:[#allocation2 + $0x300] sm:$0xff] }
  0x24   :  { %597 = vmatpush1.bf16.msra.mxu1 %v596_v52  ;;  %567 = vmatprep.subr.bf16.mxu0 %v566_v53  ;;  %v574_v14 = vpack.c.bf16 %v134_v9, %v126_v8  ;;  %v133_v16 = vld [vmem:[#allocation2 + $0x340] sm:$0xff]  ;;  %v127_v17 = vld [vmem:[#allocation2 + $0x310] sm:$0xff]  ;;  %v606_v18 = vpack.c.bf16 %v136_v11, %v128_v10  ;;  %v142_v20 = vld [vmem:[#allocation2 + $0x388] sm:$0xff] }
  0x25   :  { %599 = vmatprep.subr.bf16.mxu1 %v598_v57  ;;  %v135_v19 = vld [vmem:[#allocation2 + $0x350] sm:$0xff]  ;;  %v150_v21 = vld [vmem:[#allocation2 + $0x3c8] sm:$0xff]  ;;  %v144_v22 = vld [vmem:[#allocation2 + $0x398] sm:$0xff]  ;;  %v576_v24 = vpack.c.bf16 %v133_v16, %v125_v15 }
  0x26   :  { %v152_v23 = vld [vmem:[#allocation2 + $0x3d8] sm:$0xff]  ;;  %v608_v25 = vpack.c.bf16 %v135_v19, %v127_v17  ;;  %v578_v26 = vpack.c.bf16 %v150_v21, %v142_v20  ;;  %v141_v27 = vld [vmem:[#allocation2 + $0x380] sm:$0xff]  ;;  %v143_v29 = vld [vmem:[#allocation2 + $0x390] sm:$0xff] }
  0x27   :  { %569 = vmatpush1.bf16.msra.mxu0 %v568_v63  ;;  %v149_v28 = vld [vmem:[#allocation2 + $0x3c0] sm:$0xff]  ;;  %v610_v30 = vpack.c.bf16 %v152_v23, %v144_v22  ;;  %v151_v31 = vld [vmem:[#allocation2 + $0x3d0] sm:$0xff]  ;;  %v34_v32 = vld [vmem:[#allocation2 + $0x28] sm:$0xff] }
  0x28   :  { %601 = vmatpush1.bf16.msra.mxu1 %v600_v1  ;;  %571 = vmatprep.subr.bf16.mxu0 %v570_v2  ;;  %v42_v33 = vld [vmem:[#allocation2 + $0x68] sm:$0xff]  ;;  %v36_v34 = vld [vmem:[#allocation2 + $0x38] sm:$0xff]  ;;  %v580_v36 = vpack.c.bf16 %v149_v28, %v141_v27  ;;  %v612_v37 = vpack.c.bf16 %v151_v31, %v143_v29  ;;  %v33_v39 = vld [vmem:[#allocation2 + $0x20] sm:$0xff] }
  0x29   :  { %603 = vmatprep.subr.bf16.mxu1 %v602_v6  ;;  %v44_v35 = vld [vmem:[#allocation2 + $0x78] sm:$0xff]  ;;  %v614_v38 = vpack.c.bf16 %v42_v33, %v34_v32  ;;  %v41_v40 = vld [vmem:[#allocation2 + $0x60] sm:$0xff]  ;;  %v35_v41 = vld [vmem:[#allocation2 + $0x30] sm:$0xff] }
  0x2a   :  { %v646_v42 = vpack.c.bf16 %v44_v35, %v36_v34  ;;  %v43_v43 = vld [vmem:[#allocation2 + $0x70] sm:$0xff]  ;;  %v50_v44 = vld [vmem:[#allocation2 + $0xa8] sm:$0xff]  ;;  %v52_v46 = vld [vmem:[#allocation2 + $0xb8] sm:$0xff]  ;;  %v616_v49 = vpack.c.bf16 %v41_v40, %v33_v39 }
  0x2b   :  { %573 = vmatpush1.bf16.msra.mxu0 %v572_v12  ;;  %v58_v45 = vld [vmem:[#allocation2 + $0xe8] sm:$0xff]  ;;  %v60_v47 = vld [vmem:[#allocation2 + $0xf8] sm:$0xff]  ;;  %v742_v48 = vld [vmem:[%s885_s0] sm:$0xff]  ;;  %v648_v50 = vpack.c.bf16 %v43_v43, %v35_v41 }
  0x2c   :  { %605 = vmatpush1.bf16.msra.mxu1 %v604_v13  ;;  %575 = vmatprep.subr.bf16.mxu0 %v574_v14  ;;  %v618_v51 = vpack.c.bf16 %v58_v45, %v50_v44  ;;  %v49_v52 = vld [vmem:[#allocation2 + $0xa0] sm:$0xff]  ;;  %v51_v54 = vld [vmem:[#allocation2 + $0xb0] sm:$0xff]  ;;  %v650_v55 = vpack.c.bf16 %v60_v47, %v52_v46  ;;  %v66_v57 = vld [vmem:[#allocation2 + $0x128] sm:$0xff] }
  0x2d   :  { %607 = vmatprep.subr.bf16.mxu1 %v606_v18  ;;  %v57_v53 = vld [vmem:[#allocation2 + $0xe0] sm:$0xff]  ;;  %v59_v56 = vld [vmem:[#allocation2 + $0xf0] sm:$0xff]  ;;  %v74_v58 = vld [vmem:[#allocation2 + $0x168] sm:$0xff] }
  0x2e   :  { %v68_v59 = vld [vmem:[#allocation2 + $0x138] sm:$0xff]  ;;  %v620_v61 = vpack.c.bf16 %v57_v53, %v49_v52  ;;  %v749_v62 = vld [vmem:[%s885_s0 + $0x8] sm:$0xff]  ;;  %v652_v63 = vpack.c.bf16 %v59_v56, %v51_v54  ;;  %v622_v1 = vpack.c.bf16 %v74_v58, %v66_v57  ;;  %v65_v2 = vld [vmem:[#allocation2 + $0x120] sm:$0xff] }
  0x2f   :  { %577 = vmatpush1.bf16.msra.mxu0 %v576_v24  ;;  %v76_v60 = vld [vmem:[#allocation2 + $0x178] sm:$0xff]  ;;  %v73_v3 = vld [vmem:[#allocation2 + $0x160] sm:$0xff]  ;;  %v67_v4 = vld [vmem:[#allocation2 + $0x130] sm:$0xff] }
  0x30   :  { %609 = vmatpush1.bf16.msra.mxu1 %v608_v25  ;;  %579 = vmatprep.subr.bf16.mxu0 %v578_v26  ;;  %v654_v5 = vpack.c.bf16 %v76_v60, %v68_v59  ;;  %v75_v6 = vld [vmem:[#allocation2 + $0x170] sm:$0xff]  ;;  %v82_v7 = vld [vmem:[#allocation2 + $0x1a8] sm:$0xff]  ;;  %v84_v9 = vld [vmem:[#allocation2 + $0x1b8] sm:$0xff]  ;;  %v624_v11 = vpack.c.bf16 %v73_v3, %v65_v2 }
  0x31   :  { %611 = vmatprep.subr.bf16.mxu1 %v610_v30  ;;  %v90_v8 = vld [vmem:[#allocation2 + $0x1e8] sm:$0xff]  ;;  %v92_v10 = vld [vmem:[#allocation2 + $0x1f8] sm:$0xff]  ;;  %v758_v12 = vld [vmem:[%s885_s0 + $0x10] sm:$0xff]  ;;  %v656_v13 = vpack.c.bf16 %v75_v6, %v67_v4 }
  0x32   :  { %v626_v14 = vpack.c.bf16 %v90_v8, %v82_v7  ;;  %v81_v15 = vld [vmem:[#allocation2 + $0x1a0] sm:$0xff]  ;;  %v83_v17 = vld [vmem:[#allocation2 + $0x1b0] sm:$0xff]  ;;  %v658_v18 = vpack.c.bf16 %v92_v10, %v84_v9  ;;  %v98_v20 = vld [vmem:[#allocation2 + $0x228] sm:$0xff] }
  0x33   :  { %581 = vmatpush1.bf16.msra.mxu0 %v580_v36  ;;  %v89_v16 = vld [vmem:[#allocation2 + $0x1e0] sm:$0xff]  ;;  %v91_v19 = vld [vmem:[#allocation2 + $0x1f0] sm:$0xff]  ;;  %v106_v21 = vld [vmem:[#allocation2 + $0x268] sm:$0xff] }
  0x34   :  { %613 = vmatpush1.bf16.msra.mxu1 %v612_v37  ;;  %615 = vmatprep.subr.bf16.mxu0 %v614_v38  ;;  %v100_v22 = vld [vmem:[#allocation2 + $0x238] sm:$0xff]  ;;  %v628_v24 = vpack.c.bf16 %v89_v16, %v81_v15  ;;  %v660_v26 = vpack.c.bf16 %v91_v19, %v83_v17  ;;  %v630_v27 = vpack.c.bf16 %v106_v21, %v98_v20  ;;  %v97_v28 = vld [vmem:[#allocation2 + $0x220] sm:$0xff]  ;;  %v99_v30 = vld [vmem:[#allocation2 + $0x230] sm:$0xff] }
  0x35   :  { %647 = vmatprep.subr.bf16.mxu1 %v646_v42  ;;  %v108_v23 = vld [vmem:[#allocation2 + $0x278] sm:$0xff]  ;;  %v105_v29 = vld [vmem:[#allocation2 + $0x260] sm:$0xff]  ;;  %v107_v32 = vld [vmem:[#allocation2 + $0x270] sm:$0xff] }
  0x36   :  { %222 = vmatmul.mubr.f32.vlgmr.msra.gmra.mrb[0].mxu0 %v742_v48  ;;  %v767_v25 = vld [vmem:[%s885_s0 + $0x18] sm:$0xff]  ;;  %v662_v31 = vpack.c.bf16 %v108_v23, %v100_v22  ;;  %v114_v33 = vld [vmem:[#allocation2 + $0x2a8] sm:$0xff]  ;;  %v632_v37 = vpack.c.bf16 %v105_v29, %v97_v28  ;;  %v664_v38 = vpack.c.bf16 %v107_v32, %v99_v30  ;;  %v113_v40 = vld [vmem:[#allocation2 + $0x2a0] sm:$0xff] }
  0x37   :  { %311 = vmatmul.mubr.f32.vlgmr.msra.gmra.mrb[0].mxu1 %v742_v48  ;;  %617 = vmatpush1.bf16.msra.mxu0 %v616_v49  ;;  %v122_v34 = vld [vmem:[#allocation2 + $0x2e8] sm:$0xff]  ;;  %v116_v35 = vld [vmem:[#allocation2 + $0x2b8] sm:$0xff]  ;;  %v121_v41 = vld [vmem:[#allocation2 + $0x2e0] sm:$0xff] }
  0x38   :  { %649 = vmatpush1.bf16.msra.mxu1 %v648_v50  ;;  %619 = vmatprep.subr.bf16.mxu0 %v618_v51  ;;  %v124_v36 = vld [vmem:[#allocation2 + $0x2f8] sm:$0xff]  ;;  %v634_v39 = vpack.c.bf16 %v122_v34, %v114_v33  ;;  %v115_v42 = vld [vmem:[#allocation2 + $0x2b0] sm:$0xff]  ;;  %v130_v45 = vld [vmem:[#allocation2 + $0x328] sm:$0xff]  ;;  %v636_v50 = vpack.c.bf16 %v121_v41, %v113_v40 }
  0x39   :  { %651 = vmatprep.subr.bf16.mxu1 %v650_v55  ;;  %227 = vmatprep.mubr.f32.mxu0 %v709_v0  ;;  %v666_v43 = vpack.c.bf16 %v124_v36, %v116_v35  ;;  %v123_v44 = vld [vmem:[#allocation2 + $0x2f0] sm:$0xff]  ;;  %v138_v46 = vld [vmem:[#allocation2 + $0x368] sm:$0xff]  ;;  %v132_v47 = vld [vmem:[#allocation2 + $0x338] sm:$0xff] }
  0x3a   :  { %316 = vmatprep.mubr.f32.mxu1 %v709_v0  ;;  %228 = vmatmul.mubr.f32.gmra.mrb[2].mxu0 %v749_v62  ;;  %v140_v49 = vld [vmem:[#allocation2 + $0x378] sm:$0xff]  ;;  %v668_v51 = vpack.c.bf16 %v123_v44, %v115_v42  ;;  %v638_v52 = vpack.c.bf16 %v138_v46, %v130_v45  ;;  %v129_v53 = vld [vmem:[#allocation2 + $0x320] sm:$0xff]  ;;  %v131_v55 = vld [vmem:[#allocation2 + $0x330] sm:$0xff] }
  0x3b   :  { %621 = vmatpush1.bf16.msra.mxu0 %v620_v61  ;;  %317 = vmatmul.mubr.f32.gmra.mrb[2].mxu1 %v749_v62  ;;  %v137_v54 = vld [vmem:[#allocation2 + $0x360] sm:$0xff]  ;;  %v670_v56 = vpack.c.bf16 %v140_v49, %v132_v47  ;;  %v139_v57 = vld [vmem:[#allocation2 + $0x370] sm:$0xff]  ;;  %v146_v58 = vld [vmem:[#allocation2 + $0x3a8] sm:$0xff] }
  0x3c   :  { %653 = vmatpush1.bf16.msra.mxu1 %v652_v63  ;;  %623 = vmatprep.subr.bf16.mxu0 %v622_v1  ;;  %v154_v59 = vld [vmem:[#allocation2 + $0x3e8] sm:$0xff]  ;;  %v148_v60 = vld [vmem:[#allocation2 + $0x3b8] sm:$0xff]  ;;  %v640_v63 = vpack.c.bf16 %v137_v54, %v129_v53  ;;  %v672_v1 = vpack.c.bf16 %v139_v57, %v131_v55  ;;  %v145_v3 = vld [vmem:[#allocation2 + $0x3a0] sm:$0xff] }
  0x3d   :  { %655 = vmatprep.subr.bf16.mxu1 %v654_v5  ;;  %233 = vmatprep.mubr.f32.mxu0 %v709_v0  ;;  %v156_v61 = vld [vmem:[#allocation2 + $0x3f8] sm:$0xff]  ;;  %v642_v2 = vpack.c.bf16 %v154_v59, %v146_v58  ;;  %v153_v4 = vld [vmem:[#allocation2 + $0x3e0] sm:$0xff]  ;;  %v147_v6 = vld [vmem:[#allocation2 + $0x3b0] sm:$0xff] }
  0x3e   :  { %322 = vmatprep.mubr.f32.mxu1 %v709_v0  ;;  %234 = vmatmul.mubr.f32.gmra.mrb[4].mxu0 %v758_v12  ;;  %v674_v5 = vpack.c.bf16 %v156_v61, %v148_v60  ;;  %v155_v7 = vld [vmem:[#allocation2 + $0x3f0] sm:$0xff]  ;;  %v644_v8 = vpack.c.bf16 %v153_v4, %v145_v3 }
  0x3f   :  { %625 = vmatpush1.bf16.msra.mxu0 %v624_v11  ;;  %323 = vmatmul.mubr.f32.gmra.mrb[4].mxu1 %v758_v12  ;;  %v676_v9 = vpack.c.bf16 %v155_v7, %v147_v6 }
  0x40   :  { %657 = vmatpush1.bf16.msra.mxu1 %v656_v13  ;;  %627 = vmatprep.subr.bf16.mxu0 %v626_v14 }
  0x41   :  { %659 = vmatprep.subr.bf16.mxu1 %v658_v18  ;;  %239 = vmatprep.mubr.f32.mxu0 %v709_v0 }
  0x42   :  { %328 = vmatprep.mubr.f32.mxu1 %v709_v0  ;;  %240 = vmatmul.mubr.f32.gmra.mrb[6].mxu0 %v767_v25 }
  0x43   :  { %629 = vmatpush1.bf16.msra.mxu0 %v628_v24  ;;  %329 = vmatmul.mubr.f32.gmra.mrb[6].mxu1 %v767_v25 }
  0x44   :  { %661 = vmatpush1.bf16.msra.mxu1 %v660_v26  ;;  %631 = vmatprep.subr.bf16.mxu0 %v630_v27 }
  0x45   :  { %663 = vmatprep.subr.bf16.mxu1 %v662_v31  ;;  %399 = vmatprep.mubr.f32.mxu0 %v709_v0 }
  0x46   :  { %488 = vmatprep.mubr.f32.mxu1 %v709_v0 }
  0x47   :  { %633 = vmatpush1.bf16.msra.mxu0 %v632_v37 }
  0x48   :  { %665 = vmatpush1.bf16.msra.mxu1 %v664_v38  ;;  %635 = vmatprep.subr.bf16.mxu0 %v634_v39 }
  0x49   :  { %667 = vmatprep.subr.bf16.mxu1 %v666_v43 }
  0x4b   :  { %637 = vmatpush1.bf16.msra.mxu0 %v636_v50 }
  0x4c   :  { %669 = vmatpush1.bf16.msra.mxu1 %v668_v51  ;;  %639 = vmatprep.subr.bf16.mxu0 %v638_v52 }
  0x4d   :  { %671 = vmatprep.subr.bf16.mxu1 %v670_v56 }
  0x4f   :  { %641 = vmatpush1.bf16.msra.mxu0 %v640_v63 }
  0x50   :  { %673 = vmatpush1.bf16.msra.mxu1 %v672_v1  ;;  %643 = vmatprep.subr.bf16.mxu0 %v642_v2 }
  0x51   :  { %675 = vmatprep.subr.bf16.mxu1 %v674_v5 }
  0x53   :  { %645 = vmatpush1.bf16.msra.mxu0 %v644_v8 }
  0x54   :  { %677 = vmatpush1.bf16.msra.mxu1 %v676_v9 }
  0x56   :  { %400 = vmatmul.mubr.f32.vlgmr.msra.gmra.mrb[8].mxu0 %v742_v48 }
  0x57   :  { %489 = vmatmul.mubr.f32.vlgmr.msra.gmra.mrb[8].mxu1 %v742_v48  ;;  %405 = vmatprep.mubr.f32.mxu0 %v709_v0 }
  0x58   :  { %494 = vmatprep.mubr.f32.mxu1 %v709_v0 }
  0x5a   :  { %406 = vmatmul.mubr.f32.gmra.mrb[10].mxu0 %v749_v62 }
  0x5b   :  { %495 = vmatmul.mubr.f32.gmra.mrb[10].mxu1 %v749_v62  ;;  %411 = vmatprep.mubr.f32.mxu0 %v709_v0 }
  0x5c   :  { %500 = vmatprep.mubr.f32.mxu1 %v709_v0 }
  0x5e   :  { %412 = vmatmul.mubr.f32.gmra.mrb[12].mxu0 %v758_v12 }
  0x5f   :  { %501 = vmatmul.mubr.f32.gmra.mrb[12].mxu1 %v758_v12  ;;  %417 = vmatprep.mubr.f32.mxu0 %v709_v0 }
  0x60   :  { %506 = vmatprep.mubr.f32.mxu1 %v709_v0 }
  0x62   :  { %418 = vmatmul.mubr.f32.gmra.mrb[14].mxu0 %v767_v25 }
  0x63   :  { %507 = vmatmul.mubr.f32.gmra.mrb[14].mxu1 %v767_v25 }
 0x109   :  { %v223_v48 = vpop.f32.mrb[0].mxu0 }
 0x10a   :  { %513 = vst [vmem:[%s887_s2] sm:$0xff] %v223_v48  ;;  %v312_v62 = vpop.f32.mrb[0].mxu1  ;;  %v225_v10 = vpop.f32.mrb[1].mxu0 }
 0x10b   :  { %515 = vst [vmem:[%s887_s2 + $0x10] sm:$0xff] %v312_v62  ;;  %514 = vst [vmem:[%s887_s2 + $0x8] sm:$0xff] %v225_v10  ;;  %v314_v0 = vpop.f32.mrb[1].mxu1 }
 0x10c   :  { %516 = vst [vmem:[%s887_s2 + $0x18] sm:$0xff] %v314_v0 }
 0x10d   :  { %v229_v11 = vpop.f32.mrb[2].mxu0 }
 0x10e   :  { %521 = vst [vmem:[%s887_s2 + $0x40] sm:$0xff] %v229_v11  ;;  %v318_v12 = vpop.f32.mrb[2].mxu1  ;;  %v231_v13 = vpop.f32.mrb[3].mxu0 }
 0x10f   :  { %523 = vst [vmem:[%s887_s2 + $0x50] sm:$0xff] %v318_v12  ;;  %522 = vst [vmem:[%s887_s2 + $0x48] sm:$0xff] %v231_v13  ;;  %v320_v14 = vpop.f32.mrb[3].mxu1 }
 0x110   :  { %524 = vst [vmem:[%s887_s2 + $0x58] sm:$0xff] %v320_v14 }
 0x111   :  { %v235_v15 = vpop.f32.mrb[4].mxu0 }
 0x112   :  { %529 = vst [vmem:[%s887_s2 + $0x80] sm:$0xff] %v235_v15  ;;  %v324_v16 = vpop.f32.mrb[4].mxu1  ;;  %v237_v17 = vpop.f32.mrb[5].mxu0 }
 0x113   :  { %531 = vst [vmem:[%s887_s2 + $0x90] sm:$0xff] %v324_v16  ;;  %530 = vst [vmem:[%s887_s2 + $0x88] sm:$0xff] %v237_v17  ;;  %v326_v18 = vpop.f32.mrb[5].mxu1 }
 0x114   :  { %532 = vst [vmem:[%s887_s2 + $0x98] sm:$0xff] %v326_v18 }
 0x115   :  { %v241_v19 = vpop.f32.mrb[6].mxu0 }
 0x116   :  { %537 = vst [vmem:[%s887_s2 + $0xc0] sm:$0xff] %v241_v19  ;;  %v330_v20 = vpop.f32.mrb[6].mxu1  ;;  %v243_v21 = vpop.f32.mrb[7].mxu0 }
 0x117   :  { %539 = vst [vmem:[%s887_s2 + $0xd0] sm:$0xff] %v330_v20  ;;  %538 = vst [vmem:[%s887_s2 + $0xc8] sm:$0xff] %v243_v21  ;;  %v332_v22 = vpop.f32.mrb[7].mxu1 }
 0x118   :  { %540 = vst [vmem:[%s887_s2 + $0xd8] sm:$0xff] %v332_v22 }
 0x129   :  { %v401_v23 = vpop.f32.mrb[8].mxu0 }
 0x12a   :  { %517 = vst [vmem:[%s887_s2 + $0x20] sm:$0xff] %v401_v23  ;;  %v490_v24 = vpop.f32.mrb[8].mxu1  ;;  %v403_v25 = vpop.f32.mrb[9].mxu0 }
 0x12b   :  { %519 = vst [vmem:[%s887_s2 + $0x30] sm:$0xff] %v490_v24  ;;  %518 = vst [vmem:[%s887_s2 + $0x28] sm:$0xff] %v403_v25  ;;  %v492_v26 = vpop.f32.mrb[9].mxu1 }
 0x12c   :  { %520 = vst [vmem:[%s887_s2 + $0x38] sm:$0xff] %v492_v26 }
 0x12d   :  { %v407_v27 = vpop.f32.mrb[10].mxu0 }
 0x12e   :  { %525 = vst [vmem:[%s887_s2 + $0x60] sm:$0xff] %v407_v27  ;;  %v496_v28 = vpop.f32.mrb[10].mxu1  ;;  %v409_v29 = vpop.f32.mrb[11].mxu0 }
 0x12f   :  { %527 = vst [vmem:[%s887_s2 + $0x70] sm:$0xff] %v496_v28  ;;  %526 = vst [vmem:[%s887_s2 + $0x68] sm:$0xff] %v409_v29  ;;  %v498_v30 = vpop.f32.mrb[11].mxu1 }
 0x130   :  { %528 = vst [vmem:[%s887_s2 + $0x78] sm:$0xff] %v498_v30 }
 0x131   :  { %v413_v31 = vpop.f32.mrb[12].mxu0 }
 0x132   :  { %533 = vst [vmem:[%s887_s2 + $0xa0] sm:$0xff] %v413_v31  ;;  %v502_v32 = vpop.f32.mrb[12].mxu1  ;;  %v415_v33 = vpop.f32.mrb[13].mxu0 }
 0x133   :  { %535 = vst [vmem:[%s887_s2 + $0xb0] sm:$0xff] %v502_v32  ;;  %534 = vst [vmem:[%s887_s2 + $0xa8] sm:$0xff] %v415_v33  ;;  %v504_v34 = vpop.f32.mrb[13].mxu1 }
 0x134   :  { %536 = vst [vmem:[%s887_s2 + $0xb8] sm:$0xff] %v504_v34 }
 0x135   :  { %v419_v35 = vpop.f32.mrb[14].mxu0 }
 0x136   :  { %541 = vst [vmem:[%s887_s2 + $0xe0] sm:$0xff] %v419_v35  ;;  %v508_v36 = vpop.f32.mrb[14].mxu1  ;;  %v421_v37 = vpop.f32.mrb[15].mxu0 }
 0x137   :  { %543 = vst [vmem:[%s887_s2 + $0xf0] sm:$0xff] %v508_v36  ;;  %542 = vst [vmem:[%s887_s2 + $0xe8] sm:$0xff] %v421_v37  ;;  %v510_v38 = vpop.f32.mrb[15].mxu1 }
 0x138   :  { %544 = vst [vmem:[%s887_s2 + $0xf8] sm:$0xff] %v510_v38 }
 0x139   :  { %549 = vsyncpa [#allocation3], 1 }

// kernel: _lambda_.13
= control target key start
LH: loop header
LB: loop body
LE: loop exit
PB: predicated region body
PF: predicated region fallthrough
CT: control target
= control target key end

     0   :  { %8 = vsyncpa [#allocation3], 0  ;;  %s576_s0 = inlined_call_operand.vmem [shape: f32[128,64], index: 0, kind: input, shape index: {}]   ;;  %s577_s1 = inlined_call_operand.hbm [shape: f32[1,64], index: 1, kind: input, shape index: {}]   ;;  %s578_s2 = inlined_call_operand.hbm [shape: f32[1,64], index: 2, kind: input, shape index: {}]   ;;  %s579_s3 = inlined_call_operand.vmem [shape: f32[128,64], index: 3, kind: output, shape index: {}]  }
   0x1   :  { %9 = vsyncpa [#allocation5], 0  ;;  %s290_s12 = smov [#allocation2]   ;;  %s291_s14 = smov [#allocation4]  }
   0x2   :  { %s18_s13 = sshll.u32 %s290_s12, 4  ;;  %s28_s15 = sshll.u32 %s291_s14, 4  ;;  %s19_s13 = int_to_ptr.vmem [resolvable:$true] %s18_s13  ;;  %s29_s15 = int_to_ptr.vmem [resolvable:$true] %s28_s15 }
   0x3   :  { %s242_s18 = scalar_lea.hbm %s577_s1, 16 }
   0x4   :  { %p243_p0 = scmp.ne.s32.totalorder %s577_s1, %s242_s18  ;;  %p246_p1 = scmp.lt.u32.totalorder %s242_s18, %s577_s1 }
   0x6   :  { %p248_p2 = pnand %p246_p1, %p243_p0 }
   0x8   :  { %251 = shalt.err (!%p248_p2)
}
   0x9   :  { %s252_s23 = scalar_lea.vmem %s19_s13, 16  ;;  %s256_s24 = scalar_lea.vmem %s19_s13, 32 }
   0xa   :  { %p253_p3 = scmp.ne.s32.totalorder %s19_s13, %s252_s23  ;;  %p257_p4 = scmp.lt.s32.totalorder %s19_s13, %s19_s13 }
   0xb   :  { %p258_p5 = scmp.lt.s32.totalorder %s256_s24, %s252_s23 }
   0xd   :  { %p259_p6 = por %p258_p5, %p257_p4 }
   0xf   :  { %p260_p7 = pnand %p259_p6, %p253_p3 }
  0x11   :  { %263 = shalt.err (!%p260_p7)
}
  0x12   :  { %21 = dma.hbm_to_vmem [thread:$0]  %s577_s1, 16, %s19_s13, [#allocation3]  }
  0x13   :  { %s264_s29 = scalar_lea.hbm %s578_s2, 16 }
  0x14   :  { %p265_p8 = scmp.ne.s32.totalorder %s578_s2, %s264_s29  ;;  %p268_p9 = scmp.lt.u32.totalorder %s264_s29, %s578_s2 }
  0x16   :  { %p270_p10 = pnand %p268_p9, %p265_p8 }
  0x18   :  { %273 = shalt.err (!%p270_p10)
}
  0x19   :  { %s274_s7 = scalar_lea.vmem %s29_s15, 16  ;;  %s278_s8 = scalar_lea.vmem %s29_s15, 32 }
  0x1a   :  { %p275_p11 = scmp.ne.s32.totalorder %s29_s15, %s274_s7  ;;  %p279_p12 = scmp.lt.s32.totalorder %s29_s15, %s29_s15 }
  0x1b   :  { %p280_p13 = scmp.lt.s32.totalorder %s278_s8, %s274_s7 }
  0x1d   :  { %p281_p0 = por %p280_p13, %p279_p12 }
  0x1f   :  { %p282_p1 = pnand %p281_p0, %p275_p11 }
  0x21   :  { %285 = shalt.err (!%p282_p1)
}
  0x22   :  { %31 = dma.hbm_to_vmem [thread:$0]  %s578_s2, 16, %s29_s15, [#allocation5]  }
  0x23   :  { %286 = dma.done.wait [#allocation3], 16  }
  0x24   :  { %287 = vsyncadd [#allocation3], 4294967280 }
  0x25   :  { %288 = dma.done.wait [#allocation5], 16  }
  0x26   :  { %289 = vsyncadd [#allocation5], 4294967280  ;;  %vm54_vm0 = vcmask 523264   ;;  %v339_v0 = vld [vmem:[%s576_s0] sm:$0xff]  ;;  %v344_v1 = vld [vmem:[%s576_s0 + $0x8] sm:$0xff] }
  0x27   :  { %v349_v2 = vld [vmem:[%s576_s0 + $0x10] sm:$0xff]  ;;  %v354_v3 = vld [vmem:[%s576_s0 + $0x18] sm:$0xff]  ;;  %v55_v4 = vsel %vm54_vm0, %v339_v0, 0.0  ;;  %v56_v5 = vsel %vm54_vm0, %v344_v1, 0.0  ;;  %v365_v7 = vld [vmem:[%s576_s0 + $0x20] sm:$0xff]  ;;  %v92_v15 = vmul.f32 %v339_v0, %v339_v0  ;;  %v93_v16 = vmul.f32 %v344_v1, %v344_v1 }
  0x28   :  { %v58_v6 = vsel %vm54_vm0, %v349_v2, 0.0  ;;  %v57_v8 = vadd.f32 %v56_v5, %v55_v4  ;;  %v60_v9 = vsel %vm54_vm0, %v354_v3, 0.0  ;;  %v372_v10 = vld [vmem:[%s576_s0 + $0x28] sm:$0xff]  ;;  %v62_v12 = vsel %vm54_vm0, %v365_v7, 0.0  ;;  %v379_v13 = vld [vmem:[%s576_s0 + $0x30] sm:$0xff]  ;;  %v392_v19 = vld [vmem:[%s576_s0 + $0x38] sm:$0xff] }
  0x29   :  { %v94_v17 = vmul.f32 %v349_v2, %v349_v2  ;;  %v64_v18 = vsel %vm54_vm0, %v372_v10, 0.0  ;;  %v95_v21 = vmul.f32 %v354_v3, %v354_v3  ;;  %v66_v22 = vsel %vm54_vm0, %v379_v13, 0.0  ;;  %v403_v24 = vld [vmem:[%s576_s0 + $0x40] sm:$0xff]  ;;  %v413_v31 = vld [vmem:[%s576_s0 + $0x48] sm:$0xff]  ;;  %v423_v37 = vld [vmem:[%s576_s0 + $0x50] sm:$0xff] }
  0x2a   :  { %v59_v11 = vadd.f32 %v58_v6, %v57_v8  ;;  %v96_v23 = vmul.f32 %v365_v7, %v365_v7  ;;  %v108_v26 = vsel %vm54_vm0, %v92_v15, 0.0  ;;  %v109_v27 = vsel %vm54_vm0, %v93_v16, 0.0  ;;  %v433_v43 = vld [vmem:[%s576_s0 + $0x58] sm:$0xff]  ;;  %v443_v49 = vld [vmem:[%s576_s0 + $0x60] sm:$0xff]  ;;  %v453_v55 = vld [vmem:[%s576_s0 + $0x68] sm:$0xff] }
  0x2b   :  { %v111_v28 = vsel %vm54_vm0, %v94_v17, 0.0  ;;  %v68_v29 = vsel %vm54_vm0, %v392_v19, 0.0  ;;  %v110_v30 = vadd.f32 %v109_v27, %v108_v26  ;;  %v97_v33 = vmul.f32 %v372_v10, %v372_v10  ;;  %v463_v61 = vld [vmem:[%s576_s0 + $0x70] sm:$0xff]  ;;  %v473_v8 = vld [vmem:[%s576_s0 + $0x78] sm:$0xff] }
  0x2c   :  { %v61_v14 = vadd.f32 %v60_v9, %v59_v11  ;;  %v113_v34 = vsel %vm54_vm0, %v95_v21, 0.0  ;;  %v70_v35 = vsel %vm54_vm0, %v403_v24, 0.0  ;;  %v98_v39 = vmul.f32 %v379_v13, %v379_v13 }
  0x2d   :  { %v112_v36 = vadd.f32 %v111_v28, %v110_v30  ;;  %v115_v40 = vsel %vm54_vm0, %v96_v23, 0.0  ;;  %v72_v41 = vsel %vm54_vm0, %v413_v31, 0.0  ;;  %v99_v45 = vmul.f32 %v392_v19, %v392_v19 }
  0x2e   :  { %v63_v20 = vadd.f32 %v62_v12, %v61_v14  ;;  %v117_v46 = vsel %vm54_vm0, %v97_v33, 0.0  ;;  %v74_v47 = vsel %vm54_vm0, %v423_v37, 0.0  ;;  %v100_v51 = vmul.f32 %v403_v24, %v403_v24 }
  0x2f   :  { %v114_v42 = vadd.f32 %v113_v34, %v112_v36  ;;  %v119_v52 = vsel %vm54_vm0, %v98_v39, 0.0  ;;  %v76_v53 = vsel %vm54_vm0, %v433_v43, 0.0  ;;  %v101_v57 = vmul.f32 %v413_v31, %v413_v31 }
  0x30   :  { %v65_v25 = vadd.f32 %v64_v18, %v63_v20  ;;  %v121_v58 = vsel %vm54_vm0, %v99_v45, 0.0  ;;  %v78_v59 = vsel %vm54_vm0, %v443_v49, 0.0  ;;  %v102_v63 = vmul.f32 %v423_v37, %v423_v37 }
  0x31   :  { %v116_v48 = vadd.f32 %v115_v40, %v114_v42  ;;  %v123_v4 = vsel %vm54_vm0, %v100_v51, 0.0  ;;  %v80_v5 = vsel %vm54_vm0, %v453_v55, 0.0  ;;  %v103_v11 = vmul.f32 %v433_v43, %v433_v43 }
  0x32   :  { %v67_v32 = vadd.f32 %v66_v22, %v65_v25  ;;  %v125_v12 = vsel %vm54_vm0, %v101_v57, 0.0  ;;  %v82_v14 = vsel %vm54_vm0, %v463_v61, 0.0  ;;  %v104_v17 = vmul.f32 %v443_v49, %v443_v49 }
  0x33   :  { %v118_v54 = vadd.f32 %v117_v46, %v116_v48  ;;  %v127_v18 = vsel %vm54_vm0, %v102_v63, 0.0  ;;  %v84_v20 = vsel %vm54_vm0, %v473_v8, 0.0  ;;  %v105_v23 = vmul.f32 %v453_v55, %v453_v55 }
  0x34   :  { %v69_v38 = vadd.f32 %v68_v29, %v67_v32  ;;  %v129_v25 = vsel %vm54_vm0, %v103_v11, 0.0  ;;  %v106_v28 = vmul.f32 %v463_v61, %v463_v61  ;;  %v131_v29 = vsel %vm54_vm0, %v104_v17, 0.0  ;;  %v153_v11 = vld [vmem:[#allocation4] sm:$0x1] }
  0x35   :  { %v120_v60 = vadd.f32 %v119_v52, %v118_v54  ;;  %v107_v33 = vmul.f32 %v473_v8, %v473_v8  ;;  %v133_v34 = vsel %vm54_vm0, %v105_v23, 0.0 }
  0x36   :  { %v71_v44 = vadd.f32 %v70_v35, %v69_v38  ;;  %v135_v38 = vsel %vm54_vm0, %v106_v28, 0.0 }
  0x37   :  { %v122_v6 = vadd.f32 %v121_v58, %v120_v60 }
  0x38   :  { %v73_v50 = vadd.f32 %v72_v41, %v71_v44  ;;  %v137_v41 = vsel %vm54_vm0, %v107_v33, 0.0 }
  0x39   :  { %v124_v15 = vadd.f32 %v123_v4, %v122_v6  ;;  %v149_v4 = vld [vmem:[#allocation2] sm:$0x1] }
  0x3a   :  { %v75_v56 = vadd.f32 %v74_v47, %v73_v50 }
  0x3b   :  { %v126_v21 = vadd.f32 %v125_v12, %v124_v15 }
  0x3c   :  { %v77_v62 = vadd.f32 %v76_v53, %v75_v56 }
  0x3d   :  { %v128_v26 = vadd.f32 %v127_v18, %v126_v21 }
  0x3e   :  { %v79_v9 = vadd.f32 %v78_v59, %v77_v62  ;;  %v157_v62 = vlaneseq }
  0x3f   :  { %v130_v30 = vadd.f32 %v129_v25, %v128_v26 }
  0x40   :  { %v81_v16 = vadd.f32 %v80_v5, %v79_v9  ;;  %v158_v63 = vshrl.u32 %v157_v62, 7 }
  0x41   :  { %v132_v35 = vadd.f32 %v131_v29, %v130_v30 }
  0x42   :  { %v83_v22 = vadd.f32 %v82_v14, %v81_v16  ;;  %v159_v5 = vsub.s32 0, %v158_v63 }
  0x43   :  { %v134_v39 = vadd.f32 %v133_v34, %v132_v35 }
  0x44   :  { %v85_v27 = vadd.f32 %v84_v20, %v83_v22 }
  0x45   :  { %v136_v42 = vadd.f32 %v135_v38, %v134_v39 }
  0x46   :  { %v86_v32 = vrot.slane %v85_v27, 4 }
  0x47   :  { %v138_v45 = vadd.f32 %v137_v41, %v136_v42 }
  0x48   :  { %v87_v36 = vadd.f32 %v86_v32, %v85_v27 }
  0x49   :  { %v139_v47 = vrot.slane %v138_v45, 4 }
  0x4a   :  { %v88_v40 = vrot.slane %v87_v36, 2 }
  0x4b   :  { %v140_v50 = vadd.f32 %v139_v47, %v138_v45 }
  0x4c   :  { %v89_v44 = vadd.f32 %v88_v40, %v87_v36 }
  0x4d   :  { %v141_v51 = vrot.slane %v140_v50, 2 }
  0x4e   :  { %v90_v46 = vrot.slane %v89_v44, 1 }
  0x4f   :  { %v142_v52 = vadd.f32 %v141_v51, %v140_v50 }
  0x50   :  { %v91_v48 = vadd.f32 %v90_v46, %v89_v44 }
  0x51   :  { %v143_v54 = vrot.slane %v142_v52, 1 }
  0x52   :  { %v145_v53 = vmul.f32 0.0078125, %v91_v48 }
  0x53   :  { %v144_v56 = vadd.f32 %v143_v54, %v142_v52 }
  0x54   :  { %v147_v57 = vmul.f32 %v145_v53, %v145_v53 }
  0x55   :  { %v146_v58 = vmul.f32 0.0078125, %v144_v56 }
  0x57   :  { %v148_v59 = vsub.f32 %v146_v58, %v147_v57 }
  0x59   :  { %v150_v60 = vadd.f32 1e-05, %v148_v59 }
  0x5b   :  { %240 = vrsqrt.f32 %v150_v60 }
  0x65   :  { %v241_v6 = vpop.eup %240 }
  0x66   :  { %v152_v9 = vmul.f32 %v241_v6, %v149_v4 }
  0x68   :  { %v154_v12 = vmul.f32 %v152_v9, %v145_v53  ;;  %v160_v14 = vrot.slane %v152_v9, %v159_v5 }
  0x6a   :  { %v155_v15 = vsub.f32 %v153_v11, %v154_v12  ;;  %v162_v16 = vmul.f32 %v160_v14, %v339_v0  ;;  %v163_v17 = vmul.f32 %v160_v14, %v344_v1  ;;  %v164_v18 = vmul.f32 %v160_v14, %v349_v2 }
  0x6b   :  { %v165_v20 = vmul.f32 %v160_v14, %v354_v3  ;;  %v166_v21 = vmul.f32 %v160_v14, %v365_v7  ;;  %v167_v22 = vmul.f32 %v160_v14, %v372_v10  ;;  %v168_v23 = vmul.f32 %v160_v14, %v379_v13 }
  0x6c   :  { %v182_v25 = vrot.slane %v155_v15, %v159_v5  ;;  %v169_v26 = vmul.f32 %v160_v14, %v392_v19  ;;  %v170_v27 = vmul.f32 %v160_v14, %v403_v24  ;;  %v171_v28 = vmul.f32 %v160_v14, %v413_v31 }
  0x6d   :  { %v172_v0 = vmul.f32 %v160_v14, %v423_v37  ;;  %v173_v1 = vmul.f32 %v160_v14, %v433_v43  ;;  %v174_v2 = vmul.f32 %v160_v14, %v443_v49  ;;  %v175_v3 = vmul.f32 %v160_v14, %v453_v55 }
  0x6e   :  { %v184_v7 = vadd.f32 %v182_v25, %v162_v16  ;;  %v185_v29 = vadd.f32 %v182_v25, %v163_v17  ;;  %v186_v10 = vadd.f32 %v182_v25, %v164_v18  ;;  %v187_v30 = vadd.f32 %v182_v25, %v165_v20 }
  0x6f   :  { %v188_v13 = vadd.f32 %v182_v25, %v166_v21  ;;  %v189_v32 = vadd.f32 %v182_v25, %v167_v22  ;;  %v190_v33 = vadd.f32 %v182_v25, %v168_v23  ;;  %v191_v19 = vadd.f32 %v182_v25, %v169_v26 }
  0x70   :  { %v200_v34 = vmax.f32 %v184_v7, 0.0  ;;  %v201_v24 = vmax.f32 %v185_v29, 0.0  ;;  %v202_v35 = vmax.f32 %v186_v10, 0.0  ;;  %v203_v31 = vmax.f32 %v187_v30, 0.0 }
  0x71   :  { %v204_v36 = vmax.f32 %v188_v13, 0.0  ;;  %v205_v37 = vmax.f32 %v189_v32, 0.0  ;;  %v206_v38 = vmax.f32 %v190_v33, 0.0  ;;  %v207_v43 = vmax.f32 %v191_v19, 0.0 }
  0x72   :  { %216 = vst.msk [vmem:[%s579_s3] sm:$0xff] %vm54_vm0, %v200_v34  ;;  %217 = vst.msk [vmem:[%s579_s3 + $0x8] sm:$0xff] %vm54_vm0, %v201_v24  ;;  %v192_v49 = vadd.f32 %v182_v25, %v170_v27  ;;  %v193_v55 = vadd.f32 %v182_v25, %v171_v28  ;;  %v194_v39 = vadd.f32 %v182_v25, %v172_v0 }
  0x73   :  { %218 = vst.msk [vmem:[%s579_s3 + $0x10] sm:$0xff] %vm54_vm0, %v202_v35  ;;  %219 = vst.msk [vmem:[%s579_s3 + $0x18] sm:$0xff] %vm54_vm0, %v203_v31  ;;  %v195_v40 = vadd.f32 %v182_v25, %v173_v1  ;;  %v196_v41 = vadd.f32 %v182_v25, %v174_v2  ;;  %v197_v42 = vadd.f32 %v182_v25, %v175_v3 }
  0x74   :  { %220 = vst.msk [vmem:[%s579_s3 + $0x20] sm:$0xff] %vm54_vm0, %v204_v36  ;;  %221 = vst.msk [vmem:[%s579_s3 + $0x28] sm:$0xff] %vm54_vm0, %v205_v37  ;;  %v176_v44 = vmul.f32 %v160_v14, %v463_v61  ;;  %v177_v45 = vmul.f32 %v160_v14, %v473_v8  ;;  %v208_v46 = vmax.f32 %v192_v49, 0.0  ;;  %v209_v47 = vmax.f32 %v193_v55, 0.0 }
  0x75   :  { %222 = vst.msk [vmem:[%s579_s3 + $0x30] sm:$0xff] %vm54_vm0, %v206_v38  ;;  %223 = vst.msk [vmem:[%s579_s3 + $0x38] sm:$0xff] %vm54_vm0, %v207_v43  ;;  %v210_v48 = vmax.f32 %v194_v39, 0.0  ;;  %v211_v50 = vmax.f32 %v195_v40, 0.0  ;;  %v212_v51 = vmax.f32 %v196_v41, 0.0  ;;  %v213_v52 = vmax.f32 %v197_v42, 0.0 }
  0x76   :  { %v198_v53 = vadd.f32 %v182_v25, %v176_v44  ;;  %v199_v54 = vadd.f32 %v182_v25, %v177_v45  ;;  %224 = vst.msk [vmem:[%s579_s3 + $0x40] sm:$0xff] %vm54_vm0, %v208_v46  ;;  %225 = vst.msk [vmem:[%s579_s3 + $0x48] sm:$0xff] %vm54_vm0, %v209_v47 }
  0x77   :  { %226 = vst.msk [vmem:[%s579_s3 + $0x50] sm:$0xff] %vm54_vm0, %v210_v48  ;;  %227 = vst.msk [vmem:[%s579_s3 + $0x58] sm:$0xff] %vm54_vm0, %v211_v50 }
  0x78   :  { %228 = vst.msk [vmem:[%s579_s3 + $0x60] sm:$0xff] %vm54_vm0, %v212_v51  ;;  %229 = vst.msk [vmem:[%s579_s3 + $0x68] sm:$0xff] %vm54_vm0, %v213_v52  ;;  %v214_v61 = vmax.f32 %v198_v53, 0.0  ;;  %v215_v8 = vmax.f32 %v199_v54, 0.0 }
  0x7a   :  { %230 = vst.msk [vmem:[%s579_s3 + $0x70] sm:$0xff] %vm54_vm0, %v214_v61  ;;  %231 = vst.msk [vmem:[%s579_s3 + $0x78] sm:$0xff] %vm54_vm0, %v215_v8 }
  0x7b   :  { %236 = vsyncpa [#allocation3], 1 }
  0x7c   :  { %237 = vsyncpa [#allocation5], 1 }

// kernel: _lambda_.14
= control target key start
LH: loop header
LB: loop body
LE: loop exit
PB: predicated region body
PF: predicated region fallthrough
CT: control target
= control target key end

     0   :  { %7 = vsyncpa [#allocation3], 0  ;;  %s605_s9 = smov [#allocation2]   ;;  %s940_s0 = inlined_call_operand.vmem [shape: f32[128,64], index: 0, kind: input, shape index: {}]   ;;  %s941_s1 = inlined_call_operand.hbm [shape: f32[64,512], index: 1, kind: input, shape index: {}]   ;;  %s942_s2 = inlined_call_operand.vmem [shape: f32[128,512], index: 2, kind: output, shape index: {}]  }
   0x1   :  { %s15_s10 = sshll.u32 %s605_s9, 4  ;;  %s581_s13 = scalar_lea.hbm %s941_s1, 4096  ;;  %s16_s10 = int_to_ptr.vmem [resolvable:$true] %s15_s10 }
   0x2   :  { %p582_p0 = scmp.ne.s32.totalorder %s941_s1, %s581_s13  ;;  %p585_p1 = scmp.lt.u32.totalorder %s581_s13, %s941_s1 }
   0x4   :  { %p587_p2 = pnand %p585_p1, %p582_p0 }
   0x6   :  { %590 = shalt.err (!%p587_p2)
}
   0x7   :  { %s591_s18 = scalar_lea.vmem %s16_s10, 4096  ;;  %p596_p4 = scmp.lt.s32.totalorder %s16_s10, %s16_s10 }
   0x8   :  { %p592_p3 = scmp.ne.s32.totalorder %s16_s10, %s591_s18  ;;  %p597_p5 = scmp.lt.s32.totalorder %s591_s18, %s591_s18 }
   0xa   :  { %p598_p6 = por %p597_p5, %p596_p4 }
   0xc   :  { %p599_p7 = pnand %p598_p6, %p592_p3 }
   0xe   :  { %602 = shalt.err (!%p599_p7)
}
   0xf   :  { %s606_s19 = smov 512   ;;  %s607_s20 = smov 32  }
  0x10   :  { %21 = dma.hbm_to_vmem [thread:$0]  %s941_s1, 4096, %s16_s10, [#allocation3], %s606_s19, %s606_s19, %s607_s20  }
  0x11   :  { %603 = dma.done.wait [#allocation3], 4096  }
  0x12   :  { %604 = vsyncadd [#allocation3], 4294963200  ;;  %v608_v0 = vmov 0.0   ;;  %v42_v1 = vld [vmem:[#allocation2 + $0x8] sm:$0xff]  ;;  %v44_v3 = vld [vmem:[#allocation2 + $0x18] sm:$0xff]  ;;  %vm73_vm0 = vcmask 523264  }
  0x13   :  { %186 = vmatprep.mubr.f32.mxu0 %v608_v0  ;;  %347 = vmatprep.mubr.f32.mxu1 %v608_v0  ;;  %v46_v2 = vld [vmem:[#allocation2 + $0x28] sm:$0xff]  ;;  %v48_v5 = vld [vmem:[#allocation2 + $0x38] sm:$0xff]  ;;  %v41_v6 = vld [vmem:[#allocation2] sm:$0xff] }
  0x14   :  { %v545_v4 = vpack.c.bf16 %v46_v2, %v42_v1  ;;  %v45_v7 = vld [vmem:[#allocation2 + $0x20] sm:$0xff]  ;;  %v561_v8 = vpack.c.bf16 %v48_v5, %v44_v3  ;;  %v43_v10 = vld [vmem:[#allocation2 + $0x10] sm:$0xff]  ;;  %v50_v12 = vld [vmem:[#allocation2 + $0x48] sm:$0xff] }
  0x15   :  { %v547_v9 = vpack.c.bf16 %v45_v7, %v41_v6  ;;  %v47_v11 = vld [vmem:[#allocation2 + $0x30] sm:$0xff]  ;;  %v54_v14 = vld [vmem:[#allocation2 + $0x68] sm:$0xff]  ;;  %v52_v15 = vld [vmem:[#allocation2 + $0x58] sm:$0xff] }
  0x16   :  { %546 = vmatprep.subr.bf16.mxu0 %v545_v4  ;;  %v563_v13 = vpack.c.bf16 %v47_v11, %v43_v10  ;;  %v56_v16 = vld [vmem:[#allocation2 + $0x78] sm:$0xff]  ;;  %562 = vmatprep.subr.bf16.mxu1 %v561_v8  ;;  %v549_v17 = vpack.c.bf16 %v54_v14, %v50_v12  ;;  %v49_v19 = vld [vmem:[#allocation2 + $0x40] sm:$0xff]  ;;  %v51_v21 = vld [vmem:[#allocation2 + $0x50] sm:$0xff] }
  0x17   :  { %548 = vmatpush1.bf16.msra.mxu0 %v547_v9  ;;  %v565_v18 = vpack.c.bf16 %v56_v16, %v52_v15  ;;  %v53_v20 = vld [vmem:[#allocation2 + $0x60] sm:$0xff]  ;;  %v55_v23 = vld [vmem:[#allocation2 + $0x70] sm:$0xff]  ;;  %v58_v24 = vld [vmem:[#allocation2 + $0x88] sm:$0xff] }
  0x18   :  { %564 = vmatpush1.bf16.msra.mxu1 %v563_v13  ;;  %v551_v22 = vpack.c.bf16 %v53_v20, %v49_v19  ;;  %v62_v25 = vld [vmem:[#allocation2 + $0xa8] sm:$0xff]  ;;  %550 = vmatprep.subr.bf16.mxu0 %v549_v17  ;;  %v567_v26 = vpack.c.bf16 %v55_v23, %v51_v21  ;;  %v60_v28 = vld [vmem:[#allocation2 + $0x98] sm:$0xff]  ;;  %v57_v30 = vld [vmem:[#allocation2 + $0x80] sm:$0xff] }
  0x19   :  { %566 = vmatprep.subr.bf16.mxu1 %v565_v18  ;;  %v553_v27 = vpack.c.bf16 %v62_v25, %v58_v24  ;;  %v64_v29 = vld [vmem:[#allocation2 + $0xb8] sm:$0xff]  ;;  %v61_v32 = vld [vmem:[#allocation2 + $0xa0] sm:$0xff]  ;;  %v59_v33 = vld [vmem:[#allocation2 + $0x90] sm:$0xff] }
  0x1a   :  { %v569_v31 = vpack.c.bf16 %v64_v29, %v60_v28  ;;  %v63_v34 = vld [vmem:[#allocation2 + $0xb0] sm:$0xff]  ;;  %v555_v35 = vpack.c.bf16 %v61_v32, %v57_v30  ;;  %v66_v36 = vld [vmem:[#allocation2 + $0xc8] sm:$0xff]  ;;  %v68_v38 = vld [vmem:[#allocation2 + $0xd8] sm:$0xff] }
  0x1b   :  { %552 = vmatpush1.bf16.msra.mxu0 %v551_v22  ;;  %v70_v37 = vld [vmem:[#allocation2 + $0xe8] sm:$0xff]  ;;  %v571_v39 = vpack.c.bf16 %v63_v34, %v59_v33  ;;  %v72_v41 = vld [vmem:[#allocation2 + $0xf8] sm:$0xff]  ;;  %v65_v42 = vld [vmem:[#allocation2 + $0xc0] sm:$0xff] }
  0x1c   :  { %568 = vmatpush1.bf16.msra.mxu1 %v567_v26  ;;  %554 = vmatprep.subr.bf16.mxu0 %v553_v27  ;;  %v557_v40 = vpack.c.bf16 %v70_v37, %v66_v36  ;;  %v69_v43 = vld [vmem:[#allocation2 + $0xe0] sm:$0xff]  ;;  %v573_v44 = vpack.c.bf16 %v72_v41, %v68_v38  ;;  %v67_v45 = vld [vmem:[#allocation2 + $0xd0] sm:$0xff]  ;;  %v26_v50 = vld [vmem:[%s940_s0 + $0x8] sm:$0xff] }
  0x1d   :  { %570 = vmatprep.subr.bf16.mxu1 %v569_v31  ;;  %v71_v46 = vld [vmem:[#allocation2 + $0xf0] sm:$0xff]  ;;  %v559_v47 = vpack.c.bf16 %v69_v43, %v65_v42  ;;  %v25_v49 = vld [vmem:[%s940_s0] sm:$0xff]  ;;  %v28_v52 = vld [vmem:[%s940_s0 + $0x18] sm:$0xff] }
  0x1e   :  { %v575_v48 = vpack.c.bf16 %v71_v46, %v67_v45  ;;  %v27_v51 = vld [vmem:[%s940_s0 + $0x10] sm:$0xff]  ;;  %v29_v53 = vld [vmem:[%s940_s0 + $0x20] sm:$0xff]  ;;  %v30_v54 = vld [vmem:[%s940_s0 + $0x28] sm:$0xff] }
  0x1f   :  { %556 = vmatpush1.bf16.msra.mxu0 %v555_v35  ;;  %v31_v55 = vld [vmem:[%s940_s0 + $0x30] sm:$0xff]  ;;  %v32_v56 = vld [vmem:[%s940_s0 + $0x38] sm:$0xff]  ;;  %v33_v57 = vld [vmem:[%s940_s0 + $0x40] sm:$0xff] }
  0x20   :  { %572 = vmatpush1.bf16.msra.mxu1 %v571_v39  ;;  %558 = vmatprep.subr.bf16.mxu0 %v557_v40  ;;  %v34_v58 = vld [vmem:[%s940_s0 + $0x48] sm:$0xff]  ;;  %v35_v59 = vld [vmem:[%s940_s0 + $0x50] sm:$0xff]  ;;  %v36_v60 = vld [vmem:[%s940_s0 + $0x58] sm:$0xff] }
  0x21   :  { %574 = vmatprep.subr.bf16.mxu1 %v573_v44  ;;  %v37_v61 = vld [vmem:[%s940_s0 + $0x60] sm:$0xff]  ;;  %v38_v62 = vld [vmem:[%s940_s0 + $0x68] sm:$0xff]  ;;  %v39_v63 = vld [vmem:[%s940_s0 + $0x70] sm:$0xff] }
  0x22   :  { %v40_v1 = vld [vmem:[%s940_s0 + $0x78] sm:$0xff] }
  0x23   :  { %560 = vmatpush1.bf16.msra.mxu0 %v559_v47 }
  0x24   :  { %576 = vmatpush1.bf16.msra.mxu1 %v575_v48 }
  0x26   :  { %513 = vmatmul.mubr.msk.f32.vlgmr.msra.gmra.mrb[0].mxu0 %vm73_vm0, %v25_v49 }
  0x27   :  { %529 = vmatmul.mubr.msk.f32.vlgmr.msra.gmra.mrb[0].mxu1 %vm73_vm0, %v25_v49  ;;  %192 = vmatprep.mubr.f32.mxu0 %v608_v0 }
  0x28   :  { %353 = vmatprep.mubr.f32.mxu1 %v608_v0 }
  0x2a   :  { %514 = vmatmul.mubr.msk.f32.gmra.mrb[2].mxu0 %vm73_vm0, %v26_v50 }
  0x2b   :  { %530 = vmatmul.mubr.msk.f32.gmra.mrb[2].mxu1 %vm73_vm0, %v26_v50  ;;  %198 = vmatprep.mubr.f32.mxu0 %v608_v0 }
  0x2c   :  { %359 = vmatprep.mubr.f32.mxu1 %v608_v0 }
  0x2e   :  { %515 = vmatmul.mubr.msk.f32.gmra.mrb[4].mxu0 %vm73_vm0, %v27_v51 }
  0x2f   :  { %531 = vmatmul.mubr.msk.f32.gmra.mrb[4].mxu1 %vm73_vm0, %v27_v51  ;;  %204 = vmatprep.mubr.f32.mxu0 %v608_v0 }
  0x30   :  { %365 = vmatprep.mubr.f32.mxu1 %v608_v0 }
  0x32   :  { %516 = vmatmul.mubr.msk.f32.gmra.mrb[6].mxu0 %vm73_vm0, %v28_v52 }
  0x33   :  { %532 = vmatmul.mubr.msk.f32.gmra.mrb[6].mxu1 %vm73_vm0, %v28_v52  ;;  %210 = vmatprep.mubr.f32.mxu0 %v608_v0 }
  0x34   :  { %371 = vmatprep.mubr.f32.mxu1 %v608_v0 }
  0x36   :  { %517 = vmatmul.mubr.msk.f32.gmra.mrb[8].mxu0 %vm73_vm0, %v29_v53 }
  0x37   :  { %533 = vmatmul.mubr.msk.f32.gmra.mrb[8].mxu1 %vm73_vm0, %v29_v53  ;;  %216 = vmatprep.mubr.f32.mxu0 %v608_v0 }
  0x38   :  { %377 = vmatprep.mubr.f32.mxu1 %v608_v0 }
  0x3a   :  { %518 = vmatmul.mubr.msk.f32.gmra.mrb[10].mxu0 %vm73_vm0, %v30_v54 }
  0x3b   :  { %534 = vmatmul.mubr.msk.f32.gmra.mrb[10].mxu1 %vm73_vm0, %v30_v54  ;;  %222 = vmatprep.mubr.f32.mxu0 %v608_v0 }
  0x3c   :  { %383 = vmatprep.mubr.f32.mxu1 %v608_v0 }
  0x3e   :  { %519 = vmatmul.mubr.msk.f32.gmra.mrb[12].mxu0 %vm73_vm0, %v31_v55 }
  0x3f   :  { %535 = vmatmul.mubr.msk.f32.gmra.mrb[12].mxu1 %vm73_vm0, %v31_v55  ;;  %228 = vmatprep.mubr.f32.mxu0 %v608_v0 }
  0x40   :  { %389 = vmatprep.mubr.f32.mxu1 %v608_v0 }
  0x42   :  { %520 = vmatmul.mubr.msk.f32.gmra.mrb[14].mxu0 %vm73_vm0, %v32_v56 }
  0x43   :  { %536 = vmatmul.mubr.msk.f32.gmra.mrb[14].mxu1 %vm73_vm0, %v32_v56  ;;  %234 = vmatprep.mubr.f32.mxu0 %v608_v0 }
  0x44   :  { %395 = vmatprep.mubr.f32.mxu1 %v608_v0 }
  0x46   :  { %521 = vmatmul.mubr.msk.f32.gmra.mrb[16].mxu0 %vm73_vm0, %v33_v57 }
  0x47   :  { %537 = vmatmul.mubr.msk.f32.gmra.mrb[16].mxu1 %vm73_vm0, %v33_v57  ;;  %240 = vmatprep.mubr.f32.mxu0 %v608_v0 }
  0x48   :  { %401 = vmatprep.mubr.f32.mxu1 %v608_v0 }
  0x4a   :  { %522 = vmatmul.mubr.msk.f32.gmra.mrb[18].mxu0 %vm73_vm0, %v34_v58 }
  0x4b   :  { %538 = vmatmul.mubr.msk.f32.gmra.mrb[18].mxu1 %vm73_vm0, %v34_v58  ;;  %246 = vmatprep.mubr.f32.mxu0 %v608_v0 }
  0x4c   :  { %407 = vmatprep.mubr.f32.mxu1 %v608_v0 }
  0x4e   :  { %523 = vmatmul.mubr.msk.f32.gmra.mrb[20].mxu0 %vm73_vm0, %v35_v59 }
  0x4f   :  { %539 = vmatmul.mubr.msk.f32.gmra.mrb[20].mxu1 %vm73_vm0, %v35_v59  ;;  %252 = vmatprep.mubr.f32.mxu0 %v608_v0 }
  0x50   :  { %413 = vmatprep.mubr.f32.mxu1 %v608_v0 }
  0x52   :  { %524 = vmatmul.mubr.msk.f32.gmra.mrb[22].mxu0 %vm73_vm0, %v36_v60 }
  0x53   :  { %540 = vmatmul.mubr.msk.f32.gmra.mrb[22].mxu1 %vm73_vm0, %v36_v60  ;;  %258 = vmatprep.mubr.f32.mxu0 %v608_v0 }
  0x54   :  { %419 = vmatprep.mubr.f32.mxu1 %v608_v0 }
  0x56   :  { %525 = vmatmul.mubr.msk.f32.gmra.mrb[24].mxu0 %vm73_vm0, %v37_v61 }
  0x57   :  { %541 = vmatmul.mubr.msk.f32.gmra.mrb[24].mxu1 %vm73_vm0, %v37_v61  ;;  %264 = vmatprep.mubr.f32.mxu0 %v608_v0 }
  0x58   :  { %425 = vmatprep.mubr.f32.mxu1 %v608_v0 }
  0x5a   :  { %526 = vmatmul.mubr.msk.f32.gmra.mrb[26].mxu0 %vm73_vm0, %v38_v62 }
  0x5b   :  { %542 = vmatmul.mubr.msk.f32.gmra.mrb[26].mxu1 %vm73_vm0, %v38_v62  ;;  %270 = vmatprep.mubr.f32.mxu0 %v608_v0 }
  0x5c   :  { %431 = vmatprep.mubr.f32.mxu1 %v608_v0 }
  0x5e   :  { %527 = vmatmul.mubr.msk.f32.gmra.mrb[28].mxu0 %vm73_vm0, %v39_v63 }
  0x5f   :  { %543 = vmatmul.mubr.msk.f32.gmra.mrb[28].mxu1 %vm73_vm0, %v39_v63  ;;  %276 = vmatprep.mubr.f32.mxu0 %v608_v0 }
  0x60   :  { %437 = vmatprep.mubr.f32.mxu1 %v608_v0 }
  0x62   :  { %528 = vmatmul.mubr.msk.f32.gmra.mrb[30].mxu0 %vm73_vm0, %v40_v1 }
  0x63   :  { %544 = vmatmul.mubr.msk.f32.gmra.mrb[30].mxu1 %vm73_vm0, %v40_v1 }
  0xf9   :  { %v188_v2 = vpop.f32.mrb[0].mxu0 }
  0xfa   :  { %444 = vst [vmem:[%s942_s2] sm:$0xff] %v188_v2  ;;  %v349_v3 = vpop.f32.mrb[0].mxu1  ;;  %v190_v4 = vpop.f32.mrb[1].mxu0 }
  0xfb   :  { %446 = vst [vmem:[%s942_s2 + $0x10] sm:$0xff] %v349_v3  ;;  %445 = vst [vmem:[%s942_s2 + $0x8] sm:$0xff] %v190_v4  ;;  %v351_v0 = vpop.f32.mrb[1].mxu1 }
  0xfc   :  { %447 = vst [vmem:[%s942_s2 + $0x18] sm:$0xff] %v351_v0 }
  0xfd   :  { %v194_v5 = vpop.f32.mrb[2].mxu0 }
  0xfe   :  { %448 = vst [vmem:[%s942_s2 + $0x20] sm:$0xff] %v194_v5  ;;  %v355_v6 = vpop.f32.mrb[2].mxu1  ;;  %v196_v7 = vpop.f32.mrb[3].mxu0 }
  0xff   :  { %450 = vst [vmem:[%s942_s2 + $0x30] sm:$0xff] %v355_v6  ;;  %449 = vst [vmem:[%s942_s2 + $0x28] sm:$0xff] %v196_v7  ;;  %v357_v8 = vpop.f32.mrb[3].mxu1 }
 0x100   :  { %451 = vst [vmem:[%s942_s2 + $0x38] sm:$0xff] %v357_v8 }
 0x101   :  { %v200_v9 = vpop.f32.mrb[4].mxu0 }
 0x102   :  { %452 = vst [vmem:[%s942_s2 + $0x40] sm:$0xff] %v200_v9  ;;  %v361_v10 = vpop.f32.mrb[4].mxu1  ;;  %v202_v11 = vpop.f32.mrb[5].mxu0 }
 0x103   :  { %454 = vst [vmem:[%s942_s2 + $0x50] sm:$0xff] %v361_v10  ;;  %453 = vst [vmem:[%s942_s2 + $0x48] sm:$0xff] %v202_v11  ;;  %v363_v12 = vpop.f32.mrb[5].mxu1 }
 0x104   :  { %455 = vst [vmem:[%s942_s2 + $0x58] sm:$0xff] %v363_v12 }
 0x105   :  { %v206_v13 = vpop.f32.mrb[6].mxu0 }
 0x106   :  { %456 = vst [vmem:[%s942_s2 + $0x60] sm:$0xff] %v206_v13  ;;  %v367_v14 = vpop.f32.mrb[6].mxu1  ;;  %v208_v15 = vpop.f32.mrb[7].mxu0 }
 0x107   :  { %458 = vst [vmem:[%s942_s2 + $0x70] sm:$0xff] %v367_v14  ;;  %457 = vst [vmem:[%s942_s2 + $0x68] sm:$0xff] %v208_v15  ;;  %v369_v16 = vpop.f32.mrb[7].mxu1 }
 0x108   :  { %459 = vst [vmem:[%s942_s2 + $0x78] sm:$0xff] %v369_v16 }
 0x109   :  { %v212_v17 = vpop.f32.mrb[8].mxu0 }
 0x10a   :  { %460 = vst [vmem:[%s942_s2 + $0x80] sm:$0xff] %v212_v17  ;;  %v373_v18 = vpop.f32.mrb[8].mxu1  ;;  %v214_v19 = vpop.f32.mrb[9].mxu0 }
 0x10b   :  { %462 = vst [vmem:[%s942_s2 + $0x90] sm:$0xff] %v373_v18  ;;  %461 = vst [vmem:[%s942_s2 + $0x88] sm:$0xff] %v214_v19  ;;  %v375_v20 = vpop.f32.mrb[9].mxu1 }
 0x10c   :  { %463 = vst [vmem:[%s942_s2 + $0x98] sm:$0xff] %v375_v20 }
 0x10d   :  { %v218_v21 = vpop.f32.mrb[10].mxu0 }
 0x10e   :  { %464 = vst [vmem:[%s942_s2 + $0xa0] sm:$0xff] %v218_v21  ;;  %v379_v22 = vpop.f32.mrb[10].mxu1  ;;  %v220_v23 = vpop.f32.mrb[11].mxu0 }
 0x10f   :  { %466 = vst [vmem:[%s942_s2 + $0xb0] sm:$0xff] %v379_v22  ;;  %465 = vst [vmem:[%s942_s2 + $0xa8] sm:$0xff] %v220_v23  ;;  %v381_v24 = vpop.f32.mrb[11].mxu1 }
 0x110   :  { %467 = vst [vmem:[%s942_s2 + $0xb8] sm:$0xff] %v381_v24 }
 0x111   :  { %v224_v25 = vpop.f32.mrb[12].mxu0 }
 0x112   :  { %468 = vst [vmem:[%s942_s2 + $0xc0] sm:$0xff] %v224_v25  ;;  %v385_v26 = vpop.f32.mrb[12].mxu1  ;;  %v226_v27 = vpop.f32.mrb[13].mxu0 }
 0x113   :  { %470 = vst [vmem:[%s942_s2 + $0xd0] sm:$0xff] %v385_v26  ;;  %469 = vst [vmem:[%s942_s2 + $0xc8] sm:$0xff] %v226_v27  ;;  %v387_v28 = vpop.f32.mrb[13].mxu1 }
 0x114   :  { %471 = vst [vmem:[%s942_s2 + $0xd8] sm:$0xff] %v387_v28 }
 0x115   :  { %v230_v29 = vpop.f32.mrb[14].mxu0 }
 0x116   :  { %472 = vst [vmem:[%s942_s2 + $0xe0] sm:$0xff] %v230_v29  ;;  %v391_v30 = vpop.f32.mrb[14].mxu1  ;;  %v232_v31 = vpop.f32.mrb[15].mxu0 }
 0x117   :  { %474 = vst [vmem:[%s942_s2 + $0xf0] sm:$0xff] %v391_v30  ;;  %473 = vst [vmem:[%s942_s2 + $0xe8] sm:$0xff] %v232_v31  ;;  %v393_v32 = vpop.f32.mrb[15].mxu1 }
 0x118   :  { %475 = vst [vmem:[%s942_s2 + $0xf8] sm:$0xff] %v393_v32 }
 0x119   :  { %v236_v33 = vpop.f32.mrb[16].mxu0 }
 0x11a   :  { %476 = vst [vmem:[%s942_s2 + $0x100] sm:$0xff] %v236_v33  ;;  %v397_v34 = vpop.f32.mrb[16].mxu1  ;;  %v238_v35 = vpop.f32.mrb[17].mxu0 }
 0x11b   :  { %478 = vst [vmem:[%s942_s2 + $0x110] sm:$0xff] %v397_v34  ;;  %477 = vst [vmem:[%s942_s2 + $0x108] sm:$0xff] %v238_v35  ;;  %v399_v36 = vpop.f32.mrb[17].mxu1 }
 0x11c   :  { %479 = vst [vmem:[%s942_s2 + $0x118] sm:$0xff] %v399_v36 }
 0x11d   :  { %v242_v37 = vpop.f32.mrb[18].mxu0 }
 0x11e   :  { %480 = vst [vmem:[%s942_s2 + $0x120] sm:$0xff] %v242_v37  ;;  %v403_v38 = vpop.f32.mrb[18].mxu1  ;;  %v244_v39 = vpop.f32.mrb[19].mxu0 }
 0x11f   :  { %482 = vst [vmem:[%s942_s2 + $0x130] sm:$0xff] %v403_v38  ;;  %481 = vst [vmem:[%s942_s2 + $0x128] sm:$0xff] %v244_v39  ;;  %v405_v40 = vpop.f32.mrb[19].mxu1 }
 0x120   :  { %483 = vst [vmem:[%s942_s2 + $0x138] sm:$0xff] %v405_v40 }
 0x121   :  { %v248_v41 = vpop.f32.mrb[20].mxu0 }
 0x122   :  { %484 = vst [vmem:[%s942_s2 + $0x140] sm:$0xff] %v248_v41  ;;  %v409_v42 = vpop.f32.mrb[20].mxu1  ;;  %v250_v43 = vpop.f32.mrb[21].mxu0 }
 0x123   :  { %486 = vst [vmem:[%s942_s2 + $0x150] sm:$0xff] %v409_v42  ;;  %485 = vst [vmem:[%s942_s2 + $0x148] sm:$0xff] %v250_v43  ;;  %v411_v44 = vpop.f32.mrb[21].mxu1 }
 0x124   :  { %487 = vst [vmem:[%s942_s2 + $0x158] sm:$0xff] %v411_v44 }
 0x125   :  { %v254_v45 = vpop.f32.mrb[22].mxu0 }
 0x126   :  { %488 = vst [vmem:[%s942_s2 + $0x160] sm:$0xff] %v254_v45  ;;  %v415_v46 = vpop.f32.mrb[22].mxu1  ;;  %v256_v47 = vpop.f32.mrb[23].mxu0 }
 0x127   :  { %490 = vst [vmem:[%s942_s2 + $0x170] sm:$0xff] %v415_v46  ;;  %489 = vst [vmem:[%s942_s2 + $0x168] sm:$0xff] %v256_v47  ;;  %v417_v48 = vpop.f32.mrb[23].mxu1 }
 0x128   :  { %491 = vst [vmem:[%s942_s2 + $0x178] sm:$0xff] %v417_v48 }
 0x129   :  { %v260_v49 = vpop.f32.mrb[24].mxu0 }
 0x12a   :  { %492 = vst [vmem:[%s942_s2 + $0x180] sm:$0xff] %v260_v49  ;;  %v421_v50 = vpop.f32.mrb[24].mxu1  ;;  %v262_v51 = vpop.f32.mrb[25].mxu0 }
 0x12b   :  { %494 = vst [vmem:[%s942_s2 + $0x190] sm:$0xff] %v421_v50  ;;  %493 = vst [vmem:[%s942_s2 + $0x188] sm:$0xff] %v262_v51  ;;  %v423_v52 = vpop.f32.mrb[25].mxu1 }
 0x12c   :  { %495 = vst [vmem:[%s942_s2 + $0x198] sm:$0xff] %v423_v52 }
 0x12d   :  { %v266_v53 = vpop.f32.mrb[26].mxu0 }
 0x12e   :  { %496 = vst [vmem:[%s942_s2 + $0x1a0] sm:$0xff] %v266_v53  ;;  %v427_v54 = vpop.f32.mrb[26].mxu1  ;;  %v268_v55 = vpop.f32.mrb[27].mxu0 }
 0x12f   :  { %498 = vst [vmem:[%s942_s2 + $0x1b0] sm:$0xff] %v427_v54  ;;  %497 = vst [vmem:[%s942_s2 + $0x1a8] sm:$0xff] %v268_v55  ;;  %v429_v56 = vpop.f32.mrb[27].mxu1 }
 0x130   :  { %499 = vst [vmem:[%s942_s2 + $0x1b8] sm:$0xff] %v429_v56 }
 0x131   :  { %v272_v57 = vpop.f32.mrb[28].mxu0 }
 0x132   :  { %500 = vst [vmem:[%s942_s2 + $0x1c0] sm:$0xff] %v272_v57  ;;  %v433_v58 = vpop.f32.mrb[28].mxu1  ;;  %v274_v59 = vpop.f32.mrb[29].mxu0 }
 0x133   :  { %502 = vst [vmem:[%s942_s2 + $0x1d0] sm:$0xff] %v433_v58  ;;  %501 = vst [vmem:[%s942_s2 + $0x1c8] sm:$0xff] %v274_v59  ;;  %v435_v60 = vpop.f32.mrb[29].mxu1 }
 0x134   :  { %503 = vst [vmem:[%s942_s2 + $0x1d8] sm:$0xff] %v435_v60 }
 0x135   :  { %v278_v61 = vpop.f32.mrb[30].mxu0 }
 0x136   :  { %504 = vst [vmem:[%s942_s2 + $0x1e0] sm:$0xff] %v278_v61  ;;  %v439_v62 = vpop.f32.mrb[30].mxu1  ;;  %v280_v63 = vpop.f32.mrb[31].mxu0 }
 0x137   :  { %506 = vst [vmem:[%s942_s2 + $0x1f0] sm:$0xff] %v439_v62  ;;  %505 = vst [vmem:[%s942_s2 + $0x1e8] sm:$0xff] %v280_v63  ;;  %v441_v1 = vpop.f32.mrb[31].mxu1 }
 0x138   :  { %507 = vst [vmem:[%s942_s2 + $0x1f8] sm:$0xff] %v441_v1 }
 0x139   :  { %512 = vsyncpa [#allocation3], 1 }

// kernel: _lambda_.16
= control target key start
LH: loop header
LB: loop body
LE: loop exit
PB: predicated region body
PF: predicated region fallthrough
CT: control target
= control target key end

     0   :  { %v934_v3 = vmov 0.0   ;;  %vm83_vm0 = vcmask 261120   ;;  %s1678_s1 = inlined_call_operand.vmem [shape: f32[32,256], index: 1, kind: input, shape index: {}]   ;;  %s1679_s0 = inlined_call_operand.vmem [shape: f32[512,32], index: 0, kind: input, shape index: {}]   ;;  %s1680_s2 = inlined_call_operand.vmem [shape: f32[512,256], index: 2, kind: output, shape index: {}]  }
   0x1   :  { %v76_v0 = vld [vmem:[%s1678_s1 + $0x8] sm:$0xff]  ;;  %v78_v1 = vld [vmem:[%s1678_s1 + $0x18] sm:$0xff]  ;;  %v75_v2 = vld [vmem:[%s1678_s1] sm:$0xff]  ;;  %340 = vmatprep.mubr.f32.mxu0 %v934_v3  ;;  %532 = vmatprep.mubr.f32.mxu1 %v934_v3 }
   0x2   :  { %v921_v4 = vpack.c.bf16 %v78_v1, %v76_v0  ;;  %v77_v5 = vld [vmem:[%s1678_s1 + $0x10] sm:$0xff]  ;;  %v80_v6 = vld [vmem:[%s1678_s1 + $0x28] sm:$0xff]  ;;  %v82_v7 = vld [vmem:[%s1678_s1 + $0x38] sm:$0xff] }
   0x3   :  { %v923_v8 = vpack.c.bf16 %v77_v5, %v75_v2  ;;  %v925_v9 = vpack.c.bf16 %v82_v7, %v80_v6  ;;  %v79_v10 = vld [vmem:[%s1678_s1 + $0x20] sm:$0xff]  ;;  %v81_v11 = vld [vmem:[%s1678_s1 + $0x30] sm:$0xff]  ;;  %v12_v15 = vld [vmem:[%s1679_s0 + $0x8] sm:$0xff] }
   0x4   :  { %922 = vmatprep.subr.bf16.mxu0 %v921_v4  ;;  %929 = vmatprep.subr.bf16.mxu1 %v921_v4  ;;  %v927_v12 = vpack.c.bf16 %v81_v11, %v79_v10  ;;  %v11_v13 = vld [vmem:[%s1679_s0] sm:$0xff]  ;;  %v44_v16 = vld [vmem:[%s1679_s0 + $0x108] sm:$0xff]  ;;  %v13_v17 = vld [vmem:[%s1679_s0 + $0x10] sm:$0xff] }
   0x5   :  { %924 = vmatpush1.bf16.msra.mxu0 %v923_v8  ;;  %931 = vmatpush1.bf16.msra.mxu1 %v923_v8  ;;  %v43_v14 = vld [vmem:[%s1679_s0 + $0x100] sm:$0xff]  ;;  %v45_v18 = vld [vmem:[%s1679_s0 + $0x110] sm:$0xff]  ;;  %v14_v19 = vld [vmem:[%s1679_s0 + $0x18] sm:$0xff] }
   0x6   :  { %926 = vmatprep.subr.bf16.mxu0 %v925_v9  ;;  %930 = vmatprep.subr.bf16.mxu1 %v925_v9  ;;  %v46_v20 = vld [vmem:[%s1679_s0 + $0x118] sm:$0xff]  ;;  %v15_v21 = vld [vmem:[%s1679_s0 + $0x20] sm:$0xff]  ;;  %v16_v23 = vld [vmem:[%s1679_s0 + $0x28] sm:$0xff] }
   0x7   :  { %v47_v22 = vld [vmem:[%s1679_s0 + $0x120] sm:$0xff]  ;;  %v48_v24 = vld [vmem:[%s1679_s0 + $0x128] sm:$0xff]  ;;  %v17_v25 = vld [vmem:[%s1679_s0 + $0x30] sm:$0xff] }
   0x8   :  { %v49_v26 = vld [vmem:[%s1679_s0 + $0x130] sm:$0xff]  ;;  %v18_v27 = vld [vmem:[%s1679_s0 + $0x38] sm:$0xff]  ;;  %v19_v29 = vld [vmem:[%s1679_s0 + $0x40] sm:$0xff] }
   0x9   :  { %928 = vmatpush1.bf16.msra.mxu0 %v927_v12  ;;  %932 = vmatpush1.bf16.msra.mxu1 %v927_v12  ;;  %v50_v28 = vld [vmem:[%s1679_s0 + $0x138] sm:$0xff]  ;;  %v51_v30 = vld [vmem:[%s1679_s0 + $0x140] sm:$0xff]  ;;  %v20_v31 = vld [vmem:[%s1679_s0 + $0x48] sm:$0xff] }
   0xa   :  { %v52_v32 = vld [vmem:[%s1679_s0 + $0x148] sm:$0xff]  ;;  %v21_v33 = vld [vmem:[%s1679_s0 + $0x50] sm:$0xff]  ;;  %v22_v35 = vld [vmem:[%s1679_s0 + $0x58] sm:$0xff] }
   0xb   :  { %v53_v34 = vld [vmem:[%s1679_s0 + $0x150] sm:$0xff]  ;;  %v54_v36 = vld [vmem:[%s1679_s0 + $0x158] sm:$0xff]  ;;  %v23_v37 = vld [vmem:[%s1679_s0 + $0x60] sm:$0xff] }
   0xc   :  { %857 = vmatmul.mubr.msk.f32.vlgmr.msra.gmra.mrb[0].mxu0 %vm83_vm0, %v11_v13  ;;  %889 = vmatmul.mubr.msk.f32.vlgmr.msra.gmra.mrb[0].mxu1 %vm83_vm0, %v43_v14  ;;  %v55_v38 = vld [vmem:[%s1679_s0 + $0x160] sm:$0xff]  ;;  %v24_v39 = vld [vmem:[%s1679_s0 + $0x68] sm:$0xff]  ;;  %v25_v41 = vld [vmem:[%s1679_s0 + $0x70] sm:$0xff] }
   0xd   :  { %346 = vmatprep.mubr.f32.mxu0 %v934_v3  ;;  %538 = vmatprep.mubr.f32.mxu1 %v934_v3  ;;  %v56_v40 = vld [vmem:[%s1679_s0 + $0x168] sm:$0xff]  ;;  %v57_v42 = vld [vmem:[%s1679_s0 + $0x170] sm:$0xff]  ;;  %v26_v43 = vld [vmem:[%s1679_s0 + $0x78] sm:$0xff] }
   0xe   :  { %v58_v44 = vld [vmem:[%s1679_s0 + $0x178] sm:$0xff]  ;;  %v27_v45 = vld [vmem:[%s1679_s0 + $0x80] sm:$0xff]  ;;  %v28_v47 = vld [vmem:[%s1679_s0 + $0x88] sm:$0xff] }
   0xf   :  { %v59_v46 = vld [vmem:[%s1679_s0 + $0x180] sm:$0xff]  ;;  %v60_v48 = vld [vmem:[%s1679_s0 + $0x188] sm:$0xff]  ;;  %v29_v49 = vld [vmem:[%s1679_s0 + $0x90] sm:$0xff] }
  0x10   :  { %858 = vmatmul.mubr.msk.f32.gmra.mrb[2].mxu0 %vm83_vm0, %v12_v15  ;;  %890 = vmatmul.mubr.msk.f32.gmra.mrb[2].mxu1 %vm83_vm0, %v44_v16  ;;  %v61_v50 = vld [vmem:[%s1679_s0 + $0x190] sm:$0xff]  ;;  %v30_v51 = vld [vmem:[%s1679_s0 + $0x98] sm:$0xff]  ;;  %v31_v53 = vld [vmem:[%s1679_s0 + $0xa0] sm:$0xff] }
  0x11   :  { %352 = vmatprep.mubr.f32.mxu0 %v934_v3  ;;  %544 = vmatprep.mubr.f32.mxu1 %v934_v3  ;;  %v62_v52 = vld [vmem:[%s1679_s0 + $0x198] sm:$0xff]  ;;  %v63_v54 = vld [vmem:[%s1679_s0 + $0x1a0] sm:$0xff]  ;;  %v32_v55 = vld [vmem:[%s1679_s0 + $0xa8] sm:$0xff] }
  0x12   :  { %v64_v56 = vld [vmem:[%s1679_s0 + $0x1a8] sm:$0xff]  ;;  %v33_v57 = vld [vmem:[%s1679_s0 + $0xb0] sm:$0xff]  ;;  %v34_v59 = vld [vmem:[%s1679_s0 + $0xb8] sm:$0xff] }
  0x13   :  { %v65_v58 = vld [vmem:[%s1679_s0 + $0x1b0] sm:$0xff]  ;;  %v66_v60 = vld [vmem:[%s1679_s0 + $0x1b8] sm:$0xff]  ;;  %v35_v61 = vld [vmem:[%s1679_s0 + $0xc0] sm:$0xff] }
  0x14   :  { %859 = vmatmul.mubr.msk.f32.gmra.mrb[4].mxu0 %vm83_vm0, %v13_v17  ;;  %891 = vmatmul.mubr.msk.f32.gmra.mrb[4].mxu1 %vm83_vm0, %v45_v18  ;;  %v67_v62 = vld [vmem:[%s1679_s0 + $0x1c0] sm:$0xff]  ;;  %v36_v63 = vld [vmem:[%s1679_s0 + $0xc8] sm:$0xff]  ;;  %v37_v1 = vld [vmem:[%s1679_s0 + $0xd0] sm:$0xff] }
  0x15   :  { %358 = vmatprep.mubr.f32.mxu0 %v934_v3  ;;  %550 = vmatprep.mubr.f32.mxu1 %v934_v3  ;;  %v68_v0 = vld [vmem:[%s1679_s0 + $0x1c8] sm:$0xff]  ;;  %v69_v2 = vld [vmem:[%s1679_s0 + $0x1d0] sm:$0xff]  ;;  %v38_v4 = vld [vmem:[%s1679_s0 + $0xd8] sm:$0xff] }
  0x16   :  { %v70_v5 = vld [vmem:[%s1679_s0 + $0x1d8] sm:$0xff]  ;;  %v39_v6 = vld [vmem:[%s1679_s0 + $0xe0] sm:$0xff]  ;;  %v40_v8 = vld [vmem:[%s1679_s0 + $0xe8] sm:$0xff] }
  0x17   :  { %v71_v7 = vld [vmem:[%s1679_s0 + $0x1e0] sm:$0xff]  ;;  %v72_v9 = vld [vmem:[%s1679_s0 + $0x1e8] sm:$0xff]  ;;  %v41_v10 = vld [vmem:[%s1679_s0 + $0xf0] sm:$0xff] }
  0x18   :  { %860 = vmatmul.mubr.msk.f32.gmra.mrb[6].mxu0 %vm83_vm0, %v14_v19  ;;  %892 = vmatmul.mubr.msk.f32.gmra.mrb[6].mxu1 %vm83_vm0, %v46_v20  ;;  %v73_v11 = vld [vmem:[%s1679_s0 + $0x1f0] sm:$0xff]  ;;  %v42_v12 = vld [vmem:[%s1679_s0 + $0xf8] sm:$0xff] }
  0x19   :  { %364 = vmatprep.mubr.f32.mxu0 %v934_v3  ;;  %556 = vmatprep.mubr.f32.mxu1 %v934_v3  ;;  %v74_v13 = vld [vmem:[%s1679_s0 + $0x1f8] sm:$0xff] }
  0x1c   :  { %861 = vmatmul.mubr.msk.f32.gmra.mrb[8].mxu0 %vm83_vm0, %v15_v21  ;;  %893 = vmatmul.mubr.msk.f32.gmra.mrb[8].mxu1 %vm83_vm0, %v47_v22 }
  0x1d   :  { %370 = vmatprep.mubr.f32.mxu0 %v934_v3  ;;  %562 = vmatprep.mubr.f32.mxu1 %v934_v3 }
  0x20   :  { %862 = vmatmul.mubr.msk.f32.gmra.mrb[10].mxu0 %vm83_vm0, %v16_v23  ;;  %894 = vmatmul.mubr.msk.f32.gmra.mrb[10].mxu1 %vm83_vm0, %v48_v24 }
  0x21   :  { %376 = vmatprep.mubr.f32.mxu0 %v934_v3  ;;  %568 = vmatprep.mubr.f32.mxu1 %v934_v3 }
  0x24   :  { %863 = vmatmul.mubr.msk.f32.gmra.mrb[12].mxu0 %vm83_vm0, %v17_v25  ;;  %895 = vmatmul.mubr.msk.f32.gmra.mrb[12].mxu1 %vm83_vm0, %v49_v26 }
  0x25   :  { %382 = vmatprep.mubr.f32.mxu0 %v934_v3  ;;  %574 = vmatprep.mubr.f32.mxu1 %v934_v3 }
  0x28   :  { %864 = vmatmul.mubr.msk.f32.gmra.mrb[14].mxu0 %vm83_vm0, %v18_v27  ;;  %896 = vmatmul.mubr.msk.f32.gmra.mrb[14].mxu1 %vm83_vm0, %v50_v28 }
  0x29   :  { %388 = vmatprep.mubr.f32.mxu0 %v934_v3  ;;  %580 = vmatprep.mubr.f32.mxu1 %v934_v3 }
  0x2c   :  { %865 = vmatmul.mubr.msk.f32.gmra.mrb[16].mxu0 %vm83_vm0, %v19_v29  ;;  %897 = vmatmul.mubr.msk.f32.gmra.mrb[16].mxu1 %vm83_vm0, %v51_v30 }
  0x2d   :  { %394 = vmatprep.mubr.f32.mxu0 %v934_v3  ;;  %586 = vmatprep.mubr.f32.mxu1 %v934_v3 }
  0x30   :  { %866 = vmatmul.mubr.msk.f32.gmra.mrb[18].mxu0 %vm83_vm0, %v20_v31  ;;  %898 = vmatmul.mubr.msk.f32.gmra.mrb[18].mxu1 %vm83_vm0, %v52_v32 }
  0x31   :  { %400 = vmatprep.mubr.f32.mxu0 %v934_v3  ;;  %592 = vmatprep.mubr.f32.mxu1 %v934_v3 }
  0x34   :  { %867 = vmatmul.mubr.msk.f32.gmra.mrb[20].mxu0 %vm83_vm0, %v21_v33  ;;  %899 = vmatmul.mubr.msk.f32.gmra.mrb[20].mxu1 %vm83_vm0, %v53_v34 }
  0x35   :  { %406 = vmatprep.mubr.f32.mxu0 %v934_v3  ;;  %598 = vmatprep.mubr.f32.mxu1 %v934_v3 }
  0x38   :  { %868 = vmatmul.mubr.msk.f32.gmra.mrb[22].mxu0 %vm83_vm0, %v22_v35  ;;  %900 = vmatmul.mubr.msk.f32.gmra.mrb[22].mxu1 %vm83_vm0, %v54_v36 }
  0x39   :  { %412 = vmatprep.mubr.f32.mxu0 %v934_v3  ;;  %604 = vmatprep.mubr.f32.mxu1 %v934_v3 }
  0x3c   :  { %869 = vmatmul.mubr.msk.f32.gmra.mrb[24].mxu0 %vm83_vm0, %v23_v37  ;;  %901 = vmatmul.mubr.msk.f32.gmra.mrb[24].mxu1 %vm83_vm0, %v55_v38 }
  0x3d   :  { %418 = vmatprep.mubr.f32.mxu0 %v934_v3  ;;  %610 = vmatprep.mubr.f32.mxu1 %v934_v3 }
  0x40   :  { %870 = vmatmul.mubr.msk.f32.gmra.mrb[26].mxu0 %vm83_vm0, %v24_v39  ;;  %902 = vmatmul.mubr.msk.f32.gmra.mrb[26].mxu1 %vm83_vm0, %v56_v40 }
  0x41   :  { %424 = vmatprep.mubr.f32.mxu0 %v934_v3  ;;  %616 = vmatprep.mubr.f32.mxu1 %v934_v3 }
  0x44   :  { %871 = vmatmul.mubr.msk.f32.gmra.mrb[28].mxu0 %vm83_vm0, %v25_v41  ;;  %903 = vmatmul.mubr.msk.f32.gmra.mrb[28].mxu1 %vm83_vm0, %v57_v42 }
  0x45   :  { %430 = vmatprep.mubr.f32.mxu0 %v934_v3  ;;  %622 = vmatprep.mubr.f32.mxu1 %v934_v3 }
  0x48   :  { %872 = vmatmul.mubr.msk.f32.gmra.mrb[30].mxu0 %vm83_vm0, %v26_v43  ;;  %904 = vmatmul.mubr.msk.f32.gmra.mrb[30].mxu1 %vm83_vm0, %v58_v44 }
  0x49   :  { %436 = vmatprep.mubr.f32.mxu0 %v934_v3  ;;  %628 = vmatprep.mubr.f32.mxu1 %v934_v3 }
  0x4c   :  { %873 = vmatmul.mubr.msk.f32.gmra.mrb[32].mxu0 %vm83_vm0, %v27_v45  ;;  %905 = vmatmul.mubr.msk.f32.gmra.mrb[32].mxu1 %vm83_vm0, %v59_v46 }
  0x4d   :  { %442 = vmatprep.mubr.f32.mxu0 %v934_v3  ;;  %634 = vmatprep.mubr.f32.mxu1 %v934_v3 }
  0x50   :  { %874 = vmatmul.mubr.msk.f32.gmra.mrb[34].mxu0 %vm83_vm0, %v28_v47  ;;  %906 = vmatmul.mubr.msk.f32.gmra.mrb[34].mxu1 %vm83_vm0, %v60_v48 }
  0x51   :  { %448 = vmatprep.mubr.f32.mxu0 %v934_v3  ;;  %640 = vmatprep.mubr.f32.mxu1 %v934_v3 }
  0x54   :  { %875 = vmatmul.mubr.msk.f32.gmra.mrb[36].mxu0 %vm83_vm0, %v29_v49  ;;  %907 = vmatmul.mubr.msk.f32.gmra.mrb[36].mxu1 %vm83_vm0, %v61_v50 }
  0x55   :  { %454 = vmatprep.mubr.f32.mxu0 %v934_v3  ;;  %646 = vmatprep.mubr.f32.mxu1 %v934_v3 }
  0x58   :  { %876 = vmatmul.mubr.msk.f32.gmra.mrb[38].mxu0 %vm83_vm0, %v30_v51  ;;  %908 = vmatmul.mubr.msk.f32.gmra.mrb[38].mxu1 %vm83_vm0, %v62_v52 }
  0x59   :  { %460 = vmatprep.mubr.f32.mxu0 %v934_v3  ;;  %652 = vmatprep.mubr.f32.mxu1 %v934_v3 }
  0x5c   :  { %877 = vmatmul.mubr.msk.f32.gmra.mrb[40].mxu0 %vm83_vm0, %v31_v53  ;;  %909 = vmatmul.mubr.msk.f32.gmra.mrb[40].mxu1 %vm83_vm0, %v63_v54 }
  0x5d   :  { %466 = vmatprep.mubr.f32.mxu0 %v934_v3  ;;  %658 = vmatprep.mubr.f32.mxu1 %v934_v3 }
  0x60   :  { %878 = vmatmul.mubr.msk.f32.gmra.mrb[42].mxu0 %vm83_vm0, %v32_v55  ;;  %910 = vmatmul.mubr.msk.f32.gmra.mrb[42].mxu1 %vm83_vm0, %v64_v56 }
  0x61   :  { %472 = vmatprep.mubr.f32.mxu0 %v934_v3  ;;  %664 = vmatprep.mubr.f32.mxu1 %v934_v3 }
  0x64   :  { %879 = vmatmul.mubr.msk.f32.gmra.mrb[44].mxu0 %vm83_vm0, %v33_v57  ;;  %911 = vmatmul.mubr.msk.f32.gmra.mrb[44].mxu1 %vm83_vm0, %v65_v58 }
  0x65   :  { %478 = vmatprep.mubr.f32.mxu0 %v934_v3  ;;  %670 = vmatprep.mubr.f32.mxu1 %v934_v3 }
  0x68   :  { %880 = vmatmul.mubr.msk.f32.gmra.mrb[46].mxu0 %vm83_vm0, %v34_v59  ;;  %912 = vmatmul.mubr.msk.f32.gmra.mrb[46].mxu1 %vm83_vm0, %v66_v60 }
  0x69   :  { %484 = vmatprep.mubr.f32.mxu0 %v934_v3  ;;  %676 = vmatprep.mubr.f32.mxu1 %v934_v3 }
  0x6c   :  { %881 = vmatmul.mubr.msk.f32.gmra.mrb[48].mxu0 %vm83_vm0, %v35_v61  ;;  %913 = vmatmul.mubr.msk.f32.gmra.mrb[48].mxu1 %vm83_vm0, %v67_v62 }
  0x6d   :  { %490 = vmatprep.mubr.f32.mxu0 %v934_v3  ;;  %682 = vmatprep.mubr.f32.mxu1 %v934_v3 }
  0x70   :  { %882 = vmatmul.mubr.msk.f32.gmra.mrb[50].mxu0 %vm83_vm0, %v36_v63  ;;  %914 = vmatmul.mubr.msk.f32.gmra.mrb[50].mxu1 %vm83_vm0, %v68_v0 }
  0x71   :  { %496 = vmatprep.mubr.f32.mxu0 %v934_v3  ;;  %688 = vmatprep.mubr.f32.mxu1 %v934_v3 }
  0x74   :  { %883 = vmatmul.mubr.msk.f32.gmra.mrb[52].mxu0 %vm83_vm0, %v37_v1  ;;  %915 = vmatmul.mubr.msk.f32.gmra.mrb[52].mxu1 %vm83_vm0, %v69_v2 }
  0x75   :  { %502 = vmatprep.mubr.f32.mxu0 %v934_v3  ;;  %694 = vmatprep.mubr.f32.mxu1 %v934_v3 }
  0x78   :  { %884 = vmatmul.mubr.msk.f32.gmra.mrb[54].mxu0 %vm83_vm0, %v38_v4  ;;  %916 = vmatmul.mubr.msk.f32.gmra.mrb[54].mxu1 %vm83_vm0, %v70_v5 }
  0x79   :  { %508 = vmatprep.mubr.f32.mxu0 %v934_v3  ;;  %700 = vmatprep.mubr.f32.mxu1 %v934_v3 }
  0x7c   :  { %885 = vmatmul.mubr.msk.f32.gmra.mrb[56].mxu0 %vm83_vm0, %v39_v6  ;;  %917 = vmatmul.mubr.msk.f32.gmra.mrb[56].mxu1 %vm83_vm0, %v71_v7 }
  0x7d   :  { %514 = vmatprep.mubr.f32.mxu0 %v934_v3  ;;  %706 = vmatprep.mubr.f32.mxu1 %v934_v3 }
  0x80   :  { %886 = vmatmul.mubr.msk.f32.gmra.mrb[58].mxu0 %vm83_vm0, %v40_v8  ;;  %918 = vmatmul.mubr.msk.f32.gmra.mrb[58].mxu1 %vm83_vm0, %v72_v9 }
  0x81   :  { %520 = vmatprep.mubr.f32.mxu0 %v934_v3  ;;  %712 = vmatprep.mubr.f32.mxu1 %v934_v3 }
  0x84   :  { %887 = vmatmul.mubr.msk.f32.gmra.mrb[60].mxu0 %vm83_vm0, %v41_v10  ;;  %919 = vmatmul.mubr.msk.f32.gmra.mrb[60].mxu1 %vm83_vm0, %v73_v11 }
  0x85   :  { %526 = vmatprep.mubr.f32.mxu0 %v934_v3  ;;  %718 = vmatprep.mubr.f32.mxu1 %v934_v3 }
  0x88   :  { %888 = vmatmul.mubr.msk.f32.gmra.mrb[62].mxu0 %vm83_vm0, %v42_v12  ;;  %920 = vmatmul.mubr.msk.f32.gmra.mrb[62].mxu1 %vm83_vm0, %v74_v13 }
  0xdf   :  { %v342_v14 = vpop.f32.mrb[0].mxu0  ;;  %v534_v15 = vpop.f32.mrb[0].mxu1 }
  0xe0   :  { %725 = vst [vmem:[%s1680_s2] sm:$0xff] %v342_v14  ;;  %789 = vst [vmem:[%s1680_s2 + $0x200] sm:$0xff] %v534_v15  ;;  %v344_v3 = vpop.f32.mrb[1].mxu0  ;;  %v536_v16 = vpop.f32.mrb[1].mxu1 }
  0xe1   :  { %726 = vst [vmem:[%s1680_s2 + $0x8] sm:$0xff] %v344_v3  ;;  %790 = vst [vmem:[%s1680_s2 + $0x208] sm:$0xff] %v536_v16 }
  0xe3   :  { %v348_v17 = vpop.f32.mrb[2].mxu0  ;;  %v540_v18 = vpop.f32.mrb[2].mxu1 }
  0xe4   :  { %727 = vst [vmem:[%s1680_s2 + $0x10] sm:$0xff] %v348_v17  ;;  %791 = vst [vmem:[%s1680_s2 + $0x210] sm:$0xff] %v540_v18  ;;  %v350_v19 = vpop.f32.mrb[3].mxu0  ;;  %v542_v20 = vpop.f32.mrb[3].mxu1 }
  0xe5   :  { %728 = vst [vmem:[%s1680_s2 + $0x18] sm:$0xff] %v350_v19  ;;  %792 = vst [vmem:[%s1680_s2 + $0x218] sm:$0xff] %v542_v20 }
  0xe7   :  { %v354_v21 = vpop.f32.mrb[4].mxu0  ;;  %v546_v22 = vpop.f32.mrb[4].mxu1 }
  0xe8   :  { %729 = vst [vmem:[%s1680_s2 + $0x20] sm:$0xff] %v354_v21  ;;  %793 = vst [vmem:[%s1680_s2 + $0x220] sm:$0xff] %v546_v22  ;;  %v356_v23 = vpop.f32.mrb[5].mxu0  ;;  %v548_v24 = vpop.f32.mrb[5].mxu1 }
  0xe9   :  { %730 = vst [vmem:[%s1680_s2 + $0x28] sm:$0xff] %v356_v23  ;;  %794 = vst [vmem:[%s1680_s2 + $0x228] sm:$0xff] %v548_v24 }
  0xeb   :  { %v360_v25 = vpop.f32.mrb[6].mxu0  ;;  %v552_v26 = vpop.f32.mrb[6].mxu1 }
  0xec   :  { %731 = vst [vmem:[%s1680_s2 + $0x30] sm:$0xff] %v360_v25  ;;  %795 = vst [vmem:[%s1680_s2 + $0x230] sm:$0xff] %v552_v26  ;;  %v362_v27 = vpop.f32.mrb[7].mxu0  ;;  %v554_v28 = vpop.f32.mrb[7].mxu1 }
  0xed   :  { %732 = vst [vmem:[%s1680_s2 + $0x38] sm:$0xff] %v362_v27  ;;  %796 = vst [vmem:[%s1680_s2 + $0x238] sm:$0xff] %v554_v28 }
  0xef   :  { %v366_v29 = vpop.f32.mrb[8].mxu0  ;;  %v558_v30 = vpop.f32.mrb[8].mxu1 }
  0xf0   :  { %733 = vst [vmem:[%s1680_s2 + $0x40] sm:$0xff] %v366_v29  ;;  %797 = vst [vmem:[%s1680_s2 + $0x240] sm:$0xff] %v558_v30  ;;  %v368_v31 = vpop.f32.mrb[9].mxu0  ;;  %v560_v32 = vpop.f32.mrb[9].mxu1 }
  0xf1   :  { %734 = vst [vmem:[%s1680_s2 + $0x48] sm:$0xff] %v368_v31  ;;  %798 = vst [vmem:[%s1680_s2 + $0x248] sm:$0xff] %v560_v32 }
  0xf3   :  { %v372_v33 = vpop.f32.mrb[10].mxu0  ;;  %v564_v34 = vpop.f32.mrb[10].mxu1 }
  0xf4   :  { %735 = vst [vmem:[%s1680_s2 + $0x50] sm:$0xff] %v372_v33  ;;  %799 = vst [vmem:[%s1680_s2 + $0x250] sm:$0xff] %v564_v34  ;;  %v374_v35 = vpop.f32.mrb[11].mxu0  ;;  %v566_v36 = vpop.f32.mrb[11].mxu1 }
  0xf5   :  { %736 = vst [vmem:[%s1680_s2 + $0x58] sm:$0xff] %v374_v35  ;;  %800 = vst [vmem:[%s1680_s2 + $0x258] sm:$0xff] %v566_v36 }
  0xf7   :  { %v378_v37 = vpop.f32.mrb[12].mxu0  ;;  %v570_v38 = vpop.f32.mrb[12].mxu1 }
  0xf8   :  { %737 = vst [vmem:[%s1680_s2 + $0x60] sm:$0xff] %v378_v37  ;;  %801 = vst [vmem:[%s1680_s2 + $0x260] sm:$0xff] %v570_v38  ;;  %v380_v39 = vpop.f32.mrb[13].mxu0  ;;  %v572_v40 = vpop.f32.mrb[13].mxu1 }
  0xf9   :  { %738 = vst [vmem:[%s1680_s2 + $0x68] sm:$0xff] %v380_v39  ;;  %802 = vst [vmem:[%s1680_s2 + $0x268] sm:$0xff] %v572_v40 }
  0xfb   :  { %v384_v41 = vpop.f32.mrb[14].mxu0  ;;  %v576_v42 = vpop.f32.mrb[14].mxu1 }
  0xfc   :  { %739 = vst [vmem:[%s1680_s2 + $0x70] sm:$0xff] %v384_v41  ;;  %803 = vst [vmem:[%s1680_s2 + $0x270] sm:$0xff] %v576_v42  ;;  %v386_v43 = vpop.f32.mrb[15].mxu0  ;;  %v578_v44 = vpop.f32.mrb[15].mxu1 }
  0xfd   :  { %740 = vst [vmem:[%s1680_s2 + $0x78] sm:$0xff] %v386_v43  ;;  %804 = vst [vmem:[%s1680_s2 + $0x278] sm:$0xff] %v578_v44 }
  0xff   :  { %v390_v45 = vpop.f32.mrb[16].mxu0  ;;  %v582_v46 = vpop.f32.mrb[16].mxu1 }
 0x100   :  { %741 = vst [vmem:[%s1680_s2 + $0x80] sm:$0xff] %v390_v45  ;;  %805 = vst [vmem:[%s1680_s2 + $0x280] sm:$0xff] %v582_v46  ;;  %v392_v47 = vpop.f32.mrb[17].mxu0  ;;  %v584_v48 = vpop.f32.mrb[17].mxu1 }
 0x101   :  { %742 = vst [vmem:[%s1680_s2 + $0x88] sm:$0xff] %v392_v47  ;;  %806 = vst [vmem:[%s1680_s2 + $0x288] sm:$0xff] %v584_v48 }
 0x103   :  { %v396_v49 = vpop.f32.mrb[18].mxu0  ;;  %v588_v50 = vpop.f32.mrb[18].mxu1 }
 0x104   :  { %743 = vst [vmem:[%s1680_s2 + $0x90] sm:$0xff] %v396_v49  ;;  %807 = vst [vmem:[%s1680_s2 + $0x290] sm:$0xff] %v588_v50  ;;  %v398_v51 = vpop.f32.mrb[19].mxu0  ;;  %v590_v52 = vpop.f32.mrb[19].mxu1 }
 0x105   :  { %744 = vst [vmem:[%s1680_s2 + $0x98] sm:$0xff] %v398_v51  ;;  %808 = vst [vmem:[%s1680_s2 + $0x298] sm:$0xff] %v590_v52 }
 0x107   :  { %v402_v53 = vpop.f32.mrb[20].mxu0  ;;  %v594_v54 = vpop.f32.mrb[20].mxu1 }
 0x108   :  { %745 = vst [vmem:[%s1680_s2 + $0xa0] sm:$0xff] %v402_v53  ;;  %809 = vst [vmem:[%s1680_s2 + $0x2a0] sm:$0xff] %v594_v54  ;;  %v404_v55 = vpop.f32.mrb[21].mxu0  ;;  %v596_v56 = vpop.f32.mrb[21].mxu1 }
 0x109   :  { %746 = vst [vmem:[%s1680_s2 + $0xa8] sm:$0xff] %v404_v55  ;;  %810 = vst [vmem:[%s1680_s2 + $0x2a8] sm:$0xff] %v596_v56 }
 0x10b   :  { %v408_v57 = vpop.f32.mrb[22].mxu0  ;;  %v600_v58 = vpop.f32.mrb[22].mxu1 }
 0x10c   :  { %747 = vst [vmem:[%s1680_s2 + $0xb0] sm:$0xff] %v408_v57  ;;  %811 = vst [vmem:[%s1680_s2 + $0x2b0] sm:$0xff] %v600_v58  ;;  %v410_v59 = vpop.f32.mrb[23].mxu0  ;;  %v602_v60 = vpop.f32.mrb[23].mxu1 }
 0x10d   :  { %748 = vst [vmem:[%s1680_s2 + $0xb8] sm:$0xff] %v410_v59  ;;  %812 = vst [vmem:[%s1680_s2 + $0x2b8] sm:$0xff] %v602_v60 }
 0x10f   :  { %v414_v61 = vpop.f32.mrb[24].mxu0  ;;  %v606_v62 = vpop.f32.mrb[24].mxu1 }
 0x110   :  { %749 = vst [vmem:[%s1680_s2 + $0xc0] sm:$0xff] %v414_v61  ;;  %813 = vst [vmem:[%s1680_s2 + $0x2c0] sm:$0xff] %v606_v62  ;;  %v416_v63 = vpop.f32.mrb[25].mxu0  ;;  %v608_v0 = vpop.f32.mrb[25].mxu1 }
 0x111   :  { %750 = vst [vmem:[%s1680_s2 + $0xc8] sm:$0xff] %v416_v63  ;;  %814 = vst [vmem:[%s1680_s2 + $0x2c8] sm:$0xff] %v608_v0 }
 0x113   :  { %v420_v1 = vpop.f32.mrb[26].mxu0  ;;  %v612_v2 = vpop.f32.mrb[26].mxu1 }
 0x114   :  { %751 = vst [vmem:[%s1680_s2 + $0xd0] sm:$0xff] %v420_v1  ;;  %815 = vst [vmem:[%s1680_s2 + $0x2d0] sm:$0xff] %v612_v2  ;;  %v422_v4 = vpop.f32.mrb[27].mxu0  ;;  %v614_v5 = vpop.f32.mrb[27].mxu1 }
 0x115   :  { %752 = vst [vmem:[%s1680_s2 + $0xd8] sm:$0xff] %v422_v4  ;;  %816 = vst [vmem:[%s1680_s2 + $0x2d8] sm:$0xff] %v614_v5 }
 0x117   :  { %v426_v6 = vpop.f32.mrb[28].mxu0  ;;  %v618_v7 = vpop.f32.mrb[28].mxu1 }
 0x118   :  { %753 = vst [vmem:[%s1680_s2 + $0xe0] sm:$0xff] %v426_v6  ;;  %817 = vst [vmem:[%s1680_s2 + $0x2e0] sm:$0xff] %v618_v7  ;;  %v428_v8 = vpop.f32.mrb[29].mxu0  ;;  %v620_v9 = vpop.f32.mrb[29].mxu1 }
 0x119   :  { %754 = vst [vmem:[%s1680_s2 + $0xe8] sm:$0xff] %v428_v8  ;;  %818 = vst [vmem:[%s1680_s2 + $0x2e8] sm:$0xff] %v620_v9 }
 0x11b   :  { %v432_v10 = vpop.f32.mrb[30].mxu0  ;;  %v624_v11 = vpop.f32.mrb[30].mxu1 }
 0x11c   :  { %755 = vst [vmem:[%s1680_s2 + $0xf0] sm:$0xff] %v432_v10  ;;  %819 = vst [vmem:[%s1680_s2 + $0x2f0] sm:$0xff] %v624_v11  ;;  %v434_v12 = vpop.f32.mrb[31].mxu0  ;;  %v626_v13 = vpop.f32.mrb[31].mxu1 }
 0x11d   :  { %756 = vst [vmem:[%s1680_s2 + $0xf8] sm:$0xff] %v434_v12  ;;  %820 = vst [vmem:[%s1680_s2 + $0x2f8] sm:$0xff] %v626_v13 }
 0x11f   :  { %v438_v14 = vpop.f32.mrb[32].mxu0  ;;  %v630_v15 = vpop.f32.mrb[32].mxu1 }
 0x120   :  { %757 = vst [vmem:[%s1680_s2 + $0x100] sm:$0xff] %v438_v14  ;;  %821 = vst [vmem:[%s1680_s2 + $0x300] sm:$0xff] %v630_v15  ;;  %v440_v3 = vpop.f32.mrb[33].mxu0  ;;  %v632_v16 = vpop.f32.mrb[33].mxu1 }
 0x121   :  { %758 = vst [vmem:[%s1680_s2 + $0x108] sm:$0xff] %v440_v3  ;;  %822 = vst [vmem:[%s1680_s2 + $0x308] sm:$0xff] %v632_v16 }
 0x123   :  { %v444_v17 = vpop.f32.mrb[34].mxu0  ;;  %v636_v18 = vpop.f32.mrb[34].mxu1 }
 0x124   :  { %759 = vst [vmem:[%s1680_s2 + $0x110] sm:$0xff] %v444_v17  ;;  %823 = vst [vmem:[%s1680_s2 + $0x310] sm:$0xff] %v636_v18  ;;  %v446_v19 = vpop.f32.mrb[35].mxu0  ;;  %v638_v20 = vpop.f32.mrb[35].mxu1 }
 0x125   :  { %760 = vst [vmem:[%s1680_s2 + $0x118] sm:$0xff] %v446_v19  ;;  %824 = vst [vmem:[%s1680_s2 + $0x318] sm:$0xff] %v638_v20 }
 0x127   :  { %v450_v21 = vpop.f32.mrb[36].mxu0  ;;  %v642_v22 = vpop.f32.mrb[36].mxu1 }
 0x128   :  { %761 = vst [vmem:[%s1680_s2 + $0x120] sm:$0xff] %v450_v21  ;;  %825 = vst [vmem:[%s1680_s2 + $0x320] sm:$0xff] %v642_v22  ;;  %v452_v23 = vpop.f32.mrb[37].mxu0  ;;  %v644_v24 = vpop.f32.mrb[37].mxu1 }
 0x129   :  { %762 = vst [vmem:[%s1680_s2 + $0x128] sm:$0xff] %v452_v23  ;;  %826 = vst [vmem:[%s1680_s2 + $0x328] sm:$0xff] %v644_v24 }
 0x12b   :  { %v456_v25 = vpop.f32.mrb[38].mxu0  ;;  %v648_v26 = vpop.f32.mrb[38].mxu1 }
 0x12c   :  { %763 = vst [vmem:[%s1680_s2 + $0x130] sm:$0xff] %v456_v25  ;;  %827 = vst [vmem:[%s1680_s2 + $0x330] sm:$0xff] %v648_v26  ;;  %v458_v27 = vpop.f32.mrb[39].mxu0  ;;  %v650_v28 = vpop.f32.mrb[39].mxu1 }
 0x12d   :  { %764 = vst [vmem:[%s1680_s2 + $0x138] sm:$0xff] %v458_v27  ;;  %828 = vst [vmem:[%s1680_s2 + $0x338] sm:$0xff] %v650_v28 }
 0x12f   :  { %v462_v29 = vpop.f32.mrb[40].mxu0  ;;  %v654_v30 = vpop.f32.mrb[40].mxu1 }
 0x130   :  { %765 = vst [vmem:[%s1680_s2 + $0x140] sm:$0xff] %v462_v29  ;;  %829 = vst [vmem:[%s1680_s2 + $0x340] sm:$0xff] %v654_v30  ;;  %v464_v31 = vpop.f32.mrb[41].mxu0  ;;  %v656_v32 = vpop.f32.mrb[41].mxu1 }
 0x131   :  { %766 = vst [vmem:[%s1680_s2 + $0x148] sm:$0xff] %v464_v31  ;;  %830 = vst [vmem:[%s1680_s2 + $0x348] sm:$0xff] %v656_v32 }
 0x133   :  { %v468_v33 = vpop.f32.mrb[42].mxu0  ;;  %v660_v34 = vpop.f32.mrb[42].mxu1 }
 0x134   :  { %767 = vst [vmem:[%s1680_s2 + $0x150] sm:$0xff] %v468_v33  ;;  %831 = vst [vmem:[%s1680_s2 + $0x350] sm:$0xff] %v660_v34  ;;  %v470_v35 = vpop.f32.mrb[43].mxu0  ;;  %v662_v36 = vpop.f32.mrb[43].mxu1 }
 0x135   :  { %768 = vst [vmem:[%s1680_s2 + $0x158] sm:$0xff] %v470_v35  ;;  %832 = vst [vmem:[%s1680_s2 + $0x358] sm:$0xff] %v662_v36 }
 0x137   :  { %v474_v37 = vpop.f32.mrb[44].mxu0  ;;  %v666_v38 = vpop.f32.mrb[44].mxu1 }
 0x138   :  { %769 = vst [vmem:[%s1680_s2 + $0x160] sm:$0xff] %v474_v37  ;;  %833 = vst [vmem:[%s1680_s2 + $0x360] sm:$0xff] %v666_v38  ;;  %v476_v39 = vpop.f32.mrb[45].mxu0  ;;  %v668_v40 = vpop.f32.mrb[45].mxu1 }
 0x139   :  { %770 = vst [vmem:[%s1680_s2 + $0x168] sm:$0xff] %v476_v39  ;;  %834 = vst [vmem:[%s1680_s2 + $0x368] sm:$0xff] %v668_v40 }
 0x13b   :  { %v480_v41 = vpop.f32.mrb[46].mxu0  ;;  %v672_v42 = vpop.f32.mrb[46].mxu1 }
 0x13c   :  { %771 = vst [vmem:[%s1680_s2 + $0x170] sm:$0xff] %v480_v41  ;;  %835 = vst [vmem:[%s1680_s2 + $0x370] sm:$0xff] %v672_v42  ;;  %v482_v43 = vpop.f32.mrb[47].mxu0  ;;  %v674_v44 = vpop.f32.mrb[47].mxu1 }
 0x13d   :  { %772 = vst [vmem:[%s1680_s2 + $0x178] sm:$0xff] %v482_v43  ;;  %836 = vst [vmem:[%s1680_s2 + $0x378] sm:$0xff] %v674_v44 }
 0x13f   :  { %v486_v45 = vpop.f32.mrb[48].mxu0  ;;  %v678_v46 = vpop.f32.mrb[48].mxu1 }
 0x140   :  { %773 = vst [vmem:[%s1680_s2 + $0x180] sm:$0xff] %v486_v45  ;;  %837 = vst [vmem:[%s1680_s2 + $0x380] sm:$0xff] %v678_v46  ;;  %v488_v47 = vpop.f32.mrb[49].mxu0  ;;  %v680_v48 = vpop.f32.mrb[49].mxu1 }
 0x141   :  { %774 = vst [vmem:[%s1680_s2 + $0x188] sm:$0xff] %v488_v47  ;;  %838 = vst [vmem:[%s1680_s2 + $0x388] sm:$0xff] %v680_v48 }
 0x143   :  { %v492_v49 = vpop.f32.mrb[50].mxu0  ;;  %v684_v50 = vpop.f32.mrb[50].mxu1 }
 0x144   :  { %775 = vst [vmem:[%s1680_s2 + $0x190] sm:$0xff] %v492_v49  ;;  %839 = vst [vmem:[%s1680_s2 + $0x390] sm:$0xff] %v684_v50  ;;  %v494_v51 = vpop.f32.mrb[51].mxu0  ;;  %v686_v52 = vpop.f32.mrb[51].mxu1 }
 0x145   :  { %776 = vst [vmem:[%s1680_s2 + $0x198] sm:$0xff] %v494_v51  ;;  %840 = vst [vmem:[%s1680_s2 + $0x398] sm:$0xff] %v686_v52 }
 0x147   :  { %v498_v53 = vpop.f32.mrb[52].mxu0  ;;  %v690_v54 = vpop.f32.mrb[52].mxu1 }
 0x148   :  { %777 = vst [vmem:[%s1680_s2 + $0x1a0] sm:$0xff] %v498_v53  ;;  %841 = vst [vmem:[%s1680_s2 + $0x3a0] sm:$0xff] %v690_v54  ;;  %v500_v55 = vpop.f32.mrb[53].mxu0  ;;  %v692_v56 = vpop.f32.mrb[53].mxu1 }
 0x149   :  { %778 = vst [vmem:[%s1680_s2 + $0x1a8] sm:$0xff] %v500_v55  ;;  %842 = vst [vmem:[%s1680_s2 + $0x3a8] sm:$0xff] %v692_v56 }
 0x14b   :  { %v504_v57 = vpop.f32.mrb[54].mxu0  ;;  %v696_v58 = vpop.f32.mrb[54].mxu1 }
 0x14c   :  { %779 = vst [vmem:[%s1680_s2 + $0x1b0] sm:$0xff] %v504_v57  ;;  %843 = vst [vmem:[%s1680_s2 + $0x3b0] sm:$0xff] %v696_v58  ;;  %v506_v59 = vpop.f32.mrb[55].mxu0  ;;  %v698_v60 = vpop.f32.mrb[55].mxu1 }
 0x14d   :  { %780 = vst [vmem:[%s1680_s2 + $0x1b8] sm:$0xff] %v506_v59  ;;  %844 = vst [vmem:[%s1680_s2 + $0x3b8] sm:$0xff] %v698_v60 }
 0x14f   :  { %v510_v61 = vpop.f32.mrb[56].mxu0  ;;  %v702_v62 = vpop.f32.mrb[56].mxu1 }
 0x150   :  { %781 = vst [vmem:[%s1680_s2 + $0x1c0] sm:$0xff] %v510_v61  ;;  %845 = vst [vmem:[%s1680_s2 + $0x3c0] sm:$0xff] %v702_v62  ;;  %v512_v63 = vpop.f32.mrb[57].mxu0  ;;  %v704_v0 = vpop.f32.mrb[57].mxu1 }
 0x151   :  { %782 = vst [vmem:[%s1680_s2 + $0x1c8] sm:$0xff] %v512_v63  ;;  %846 = vst [vmem:[%s1680_s2 + $0x3c8] sm:$0xff] %v704_v0 }
 0x153   :  { %v516_v1 = vpop.f32.mrb[58].mxu0  ;;  %v708_v2 = vpop.f32.mrb[58].mxu1 }
 0x154   :  { %783 = vst [vmem:[%s1680_s2 + $0x1d0] sm:$0xff] %v516_v1  ;;  %847 = vst [vmem:[%s1680_s2 + $0x3d0] sm:$0xff] %v708_v2  ;;  %v518_v4 = vpop.f32.mrb[59].mxu0  ;;  %v710_v5 = vpop.f32.mrb[59].mxu1 }
 0x155   :  { %784 = vst [vmem:[%s1680_s2 + $0x1d8] sm:$0xff] %v518_v4  ;;  %848 = vst [vmem:[%s1680_s2 + $0x3d8] sm:$0xff] %v710_v5 }
 0x157   :  { %v522_v6 = vpop.f32.mrb[60].mxu0  ;;  %v714_v7 = vpop.f32.mrb[60].mxu1 }
 0x158   :  { %785 = vst [vmem:[%s1680_s2 + $0x1e0] sm:$0xff] %v522_v6  ;;  %849 = vst [vmem:[%s1680_s2 + $0x3e0] sm:$0xff] %v714_v7  ;;  %v524_v8 = vpop.f32.mrb[61].mxu0  ;;  %v716_v9 = vpop.f32.mrb[61].mxu1 }
 0x159   :  { %786 = vst [vmem:[%s1680_s2 + $0x1e8] sm:$0xff] %v524_v8  ;;  %850 = vst [vmem:[%s1680_s2 + $0x3e8] sm:$0xff] %v716_v9 }
 0x15b   :  { %v528_v10 = vpop.f32.mrb[62].mxu0  ;;  %v720_v11 = vpop.f32.mrb[62].mxu1 }
 0x15c   :  { %787 = vst [vmem:[%s1680_s2 + $0x1f0] sm:$0xff] %v528_v10  ;;  %851 = vst [vmem:[%s1680_s2 + $0x3f0] sm:$0xff] %v720_v11  ;;  %v530_v12 = vpop.f32.mrb[63].mxu0  ;;  %v722_v13 = vpop.f32.mrb[63].mxu1 }
 0x15d   :  { %788 = vst [vmem:[%s1680_s2 + $0x1f8] sm:$0xff] %v530_v12  ;;  %852 = vst [vmem:[%s1680_s2 + $0x3f8] sm:$0xff] %v722_v13 }

// kernel: _lambda_.15
= control target key start
LH: loop header
LB: loop body
LE: loop exit
PB: predicated region body
PF: predicated region fallthrough
CT: control target
= control target key end

     0   :  { %vm78_vm0 = vcmask 261120   ;;  %s1812_s0 = inlined_call_operand.vmem [shape: f32[512,32], index: 0, kind: input, shape index: {}]   ;;  %s1813_s1 = inlined_call_operand.vmem [shape: f32[1,32], index: 1, kind: input, shape index: {}]   ;;  %s1814_s2 = inlined_call_operand.vmem [shape: f32[1,32], index: 2, kind: input, shape index: {}]   ;;  %s1815_s3 = inlined_call_operand.vmem [shape: f32[512,32], index: 3, kind: output, shape index: {}]  }
   0x1   :  { %v717_v0 = vld [vmem:[%s1812_s0] sm:$0xff]  ;;  %v722_v1 = vld [vmem:[%s1812_s0 + $0x8] sm:$0xff]  ;;  %v727_v2 = vld [vmem:[%s1812_s0 + $0x10] sm:$0xff] }
   0x2   :  { %v732_v3 = vld [vmem:[%s1812_s0 + $0x18] sm:$0xff]  ;;  %v79_v4 = vsel %vm78_vm0, %v717_v0, 0.0  ;;  %v80_v5 = vsel %vm78_vm0, %v722_v1, 0.0  ;;  %v82_v6 = vsel %vm78_vm0, %v727_v2, 0.0  ;;  %v743_v7 = vld [vmem:[%s1812_s0 + $0x20] sm:$0xff]  ;;  %v750_v10 = vld [vmem:[%s1812_s0 + $0x28] sm:$0xff]  ;;  %v212_v55 = vmul.f32 %v717_v0, %v717_v0 }
   0x3   :  { %v81_v8 = vadd.f32 %v80_v5, %v79_v4  ;;  %v84_v9 = vsel %vm78_vm0, %v732_v3, 0.0  ;;  %v86_v12 = vsel %vm78_vm0, %v743_v7, 0.0  ;;  %v757_v13 = vld [vmem:[%s1812_s0 + $0x30] sm:$0xff]  ;;  %v88_v15 = vsel %vm78_vm0, %v750_v10, 0.0  ;;  %v764_v16 = vld [vmem:[%s1812_s0 + $0x38] sm:$0xff]  ;;  %v771_v19 = vld [vmem:[%s1812_s0 + $0x40] sm:$0xff] }
   0x4   :  { %v90_v18 = vsel %vm78_vm0, %v757_v13, 0.0  ;;  %v92_v21 = vsel %vm78_vm0, %v764_v16, 0.0  ;;  %v778_v22 = vld [vmem:[%s1812_s0 + $0x48] sm:$0xff]  ;;  %v94_v24 = vsel %vm78_vm0, %v771_v19, 0.0  ;;  %v785_v25 = vld [vmem:[%s1812_s0 + $0x50] sm:$0xff]  ;;  %v792_v28 = vld [vmem:[%s1812_s0 + $0x58] sm:$0xff]  ;;  %v213_v56 = vmul.f32 %v722_v1, %v722_v1 }
   0x5   :  { %v83_v11 = vadd.f32 %v82_v6, %v81_v8  ;;  %v96_v27 = vsel %vm78_vm0, %v778_v22, 0.0  ;;  %v98_v30 = vsel %vm78_vm0, %v785_v25, 0.0  ;;  %v799_v31 = vld [vmem:[%s1812_s0 + $0x60] sm:$0xff]  ;;  %v100_v33 = vsel %vm78_vm0, %v792_v28, 0.0  ;;  %v806_v34 = vld [vmem:[%s1812_s0 + $0x68] sm:$0xff]  ;;  %v813_v37 = vld [vmem:[%s1812_s0 + $0x70] sm:$0xff] }
   0x6   :  { %v102_v36 = vsel %vm78_vm0, %v799_v31, 0.0  ;;  %v104_v39 = vsel %vm78_vm0, %v806_v34, 0.0  ;;  %v820_v40 = vld [vmem:[%s1812_s0 + $0x78] sm:$0xff]  ;;  %v106_v42 = vsel %vm78_vm0, %v813_v37, 0.0  ;;  %v827_v43 = vld [vmem:[%s1812_s0 + $0x80] sm:$0xff]  ;;  %v834_v46 = vld [vmem:[%s1812_s0 + $0x88] sm:$0xff]  ;;  %v214_v59 = vmul.f32 %v727_v2, %v727_v2 }
   0x7   :  { %v85_v14 = vadd.f32 %v84_v9, %v83_v11  ;;  %v108_v45 = vsel %vm78_vm0, %v820_v40, 0.0  ;;  %v110_v48 = vsel %vm78_vm0, %v827_v43, 0.0  ;;  %v841_v49 = vld [vmem:[%s1812_s0 + $0x90] sm:$0xff]  ;;  %v112_v51 = vsel %vm78_vm0, %v834_v46, 0.0  ;;  %v848_v52 = vld [vmem:[%s1812_s0 + $0x98] sm:$0xff]  ;;  %v859_v57 = vld [vmem:[%s1812_s0 + $0xa0] sm:$0xff] }
   0x8   :  { %v114_v54 = vsel %vm78_vm0, %v841_v49, 0.0  ;;  %v116_v60 = vsel %vm78_vm0, %v848_v52, 0.0  ;;  %v215_v61 = vmul.f32 %v732_v3, %v732_v3  ;;  %v870_v62 = vld [vmem:[%s1812_s0 + $0xa8] sm:$0xff]  ;;  %v118_v4 = vsel %vm78_vm0, %v859_v57, 0.0  ;;  %v881_v9 = vld [vmem:[%s1812_s0 + $0xb0] sm:$0xff] }
   0x9   :  { %v87_v17 = vadd.f32 %v86_v12, %v85_v14  ;;  %v216_v5 = vmul.f32 %v743_v7, %v743_v7  ;;  %v276_v6 = vsel %vm78_vm0, %v212_v55, 0.0  ;;  %v277_v8 = vsel %vm78_vm0, %v213_v56, 0.0  ;;  %v932_v55 = vld [vmem:[%s1812_s0 + $0xd8] sm:$0xff] }
   0xa   :  { %v278_v12 = vadd.f32 %v277_v8, %v276_v6  ;;  %v279_v14 = vsel %vm78_vm0, %v214_v59, 0.0  ;;  %v132_v6 = vsel %vm78_vm0, %v932_v55, 0.0  ;;  %v223_v8 = vmul.f32 %v792_v28, %v792_v28 }
   0xb   :  { %v89_v20 = vadd.f32 %v88_v15, %v87_v17  ;;  %v120_v15 = vsel %vm78_vm0, %v870_v62, 0.0  ;;  %v217_v17 = vmul.f32 %v750_v10, %v750_v10 }
   0xd   :  { %v91_v23 = vadd.f32 %v90_v18, %v89_v20  ;;  %v281_v18 = vsel %vm78_vm0, %v215_v61, 0.0  ;;  %v892_v20 = vld [vmem:[%s1812_s0 + $0xb8] sm:$0xff] }
   0xf   :  { %v93_v26 = vadd.f32 %v92_v21, %v91_v23  ;;  %v280_v23 = vadd.f32 %v279_v14, %v278_v12  ;;  %v952_v12 = vld [vmem:[%s1812_s0 + $0xe8] sm:$0xff] }
  0x10   :  { %1842 = vst [vmem:[#allocation3_spill] sm:$0xff] %v952_v12 }
  0x11   :  { %v95_v29 = vadd.f32 %v94_v24, %v93_v26  ;;  %v122_v24 = vsel %vm78_vm0, %v881_v9, 0.0  ;;  %v218_v26 = vmul.f32 %v757_v13, %v757_v13 }
  0x13   :  { %v97_v32 = vadd.f32 %v96_v27, %v95_v29  ;;  %v283_v27 = vsel %vm78_vm0, %v216_v5, 0.0  ;;  %v902_v29 = vld [vmem:[%s1812_s0 + $0xc0] sm:$0xff] }
  0x15   :  { %v99_v35 = vadd.f32 %v98_v30, %v97_v32  ;;  %v282_v32 = vadd.f32 %v281_v18, %v280_v23  ;;  %v224_v18 = vmul.f32 %v799_v31, %v799_v31  ;;  %v962_v23 = vld [vmem:[%s1812_s0 + $0xf0] sm:$0xff] }
  0x16   :  { %1843 = vst [vmem:[#allocation4_spill] sm:$0xff] %v962_v23 }
  0x17   :  { %v101_v38 = vadd.f32 %v100_v33, %v99_v35  ;;  %v124_v33 = vsel %vm78_vm0, %v892_v20, 0.0  ;;  %v219_v35 = vmul.f32 %v764_v16, %v764_v16 }
  0x19   :  { %v103_v41 = vadd.f32 %v102_v36, %v101_v38  ;;  %v285_v36 = vsel %vm78_vm0, %v217_v17, 0.0  ;;  %v912_v38 = vld [vmem:[%s1812_s0 + $0xc8] sm:$0xff] }
  0x1b   :  { %v105_v44 = vadd.f32 %v104_v39, %v103_v41  ;;  %v284_v41 = vadd.f32 %v283_v27, %v282_v32  ;;  %v136_v27 = vsel %vm78_vm0, %v952_v12, 0.0  ;;  %v297_v32 = vsel %vm78_vm0, %v223_v8, 0.0 }
  0x1d   :  { %v107_v47 = vadd.f32 %v106_v42, %v105_v44  ;;  %v126_v42 = vsel %vm78_vm0, %v902_v29, 0.0  ;;  %v220_v44 = vmul.f32 %v771_v19, %v771_v19 }
  0x1f   :  { %v109_v50 = vadd.f32 %v108_v45, %v107_v47  ;;  %v287_v45 = vsel %vm78_vm0, %v218_v26, 0.0  ;;  %v922_v47 = vld [vmem:[%s1812_s0 + $0xd0] sm:$0xff]  ;;  %v291_v61 = vsel %vm78_vm0, %v220_v44, 0.0  ;;  %v982_v44 = vld [vmem:[%s1812_s0 + $0x100] sm:$0xff] }
  0x20   :  { %v130_v59 = vsel %vm78_vm0, %v922_v47, 0.0  ;;  %1845 = vst [vmem:[#allocation6_spill] sm:$0xff] %v982_v44 }
  0x21   :  { %v111_v53 = vadd.f32 %v110_v48, %v109_v50  ;;  %v286_v50 = vadd.f32 %v285_v36, %v284_v41  ;;  %v226_v41 = vmul.f32 %v813_v37, %v813_v37 }
  0x23   :  { %v113_v58 = vadd.f32 %v112_v51, %v111_v53  ;;  %v128_v51 = vsel %vm78_vm0, %v912_v38, 0.0  ;;  %v221_v53 = vmul.f32 %v778_v22, %v778_v22 }
  0x25   :  { %v115_v63 = vadd.f32 %v114_v54, %v113_v58  ;;  %v289_v54 = vsel %vm78_vm0, %v219_v35, 0.0  ;;  %v288_v58 = vadd.f32 %v287_v45, %v286_v50 }
  0x27   :  { %v117_v11 = vadd.f32 %v116_v60, %v115_v63  ;;  %v222_v60 = vmul.f32 %v785_v25, %v785_v25  ;;  %v942_v63 = vld [vmem:[%s1812_s0 + $0xe0] sm:$0xff]  ;;  %v290_v5 = vadd.f32 %v289_v54, %v288_v58  ;;  %v992_v54 = vld [vmem:[%s1812_s0 + $0x108] sm:$0xff] }
  0x28   :  { %1841 = vst [vmem:[#allocation2_spill] sm:$0xff] %v942_v63  ;;  %v134_v17 = vsel %vm78_vm0, %v942_v63, 0.0  ;;  %1846 = vst [vmem:[#allocation7_spill] sm:$0xff] %v992_v54  ;;  %v144_v8 = vsel %vm78_vm0, %v992_v54, 0.0 }
  0x29   :  { %v119_v21 = vadd.f32 %v118_v4, %v117_v11  ;;  %v293_v11 = vsel %vm78_vm0, %v221_v53, 0.0 }
  0x2b   :  { %v121_v30 = vadd.f32 %v120_v15, %v119_v21  ;;  %v292_v15 = vadd.f32 %v291_v61, %v290_v5  ;;  %v295_v21 = vsel %vm78_vm0, %v222_v60, 0.0  ;;  %v228_v60 = vmul.f32 %v827_v43, %v827_v43 }
  0x2c   :  { %v303_v61 = vsel %vm78_vm0, %v226_v41, 0.0  ;;  %v1032_v41 = vld [vmem:[%s1812_s0 + $0x128] sm:$0xff] }
  0x2d   :  { %v123_v39 = vadd.f32 %v122_v24, %v121_v30  ;;  %v294_v26 = vadd.f32 %v293_v11, %v292_v15  ;;  %v225_v30 = vmul.f32 %v806_v34, %v806_v34  ;;  %v229_v11 = vmul.f32 %v834_v46, %v834_v46  ;;  %v1012_v15 = vld [vmem:[%s1812_s0 + $0x118] sm:$0xff]  ;;  %1850 = vst [vmem:[#allocation11_spill] sm:$0xff] %v1032_v41 }
  0x2e   :  { %1848 = vst [vmem:[#allocation9_spill] sm:$0xff] %v1012_v15 }
  0x2f   :  { %v125_v48 = vadd.f32 %v124_v33, %v123_v39  ;;  %v972_v33 = vld [vmem:[%s1812_s0 + $0xf8] sm:$0xff]  ;;  %v296_v36 = vadd.f32 %v295_v21, %v294_v26  ;;  %v138_v39 = vsel %vm78_vm0, %v962_v23, 0.0  ;;  %v301_v53 = vsel %vm78_vm0, %v225_v30, 0.0 }
  0x30   :  { %1844 = vst [vmem:[#allocation5_spill] sm:$0xff] %v972_v33  ;;  %v140_v50 = vsel %vm78_vm0, %v972_v33, 0.0  ;;  %v307_v26 = vsel %vm78_vm0, %v228_v60, 0.0  ;;  %v233_v60 = vmul.f32 %v870_v62, %v870_v62 }
  0x31   :  { %v127_v56 = vadd.f32 %v126_v42, %v125_v48  ;;  %v299_v42 = vsel %vm78_vm0, %v224_v18, 0.0  ;;  %v298_v48 = vadd.f32 %v297_v32, %v296_v36  ;;  %v231_v36 = vmul.f32 %v848_v52, %v848_v52 }
  0x33   :  { %v129_v4 = vadd.f32 %v128_v51, %v127_v56  ;;  %v227_v51 = vmul.f32 %v820_v40, %v820_v40  ;;  %v300_v58 = vadd.f32 %v299_v42, %v298_v48 }
  0x35   :  { %v131_v14 = vadd.f32 %v130_v59, %v129_v4  ;;  %v142_v59 = vsel %vm78_vm0, %v982_v44, 0.0  ;;  %v1002_v4 = vld [vmem:[%s1812_s0 + $0x110] sm:$0xff] }
  0x36   :  { %1847 = vst [vmem:[#allocation8_spill] sm:$0xff] %v1002_v4  ;;  %v146_v21 = vsel %vm78_vm0, %v1002_v4, 0.0 }
  0x37   :  { %v133_v24 = vadd.f32 %v132_v6, %v131_v14  ;;  %v302_v6 = vadd.f32 %v301_v53, %v300_v58  ;;  %v305_v14 = vsel %vm78_vm0, %v227_v51, 0.0  ;;  %v1042_v53 = vld [vmem:[%s1812_s0 + $0x130] sm:$0xff] }
  0x39   :  { %v135_v35 = vadd.f32 %v134_v17, %v133_v24  ;;  %v304_v18 = vadd.f32 %v303_v61, %v302_v6  ;;  %v230_v24 = vmul.f32 %v841_v49, %v841_v49  ;;  %v313_v61 = vsel %vm78_vm0, %v231_v36, 0.0 }
  0x3b   :  { %v137_v45 = vadd.f32 %v136_v27, %v135_v35  ;;  %v1022_v27 = vld [vmem:[%s1812_s0 + $0x120] sm:$0xff]  ;;  %v306_v32 = vadd.f32 %v305_v14, %v304_v18  ;;  %v148_v35 = vsel %vm78_vm0, %v1012_v15, 0.0  ;;  %v311_v51 = vsel %vm78_vm0, %v230_v24, 0.0 }
  0x3c   :  { %1849 = vst [vmem:[#allocation10_spill] sm:$0xff] %v1022_v27  ;;  %v150_v48 = vsel %vm78_vm0, %v1022_v27, 0.0  ;;  %v234_v14 = vmul.f32 %v881_v9, %v881_v9  ;;  %v1062_v18 = vld [vmem:[%s1812_s0 + $0x140] sm:$0xff] }
  0x3d   :  { %v139_v56 = vadd.f32 %v138_v39, %v137_v45  ;;  %v309_v39 = vsel %vm78_vm0, %v229_v11, 0.0  ;;  %v308_v45 = vadd.f32 %v307_v26, %v306_v32  ;;  %v154_v11 = vsel %vm78_vm0, %v1042_v53, 0.0 }
  0x3e   :  { %v317_v32 = vsel %vm78_vm0, %v233_v60, 0.0 }
  0x3f   :  { %v141_v5 = vadd.f32 %v140_v50, %v139_v56  ;;  %v232_v50 = vmul.f32 %v859_v57, %v859_v57  ;;  %v310_v58 = vadd.f32 %v309_v39, %v308_v45  ;;  %v236_v45 = vmul.f32 %v902_v29, %v902_v29 }
  0x41   :  { %v143_v17 = vadd.f32 %v142_v59, %v141_v5  ;;  %v152_v59 = vsel %vm78_vm0, %v1032_v41, 0.0  ;;  %v1052_v5 = vld [vmem:[%s1812_s0 + $0x138] sm:$0xff] }
  0x42   :  { %v156_v26 = vsel %vm78_vm0, %v1052_v5, 0.0 }
  0x43   :  { %v145_v30 = vadd.f32 %v144_v8, %v143_v17  ;;  %v312_v8 = vadd.f32 %v311_v51, %v310_v58  ;;  %v315_v17 = vsel %vm78_vm0, %v232_v50, 0.0  ;;  %v1082_v50 = vld [vmem:[%s1812_s0 + $0x150] sm:$0xff] }
  0x45   :  { %v147_v42 = vadd.f32 %v146_v21, %v145_v30  ;;  %v314_v24 = vadd.f32 %v313_v61, %v312_v8  ;;  %v235_v30 = vmul.f32 %v892_v20, %v892_v20  ;;  %v1092_v61 = vld [vmem:[%s1812_s0 + $0x158] sm:$0xff] }
  0x46   :  { %1851 = vst [vmem:[#allocation12_spill] sm:$0xff] %v1092_v61 }
  0x47   :  { %v149_v56 = vadd.f32 %v148_v35, %v147_v42  ;;  %v1072_v35 = vld [vmem:[%s1812_s0 + $0x148] sm:$0xff]  ;;  %v316_v39 = vadd.f32 %v315_v17, %v314_v24  ;;  %v158_v42 = vsel %vm78_vm0, %v1062_v18, 0.0  ;;  %v321_v60 = vsel %vm78_vm0, %v235_v30, 0.0 }
  0x48   :  { %v160_v58 = vsel %vm78_vm0, %v1072_v35, 0.0  ;;  %v323_v17 = vsel %vm78_vm0, %v236_v45, 0.0  ;;  %v164_v30 = vsel %vm78_vm0, %v1092_v61, 0.0 }
  0x49   :  { %v151_v6 = vadd.f32 %v150_v48, %v149_v56  ;;  %v319_v48 = vsel %vm78_vm0, %v234_v14, 0.0  ;;  %v318_v56 = vadd.f32 %v317_v32, %v316_v39  ;;  %v238_v14 = vmul.f32 %v922_v47, %v922_v47  ;;  %v1112_v39 = vld [vmem:[%s1812_s0 + $0x168] sm:$0xff] }
  0x4a   :  { %v239_v32 = vmul.f32 %v932_v55, %v932_v55  ;;  %1852 = vst [vmem:[#allocation13_spill] sm:$0xff] %v1112_v39 }
  0x4b   :  { %v153_v21 = vadd.f32 %v152_v59, %v151_v6  ;;  %v237_v59 = vmul.f32 %v912_v38, %v912_v38  ;;  %v320_v8 = vadd.f32 %v319_v48, %v318_v56  ;;  %v327_v56 = vsel %vm78_vm0, %v238_v14, 0.0 }
  0x4d   :  { %v155_v36 = vadd.f32 %v154_v11, %v153_v21  ;;  %v162_v11 = vsel %vm78_vm0, %v1082_v50, 0.0  ;;  %v1102_v21 = vld [vmem:[%s1812_s0 + $0x160] sm:$0xff] }
  0x4e   :  { %v166_v48 = vsel %vm78_vm0, %v1102_v21, 0.0 }
  0x4f   :  { %v157_v51 = vadd.f32 %v156_v26, %v155_v36  ;;  %v322_v26 = vadd.f32 %v321_v60, %v320_v8  ;;  %v325_v36 = vsel %vm78_vm0, %v237_v59, 0.0  ;;  %v241_v8 = vmul.f32 %v952_v12, %v952_v12 }
  0x51   :  { %v159_v6 = vadd.f32 %v158_v42, %v157_v51  ;;  %v324_v45 = vadd.f32 %v323_v17, %v322_v26  ;;  %v240_v51 = vmul.f32 %v942_v63, %v942_v63  ;;  %v1132_v17 = vld [vmem:[%s1812_s0 + $0x178] sm:$0xff] }
  0x52   :  { %1853 = vst [vmem:[#allocation14_spill] sm:$0xff] %v1132_v17  ;;  %v172_v12 = vsel %vm78_vm0, %v1132_v17, 0.0 }
  0x53   :  { %v161_v24 = vadd.f32 %v160_v58, %v159_v6  ;;  %v1122_v58 = vld [vmem:[%s1812_s0 + $0x170] sm:$0xff]  ;;  %v326_v60 = vadd.f32 %v325_v36, %v324_v45  ;;  %v168_v6 = vsel %vm78_vm0, %v1112_v39, 0.0  ;;  %v331_v36 = vsel %vm78_vm0, %v240_v51, 0.0 }
  0x54   :  { %v170_v26 = vsel %vm78_vm0, %v1122_v58, 0.0 }
  0x55   :  { %v163_v42 = vadd.f32 %v162_v11, %v161_v24  ;;  %v329_v11 = vsel %vm78_vm0, %v239_v32, 0.0  ;;  %v328_v24 = vadd.f32 %v327_v56, %v326_v60  ;;  %v333_v56 = vsel %vm78_vm0, %v241_v8, 0.0 }
  0x57   :  { %v165_v59 = vadd.f32 %v164_v30, %v163_v42  ;;  %v242_v30 = vmul.f32 %v962_v23, %v962_v23  ;;  %v1142_v42 = vld [vmem:[%s1812_s0 + $0x180] sm:$0xff]  ;;  %v330_v45 = vadd.f32 %v329_v11, %v328_v24 }
  0x58   :  { %v174_v23 = vsel %vm78_vm0, %v1142_v42, 0.0 }
  0x59   :  { %v167_v14 = vadd.f32 %v166_v48, %v165_v59  ;;  %v243_v48 = vmul.f32 %v972_v33, %v972_v33  ;;  %v1152_v59 = vld [vmem:[%s1812_s0 + $0x188] sm:$0xff]  ;;  %v332_v60 = vadd.f32 %v331_v36, %v330_v45  ;;  %v335_v11 = vsel %vm78_vm0, %v242_v30, 0.0 }
  0x5a   :  { %1854 = vst [vmem:[#allocation15_spill] sm:$0xff] %v1152_v59  ;;  %v176_v33 = vsel %vm78_vm0, %v1152_v59, 0.0 }
  0x5b   :  { %v169_v32 = vadd.f32 %v168_v6, %v167_v14  ;;  %v244_v6 = vmul.f32 %v982_v44, %v982_v44  ;;  %v1162_v14 = vld [vmem:[%s1812_s0 + $0x190] sm:$0xff]  ;;  %v334_v24 = vadd.f32 %v333_v56, %v332_v60  ;;  %v337_v36 = vsel %vm78_vm0, %v243_v48, 0.0 }
  0x5c   :  { %v178_v44 = vsel %vm78_vm0, %v1162_v14, 0.0 }
  0x5d   :  { %v171_v51 = vadd.f32 %v170_v26, %v169_v32  ;;  %v245_v26 = vmul.f32 %v992_v54, %v992_v54  ;;  %v1172_v32 = vld [vmem:[%s1812_s0 + $0x198] sm:$0xff]  ;;  %v336_v45 = vadd.f32 %v335_v11, %v334_v24  ;;  %v339_v56 = vsel %vm78_vm0, %v244_v6, 0.0 }
  0x5e   :  { %1855 = vst [vmem:[#allocation16_spill] sm:$0xff] %v1172_v32  ;;  %v180_v54 = vsel %vm78_vm0, %v1172_v32, 0.0 }
  0x5f   :  { %v173_v8 = vadd.f32 %v172_v12, %v171_v51  ;;  %v246_v12 = vmul.f32 %v1002_v4, %v1002_v4  ;;  %v1182_v51 = vld [vmem:[%s1812_s0 + $0x1a0] sm:$0xff]  ;;  %v338_v60 = vadd.f32 %v337_v36, %v336_v45  ;;  %v341_v11 = vsel %vm78_vm0, %v245_v26, 0.0 }
  0x60   :  { %1856 = vst [vmem:[#allocation17_spill] sm:$0xff] %v1182_v51  ;;  %v182_v4 = vsel %vm78_vm0, %v1182_v51, 0.0 }
  0x61   :  { %v175_v30 = vadd.f32 %v174_v23, %v173_v8  ;;  %v247_v23 = vmul.f32 %v1012_v15, %v1012_v15  ;;  %v1192_v8 = vld [vmem:[%s1812_s0 + $0x1a8] sm:$0xff]  ;;  %v340_v24 = vadd.f32 %v339_v56, %v338_v60  ;;  %v343_v36 = vsel %vm78_vm0, %v246_v12, 0.0 }
  0x62   :  { %1857 = vst [vmem:[#allocation18_spill] sm:$0xff] %v1192_v8  ;;  %v184_v15 = vsel %vm78_vm0, %v1192_v8, 0.0 }
  0x63   :  { %v177_v48 = vadd.f32 %v176_v33, %v175_v30  ;;  %v248_v33 = vmul.f32 %v1022_v27, %v1022_v27  ;;  %v1202_v30 = vld [vmem:[%s1812_s0 + $0x1b0] sm:$0xff]  ;;  %v342_v45 = vadd.f32 %v341_v11, %v340_v24  ;;  %v345_v56 = vsel %vm78_vm0, %v247_v23, 0.0 }
  0x64   :  { %1858 = vst [vmem:[#allocation19_spill] sm:$0xff] %v1202_v30  ;;  %v186_v27 = vsel %vm78_vm0, %v1202_v30, 0.0 }
  0x65   :  { %v179_v6 = vadd.f32 %v178_v44, %v177_v48  ;;  %v249_v44 = vmul.f32 %v1032_v41, %v1032_v41  ;;  %v1212_v48 = vld [vmem:[%s1812_s0 + $0x1b8] sm:$0xff]  ;;  %v344_v60 = vadd.f32 %v343_v36, %v342_v45  ;;  %v347_v11 = vsel %vm78_vm0, %v248_v33, 0.0 }
  0x66   :  { %v188_v23 = vsel %vm78_vm0, %v1212_v48, 0.0  ;;  %v251_v41 = vmul.f32 %v1052_v5, %v1052_v5  ;;  %v252_v33 = vmul.f32 %v1062_v18, %v1062_v18 }
  0x67   :  { %v181_v26 = vadd.f32 %v180_v54, %v179_v6  ;;  %v250_v54 = vmul.f32 %v1042_v53, %v1042_v53  ;;  %v346_v24 = vadd.f32 %v345_v56, %v344_v60  ;;  %v349_v63 = vsel %vm78_vm0, %v249_v44, 0.0 }
  0x68   :  { %v253_v44 = vmul.f32 %v1072_v35, %v1072_v35  ;;  %v353_v60 = vsel %vm78_vm0, %v251_v41, 0.0 }
  0x69   :  { %v183_v12 = vadd.f32 %v182_v4, %v181_v26  ;;  %v1227_v4 = vld [vmem:[%s1812_s0 + $0x1c0] sm:$0xff]  ;;  %v348_v26 = vadd.f32 %v347_v11, %v346_v24 }
  0x6a   :  { %v357_v41 = vsel %vm78_vm0, %v253_v44, 0.0 }
  0x6b   :  { %v185_v6 = vadd.f32 %v184_v15, %v183_v12  ;;  %v351_v15 = vsel %vm78_vm0, %v250_v54, 0.0  ;;  %v350_v56 = vadd.f32 %v349_v63, %v348_v26  ;;  %v190_v12 = vsel %vm78_vm0, %v1227_v4, 0.0  ;;  %v1253_v26 = vld [vmem:[%s1812_s0 + $0x1d0] sm:$0xff] }
  0x6c   :  { %v355_v54 = vsel %vm78_vm0, %v252_v33, 0.0  ;;  %1860 = vst [vmem:[#allocation21_spill] sm:$0xff] %v1253_v26 }
  0x6d   :  { %v187_v36 = vadd.f32 %v186_v27, %v185_v6  ;;  %v1240_v27 = vld [vmem:[%s1812_s0 + $0x1c8] sm:$0xff]  ;;  %v352_v11 = vadd.f32 %v351_v15, %v350_v56  ;;  %v254_v6 = vmul.f32 %v1082_v50, %v1082_v50  ;;  %v256_v56 = vmul.f32 %v1102_v21, %v1102_v21 }
  0x6e   :  { %1859 = vst [vmem:[#allocation20_spill] sm:$0xff] %v1240_v27 }
  0x6f   :  { %v189_v45 = vadd.f32 %v188_v23, %v187_v36  ;;  %v354_v24 = vadd.f32 %v353_v60, %v352_v11  ;;  %v192_v23 = vsel %vm78_vm0, %v1240_v27, 0.0  ;;  %v255_v36 = vmul.f32 %v1092_v61, %v1092_v61  ;;  %v1266_v61 = vld [vmem:[%s1812_s0 + $0x1d8] sm:$0xff] }
  0x70   :  { %v359_v33 = vsel %vm78_vm0, %v254_v6, 0.0  ;;  %v194_v60 = vsel %vm78_vm0, %v1253_v26, 0.0  ;;  %v257_v11 = vmul.f32 %v1112_v39, %v1112_v39  ;;  %1861 = vst [vmem:[#allocation22_spill] sm:$0xff] %v1266_v61  ;;  %v363_v6 = vsel %vm78_vm0, %v256_v56, 0.0  ;;  %v1279_v39 = vld [vmem:[%s1812_s0 + $0x1e0] sm:$0xff] }
  0x71   :  { %v191_v63 = vadd.f32 %v190_v12, %v189_v45  ;;  %v356_v15 = vadd.f32 %v355_v54, %v354_v24  ;;  %v361_v44 = vsel %vm78_vm0, %v255_v36, 0.0  ;;  %v258_v24 = vmul.f32 %v1122_v58, %v1122_v58  ;;  %1862 = vst [vmem:[#allocation23_spill] sm:$0xff] %v1279_v39 }
  0x72   :  { %v365_v36 = vsel %vm78_vm0, %v257_v11, 0.0 }
  0x73   :  { %v193_v45 = vadd.f32 %v192_v23, %v191_v63  ;;  %v358_v12 = vadd.f32 %v357_v41, %v356_v15  ;;  %v196_v41 = vsel %vm78_vm0, %v1266_v61, 0.0  ;;  %v259_v15 = vmul.f32 %v1132_v17, %v1132_v17  ;;  %v1292_v17 = vld [vmem:[%s1812_s0 + $0x1e8] sm:$0xff] }
  0x74   :  { %v367_v56 = vsel %vm78_vm0, %v258_v24, 0.0  ;;  %1863 = vst [vmem:[#allocation24_spill] sm:$0xff] %v1292_v17 }
  0x75   :  { %v360_v54 = vadd.f32 %v359_v33, %v358_v12  ;;  %v195_v63 = vadd.f32 %v194_v60, %v193_v45  ;;  %v260_v12 = vmul.f32 %v1142_v42, %v1142_v42  ;;  %v369_v11 = vsel %vm78_vm0, %v259_v15, 0.0 }
  0x77   :  { %v362_v23 = vadd.f32 %v361_v44, %v360_v54  ;;  %v197_v45 = vadd.f32 %v196_v41, %v195_v63  ;;  %v198_v44 = vsel %vm78_vm0, %v1279_v39, 0.0  ;;  %v261_v54 = vmul.f32 %v1152_v59, %v1152_v59  ;;  %v1305_v59 = vld [vmem:[%s1812_s0 + $0x1f0] sm:$0xff] }
  0x78   :  { %v371_v24 = vsel %vm78_vm0, %v260_v12, 0.0  ;;  %1864 = vst [vmem:[#allocation25_spill] sm:$0xff] %v1305_v59 }
  0x79   :  { %v364_v33 = vadd.f32 %v363_v6, %v362_v23  ;;  %v262_v23 = vmul.f32 %v1162_v14, %v1162_v14  ;;  %v199_v63 = vadd.f32 %v198_v44, %v197_v45  ;;  %v373_v15 = vsel %vm78_vm0, %v261_v54, 0.0 }
  0x7b   :  { %v366_v60 = vadd.f32 %v365_v36, %v364_v33  ;;  %v200_v36 = vsel %vm78_vm0, %v1292_v17, 0.0  ;;  %v263_v33 = vmul.f32 %v1172_v32, %v1172_v32  ;;  %v375_v12 = vsel %vm78_vm0, %v262_v23, 0.0  ;;  %v1318_v32 = vld [vmem:[%s1812_s0 + $0x1f8] sm:$0xff] }
  0x7c   :  { %v201_v45 = vadd.f32 %v200_v36, %v199_v63  ;;  %1865 = vst [vmem:[#allocation26_spill] sm:$0xff] %v1318_v32 }
  0x7d   :  { %v368_v6 = vadd.f32 %v367_v56, %v366_v60  ;;  %v264_v60 = vmul.f32 %v1182_v51, %v1182_v51  ;;  %v377_v54 = vsel %vm78_vm0, %v263_v33, 0.0  ;;  %v268_v51 = vmul.f32 %v1227_v4, %v1227_v4 }
  0x7f   :  { %v370_v41 = vadd.f32 %v369_v11, %v368_v6  ;;  %v202_v11 = vsel %vm78_vm0, %v1305_v59, 0.0  ;;  %v265_v6 = vmul.f32 %v1192_v8, %v1192_v8  ;;  %v379_v23 = vsel %vm78_vm0, %v264_v60, 0.0 }
  0x80   :  { %v203_v63 = vadd.f32 %v202_v11, %v201_v45  ;;  %v269_v60 = vmul.f32 %v1240_v27, %v1240_v27 }
  0x81   :  { %v372_v56 = vadd.f32 %v371_v24, %v370_v41  ;;  %v266_v41 = vmul.f32 %v1202_v30, %v1202_v30  ;;  %v381_v33 = vsel %vm78_vm0, %v265_v6, 0.0 }
  0x83   :  { %v374_v44 = vadd.f32 %v373_v15, %v372_v56  ;;  %v204_v15 = vsel %vm78_vm0, %v1318_v32, 0.0  ;;  %v267_v56 = vmul.f32 %v1212_v48, %v1212_v48 }
  0x85   :  { %v376_v24 = vadd.f32 %v375_v12, %v374_v44  ;;  %v383_v12 = vsel %vm78_vm0, %v266_v41, 0.0  ;;  %v205_v44 = vadd.f32 %v204_v15, %v203_v63  ;;  %v385_v45 = vsel %vm78_vm0, %v267_v56, 0.0 }
  0x86   :  { %v389_v41 = vsel %vm78_vm0, %v269_v60, 0.0 }
  0x87   :  { %v378_v36 = vadd.f32 %v377_v54, %v376_v24  ;;  %v270_v54 = vmul.f32 %v1253_v26, %v1253_v26  ;;  %v387_v24 = vsel %vm78_vm0, %v268_v51, 0.0  ;;  %v206_v6 = vrot.slane %v205_v44, 4 }
  0x89   :  { %v380_v8 = vadd.f32 %v379_v23, %v378_v36  ;;  %v271_v36 = vmul.f32 %v1266_v61, %v1266_v61  ;;  %v391_v15 = vsel %vm78_vm0, %v270_v54, 0.0  ;;  %v207_v56 = vadd.f32 %v206_v6, %v205_v44 }
  0x8b   :  { %v382_v30 = vadd.f32 %v381_v33, %v380_v8  ;;  %v272_v8 = vmul.f32 %v1279_v39, %v1279_v39  ;;  %v273_v33 = vmul.f32 %v1292_v17, %v1292_v17  ;;  %v393_v51 = vsel %vm78_vm0, %v271_v36, 0.0 }
  0x8c   :  { %v208_v60 = vrot.slane %v207_v56, 2 }
  0x8d   :  { %v384_v11 = vadd.f32 %v383_v12, %v382_v30  ;;  %v397_v54 = vsel %vm78_vm0, %v273_v33, 0.0 }
  0x8f   :  { %v386_v23 = vadd.f32 %v385_v45, %v384_v11  ;;  %v274_v45 = vmul.f32 %v1305_v59, %v1305_v59  ;;  %v395_v11 = vsel %vm78_vm0, %v272_v8, 0.0 }
  0x91   :  { %v388_v63 = vadd.f32 %v387_v24, %v386_v23  ;;  %v275_v23 = vmul.f32 %v1318_v32, %v1318_v32  ;;  %v399_v6 = vsel %vm78_vm0, %v274_v45, 0.0 }
  0x93   :  { %v390_v30 = vadd.f32 %v389_v41, %v388_v63  ;;  %v209_v41 = vadd.f32 %v208_v60, %v207_v56  ;;  %v401_v36 = vsel %vm78_vm0, %v275_v23, 0.0  ;;  %v421_v56 = vlaneseq  ;;  %v413_v60 = vld [vmem:[%s1813_s1] sm:$0x1] }
  0x95   :  { %v392_v12 = vadd.f32 %v391_v15, %v390_v30  ;;  %v210_v30 = vrot.slane %v209_v41, 1  ;;  %v422_v45 = vshrl.u32 %v421_v56, 7 }
  0x97   :  { %v394_v24 = vadd.f32 %v393_v51, %v392_v12  ;;  %v211_v39 = vadd.f32 %v210_v30, %v209_v41  ;;  %v423_v23 = vsub.s32 0, %v422_v45 }
  0x99   :  { %v396_v44 = vadd.f32 %v395_v11, %v394_v24  ;;  %v409_v12 = vmul.f32 0.001953125, %v211_v39 }
  0x9b   :  { %v398_v63 = vadd.f32 %v397_v54, %v396_v44  ;;  %v411_v27 = vmul.f32 %v409_v12, %v409_v12 }
  0x9d   :  { %v400_v15 = vadd.f32 %v399_v6, %v398_v63 }
  0x9f   :  { %v402_v17 = vadd.f32 %v401_v36, %v400_v15 }
  0xa1   :  { %v403_v59 = vrot.slane %v402_v17, 4 }
  0xa3   :  { %v404_v8 = vadd.f32 %v403_v59, %v402_v17 }
  0xa5   :  { %v405_v61 = vrot.slane %v404_v8, 2 }
  0xa7   :  { %v406_v51 = vadd.f32 %v405_v61, %v404_v8  ;;  %v417_v61 = vld [vmem:[%s1814_s2] sm:$0x1] }
  0xa9   :  { %v407_v26 = vrot.slane %v406_v51, 1 }
  0xab   :  { %v408_v32 = vadd.f32 %v407_v26, %v406_v51 }
  0xad   :  { %v410_v33 = vmul.f32 0.001953125, %v408_v32 }
  0xaf   :  { %v412_v11 = vsub.f32 %v410_v33, %v411_v27 }
  0xb1   :  { %v414_v24 = vadd.f32 1e-05, %v412_v11 }
  0xb3   :  { %692 = vrsqrt.f32 %v414_v24 }
  0xbd   :  { %v693_v54 = vpop.eup %692 }
  0xbe   :  { %v416_v44 = vmul.f32 %v693_v54, %v413_v60 }
  0xc0   :  { %v418_v39 = vmul.f32 %v416_v44, %v409_v12  ;;  %v1360_v17 = vrot.slane %v416_v44, %v423_v23 }
  0xc2   :  { %v419_v59 = vsub.f32 %v417_v61, %v418_v39  ;;  %v426_v32 = vmul.f32 %v1360_v17, %v717_v0  ;;  %v427_v27 = vmul.f32 %v1360_v17, %v722_v1  ;;  %v428_v26 = vmul.f32 %v1360_v17, %v727_v2 }
  0xc3   :  { %v429_v6 = vmul.f32 %v1360_v17, %v732_v3  ;;  %v430_v41 = vmul.f32 %v1360_v17, %v743_v7  ;;  %v431_v63 = vmul.f32 %v1360_v17, %v750_v10  ;;  %v432_v36 = vmul.f32 %v1360_v17, %v757_v13 }
  0xc4   :  { %v1376_v15 = vrot.slane %v419_v59, %v423_v23  ;;  %v433_v0 = vmul.f32 %v1360_v17, %v764_v16  ;;  %v434_v1 = vmul.f32 %v1360_v17, %v771_v19  ;;  %v435_v2 = vmul.f32 %v1360_v17, %v778_v22 }
  0xc5   :  { %v436_v3 = vmul.f32 %v1360_v17, %v785_v25  ;;  %v437_v7 = vmul.f32 %v1360_v17, %v792_v28  ;;  %v438_v10 = vmul.f32 %v1360_v17, %v799_v31  ;;  %v439_v13 = vmul.f32 %v1360_v17, %v806_v34 }
  0xc6   :  { %v496_v16 = vadd.f32 %v1376_v15, %v426_v32  ;;  %v497_v30 = vadd.f32 %v1376_v15, %v427_v27  ;;  %v498_v19 = vadd.f32 %v1376_v15, %v428_v26  ;;  %v499_v22 = vadd.f32 %v1376_v15, %v429_v6 }
  0xc7   :  { %v500_v8 = vadd.f32 %v1376_v15, %v430_v41  ;;  %v501_v25 = vadd.f32 %v1376_v15, %v431_v63  ;;  %v502_v28 = vadd.f32 %v1376_v15, %v432_v36  ;;  %v503_v51 = vadd.f32 %v1376_v15, %v433_v0 }
  0xc8   :  { %v560_v31 = vmax.f32 %v496_v16, 0.0  ;;  %v561_v12 = vmax.f32 %v497_v30, 0.0  ;;  %v562_v33 = vmax.f32 %v498_v19, 0.0  ;;  %v563_v34 = vmax.f32 %v499_v22, 0.0 }
  0xc9   :  { %v564_v11 = vmax.f32 %v500_v8, 0.0  ;;  %v565_v24 = vmax.f32 %v501_v25, 0.0  ;;  %v566_v56 = vmax.f32 %v502_v28, 0.0  ;;  %v567_v45 = vmax.f32 %v503_v51, 0.0 }
  0xca   :  { %624 = vst.msk [vmem:[%s1815_s3] sm:$0xff] %vm78_vm0, %v560_v31  ;;  %625 = vst.msk [vmem:[%s1815_s3 + $0x8] sm:$0xff] %vm78_vm0, %v561_v12  ;;  %v504_v60 = vadd.f32 %v1376_v15, %v434_v1  ;;  %v505_v23 = vadd.f32 %v1376_v15, %v435_v2  ;;  %v506_v54 = vadd.f32 %v1376_v15, %v436_v3 }
  0xcb   :  { %626 = vst.msk [vmem:[%s1815_s3 + $0x10] sm:$0xff] %vm78_vm0, %v562_v33  ;;  %627 = vst.msk [vmem:[%s1815_s3 + $0x18] sm:$0xff] %vm78_vm0, %v563_v34  ;;  %v507_v44 = vadd.f32 %v1376_v15, %v437_v7  ;;  %v508_v61 = vadd.f32 %v1376_v15, %v438_v10  ;;  %v509_v39 = vadd.f32 %v1376_v15, %v439_v13 }
  0xcc   :  { %628 = vst.msk [vmem:[%s1815_s3 + $0x20] sm:$0xff] %vm78_vm0, %v564_v11  ;;  %629 = vst.msk [vmem:[%s1815_s3 + $0x28] sm:$0xff] %vm78_vm0, %v565_v24  ;;  %v440_v59 = vmul.f32 %v1360_v17, %v813_v37  ;;  %v441_v32 = vmul.f32 %v1360_v17, %v820_v40  ;;  %v568_v27 = vmax.f32 %v504_v60, 0.0  ;;  %v569_v26 = vmax.f32 %v505_v23, 0.0 }
  0xcd   :  { %630 = vst.msk [vmem:[%s1815_s3 + $0x30] sm:$0xff] %vm78_vm0, %v566_v56  ;;  %631 = vst.msk [vmem:[%s1815_s3 + $0x38] sm:$0xff] %vm78_vm0, %v567_v45  ;;  %v570_v6 = vmax.f32 %v506_v54, 0.0  ;;  %v571_v41 = vmax.f32 %v507_v44, 0.0  ;;  %v572_v63 = vmax.f32 %v508_v61, 0.0  ;;  %v573_v36 = vmax.f32 %v509_v39, 0.0 }
  0xce   :  { %v510_v0 = vadd.f32 %v1376_v15, %v440_v59  ;;  %v511_v1 = vadd.f32 %v1376_v15, %v441_v32  ;;  %632 = vst.msk [vmem:[%s1815_s3 + $0x40] sm:$0xff] %vm78_vm0, %v568_v27  ;;  %633 = vst.msk [vmem:[%s1815_s3 + $0x48] sm:$0xff] %vm78_vm0, %v569_v26  ;;  %v442_v37 = vmul.f32 %v1360_v17, %v827_v43  ;;  %v1866_v56 = vld [vmem:[#allocation2_spill] sm:$0xff]  ;;  %v1867_v45 = vld [vmem:[#allocation3_spill] sm:$0xff] }
  0xcf   :  { %634 = vst.msk [vmem:[%s1815_s3 + $0x50] sm:$0xff] %vm78_vm0, %v570_v6  ;;  %635 = vst.msk [vmem:[%s1815_s3 + $0x58] sm:$0xff] %vm78_vm0, %v571_v41  ;;  %v443_v40 = vmul.f32 %v1360_v17, %v834_v46  ;;  %v444_v2 = vmul.f32 %v1360_v17, %v841_v49  ;;  %v445_v3 = vmul.f32 %v1360_v17, %v848_v52  ;;  %v1868_v39 = vld [vmem:[#allocation4_spill] sm:$0xff]  ;;  %v1869_v32 = vld [vmem:[#allocation5_spill] sm:$0xff] }
  0xd0   :  { %636 = vst.msk [vmem:[%s1815_s3 + $0x60] sm:$0xff] %vm78_vm0, %v572_v63  ;;  %637 = vst.msk [vmem:[%s1815_s3 + $0x68] sm:$0xff] %vm78_vm0, %v573_v36  ;;  %v574_v43 = vmax.f32 %v510_v0, 0.0  ;;  %v575_v7 = vmax.f32 %v511_v1, 0.0  ;;  %v446_v46 = vmul.f32 %v1360_v17, %v859_v57  ;;  %v447_v49 = vmul.f32 %v1360_v17, %v870_v62 }
  0xd1   :  { %v512_v52 = vadd.f32 %v1376_v15, %v442_v37  ;;  %v513_v10 = vadd.f32 %v1376_v15, %v443_v40  ;;  %v514_v13 = vadd.f32 %v1376_v15, %v444_v2  ;;  %v515_v16 = vadd.f32 %v1376_v15, %v445_v3  ;;  %v1870_v40 = vld [vmem:[#allocation6_spill] sm:$0xff]  ;;  %v1871_v3 = vld [vmem:[#allocation7_spill] sm:$0xff] }
  0xd2   :  { %638 = vst.msk [vmem:[%s1815_s3 + $0x70] sm:$0xff] %vm78_vm0, %v574_v43  ;;  %639 = vst.msk [vmem:[%s1815_s3 + $0x78] sm:$0xff] %vm78_vm0, %v575_v7  ;;  %v516_v57 = vadd.f32 %v1376_v15, %v446_v46  ;;  %v517_v62 = vadd.f32 %v1376_v15, %v447_v49  ;;  %v448_v30 = vmul.f32 %v1360_v17, %v881_v9  ;;  %v1872_v7 = vld [vmem:[#allocation8_spill] sm:$0xff]  ;;  %v1873_v49 = vld [vmem:[#allocation9_spill] sm:$0xff] }
  0xd3   :  { %v449_v19 = vmul.f32 %v1360_v17, %v892_v20  ;;  %v576_v22 = vmax.f32 %v512_v52, 0.0  ;;  %v577_v8 = vmax.f32 %v513_v10, 0.0  ;;  %v578_v25 = vmax.f32 %v514_v13, 0.0 }
  0xd4   :  { %v579_v28 = vmax.f32 %v515_v16, 0.0  ;;  %v580_v51 = vmax.f32 %v516_v57, 0.0  ;;  %v581_v31 = vmax.f32 %v517_v62, 0.0  ;;  %v518_v12 = vadd.f32 %v1376_v15, %v448_v30  ;;  %v1874_v16 = vld [vmem:[#allocation10_spill] sm:$0xff]  ;;  %v1875_v62 = vld [vmem:[#allocation11_spill] sm:$0xff] }
  0xd5   :  { %v519_v33 = vadd.f32 %v1376_v15, %v449_v19  ;;  %640 = vst.msk [vmem:[%s1815_s3 + $0x80] sm:$0xff] %vm78_vm0, %v576_v22  ;;  %641 = vst.msk [vmem:[%s1815_s3 + $0x88] sm:$0xff] %vm78_vm0, %v577_v8  ;;  %v450_v9 = vmul.f32 %v1360_v17, %v902_v29  ;;  %v451_v20 = vmul.f32 %v1360_v17, %v912_v38 }
  0xd6   :  { %642 = vst.msk [vmem:[%s1815_s3 + $0x90] sm:$0xff] %vm78_vm0, %v578_v25  ;;  %643 = vst.msk [vmem:[%s1815_s3 + $0x98] sm:$0xff] %vm78_vm0, %v579_v28  ;;  %v452_v34 = vmul.f32 %v1360_v17, %v922_v47  ;;  %v453_v11 = vmul.f32 %v1360_v17, %v932_v55  ;;  %v582_v29 = vmax.f32 %v518_v12, 0.0  ;;  %v454_v38 = vmul.f32 %v1360_v17, %v1866_v56 }
  0xd7   :  { %644 = vst.msk [vmem:[%s1815_s3 + $0xa0] sm:$0xff] %vm78_vm0, %v580_v51  ;;  %645 = vst.msk [vmem:[%s1815_s3 + $0xa8] sm:$0xff] %vm78_vm0, %v581_v31  ;;  %v583_v24 = vmax.f32 %v519_v33, 0.0  ;;  %v455_v47 = vmul.f32 %v1360_v17, %v1867_v45  ;;  %v520_v55 = vadd.f32 %v1376_v15, %v450_v9  ;;  %v521_v60 = vadd.f32 %v1376_v15, %v451_v20  ;;  %v1876_v45 = vld [vmem:[#allocation12_spill] sm:$0xff] }
  0xd8   :  { %v522_v23 = vadd.f32 %v1376_v15, %v452_v34  ;;  %v523_v54 = vadd.f32 %v1376_v15, %v453_v11  ;;  %646 = vst.msk [vmem:[%s1815_s3 + $0xb0] sm:$0xff] %vm78_vm0, %v582_v29  ;;  %v524_v44 = vadd.f32 %v1376_v15, %v454_v38  ;;  %v456_v59 = vmul.f32 %v1360_v17, %v1868_v39 }
  0xd9   :  { %647 = vst.msk [vmem:[%s1815_s3 + $0xb8] sm:$0xff] %vm78_vm0, %v583_v24  ;;  %v525_v61 = vadd.f32 %v1376_v15, %v455_v47  ;;  %v457_v27 = vmul.f32 %v1360_v17, %v1869_v32  ;;  %v584_v26 = vmax.f32 %v520_v55, 0.0  ;;  %v585_v6 = vmax.f32 %v521_v60, 0.0  ;;  %v1877_v60 = vld [vmem:[#allocation13_spill] sm:$0xff]  ;;  %v1878_v32 = vld [vmem:[#allocation14_spill] sm:$0xff] }
  0xda   :  { %v586_v41 = vmax.f32 %v522_v23, 0.0  ;;  %v587_v63 = vmax.f32 %v523_v54, 0.0  ;;  %v588_v36 = vmax.f32 %v524_v44, 0.0  ;;  %v526_v1 = vadd.f32 %v1376_v15, %v456_v59 }
  0xdb   :  { %v589_v0 = vmax.f32 %v525_v61, 0.0  ;;  %v527_v37 = vadd.f32 %v1376_v15, %v457_v27  ;;  %648 = vst.msk [vmem:[%s1815_s3 + $0xc0] sm:$0xff] %vm78_vm0, %v584_v26  ;;  %649 = vst.msk [vmem:[%s1815_s3 + $0xc8] sm:$0xff] %vm78_vm0, %v585_v6  ;;  %v458_v2 = vmul.f32 %v1360_v17, %v1870_v40  ;;  %v459_v43 = vmul.f32 %v1360_v17, %v1871_v3  ;;  %v1879_v40 = vld [vmem:[#allocation15_spill] sm:$0xff] }
  0xdc   :  { %650 = vst.msk [vmem:[%s1815_s3 + $0xd0] sm:$0xff] %vm78_vm0, %v586_v41  ;;  %651 = vst.msk [vmem:[%s1815_s3 + $0xd8] sm:$0xff] %vm78_vm0, %v587_v63  ;;  %v460_v46 = vmul.f32 %v1360_v17, %v1872_v7  ;;  %v461_v52 = vmul.f32 %v1360_v17, %v1873_v49  ;;  %v590_v10 = vmax.f32 %v526_v1, 0.0  ;;  %v462_v57 = vmul.f32 %v1360_v17, %v1874_v16  ;;  %v1881_v49 = vld [vmem:[#allocation17_spill] sm:$0xff] }
  0xdd   :  { %652 = vst.msk [vmem:[%s1815_s3 + $0xe0] sm:$0xff] %vm78_vm0, %v588_v36  ;;  %653 = vst.msk [vmem:[%s1815_s3 + $0xe8] sm:$0xff] %vm78_vm0, %v589_v0  ;;  %v591_v13 = vmax.f32 %v527_v37, 0.0  ;;  %v463_v30 = vmul.f32 %v1360_v17, %v1875_v62  ;;  %v528_v19 = vadd.f32 %v1376_v15, %v458_v2  ;;  %v529_v22 = vadd.f32 %v1376_v15, %v459_v43  ;;  %v1880_v43 = vld [vmem:[#allocation16_spill] sm:$0xff] }
  0xde   :  { %v530_v8 = vadd.f32 %v1376_v15, %v460_v46  ;;  %v531_v25 = vadd.f32 %v1376_v15, %v461_v52  ;;  %654 = vst.msk [vmem:[%s1815_s3 + $0xf0] sm:$0xff] %vm78_vm0, %v590_v10  ;;  %v532_v28 = vadd.f32 %v1376_v15, %v462_v57  ;;  %v464_v31 = vmul.f32 %v1360_v17, %v1042_v53  ;;  %v1882_v10 = vld [vmem:[#allocation18_spill] sm:$0xff] }
  0xdf   :  { %655 = vst.msk [vmem:[%s1815_s3 + $0xf8] sm:$0xff] %vm78_vm0, %v591_v13  ;;  %v533_v51 = vadd.f32 %v1376_v15, %v463_v30  ;;  %v465_v12 = vmul.f32 %v1360_v17, %v1052_v5  ;;  %v592_v33 = vmax.f32 %v528_v19, 0.0  ;;  %v593_v9 = vmax.f32 %v529_v22, 0.0  ;;  %v1883_v22 = vld [vmem:[#allocation19_spill] sm:$0xff] }
  0xe0   :  { %v594_v20 = vmax.f32 %v530_v8, 0.0  ;;  %v595_v34 = vmax.f32 %v531_v25, 0.0  ;;  %v596_v11 = vmax.f32 %v532_v28, 0.0  ;;  %v534_v24 = vadd.f32 %v1376_v15, %v464_v31 }
  0xe1   :  { %v597_v29 = vmax.f32 %v533_v51, 0.0  ;;  %v535_v56 = vadd.f32 %v1376_v15, %v465_v12  ;;  %656 = vst.msk [vmem:[%s1815_s3 + $0x100] sm:$0xff] %vm78_vm0, %v592_v33  ;;  %657 = vst.msk [vmem:[%s1815_s3 + $0x108] sm:$0xff] %vm78_vm0, %v593_v9  ;;  %v466_v53 = vmul.f32 %v1360_v17, %v1062_v18  ;;  %v467_v5 = vmul.f32 %v1360_v17, %v1072_v35 }
  0xe2   :  { %658 = vst.msk [vmem:[%s1815_s3 + $0x110] sm:$0xff] %vm78_vm0, %v594_v20  ;;  %659 = vst.msk [vmem:[%s1815_s3 + $0x118] sm:$0xff] %vm78_vm0, %v595_v34  ;;  %v468_v38 = vmul.f32 %v1360_v17, %v1082_v50  ;;  %v469_v47 = vmul.f32 %v1360_v17, %v1876_v45  ;;  %v598_v18 = vmax.f32 %v534_v24, 0.0  ;;  %v470_v35 = vmul.f32 %v1360_v17, %v1102_v21  ;;  %v1885_v24 = vld [vmem:[#allocation21_spill] sm:$0xff]  ;;  %v1887_v45 = vld [vmem:[#allocation23_spill] sm:$0xff] }
  0xe3   :  { %660 = vst.msk [vmem:[%s1815_s3 + $0x120] sm:$0xff] %vm78_vm0, %v596_v11  ;;  %661 = vst.msk [vmem:[%s1815_s3 + $0x128] sm:$0xff] %vm78_vm0, %v597_v29  ;;  %v599_v55 = vmax.f32 %v535_v56, 0.0  ;;  %v471_v50 = vmul.f32 %v1360_v17, %v1877_v60  ;;  %v536_v23 = vadd.f32 %v1376_v15, %v466_v53  ;;  %v537_v54 = vadd.f32 %v1376_v15, %v467_v5  ;;  %v1884_v11 = vld [vmem:[#allocation20_spill] sm:$0xff]  ;;  %v1886_v53 = vld [vmem:[#allocation22_spill] sm:$0xff] }
  0xe4   :  { %v538_v44 = vadd.f32 %v1376_v15, %v468_v38  ;;  %v539_v61 = vadd.f32 %v1376_v15, %v469_v47  ;;  %662 = vst.msk [vmem:[%s1815_s3 + $0x130] sm:$0xff] %vm78_vm0, %v598_v18  ;;  %v540_v21 = vadd.f32 %v1376_v15, %v470_v35  ;;  %v472_v59 = vmul.f32 %v1360_v17, %v1122_v58  ;;  %v1888_v18 = vld [vmem:[#allocation24_spill] sm:$0xff] }
  0xe5   :  { %663 = vst.msk [vmem:[%s1815_s3 + $0x138] sm:$0xff] %vm78_vm0, %v599_v55  ;;  %v541_v39 = vadd.f32 %v1376_v15, %v471_v50  ;;  %v473_v27 = vmul.f32 %v1360_v17, %v1878_v32  ;;  %v600_v26 = vmax.f32 %v536_v23, 0.0  ;;  %v601_v6 = vmax.f32 %v537_v54, 0.0 }
  0xe6   :  { %v602_v41 = vmax.f32 %v538_v44, 0.0  ;;  %v603_v63 = vmax.f32 %v539_v61, 0.0  ;;  %v604_v36 = vmax.f32 %v540_v21, 0.0  ;;  %v542_v1 = vadd.f32 %v1376_v15, %v472_v59  ;;  %v1889_v61 = vld [vmem:[#allocation25_spill] sm:$0xff] }
  0xe7   :  { %v605_v0 = vmax.f32 %v541_v39, 0.0  ;;  %v543_v37 = vadd.f32 %v1376_v15, %v473_v27  ;;  %664 = vst.msk [vmem:[%s1815_s3 + $0x140] sm:$0xff] %vm78_vm0, %v600_v26  ;;  %665 = vst.msk [vmem:[%s1815_s3 + $0x148] sm:$0xff] %vm78_vm0, %v601_v6  ;;  %v474_v58 = vmul.f32 %v1360_v17, %v1142_v42  ;;  %v475_v2 = vmul.f32 %v1360_v17, %v1879_v40  ;;  %v1890_v39 = vld [vmem:[#allocation26_spill] sm:$0xff] }
  0xe8   :  { %666 = vst.msk [vmem:[%s1815_s3 + $0x150] sm:$0xff] %vm78_vm0, %v602_v41  ;;  %667 = vst.msk [vmem:[%s1815_s3 + $0x158] sm:$0xff] %vm78_vm0, %v603_v63  ;;  %v476_v3 = vmul.f32 %v1360_v17, %v1162_v14  ;;  %v477_v7 = vmul.f32 %v1360_v17, %v1880_v43  ;;  %v606_v42 = vmax.f32 %v542_v1, 0.0  ;;  %v478_v52 = vmul.f32 %v1360_v17, %v1881_v49 }
  0xe9   :  { %668 = vst.msk [vmem:[%s1815_s3 + $0x160] sm:$0xff] %vm78_vm0, %v604_v36  ;;  %669 = vst.msk [vmem:[%s1815_s3 + $0x168] sm:$0xff] %vm78_vm0, %v605_v0  ;;  %v607_v46 = vmax.f32 %v543_v37, 0.0  ;;  %v479_v14 = vmul.f32 %v1360_v17, %v1882_v10  ;;  %v544_v13 = vadd.f32 %v1376_v15, %v474_v58  ;;  %v545_v16 = vadd.f32 %v1376_v15, %v475_v2 }
  0xea   :  { %v546_v57 = vadd.f32 %v1376_v15, %v476_v3  ;;  %v547_v62 = vadd.f32 %v1376_v15, %v477_v7  ;;  %670 = vst.msk [vmem:[%s1815_s3 + $0x170] sm:$0xff] %vm78_vm0, %v606_v42  ;;  %v548_v30 = vadd.f32 %v1376_v15, %v478_v52  ;;  %v480_v8 = vmul.f32 %v1360_v17, %v1883_v22 }
  0xeb   :  { %671 = vst.msk [vmem:[%s1815_s3 + $0x178] sm:$0xff] %vm78_vm0, %v607_v46  ;;  %v549_v19 = vadd.f32 %v1376_v15, %v479_v14  ;;  %v481_v25 = vmul.f32 %v1360_v17, %v1212_v48  ;;  %v608_v28 = vmax.f32 %v544_v13, 0.0  ;;  %v609_v51 = vmax.f32 %v545_v16, 0.0 }
  0xec   :  { %v610_v31 = vmax.f32 %v546_v57, 0.0  ;;  %v611_v12 = vmax.f32 %v547_v62, 0.0  ;;  %v612_v33 = vmax.f32 %v548_v30, 0.0  ;;  %v550_v20 = vadd.f32 %v1376_v15, %v480_v8 }
  0xed   :  { %v613_v9 = vmax.f32 %v549_v19, 0.0  ;;  %v551_v34 = vadd.f32 %v1376_v15, %v481_v25  ;;  %672 = vst.msk [vmem:[%s1815_s3 + $0x180] sm:$0xff] %vm78_vm0, %v608_v28  ;;  %673 = vst.msk [vmem:[%s1815_s3 + $0x188] sm:$0xff] %vm78_vm0, %v609_v51  ;;  %v482_v48 = vmul.f32 %v1360_v17, %v1227_v4  ;;  %v483_v29 = vmul.f32 %v1360_v17, %v1884_v11 }
  0xee   :  { %674 = vst.msk [vmem:[%s1815_s3 + $0x190] sm:$0xff] %vm78_vm0, %v610_v31  ;;  %675 = vst.msk [vmem:[%s1815_s3 + $0x198] sm:$0xff] %vm78_vm0, %v611_v12  ;;  %v484_v56 = vmul.f32 %v1360_v17, %v1885_v24  ;;  %v485_v5 = vmul.f32 %v1360_v17, %v1886_v53  ;;  %v614_v4 = vmax.f32 %v550_v20, 0.0  ;;  %v486_v47 = vmul.f32 %v1360_v17, %v1887_v45 }
  0xef   :  { %676 = vst.msk [vmem:[%s1815_s3 + $0x1a0] sm:$0xff] %vm78_vm0, %v612_v33  ;;  %677 = vst.msk [vmem:[%s1815_s3 + $0x1a8] sm:$0xff] %vm78_vm0, %v613_v9  ;;  %v615_v38 = vmax.f32 %v551_v34, 0.0  ;;  %v487_v55 = vmul.f32 %v1360_v17, %v1888_v18  ;;  %v552_v35 = vadd.f32 %v1376_v15, %v482_v48  ;;  %v553_v60 = vadd.f32 %v1376_v15, %v483_v29 }
  0xf0   :  { %v554_v50 = vadd.f32 %v1376_v15, %v484_v56  ;;  %v555_v23 = vadd.f32 %v1376_v15, %v485_v5  ;;  %678 = vst.msk [vmem:[%s1815_s3 + $0x1b0] sm:$0xff] %vm78_vm0, %v614_v4  ;;  %v556_v54 = vadd.f32 %v1376_v15, %v486_v47  ;;  %v488_v21 = vmul.f32 %v1360_v17, %v1889_v61 }
  0xf1   :  { %679 = vst.msk [vmem:[%s1815_s3 + $0x1b8] sm:$0xff] %vm78_vm0, %v615_v38  ;;  %v557_v44 = vadd.f32 %v1376_v15, %v487_v55  ;;  %v489_v59 = vmul.f32 %v1360_v17, %v1890_v39  ;;  %v616_v32 = vmax.f32 %v552_v35, 0.0  ;;  %v617_v27 = vmax.f32 %v553_v60, 0.0 }
  0xf2   :  { %v618_v26 = vmax.f32 %v554_v50, 0.0  ;;  %v619_v6 = vmax.f32 %v555_v23, 0.0  ;;  %v620_v41 = vmax.f32 %v556_v54, 0.0  ;;  %v558_v36 = vadd.f32 %v1376_v15, %v488_v21 }
  0xf3   :  { %v621_v63 = vmax.f32 %v557_v44, 0.0  ;;  %v559_v0 = vadd.f32 %v1376_v15, %v489_v59  ;;  %680 = vst.msk [vmem:[%s1815_s3 + $0x1c0] sm:$0xff] %vm78_vm0, %v616_v32  ;;  %681 = vst.msk [vmem:[%s1815_s3 + $0x1c8] sm:$0xff] %vm78_vm0, %v617_v27 }
  0xf4   :  { %682 = vst.msk [vmem:[%s1815_s3 + $0x1d0] sm:$0xff] %vm78_vm0, %v618_v26  ;;  %683 = vst.msk [vmem:[%s1815_s3 + $0x1d8] sm:$0xff] %vm78_vm0, %v619_v6  ;;  %v622_v17 = vmax.f32 %v558_v36, 0.0 }
  0xf5   :  { %684 = vst.msk [vmem:[%s1815_s3 + $0x1e0] sm:$0xff] %vm78_vm0, %v620_v41  ;;  %685 = vst.msk [vmem:[%s1815_s3 + $0x1e8] sm:$0xff] %vm78_vm0, %v621_v63  ;;  %v623_v15 = vmax.f32 %v559_v0, 0.0 }
  0xf6   :  { %686 = vst.msk [vmem:[%s1815_s3 + $0x1f0] sm:$0xff] %vm78_vm0, %v622_v17 }
  0xf7   :  { %687 = vst.msk [vmem:[%s1815_s3 + $0x1f8] sm:$0xff] %vm78_vm0, %v623_v15 }

// kernel: _lambda_.17
= control target key start
LH: loop header
LB: loop body
LE: loop exit
PB: predicated region body
PF: predicated region fallthrough
CT: control target
= control target key end

     0   :  { %vm270_vm0 = vcmask 130048   ;;  %s7734_s0 = inlined_call_operand.vmem [shape: f32[2048,16], index: 0, kind: input, shape index: {}]   ;;  %s7735_s1 = inlined_call_operand.vmem [shape: f32[1,16], index: 1, kind: input, shape index: {}]   ;;  %s7736_s2 = inlined_call_operand.vmem [shape: f32[1,16], index: 2, kind: input, shape index: {}]   ;;  %s7737_s3 = inlined_call_operand.vmem [shape: f32[2048,16], index: 3, kind: output, shape index: {}]  }
   0x1   :  { %v2893_v0 = vld [vmem:[%s7734_s0] sm:$0xff]  ;;  %v2898_v1 = vld [vmem:[%s7734_s0 + $0x8] sm:$0xff]  ;;  %v2903_v2 = vld [vmem:[%s7734_s0 + $0x10] sm:$0xff] }
   0x2   :  { %v2908_v3 = vld [vmem:[%s7734_s0 + $0x18] sm:$0xff]  ;;  %v271_v4 = vsel %vm270_vm0, %v2893_v0, 0.0  ;;  %v272_v5 = vsel %vm270_vm0, %v2898_v1, 0.0  ;;  %v274_v6 = vsel %vm270_vm0, %v2903_v2, 0.0  ;;  %v2919_v7 = vld [vmem:[%s7734_s0 + $0x20] sm:$0xff]  ;;  %v2926_v10 = vld [vmem:[%s7734_s0 + $0x28] sm:$0xff] }
   0x3   :  { %v273_v8 = vadd.f32 %v272_v5, %v271_v4  ;;  %v276_v9 = vsel %vm270_vm0, %v2908_v3, 0.0  ;;  %v278_v12 = vsel %vm270_vm0, %v2919_v7, 0.0  ;;  %v2933_v13 = vld [vmem:[%s7734_s0 + $0x30] sm:$0xff]  ;;  %v280_v15 = vsel %vm270_vm0, %v2926_v10, 0.0  ;;  %v2940_v16 = vld [vmem:[%s7734_s0 + $0x38] sm:$0xff]  ;;  %v2947_v19 = vld [vmem:[%s7734_s0 + $0x40] sm:$0xff] }
   0x4   :  { %v282_v18 = vsel %vm270_vm0, %v2933_v13, 0.0  ;;  %v284_v21 = vsel %vm270_vm0, %v2940_v16, 0.0  ;;  %v2954_v22 = vld [vmem:[%s7734_s0 + $0x48] sm:$0xff]  ;;  %v286_v24 = vsel %vm270_vm0, %v2947_v19, 0.0  ;;  %v2961_v25 = vld [vmem:[%s7734_s0 + $0x50] sm:$0xff]  ;;  %v2968_v28 = vld [vmem:[%s7734_s0 + $0x58] sm:$0xff] }
   0x5   :  { %v275_v11 = vadd.f32 %v274_v6, %v273_v8  ;;  %v288_v27 = vsel %vm270_vm0, %v2954_v22, 0.0  ;;  %v290_v30 = vsel %vm270_vm0, %v2961_v25, 0.0  ;;  %v2975_v31 = vld [vmem:[%s7734_s0 + $0x60] sm:$0xff]  ;;  %v292_v33 = vsel %vm270_vm0, %v2968_v28, 0.0  ;;  %v2982_v34 = vld [vmem:[%s7734_s0 + $0x68] sm:$0xff]  ;;  %v2989_v37 = vld [vmem:[%s7734_s0 + $0x70] sm:$0xff] }
   0x6   :  { %v294_v36 = vsel %vm270_vm0, %v2975_v31, 0.0  ;;  %v296_v39 = vsel %vm270_vm0, %v2982_v34, 0.0  ;;  %v2996_v40 = vld [vmem:[%s7734_s0 + $0x78] sm:$0xff]  ;;  %v298_v42 = vsel %vm270_vm0, %v2989_v37, 0.0  ;;  %v3003_v43 = vld [vmem:[%s7734_s0 + $0x80] sm:$0xff]  ;;  %v3010_v46 = vld [vmem:[%s7734_s0 + $0x88] sm:$0xff] }
   0x7   :  { %v277_v14 = vadd.f32 %v276_v9, %v275_v11  ;;  %v300_v45 = vsel %vm270_vm0, %v2996_v40, 0.0  ;;  %v302_v48 = vsel %vm270_vm0, %v3003_v43, 0.0  ;;  %v3017_v49 = vld [vmem:[%s7734_s0 + $0x90] sm:$0xff]  ;;  %v304_v51 = vsel %vm270_vm0, %v3010_v46, 0.0  ;;  %v3024_v52 = vld [vmem:[%s7734_s0 + $0x98] sm:$0xff]  ;;  %v3031_v55 = vld [vmem:[%s7734_s0 + $0xa0] sm:$0xff] }
   0x8   :  { %v306_v54 = vsel %vm270_vm0, %v3017_v49, 0.0  ;;  %v308_v57 = vsel %vm270_vm0, %v3024_v52, 0.0  ;;  %v3038_v58 = vld [vmem:[%s7734_s0 + $0xa8] sm:$0xff]  ;;  %v310_v60 = vsel %vm270_vm0, %v3031_v55, 0.0  ;;  %v3045_v61 = vld [vmem:[%s7734_s0 + $0xb0] sm:$0xff]  ;;  %v3052_v4 = vld [vmem:[%s7734_s0 + $0xb8] sm:$0xff] }
   0x9   :  { %v279_v17 = vadd.f32 %v278_v12, %v277_v14  ;;  %v312_v63 = vsel %vm270_vm0, %v3038_v58, 0.0  ;;  %v314_v6 = vsel %vm270_vm0, %v3045_v61, 0.0  ;;  %v3059_v8 = vld [vmem:[%s7734_s0 + $0xc0] sm:$0xff]  ;;  %v316_v11 = vsel %vm270_vm0, %v3052_v4, 0.0  ;;  %v3066_v12 = vld [vmem:[%s7734_s0 + $0xc8] sm:$0xff] }
   0xb   :  { %v281_v20 = vadd.f32 %v280_v15, %v279_v17  ;;  %v318_v15 = vsel %vm270_vm0, %v3059_v8, 0.0  ;;  %v3073_v17 = vld [vmem:[%s7734_s0 + $0xd0] sm:$0xff] }
   0xd   :  { %v283_v23 = vadd.f32 %v282_v18, %v281_v20  ;;  %v320_v20 = vsel %vm270_vm0, %v3066_v12, 0.0 }
   0xf   :  { %v285_v26 = vadd.f32 %v284_v21, %v283_v23  ;;  %v3080_v21 = vld [vmem:[%s7734_s0 + $0xd8] sm:$0xff] }
  0x11   :  { %v287_v29 = vadd.f32 %v286_v24, %v285_v26  ;;  %v322_v24 = vsel %vm270_vm0, %v3073_v17, 0.0  ;;  %v788_v26 = vmul.f32 %v2893_v0, %v2893_v0  ;;  %v3102_v0 = vld [vmem:[%s7734_s0 + $0xe8] sm:$0xff] }
  0x13   :  { %v289_v32 = vadd.f32 %v288_v27, %v287_v29  ;;  %v789_v27 = vmul.f32 %v2898_v1, %v2898_v1  ;;  %v790_v29 = vmul.f32 %v2903_v2, %v2903_v2  ;;  %v792_v2 = vmul.f32 %v2919_v7, %v2919_v7 }
  0x14   :  { %v793_v7 = vmul.f32 %v2926_v10, %v2926_v10  ;;  %v3134_v10 = vld [vmem:[%s7734_s0 + $0x100] sm:$0xff] }
  0x15   :  { %v291_v35 = vadd.f32 %v290_v30, %v289_v32  ;;  %v3093_v30 = vld [vmem:[%s7734_s0 + $0xe0] sm:$0xff] }
  0x17   :  { %v293_v38 = vadd.f32 %v292_v33, %v291_v35  ;;  %v324_v33 = vsel %vm270_vm0, %v3080_v21, 0.0  ;;  %v791_v35 = vmul.f32 %v2908_v3, %v2908_v3  ;;  %v3114_v3 = vld [vmem:[%s7734_s0 + $0xf0] sm:$0xff] }
  0x19   :  { %v295_v41 = vadd.f32 %v294_v36, %v293_v38  ;;  %v326_v36 = vsel %vm270_vm0, %v3093_v30, 0.0  ;;  %v1044_v38 = vsel %vm270_vm0, %v788_v26, 0.0 }
  0x1b   :  { %v297_v44 = vadd.f32 %v296_v39, %v295_v41  ;;  %v1045_v39 = vsel %vm270_vm0, %v789_v27, 0.0  ;;  %v1047_v41 = vsel %vm270_vm0, %v790_v29, 0.0 }
  0x1d   :  { %v299_v47 = vadd.f32 %v298_v42, %v297_v44  ;;  %v1046_v44 = vadd.f32 %v1045_v39, %v1044_v38 }
  0x1f   :  { %v301_v50 = vadd.f32 %v300_v45, %v299_v47  ;;  %v328_v45 = vsel %vm270_vm0, %v3102_v0, 0.0  ;;  %v1049_v47 = vsel %vm270_vm0, %v791_v35, 0.0 }
  0x21   :  { %v303_v53 = vadd.f32 %v302_v48, %v301_v50  ;;  %v3124_v48 = vld [vmem:[%s7734_s0 + $0xf8] sm:$0xff] }
  0x23   :  { %v305_v56 = vadd.f32 %v304_v51, %v303_v53  ;;  %v1048_v51 = vadd.f32 %v1047_v41, %v1046_v44  ;;  %v330_v53 = vsel %vm270_vm0, %v3114_v3, 0.0  ;;  %v800_v44 = vmul.f32 %v2975_v31, %v2975_v31  ;;  %v3204_v31 = vld [vmem:[%s7734_s0 + $0x138] sm:$0xff] }
  0x25   :  { %v307_v59 = vadd.f32 %v306_v54, %v305_v56  ;;  %v794_v54 = vmul.f32 %v2933_v13, %v2933_v13  ;;  %v1051_v56 = vsel %vm270_vm0, %v792_v2, 0.0  ;;  %v3144_v13 = vld [vmem:[%s7734_s0 + $0x108] sm:$0xff] }
  0x27   :  { %v309_v62 = vadd.f32 %v308_v57, %v307_v59  ;;  %v1050_v59 = vadd.f32 %v1049_v47, %v1048_v51  ;;  %v801_v51 = vmul.f32 %v2982_v34, %v2982_v34  ;;  %v3214_v34 = vld [vmem:[%s7734_s0 + $0x140] sm:$0xff] }
  0x29   :  { %v311_v5 = vadd.f32 %v310_v60, %v309_v62  ;;  %v332_v60 = vsel %vm270_vm0, %v3124_v48, 0.0  ;;  %v795_v62 = vmul.f32 %v2940_v16, %v2940_v16  ;;  %v3154_v16 = vld [vmem:[%s7734_s0 + $0x110] sm:$0xff] }
  0x2a   :  { %v338_v29 = vsel %vm270_vm0, %v3154_v16, 0.0 }
  0x2b   :  { %v313_v9 = vadd.f32 %v312_v63, %v311_v5  ;;  %v1053_v63 = vsel %vm270_vm0, %v793_v7, 0.0 }
  0x2d   :  { %v315_v14 = vadd.f32 %v314_v6, %v313_v9  ;;  %v1052_v6 = vadd.f32 %v1051_v56, %v1050_v59  ;;  %v334_v9 = vsel %vm270_vm0, %v3134_v10, 0.0  ;;  %v802_v59 = vmul.f32 %v2989_v37, %v2989_v37  ;;  %v3224_v37 = vld [vmem:[%s7734_s0 + $0x148] sm:$0xff] }
  0x2f   :  { %v317_v18 = vadd.f32 %v316_v11, %v315_v14  ;;  %v796_v11 = vmul.f32 %v2947_v19, %v2947_v19  ;;  %v1055_v14 = vsel %vm270_vm0, %v794_v54, 0.0  ;;  %v3164_v19 = vld [vmem:[%s7734_s0 + $0x118] sm:$0xff] }
  0x30   :  { %v340_v2 = vsel %vm270_vm0, %v3164_v19, 0.0 }
  0x31   :  { %v319_v23 = vadd.f32 %v318_v15, %v317_v18  ;;  %v1054_v18 = vadd.f32 %v1053_v63, %v1052_v6  ;;  %v803_v6 = vmul.f32 %v2996_v40, %v2996_v40  ;;  %v3234_v40 = vld [vmem:[%s7734_s0 + $0x150] sm:$0xff] }
  0x33   :  { %v321_v32 = vadd.f32 %v320_v20, %v319_v23  ;;  %v336_v20 = vsel %vm270_vm0, %v3144_v13, 0.0  ;;  %v797_v23 = vmul.f32 %v2954_v22, %v2954_v22  ;;  %v1056_v27 = vadd.f32 %v1055_v14, %v1054_v18  ;;  %v3174_v22 = vld [vmem:[%s7734_s0 + $0x120] sm:$0xff] }
  0x34   :  { %v804_v18 = vmul.f32 %v3003_v43, %v3003_v43  ;;  %v3244_v43 = vld [vmem:[%s7734_s0 + $0x158] sm:$0xff] }
  0x35   :  { %v323_v1 = vadd.f32 %v322_v24, %v321_v32  ;;  %v1057_v24 = vsel %vm270_vm0, %v795_v62, 0.0  ;;  %v798_v32 = vmul.f32 %v2961_v25, %v2961_v25  ;;  %v1061_v38 = vsel %vm270_vm0, %v797_v23, 0.0  ;;  %v3184_v25 = vld [vmem:[%s7734_s0 + $0x128] sm:$0xff] }
  0x37   :  { %v325_v42 = vadd.f32 %v324_v33, %v323_v1  ;;  %v1059_v33 = vsel %vm270_vm0, %v796_v11, 0.0  ;;  %v1058_v1 = vadd.f32 %v1057_v24, %v1056_v27  ;;  %v805_v27 = vmul.f32 %v3010_v46, %v3010_v46  ;;  %v3254_v46 = vld [vmem:[%s7734_s0 + $0x160] sm:$0xff] }
  0x39   :  { %v327_v50 = vadd.f32 %v326_v36, %v325_v42  ;;  %v799_v36 = vmul.f32 %v2968_v28, %v2968_v28  ;;  %v1060_v41 = vadd.f32 %v1059_v33, %v1058_v1  ;;  %v342_v42 = vsel %vm270_vm0, %v3174_v22, 0.0  ;;  %v3194_v28 = vld [vmem:[%s7734_s0 + $0x130] sm:$0xff] }
  0x3a   :  { %v806_v1 = vmul.f32 %v3017_v49, %v3017_v49  ;;  %v3264_v49 = vld [vmem:[%s7734_s0 + $0x168] sm:$0xff] }
  0x3b   :  { %v329_v57 = vadd.f32 %v328_v45, %v327_v50  ;;  %v1063_v45 = vsel %vm270_vm0, %v798_v32, 0.0  ;;  %v1062_v47 = vadd.f32 %v1061_v38, %v1060_v41  ;;  %v344_v50 = vsel %vm270_vm0, %v3184_v25, 0.0 }
  0x3c   :  { %v807_v41 = vmul.f32 %v3024_v52, %v3024_v52  ;;  %v3274_v52 = vld [vmem:[%s7734_s0 + $0x170] sm:$0xff] }
  0x3d   :  { %v331_v5 = vadd.f32 %v330_v53, %v329_v57  ;;  %v1065_v53 = vsel %vm270_vm0, %v799_v36, 0.0  ;;  %v1064_v56 = vadd.f32 %v1063_v45, %v1062_v47  ;;  %v346_v57 = vsel %vm270_vm0, %v3194_v28, 0.0 }
  0x3e   :  { %v808_v47 = vmul.f32 %v3031_v55, %v3031_v55  ;;  %v3284_v55 = vld [vmem:[%s7734_s0 + $0x178] sm:$0xff] }
  0x3f   :  { %v333_v15 = vadd.f32 %v332_v60, %v331_v5  ;;  %v1067_v60 = vsel %vm270_vm0, %v800_v44, 0.0  ;;  %v1066_v63 = vadd.f32 %v1065_v53, %v1064_v56  ;;  %v348_v5 = vsel %vm270_vm0, %v3204_v31, 0.0 }
  0x40   :  { %v809_v56 = vmul.f32 %v3038_v58, %v3038_v58  ;;  %v3294_v58 = vld [vmem:[%s7734_s0 + $0x180] sm:$0xff] }
  0x41   :  { %v335_v26 = vadd.f32 %v334_v9, %v333_v15  ;;  %v1069_v9 = vsel %vm270_vm0, %v801_v51, 0.0  ;;  %v1068_v14 = vadd.f32 %v1067_v60, %v1066_v63  ;;  %v350_v15 = vsel %vm270_vm0, %v3214_v34, 0.0 }
  0x42   :  { %v810_v63 = vmul.f32 %v3045_v61, %v3045_v61  ;;  %v3304_v61 = vld [vmem:[%s7734_s0 + $0x188] sm:$0xff] }
  0x43   :  { %v337_v35 = vadd.f32 %v336_v20, %v335_v26  ;;  %v1071_v20 = vsel %vm270_vm0, %v802_v59, 0.0  ;;  %v1070_v24 = vadd.f32 %v1069_v9, %v1068_v14  ;;  %v352_v26 = vsel %vm270_vm0, %v3224_v37, 0.0 }
  0x44   :  { %v811_v14 = vmul.f32 %v3052_v4, %v3052_v4  ;;  %v3314_v4 = vld [vmem:[%s7734_s0 + $0x190] sm:$0xff] }
  0x45   :  { %v339_v39 = vadd.f32 %v338_v29, %v337_v35  ;;  %v1073_v29 = vsel %vm270_vm0, %v803_v6, 0.0  ;;  %v1072_v33 = vadd.f32 %v1071_v20, %v1070_v24  ;;  %v354_v35 = vsel %vm270_vm0, %v3234_v40, 0.0 }
  0x46   :  { %v812_v24 = vmul.f32 %v3059_v8, %v3059_v8  ;;  %v3324_v8 = vld [vmem:[%s7734_s0 + $0x198] sm:$0xff] }
  0x47   :  { %v341_v7 = vadd.f32 %v340_v2, %v339_v39  ;;  %v1075_v2 = vsel %vm270_vm0, %v804_v18, 0.0  ;;  %v1074_v38 = vadd.f32 %v1073_v29, %v1072_v33  ;;  %v356_v39 = vsel %vm270_vm0, %v3244_v43, 0.0 }
  0x48   :  { %v813_v33 = vmul.f32 %v3066_v12, %v3066_v12  ;;  %v3334_v12 = vld [vmem:[%s7734_s0 + $0x1a0] sm:$0xff] }
  0x49   :  { %v343_v54 = vadd.f32 %v342_v42, %v341_v7  ;;  %v1077_v42 = vsel %vm270_vm0, %v805_v27, 0.0  ;;  %v1076_v45 = vadd.f32 %v1075_v2, %v1074_v38  ;;  %v358_v7 = vsel %vm270_vm0, %v3254_v46, 0.0 }
  0x4a   :  { %v814_v38 = vmul.f32 %v3073_v17, %v3073_v17  ;;  %v3344_v17 = vld [vmem:[%s7734_s0 + $0x1a8] sm:$0xff] }
  0x4b   :  { %v345_v62 = vadd.f32 %v344_v50, %v343_v54  ;;  %v1079_v50 = vsel %vm270_vm0, %v806_v1, 0.0  ;;  %v1078_v53 = vadd.f32 %v1077_v42, %v1076_v45  ;;  %v360_v54 = vsel %vm270_vm0, %v3264_v49, 0.0 }
  0x4c   :  { %v815_v45 = vmul.f32 %v3080_v21, %v3080_v21  ;;  %v3354_v21 = vld [vmem:[%s7734_s0 + $0x1b0] sm:$0xff] }
  0x4d   :  { %v347_v11 = vadd.f32 %v346_v57, %v345_v62  ;;  %v1081_v57 = vsel %vm270_vm0, %v807_v41, 0.0  ;;  %v1080_v60 = vadd.f32 %v1079_v50, %v1078_v53  ;;  %v362_v62 = vsel %vm270_vm0, %v3274_v52, 0.0 }
  0x4e   :  { %v816_v53 = vmul.f32 %v3093_v30, %v3093_v30  ;;  %v3364_v30 = vld [vmem:[%s7734_s0 + $0x1b8] sm:$0xff] }
  0x4f   :  { %v349_v23 = vadd.f32 %v348_v5, %v347_v11  ;;  %v1083_v5 = vsel %vm270_vm0, %v808_v47, 0.0  ;;  %v1082_v9 = vadd.f32 %v1081_v57, %v1080_v60  ;;  %v364_v11 = vsel %vm270_vm0, %v3284_v55, 0.0 }
  0x50   :  { %v817_v60 = vmul.f32 %v3102_v0, %v3102_v0  ;;  %v3374_v0 = vld [vmem:[%s7734_s0 + $0x1c0] sm:$0xff] }
  0x51   :  { %v351_v32 = vadd.f32 %v350_v15, %v349_v23  ;;  %v1085_v15 = vsel %vm270_vm0, %v809_v56, 0.0  ;;  %v1084_v20 = vadd.f32 %v1083_v5, %v1082_v9  ;;  %v366_v23 = vsel %vm270_vm0, %v3294_v58, 0.0 }
  0x52   :  { %v818_v9 = vmul.f32 %v3114_v3, %v3114_v3  ;;  %v3384_v3 = vld [vmem:[%s7734_s0 + $0x1c8] sm:$0xff] }
  0x53   :  { %v353_v36 = vadd.f32 %v352_v26, %v351_v32  ;;  %v1087_v26 = vsel %vm270_vm0, %v810_v63, 0.0  ;;  %v1086_v29 = vadd.f32 %v1085_v15, %v1084_v20  ;;  %v368_v32 = vsel %vm270_vm0, %v3304_v61, 0.0 }
  0x54   :  { %v819_v20 = vmul.f32 %v3124_v48, %v3124_v48  ;;  %v3394_v48 = vld [vmem:[%s7734_s0 + $0x1d0] sm:$0xff] }
  0x55   :  { %v355_v44 = vadd.f32 %v354_v35, %v353_v36  ;;  %v1089_v35 = vsel %vm270_vm0, %v811_v14, 0.0  ;;  %v1088_v2 = vadd.f32 %v1087_v26, %v1086_v29  ;;  %v370_v36 = vsel %vm270_vm0, %v3314_v4, 0.0 }
  0x56   :  { %v820_v29 = vmul.f32 %v3134_v10, %v3134_v10  ;;  %v3404_v10 = vld [vmem:[%s7734_s0 + $0x1d8] sm:$0xff] }
  0x57   :  { %v357_v51 = vadd.f32 %v356_v39, %v355_v44  ;;  %v1091_v39 = vsel %vm270_vm0, %v812_v24, 0.0  ;;  %v1090_v42 = vadd.f32 %v1089_v35, %v1088_v2  ;;  %v372_v44 = vsel %vm270_vm0, %v3324_v8, 0.0 }
  0x58   :  { %v821_v2 = vmul.f32 %v3144_v13, %v3144_v13  ;;  %v3414_v13 = vld [vmem:[%s7734_s0 + $0x1e0] sm:$0xff] }
  0x59   :  { %v359_v59 = vadd.f32 %v358_v7, %v357_v51  ;;  %v1093_v7 = vsel %vm270_vm0, %v813_v33, 0.0  ;;  %v1092_v50 = vadd.f32 %v1091_v39, %v1090_v42  ;;  %v374_v51 = vsel %vm270_vm0, %v3334_v12, 0.0 }
  0x5a   :  { %v822_v42 = vmul.f32 %v3154_v16, %v3154_v16  ;;  %v3424_v16 = vld [vmem:[%s7734_s0 + $0x1e8] sm:$0xff] }
  0x5b   :  { %v361_v6 = vadd.f32 %v360_v54, %v359_v59  ;;  %v1095_v54 = vsel %vm270_vm0, %v814_v38, 0.0  ;;  %v1094_v57 = vadd.f32 %v1093_v7, %v1092_v50  ;;  %v376_v59 = vsel %vm270_vm0, %v3344_v17, 0.0 }
  0x5c   :  { %v823_v50 = vmul.f32 %v3164_v19, %v3164_v19  ;;  %v3434_v19 = vld [vmem:[%s7734_s0 + $0x1f0] sm:$0xff] }
  0x5d   :  { %v363_v18 = vadd.f32 %v362_v62, %v361_v6  ;;  %v1097_v62 = vsel %vm270_vm0, %v815_v45, 0.0  ;;  %v1096_v5 = vadd.f32 %v1095_v54, %v1094_v57  ;;  %v378_v6 = vsel %vm270_vm0, %v3354_v21, 0.0 }
  0x5e   :  { %v824_v57 = vmul.f32 %v3174_v22, %v3174_v22  ;;  %v3444_v22 = vld [vmem:[%s7734_s0 + $0x1f8] sm:$0xff] }
  0x5f   :  { %v365_v27 = vadd.f32 %v364_v11, %v363_v18  ;;  %v1099_v11 = vsel %vm270_vm0, %v816_v53, 0.0  ;;  %v1098_v15 = vadd.f32 %v1097_v62, %v1096_v5  ;;  %v380_v18 = vsel %vm270_vm0, %v3364_v30, 0.0 }
  0x60   :  { %v825_v5 = vmul.f32 %v3184_v25, %v3184_v25  ;;  %v3454_v25 = vld [vmem:[%s7734_s0 + $0x200] sm:$0xff] }
  0x61   :  { %v367_v1 = vadd.f32 %v366_v23, %v365_v27  ;;  %v1101_v23 = vsel %vm270_vm0, %v817_v60, 0.0  ;;  %v1100_v26 = vadd.f32 %v1099_v11, %v1098_v15  ;;  %v382_v27 = vsel %vm270_vm0, %v3374_v0, 0.0 }
  0x62   :  { %v826_v15 = vmul.f32 %v3194_v28, %v3194_v28  ;;  %v3464_v28 = vld [vmem:[%s7734_s0 + $0x208] sm:$0xff] }
  0x63   :  { %v369_v41 = vadd.f32 %v368_v32, %v367_v1  ;;  %v1103_v32 = vsel %vm270_vm0, %v818_v9, 0.0  ;;  %v1102_v35 = vadd.f32 %v1101_v23, %v1100_v26  ;;  %v384_v1 = vsel %vm270_vm0, %v3384_v3, 0.0 }
  0x64   :  { %v827_v26 = vmul.f32 %v3204_v31, %v3204_v31  ;;  %v3474_v31 = vld [vmem:[%s7734_s0 + $0x210] sm:$0xff] }
  0x65   :  { %v371_v47 = vadd.f32 %v370_v36, %v369_v41  ;;  %v1105_v36 = vsel %vm270_vm0, %v819_v20, 0.0  ;;  %v1104_v39 = vadd.f32 %v1103_v32, %v1102_v35  ;;  %v386_v41 = vsel %vm270_vm0, %v3394_v48, 0.0 }
  0x66   :  { %v828_v35 = vmul.f32 %v3214_v34, %v3214_v34  ;;  %v3484_v34 = vld [vmem:[%s7734_s0 + $0x218] sm:$0xff] }
  0x67   :  { %v373_v56 = vadd.f32 %v372_v44, %v371_v47  ;;  %v1107_v44 = vsel %vm270_vm0, %v820_v29, 0.0  ;;  %v1106_v7 = vadd.f32 %v1105_v36, %v1104_v39  ;;  %v388_v47 = vsel %vm270_vm0, %v3404_v10, 0.0 }
  0x68   :  { %v829_v39 = vmul.f32 %v3224_v37, %v3224_v37  ;;  %v3494_v37 = vld [vmem:[%s7734_s0 + $0x220] sm:$0xff] }
  0x69   :  { %v375_v63 = vadd.f32 %v374_v51, %v373_v56  ;;  %v1109_v51 = vsel %vm270_vm0, %v821_v2, 0.0  ;;  %v1108_v54 = vadd.f32 %v1107_v44, %v1106_v7  ;;  %v390_v56 = vsel %vm270_vm0, %v3414_v13, 0.0 }
  0x6a   :  { %v830_v7 = vmul.f32 %v3234_v40, %v3234_v40  ;;  %v3504_v40 = vld [vmem:[%s7734_s0 + $0x228] sm:$0xff] }
  0x6b   :  { %v377_v14 = vadd.f32 %v376_v59, %v375_v63  ;;  %v1111_v59 = vsel %vm270_vm0, %v822_v42, 0.0  ;;  %v1110_v62 = vadd.f32 %v1109_v51, %v1108_v54  ;;  %v392_v63 = vsel %vm270_vm0, %v3424_v16, 0.0 }
  0x6c   :  { %v831_v54 = vmul.f32 %v3244_v43, %v3244_v43  ;;  %v3514_v43 = vld [vmem:[%s7734_s0 + $0x230] sm:$0xff] }
  0x6d   :  { %v379_v24 = vadd.f32 %v378_v6, %v377_v14  ;;  %v1113_v6 = vsel %vm270_vm0, %v823_v50, 0.0  ;;  %v1112_v11 = vadd.f32 %v1111_v59, %v1110_v62  ;;  %v394_v14 = vsel %vm270_vm0, %v3434_v19, 0.0 }
  0x6e   :  { %v832_v62 = vmul.f32 %v3254_v46, %v3254_v46  ;;  %v3524_v46 = vld [vmem:[%s7734_s0 + $0x238] sm:$0xff] }
  0x6f   :  { %v381_v33 = vadd.f32 %v380_v18, %v379_v24  ;;  %v1115_v18 = vsel %vm270_vm0, %v824_v57, 0.0  ;;  %v1114_v23 = vadd.f32 %v1113_v6, %v1112_v11  ;;  %v396_v24 = vsel %vm270_vm0, %v3444_v22, 0.0 }
  0x70   :  { %v833_v11 = vmul.f32 %v3264_v49, %v3264_v49  ;;  %v3534_v49 = vld [vmem:[%s7734_s0 + $0x240] sm:$0xff] }
  0x71   :  { %v383_v38 = vadd.f32 %v382_v27, %v381_v33  ;;  %v1117_v27 = vsel %vm270_vm0, %v825_v5, 0.0  ;;  %v1116_v32 = vadd.f32 %v1115_v18, %v1114_v23  ;;  %v398_v33 = vsel %vm270_vm0, %v3454_v25, 0.0 }
  0x72   :  { %v834_v23 = vmul.f32 %v3274_v52, %v3274_v52  ;;  %v3544_v52 = vld [vmem:[%s7734_s0 + $0x248] sm:$0xff] }
  0x73   :  { %v385_v45 = vadd.f32 %v384_v1, %v383_v38  ;;  %v1119_v1 = vsel %vm270_vm0, %v826_v15, 0.0  ;;  %v1118_v36 = vadd.f32 %v1117_v27, %v1116_v32  ;;  %v400_v38 = vsel %vm270_vm0, %v3464_v28, 0.0 }
  0x74   :  { %v835_v32 = vmul.f32 %v3284_v55, %v3284_v55  ;;  %v3554_v55 = vld [vmem:[%s7734_s0 + $0x250] sm:$0xff] }
  0x75   :  { %v387_v53 = vadd.f32 %v386_v41, %v385_v45  ;;  %v1121_v41 = vsel %vm270_vm0, %v827_v26, 0.0  ;;  %v1120_v44 = vadd.f32 %v1119_v1, %v1118_v36  ;;  %v402_v45 = vsel %vm270_vm0, %v3474_v31, 0.0 }
  0x76   :  { %v836_v36 = vmul.f32 %v3294_v58, %v3294_v58  ;;  %v3564_v58 = vld [vmem:[%s7734_s0 + $0x258] sm:$0xff] }
  0x77   :  { %v389_v60 = vadd.f32 %v388_v47, %v387_v53  ;;  %v1123_v47 = vsel %vm270_vm0, %v828_v35, 0.0  ;;  %v1122_v51 = vadd.f32 %v1121_v41, %v1120_v44  ;;  %v404_v53 = vsel %vm270_vm0, %v3484_v34, 0.0 }
  0x78   :  { %v837_v44 = vmul.f32 %v3304_v61, %v3304_v61  ;;  %v3574_v61 = vld [vmem:[%s7734_s0 + $0x260] sm:$0xff] }
  0x79   :  { %v391_v9 = vadd.f32 %v390_v56, %v389_v60  ;;  %v1125_v56 = vsel %vm270_vm0, %v829_v39, 0.0  ;;  %v1124_v59 = vadd.f32 %v1123_v47, %v1122_v51  ;;  %v406_v60 = vsel %vm270_vm0, %v3494_v37, 0.0 }
  0x7a   :  { %v838_v51 = vmul.f32 %v3314_v4, %v3314_v4  ;;  %v3584_v4 = vld [vmem:[%s7734_s0 + $0x268] sm:$0xff] }
  0x7b   :  { %v393_v20 = vadd.f32 %v392_v63, %v391_v9  ;;  %v1127_v63 = vsel %vm270_vm0, %v830_v7, 0.0  ;;  %v1126_v6 = vadd.f32 %v1125_v56, %v1124_v59  ;;  %v408_v9 = vsel %vm270_vm0, %v3504_v40, 0.0 }
  0x7c   :  { %v839_v59 = vmul.f32 %v3324_v8, %v3324_v8  ;;  %v3594_v8 = vld [vmem:[%s7734_s0 + $0x270] sm:$0xff] }
  0x7d   :  { %v395_v29 = vadd.f32 %v394_v14, %v393_v20  ;;  %v1129_v14 = vsel %vm270_vm0, %v831_v54, 0.0  ;;  %v1128_v18 = vadd.f32 %v1127_v63, %v1126_v6  ;;  %v410_v20 = vsel %vm270_vm0, %v3514_v43, 0.0 }
  0x7e   :  { %v840_v6 = vmul.f32 %v3334_v12, %v3334_v12  ;;  %v3604_v12 = vld [vmem:[%s7734_s0 + $0x278] sm:$0xff] }
  0x7f   :  { %v397_v2 = vadd.f32 %v396_v24, %v395_v29  ;;  %v1131_v24 = vsel %vm270_vm0, %v832_v62, 0.0  ;;  %v1130_v27 = vadd.f32 %v1129_v14, %v1128_v18  ;;  %v412_v29 = vsel %vm270_vm0, %v3524_v46, 0.0 }
  0x80   :  { %v841_v18 = vmul.f32 %v3344_v17, %v3344_v17  ;;  %v3614_v17 = vld [vmem:[%s7734_s0 + $0x280] sm:$0xff] }
  0x81   :  { %v399_v42 = vadd.f32 %v398_v33, %v397_v2  ;;  %v1133_v33 = vsel %vm270_vm0, %v833_v11, 0.0  ;;  %v1132_v1 = vadd.f32 %v1131_v24, %v1130_v27  ;;  %v414_v2 = vsel %vm270_vm0, %v3534_v49, 0.0 }
  0x82   :  { %v842_v27 = vmul.f32 %v3354_v21, %v3354_v21  ;;  %v3624_v21 = vld [vmem:[%s7734_s0 + $0x288] sm:$0xff] }
  0x83   :  { %v401_v50 = vadd.f32 %v400_v38, %v399_v42  ;;  %v1135_v38 = vsel %vm270_vm0, %v834_v23, 0.0  ;;  %v1134_v41 = vadd.f32 %v1133_v33, %v1132_v1  ;;  %v416_v42 = vsel %vm270_vm0, %v3544_v52, 0.0 }
  0x84   :  { %v843_v1 = vmul.f32 %v3364_v30, %v3364_v30  ;;  %v3634_v30 = vld [vmem:[%s7734_s0 + $0x290] sm:$0xff] }
  0x85   :  { %v403_v57 = vadd.f32 %v402_v45, %v401_v50  ;;  %v1137_v45 = vsel %vm270_vm0, %v835_v32, 0.0  ;;  %v1136_v47 = vadd.f32 %v1135_v38, %v1134_v41  ;;  %v418_v50 = vsel %vm270_vm0, %v3554_v55, 0.0 }
  0x86   :  { %v844_v41 = vmul.f32 %v3374_v0, %v3374_v0  ;;  %v3644_v0 = vld [vmem:[%s7734_s0 + $0x298] sm:$0xff] }
  0x87   :  { %v405_v5 = vadd.f32 %v404_v53, %v403_v57  ;;  %v1139_v53 = vsel %vm270_vm0, %v836_v36, 0.0  ;;  %v1138_v56 = vadd.f32 %v1137_v45, %v1136_v47  ;;  %v420_v57 = vsel %vm270_vm0, %v3564_v58, 0.0 }
  0x88   :  { %v845_v47 = vmul.f32 %v3384_v3, %v3384_v3  ;;  %v3654_v3 = vld [vmem:[%s7734_s0 + $0x2a0] sm:$0xff] }
  0x89   :  { %v407_v15 = vadd.f32 %v406_v60, %v405_v5  ;;  %v1141_v60 = vsel %vm270_vm0, %v837_v44, 0.0  ;;  %v1140_v63 = vadd.f32 %v1139_v53, %v1138_v56  ;;  %v422_v5 = vsel %vm270_vm0, %v3574_v61, 0.0 }
  0x8a   :  { %v846_v56 = vmul.f32 %v3394_v48, %v3394_v48  ;;  %v3664_v48 = vld [vmem:[%s7734_s0 + $0x2a8] sm:$0xff] }
  0x8b   :  { %v409_v26 = vadd.f32 %v408_v9, %v407_v15  ;;  %v1143_v9 = vsel %vm270_vm0, %v838_v51, 0.0  ;;  %v1142_v14 = vadd.f32 %v1141_v60, %v1140_v63  ;;  %v424_v15 = vsel %vm270_vm0, %v3584_v4, 0.0 }
  0x8c   :  { %v847_v63 = vmul.f32 %v3404_v10, %v3404_v10  ;;  %v3674_v10 = vld [vmem:[%s7734_s0 + $0x2b0] sm:$0xff] }
  0x8d   :  { %v411_v35 = vadd.f32 %v410_v20, %v409_v26  ;;  %v1145_v20 = vsel %vm270_vm0, %v839_v59, 0.0  ;;  %v1144_v24 = vadd.f32 %v1143_v9, %v1142_v14  ;;  %v426_v26 = vsel %vm270_vm0, %v3594_v8, 0.0 }
  0x8e   :  { %v848_v14 = vmul.f32 %v3414_v13, %v3414_v13  ;;  %v3684_v13 = vld [vmem:[%s7734_s0 + $0x2b8] sm:$0xff] }
  0x8f   :  { %v413_v39 = vadd.f32 %v412_v29, %v411_v35  ;;  %v1147_v29 = vsel %vm270_vm0, %v840_v6, 0.0  ;;  %v1146_v33 = vadd.f32 %v1145_v20, %v1144_v24  ;;  %v428_v35 = vsel %vm270_vm0, %v3604_v12, 0.0 }
  0x90   :  { %v849_v24 = vmul.f32 %v3424_v16, %v3424_v16  ;;  %v3694_v16 = vld [vmem:[%s7734_s0 + $0x2c0] sm:$0xff] }
  0x91   :  { %v415_v7 = vadd.f32 %v414_v2, %v413_v39  ;;  %v1149_v2 = vsel %vm270_vm0, %v841_v18, 0.0  ;;  %v1148_v38 = vadd.f32 %v1147_v29, %v1146_v33  ;;  %v430_v39 = vsel %vm270_vm0, %v3614_v17, 0.0 }
  0x92   :  { %v850_v33 = vmul.f32 %v3434_v19, %v3434_v19  ;;  %v3704_v19 = vld [vmem:[%s7734_s0 + $0x2c8] sm:$0xff] }
  0x93   :  { %v417_v54 = vadd.f32 %v416_v42, %v415_v7  ;;  %v1151_v42 = vsel %vm270_vm0, %v842_v27, 0.0  ;;  %v1150_v45 = vadd.f32 %v1149_v2, %v1148_v38  ;;  %v432_v7 = vsel %vm270_vm0, %v3624_v21, 0.0 }
  0x94   :  { %v851_v38 = vmul.f32 %v3444_v22, %v3444_v22  ;;  %v3714_v22 = vld [vmem:[%s7734_s0 + $0x2d0] sm:$0xff] }
  0x95   :  { %v419_v62 = vadd.f32 %v418_v50, %v417_v54  ;;  %v1153_v50 = vsel %vm270_vm0, %v843_v1, 0.0  ;;  %v1152_v53 = vadd.f32 %v1151_v42, %v1150_v45  ;;  %v434_v54 = vsel %vm270_vm0, %v3634_v30, 0.0 }
  0x96   :  { %v852_v45 = vmul.f32 %v3454_v25, %v3454_v25  ;;  %v3724_v25 = vld [vmem:[%s7734_s0 + $0x2d8] sm:$0xff] }
  0x97   :  { %v421_v11 = vadd.f32 %v420_v57, %v419_v62  ;;  %v1155_v57 = vsel %vm270_vm0, %v844_v41, 0.0  ;;  %v1154_v60 = vadd.f32 %v1153_v50, %v1152_v53  ;;  %v436_v62 = vsel %vm270_vm0, %v3644_v0, 0.0 }
  0x98   :  { %v853_v53 = vmul.f32 %v3464_v28, %v3464_v28  ;;  %v3734_v28 = vld [vmem:[%s7734_s0 + $0x2e0] sm:$0xff] }
  0x99   :  { %v423_v23 = vadd.f32 %v422_v5, %v421_v11  ;;  %v1157_v5 = vsel %vm270_vm0, %v845_v47, 0.0  ;;  %v1156_v9 = vadd.f32 %v1155_v57, %v1154_v60  ;;  %v438_v11 = vsel %vm270_vm0, %v3654_v3, 0.0 }
  0x9a   :  { %v854_v60 = vmul.f32 %v3474_v31, %v3474_v31  ;;  %v3744_v31 = vld [vmem:[%s7734_s0 + $0x2e8] sm:$0xff] }
  0x9b   :  { %v425_v32 = vadd.f32 %v424_v15, %v423_v23  ;;  %v1159_v15 = vsel %vm270_vm0, %v846_v56, 0.0  ;;  %v1158_v20 = vadd.f32 %v1157_v5, %v1156_v9  ;;  %v440_v23 = vsel %vm270_vm0, %v3664_v48, 0.0 }
  0x9c   :  { %v855_v9 = vmul.f32 %v3484_v34, %v3484_v34  ;;  %v3754_v34 = vld [vmem:[%s7734_s0 + $0x2f0] sm:$0xff] }
  0x9d   :  { %v427_v36 = vadd.f32 %v426_v26, %v425_v32  ;;  %v1161_v26 = vsel %vm270_vm0, %v847_v63, 0.0  ;;  %v1160_v29 = vadd.f32 %v1159_v15, %v1158_v20  ;;  %v442_v32 = vsel %vm270_vm0, %v3674_v10, 0.0 }
  0x9e   :  { %v856_v20 = vmul.f32 %v3494_v37, %v3494_v37  ;;  %v3764_v37 = vld [vmem:[%s7734_s0 + $0x2f8] sm:$0xff] }
  0x9f   :  { %v429_v44 = vadd.f32 %v428_v35, %v427_v36  ;;  %v1163_v35 = vsel %vm270_vm0, %v848_v14, 0.0  ;;  %v1162_v2 = vadd.f32 %v1161_v26, %v1160_v29  ;;  %v444_v36 = vsel %vm270_vm0, %v3684_v13, 0.0 }
  0xa0   :  { %v857_v29 = vmul.f32 %v3504_v40, %v3504_v40  ;;  %v3774_v40 = vld [vmem:[%s7734_s0 + $0x300] sm:$0xff] }
  0xa1   :  { %v431_v51 = vadd.f32 %v430_v39, %v429_v44  ;;  %v1165_v39 = vsel %vm270_vm0, %v849_v24, 0.0  ;;  %v1164_v42 = vadd.f32 %v1163_v35, %v1162_v2  ;;  %v446_v44 = vsel %vm270_vm0, %v3694_v16, 0.0 }
  0xa2   :  { %v858_v2 = vmul.f32 %v3514_v43, %v3514_v43  ;;  %v3784_v43 = vld [vmem:[%s7734_s0 + $0x308] sm:$0xff] }
  0xa3   :  { %v433_v59 = vadd.f32 %v432_v7, %v431_v51  ;;  %v1167_v7 = vsel %vm270_vm0, %v850_v33, 0.0  ;;  %v1166_v50 = vadd.f32 %v1165_v39, %v1164_v42  ;;  %v448_v51 = vsel %vm270_vm0, %v3704_v19, 0.0 }
  0xa4   :  { %v859_v42 = vmul.f32 %v3524_v46, %v3524_v46  ;;  %v3794_v46 = vld [vmem:[%s7734_s0 + $0x310] sm:$0xff] }
  0xa5   :  { %v435_v6 = vadd.f32 %v434_v54, %v433_v59  ;;  %v1169_v54 = vsel %vm270_vm0, %v851_v38, 0.0  ;;  %v1168_v57 = vadd.f32 %v1167_v7, %v1166_v50  ;;  %v450_v59 = vsel %vm270_vm0, %v3714_v22, 0.0 }
  0xa6   :  { %v860_v50 = vmul.f32 %v3534_v49, %v3534_v49  ;;  %v3804_v49 = vld [vmem:[%s7734_s0 + $0x318] sm:$0xff] }
  0xa7   :  { %v437_v18 = vadd.f32 %v436_v62, %v435_v6  ;;  %v1171_v62 = vsel %vm270_vm0, %v852_v45, 0.0  ;;  %v1170_v5 = vadd.f32 %v1169_v54, %v1168_v57  ;;  %v452_v6 = vsel %vm270_vm0, %v3724_v25, 0.0 }
  0xa8   :  { %v861_v57 = vmul.f32 %v3544_v52, %v3544_v52  ;;  %v3814_v52 = vld [vmem:[%s7734_s0 + $0x320] sm:$0xff] }
  0xa9   :  { %v439_v27 = vadd.f32 %v438_v11, %v437_v18  ;;  %v1173_v11 = vsel %vm270_vm0, %v853_v53, 0.0  ;;  %v1172_v15 = vadd.f32 %v1171_v62, %v1170_v5  ;;  %v454_v18 = vsel %vm270_vm0, %v3734_v28, 0.0 }
  0xaa   :  { %v862_v5 = vmul.f32 %v3554_v55, %v3554_v55  ;;  %v3824_v55 = vld [vmem:[%s7734_s0 + $0x328] sm:$0xff] }
  0xab   :  { %v441_v1 = vadd.f32 %v440_v23, %v439_v27  ;;  %v1175_v23 = vsel %vm270_vm0, %v854_v60, 0.0  ;;  %v1174_v26 = vadd.f32 %v1173_v11, %v1172_v15  ;;  %v456_v27 = vsel %vm270_vm0, %v3744_v31, 0.0 }
  0xac   :  { %v863_v15 = vmul.f32 %v3564_v58, %v3564_v58  ;;  %v3834_v58 = vld [vmem:[%s7734_s0 + $0x330] sm:$0xff] }
  0xad   :  { %v443_v41 = vadd.f32 %v442_v32, %v441_v1  ;;  %v1177_v32 = vsel %vm270_vm0, %v855_v9, 0.0  ;;  %v1176_v35 = vadd.f32 %v1175_v23, %v1174_v26  ;;  %v458_v1 = vsel %vm270_vm0, %v3754_v34, 0.0 }
  0xae   :  { %v864_v26 = vmul.f32 %v3574_v61, %v3574_v61  ;;  %v3844_v61 = vld [vmem:[%s7734_s0 + $0x338] sm:$0xff] }
  0xaf   :  { %v445_v47 = vadd.f32 %v444_v36, %v443_v41  ;;  %v1179_v36 = vsel %vm270_vm0, %v856_v20, 0.0  ;;  %v1178_v39 = vadd.f32 %v1177_v32, %v1176_v35  ;;  %v460_v41 = vsel %vm270_vm0, %v3764_v37, 0.0 }
  0xb0   :  { %v865_v35 = vmul.f32 %v3584_v4, %v3584_v4  ;;  %v3854_v4 = vld [vmem:[%s7734_s0 + $0x340] sm:$0xff] }
  0xb1   :  { %v447_v56 = vadd.f32 %v446_v44, %v445_v47  ;;  %v1181_v44 = vsel %vm270_vm0, %v857_v29, 0.0  ;;  %v1180_v7 = vadd.f32 %v1179_v36, %v1178_v39  ;;  %v462_v47 = vsel %vm270_vm0, %v3774_v40, 0.0 }
  0xb2   :  { %v866_v39 = vmul.f32 %v3594_v8, %v3594_v8  ;;  %v3864_v8 = vld [vmem:[%s7734_s0 + $0x348] sm:$0xff] }
  0xb3   :  { %v449_v63 = vadd.f32 %v448_v51, %v447_v56  ;;  %v1183_v51 = vsel %vm270_vm0, %v858_v2, 0.0  ;;  %v1182_v54 = vadd.f32 %v1181_v44, %v1180_v7  ;;  %v464_v56 = vsel %vm270_vm0, %v3784_v43, 0.0 }
  0xb4   :  { %v867_v7 = vmul.f32 %v3604_v12, %v3604_v12  ;;  %v3874_v12 = vld [vmem:[%s7734_s0 + $0x350] sm:$0xff] }
  0xb5   :  { %v451_v14 = vadd.f32 %v450_v59, %v449_v63  ;;  %v1185_v59 = vsel %vm270_vm0, %v859_v42, 0.0  ;;  %v1184_v62 = vadd.f32 %v1183_v51, %v1182_v54  ;;  %v466_v63 = vsel %vm270_vm0, %v3794_v46, 0.0 }
  0xb6   :  { %v868_v54 = vmul.f32 %v3614_v17, %v3614_v17  ;;  %v3884_v17 = vld [vmem:[%s7734_s0 + $0x358] sm:$0xff] }
  0xb7   :  { %v453_v24 = vadd.f32 %v452_v6, %v451_v14  ;;  %v1187_v6 = vsel %vm270_vm0, %v860_v50, 0.0  ;;  %v1186_v11 = vadd.f32 %v1185_v59, %v1184_v62  ;;  %v468_v14 = vsel %vm270_vm0, %v3804_v49, 0.0 }
  0xb8   :  { %v869_v62 = vmul.f32 %v3624_v21, %v3624_v21  ;;  %v3894_v21 = vld [vmem:[%s7734_s0 + $0x360] sm:$0xff] }
  0xb9   :  { %v455_v33 = vadd.f32 %v454_v18, %v453_v24  ;;  %v1189_v18 = vsel %vm270_vm0, %v861_v57, 0.0  ;;  %v1188_v23 = vadd.f32 %v1187_v6, %v1186_v11  ;;  %v470_v24 = vsel %vm270_vm0, %v3814_v52, 0.0 }
  0xba   :  { %v870_v11 = vmul.f32 %v3634_v30, %v3634_v30  ;;  %v3904_v30 = vld [vmem:[%s7734_s0 + $0x368] sm:$0xff] }
  0xbb   :  { %v457_v38 = vadd.f32 %v456_v27, %v455_v33  ;;  %v1191_v27 = vsel %vm270_vm0, %v862_v5, 0.0  ;;  %v1190_v32 = vadd.f32 %v1189_v18, %v1188_v23  ;;  %v472_v33 = vsel %vm270_vm0, %v3824_v55, 0.0 }
  0xbc   :  { %v871_v23 = vmul.f32 %v3644_v0, %v3644_v0  ;;  %v3914_v0 = vld [vmem:[%s7734_s0 + $0x370] sm:$0xff] }
  0xbd   :  { %v459_v45 = vadd.f32 %v458_v1, %v457_v38  ;;  %v1193_v1 = vsel %vm270_vm0, %v863_v15, 0.0  ;;  %v1192_v36 = vadd.f32 %v1191_v27, %v1190_v32  ;;  %v474_v38 = vsel %vm270_vm0, %v3834_v58, 0.0 }
  0xbe   :  { %v872_v32 = vmul.f32 %v3654_v3, %v3654_v3  ;;  %v3924_v3 = vld [vmem:[%s7734_s0 + $0x378] sm:$0xff] }
  0xbf   :  { %v461_v53 = vadd.f32 %v460_v41, %v459_v45  ;;  %v1195_v41 = vsel %vm270_vm0, %v864_v26, 0.0  ;;  %v1194_v44 = vadd.f32 %v1193_v1, %v1192_v36  ;;  %v476_v45 = vsel %vm270_vm0, %v3844_v61, 0.0 }
  0xc0   :  { %v873_v36 = vmul.f32 %v3664_v48, %v3664_v48  ;;  %v3934_v48 = vld [vmem:[%s7734_s0 + $0x380] sm:$0xff] }
  0xc1   :  { %v463_v60 = vadd.f32 %v462_v47, %v461_v53  ;;  %v1197_v47 = vsel %vm270_vm0, %v865_v35, 0.0  ;;  %v1196_v51 = vadd.f32 %v1195_v41, %v1194_v44  ;;  %v478_v53 = vsel %vm270_vm0, %v3854_v4, 0.0 }
  0xc2   :  { %v874_v44 = vmul.f32 %v3674_v10, %v3674_v10  ;;  %v3944_v10 = vld [vmem:[%s7734_s0 + $0x388] sm:$0xff] }
  0xc3   :  { %v465_v9 = vadd.f32 %v464_v56, %v463_v60  ;;  %v1199_v56 = vsel %vm270_vm0, %v866_v39, 0.0  ;;  %v1198_v59 = vadd.f32 %v1197_v47, %v1196_v51  ;;  %v480_v60 = vsel %vm270_vm0, %v3864_v8, 0.0 }
  0xc4   :  { %v875_v51 = vmul.f32 %v3684_v13, %v3684_v13  ;;  %v3954_v13 = vld [vmem:[%s7734_s0 + $0x390] sm:$0xff] }
  0xc5   :  { %v467_v20 = vadd.f32 %v466_v63, %v465_v9  ;;  %v1201_v63 = vsel %vm270_vm0, %v867_v7, 0.0  ;;  %v1200_v6 = vadd.f32 %v1199_v56, %v1198_v59  ;;  %v482_v9 = vsel %vm270_vm0, %v3874_v12, 0.0 }
  0xc6   :  { %v876_v59 = vmul.f32 %v3694_v16, %v3694_v16  ;;  %v3964_v16 = vld [vmem:[%s7734_s0 + $0x398] sm:$0xff] }
  0xc7   :  { %v469_v29 = vadd.f32 %v468_v14, %v467_v20  ;;  %v1203_v14 = vsel %vm270_vm0, %v868_v54, 0.0  ;;  %v1202_v18 = vadd.f32 %v1201_v63, %v1200_v6  ;;  %v484_v20 = vsel %vm270_vm0, %v3884_v17, 0.0 }
  0xc8   :  { %v877_v6 = vmul.f32 %v3704_v19, %v3704_v19  ;;  %v3974_v19 = vld [vmem:[%s7734_s0 + $0x3a0] sm:$0xff] }
  0xc9   :  { %v471_v2 = vadd.f32 %v470_v24, %v469_v29  ;;  %v1205_v24 = vsel %vm270_vm0, %v869_v62, 0.0  ;;  %v1204_v27 = vadd.f32 %v1203_v14, %v1202_v18  ;;  %v486_v29 = vsel %vm270_vm0, %v3894_v21, 0.0 }
  0xca   :  { %v878_v18 = vmul.f32 %v3714_v22, %v3714_v22  ;;  %v3984_v22 = vld [vmem:[%s7734_s0 + $0x3a8] sm:$0xff] }
  0xcb   :  { %v473_v42 = vadd.f32 %v472_v33, %v471_v2  ;;  %v1207_v33 = vsel %vm270_vm0, %v870_v11, 0.0  ;;  %v1206_v1 = vadd.f32 %v1205_v24, %v1204_v27  ;;  %v488_v2 = vsel %vm270_vm0, %v3904_v30, 0.0 }
  0xcc   :  { %v879_v27 = vmul.f32 %v3724_v25, %v3724_v25  ;;  %v3994_v25 = vld [vmem:[%s7734_s0 + $0x3b0] sm:$0xff] }
  0xcd   :  { %v475_v50 = vadd.f32 %v474_v38, %v473_v42  ;;  %v1209_v38 = vsel %vm270_vm0, %v871_v23, 0.0  ;;  %v1208_v41 = vadd.f32 %v1207_v33, %v1206_v1  ;;  %v490_v42 = vsel %vm270_vm0, %v3914_v0, 0.0 }
  0xce   :  { %v880_v1 = vmul.f32 %v3734_v28, %v3734_v28  ;;  %v4004_v28 = vld [vmem:[%s7734_s0 + $0x3b8] sm:$0xff] }
  0xcf   :  { %v477_v57 = vadd.f32 %v476_v45, %v475_v50  ;;  %v1211_v45 = vsel %vm270_vm0, %v872_v32, 0.0  ;;  %v1210_v47 = vadd.f32 %v1209_v38, %v1208_v41  ;;  %v492_v50 = vsel %vm270_vm0, %v3924_v3, 0.0 }
  0xd0   :  { %v881_v41 = vmul.f32 %v3744_v31, %v3744_v31  ;;  %v4014_v31 = vld [vmem:[%s7734_s0 + $0x3c0] sm:$0xff] }
  0xd1   :  { %v479_v5 = vadd.f32 %v478_v53, %v477_v57  ;;  %v1213_v53 = vsel %vm270_vm0, %v873_v36, 0.0  ;;  %v1212_v56 = vadd.f32 %v1211_v45, %v1210_v47  ;;  %v494_v57 = vsel %vm270_vm0, %v3934_v48, 0.0 }
  0xd2   :  { %v882_v47 = vmul.f32 %v3754_v34, %v3754_v34  ;;  %v4024_v34 = vld [vmem:[%s7734_s0 + $0x3c8] sm:$0xff] }
  0xd3   :  { %v481_v15 = vadd.f32 %v480_v60, %v479_v5  ;;  %v1215_v60 = vsel %vm270_vm0, %v874_v44, 0.0  ;;  %v1214_v63 = vadd.f32 %v1213_v53, %v1212_v56  ;;  %v496_v5 = vsel %vm270_vm0, %v3944_v10, 0.0 }
  0xd4   :  { %v883_v56 = vmul.f32 %v3764_v37, %v3764_v37  ;;  %v4034_v37 = vld [vmem:[%s7734_s0 + $0x3d0] sm:$0xff] }
  0xd5   :  { %v483_v26 = vadd.f32 %v482_v9, %v481_v15  ;;  %v1217_v9 = vsel %vm270_vm0, %v875_v51, 0.0  ;;  %v1216_v14 = vadd.f32 %v1215_v60, %v1214_v63  ;;  %v498_v15 = vsel %vm270_vm0, %v3954_v13, 0.0 }
  0xd6   :  { %v884_v63 = vmul.f32 %v3774_v40, %v3774_v40  ;;  %v4044_v40 = vld [vmem:[%s7734_s0 + $0x3d8] sm:$0xff] }
  0xd7   :  { %v485_v35 = vadd.f32 %v484_v20, %v483_v26  ;;  %v1219_v20 = vsel %vm270_vm0, %v876_v59, 0.0  ;;  %v1218_v24 = vadd.f32 %v1217_v9, %v1216_v14  ;;  %v500_v26 = vsel %vm270_vm0, %v3964_v16, 0.0 }
  0xd8   :  { %v885_v14 = vmul.f32 %v3784_v43, %v3784_v43  ;;  %v4054_v43 = vld [vmem:[%s7734_s0 + $0x3e0] sm:$0xff] }
  0xd9   :  { %v487_v39 = vadd.f32 %v486_v29, %v485_v35  ;;  %v1221_v29 = vsel %vm270_vm0, %v877_v6, 0.0  ;;  %v1220_v33 = vadd.f32 %v1219_v20, %v1218_v24  ;;  %v502_v35 = vsel %vm270_vm0, %v3974_v19, 0.0 }
  0xda   :  { %v886_v24 = vmul.f32 %v3794_v46, %v3794_v46  ;;  %v4064_v46 = vld [vmem:[%s7734_s0 + $0x3e8] sm:$0xff] }
  0xdb   :  { %v489_v7 = vadd.f32 %v488_v2, %v487_v39  ;;  %v1223_v2 = vsel %vm270_vm0, %v878_v18, 0.0  ;;  %v1222_v38 = vadd.f32 %v1221_v29, %v1220_v33  ;;  %v504_v39 = vsel %vm270_vm0, %v3984_v22, 0.0 }
  0xdc   :  { %v887_v33 = vmul.f32 %v3804_v49, %v3804_v49  ;;  %v4074_v49 = vld [vmem:[%s7734_s0 + $0x3f0] sm:$0xff] }
  0xdd   :  { %v491_v54 = vadd.f32 %v490_v42, %v489_v7  ;;  %v1225_v42 = vsel %vm270_vm0, %v879_v27, 0.0  ;;  %v1224_v45 = vadd.f32 %v1223_v2, %v1222_v38  ;;  %v506_v7 = vsel %vm270_vm0, %v3994_v25, 0.0 }
  0xde   :  { %v888_v38 = vmul.f32 %v3814_v52, %v3814_v52  ;;  %v4084_v52 = vld [vmem:[%s7734_s0 + $0x3f8] sm:$0xff] }
  0xdf   :  { %v493_v62 = vadd.f32 %v492_v50, %v491_v54  ;;  %v1227_v50 = vsel %vm270_vm0, %v880_v1, 0.0  ;;  %v1226_v53 = vadd.f32 %v1225_v42, %v1224_v45  ;;  %v508_v54 = vsel %vm270_vm0, %v4004_v28, 0.0 }
  0xe0   :  { %v889_v45 = vmul.f32 %v3824_v55, %v3824_v55  ;;  %v4094_v55 = vld [vmem:[%s7734_s0 + $0x400] sm:$0xff] }
  0xe1   :  { %v495_v11 = vadd.f32 %v494_v57, %v493_v62  ;;  %v1229_v57 = vsel %vm270_vm0, %v881_v41, 0.0  ;;  %v1228_v60 = vadd.f32 %v1227_v50, %v1226_v53  ;;  %v510_v62 = vsel %vm270_vm0, %v4014_v31, 0.0 }
  0xe2   :  { %v890_v53 = vmul.f32 %v3834_v58, %v3834_v58  ;;  %v4104_v58 = vld [vmem:[%s7734_s0 + $0x408] sm:$0xff] }
  0xe3   :  { %v497_v23 = vadd.f32 %v496_v5, %v495_v11  ;;  %v1231_v5 = vsel %vm270_vm0, %v882_v47, 0.0  ;;  %v1230_v9 = vadd.f32 %v1229_v57, %v1228_v60  ;;  %v512_v11 = vsel %vm270_vm0, %v4024_v34, 0.0 }
  0xe4   :  { %v891_v60 = vmul.f32 %v3844_v61, %v3844_v61  ;;  %v4114_v61 = vld [vmem:[%s7734_s0 + $0x410] sm:$0xff] }
  0xe5   :  { %v499_v32 = vadd.f32 %v498_v15, %v497_v23  ;;  %v1233_v15 = vsel %vm270_vm0, %v883_v56, 0.0  ;;  %v1232_v20 = vadd.f32 %v1231_v5, %v1230_v9  ;;  %v514_v23 = vsel %vm270_vm0, %v4034_v37, 0.0 }
  0xe6   :  { %v892_v9 = vmul.f32 %v3854_v4, %v3854_v4  ;;  %v4124_v4 = vld [vmem:[%s7734_s0 + $0x418] sm:$0xff] }
  0xe7   :  { %v501_v36 = vadd.f32 %v500_v26, %v499_v32  ;;  %v1235_v26 = vsel %vm270_vm0, %v884_v63, 0.0  ;;  %v1234_v29 = vadd.f32 %v1233_v15, %v1232_v20  ;;  %v516_v32 = vsel %vm270_vm0, %v4044_v40, 0.0 }
  0xe8   :  { %v893_v20 = vmul.f32 %v3864_v8, %v3864_v8  ;;  %v4134_v8 = vld [vmem:[%s7734_s0 + $0x420] sm:$0xff] }
  0xe9   :  { %v503_v44 = vadd.f32 %v502_v35, %v501_v36  ;;  %v1237_v35 = vsel %vm270_vm0, %v885_v14, 0.0  ;;  %v1236_v2 = vadd.f32 %v1235_v26, %v1234_v29  ;;  %v518_v36 = vsel %vm270_vm0, %v4054_v43, 0.0 }
  0xea   :  { %v894_v29 = vmul.f32 %v3874_v12, %v3874_v12  ;;  %v4144_v12 = vld [vmem:[%s7734_s0 + $0x428] sm:$0xff] }
  0xeb   :  { %v505_v51 = vadd.f32 %v504_v39, %v503_v44  ;;  %v1239_v39 = vsel %vm270_vm0, %v886_v24, 0.0  ;;  %v1238_v42 = vadd.f32 %v1237_v35, %v1236_v2  ;;  %v520_v44 = vsel %vm270_vm0, %v4064_v46, 0.0 }
  0xec   :  { %v895_v2 = vmul.f32 %v3884_v17, %v3884_v17  ;;  %v4154_v17 = vld [vmem:[%s7734_s0 + $0x430] sm:$0xff] }
  0xed   :  { %v507_v59 = vadd.f32 %v506_v7, %v505_v51  ;;  %v1241_v7 = vsel %vm270_vm0, %v887_v33, 0.0  ;;  %v1240_v50 = vadd.f32 %v1239_v39, %v1238_v42  ;;  %v522_v51 = vsel %vm270_vm0, %v4074_v49, 0.0 }
  0xee   :  { %v896_v42 = vmul.f32 %v3894_v21, %v3894_v21  ;;  %v4164_v21 = vld [vmem:[%s7734_s0 + $0x438] sm:$0xff] }
  0xef   :  { %v509_v6 = vadd.f32 %v508_v54, %v507_v59  ;;  %v1243_v54 = vsel %vm270_vm0, %v888_v38, 0.0  ;;  %v1242_v57 = vadd.f32 %v1241_v7, %v1240_v50  ;;  %v524_v59 = vsel %vm270_vm0, %v4084_v52, 0.0 }
  0xf0   :  { %v897_v50 = vmul.f32 %v3904_v30, %v3904_v30  ;;  %v4174_v30 = vld [vmem:[%s7734_s0 + $0x440] sm:$0xff] }
  0xf1   :  { %v511_v18 = vadd.f32 %v510_v62, %v509_v6  ;;  %v1245_v62 = vsel %vm270_vm0, %v889_v45, 0.0  ;;  %v1244_v5 = vadd.f32 %v1243_v54, %v1242_v57  ;;  %v526_v6 = vsel %vm270_vm0, %v4094_v55, 0.0 }
  0xf2   :  { %v898_v57 = vmul.f32 %v3914_v0, %v3914_v0  ;;  %v4184_v0 = vld [vmem:[%s7734_s0 + $0x448] sm:$0xff] }
  0xf3   :  { %v513_v27 = vadd.f32 %v512_v11, %v511_v18  ;;  %v1247_v11 = vsel %vm270_vm0, %v890_v53, 0.0  ;;  %v1246_v15 = vadd.f32 %v1245_v62, %v1244_v5  ;;  %v528_v18 = vsel %vm270_vm0, %v4104_v58, 0.0 }
  0xf4   :  { %v899_v5 = vmul.f32 %v3924_v3, %v3924_v3  ;;  %v4194_v3 = vld [vmem:[%s7734_s0 + $0x450] sm:$0xff] }
  0xf5   :  { %v515_v1 = vadd.f32 %v514_v23, %v513_v27  ;;  %v1249_v23 = vsel %vm270_vm0, %v891_v60, 0.0  ;;  %v1248_v26 = vadd.f32 %v1247_v11, %v1246_v15  ;;  %v530_v27 = vsel %vm270_vm0, %v4114_v61, 0.0 }
  0xf6   :  { %v900_v15 = vmul.f32 %v3934_v48, %v3934_v48  ;;  %v4204_v48 = vld [vmem:[%s7734_s0 + $0x458] sm:$0xff] }
  0xf7   :  { %v517_v41 = vadd.f32 %v516_v32, %v515_v1  ;;  %v1251_v32 = vsel %vm270_vm0, %v892_v9, 0.0  ;;  %v1250_v35 = vadd.f32 %v1249_v23, %v1248_v26  ;;  %v532_v1 = vsel %vm270_vm0, %v4124_v4, 0.0 }
  0xf8   :  { %v901_v26 = vmul.f32 %v3944_v10, %v3944_v10  ;;  %v4214_v10 = vld [vmem:[%s7734_s0 + $0x460] sm:$0xff] }
  0xf9   :  { %v519_v47 = vadd.f32 %v518_v36, %v517_v41  ;;  %v1253_v36 = vsel %vm270_vm0, %v893_v20, 0.0  ;;  %v1252_v39 = vadd.f32 %v1251_v32, %v1250_v35  ;;  %v534_v41 = vsel %vm270_vm0, %v4134_v8, 0.0 }
  0xfa   :  { %v902_v35 = vmul.f32 %v3954_v13, %v3954_v13  ;;  %v4224_v13 = vld [vmem:[%s7734_s0 + $0x468] sm:$0xff] }
  0xfb   :  { %v521_v56 = vadd.f32 %v520_v44, %v519_v47  ;;  %v1255_v44 = vsel %vm270_vm0, %v894_v29, 0.0  ;;  %v1254_v7 = vadd.f32 %v1253_v36, %v1252_v39  ;;  %v536_v47 = vsel %vm270_vm0, %v4144_v12, 0.0 }
  0xfc   :  { %v903_v39 = vmul.f32 %v3964_v16, %v3964_v16  ;;  %v4234_v16 = vld [vmem:[%s7734_s0 + $0x470] sm:$0xff] }
  0xfd   :  { %v523_v63 = vadd.f32 %v522_v51, %v521_v56  ;;  %v1257_v51 = vsel %vm270_vm0, %v895_v2, 0.0  ;;  %v1256_v54 = vadd.f32 %v1255_v44, %v1254_v7  ;;  %v538_v56 = vsel %vm270_vm0, %v4154_v17, 0.0 }
  0xfe   :  { %v904_v7 = vmul.f32 %v3974_v19, %v3974_v19  ;;  %v4244_v19 = vld [vmem:[%s7734_s0 + $0x478] sm:$0xff] }
  0xff   :  { %v525_v14 = vadd.f32 %v524_v59, %v523_v63  ;;  %v1259_v59 = vsel %vm270_vm0, %v896_v42, 0.0  ;;  %v1258_v62 = vadd.f32 %v1257_v51, %v1256_v54  ;;  %v540_v63 = vsel %vm270_vm0, %v4164_v21, 0.0 }
 0x100   :  { %v905_v54 = vmul.f32 %v3984_v22, %v3984_v22  ;;  %v4254_v22 = vld [vmem:[%s7734_s0 + $0x480] sm:$0xff] }
 0x101   :  { %v527_v24 = vadd.f32 %v526_v6, %v525_v14  ;;  %v1261_v6 = vsel %vm270_vm0, %v897_v50, 0.0  ;;  %v1260_v11 = vadd.f32 %v1259_v59, %v1258_v62  ;;  %v542_v14 = vsel %vm270_vm0, %v4174_v30, 0.0 }
 0x102   :  { %v906_v62 = vmul.f32 %v3994_v25, %v3994_v25  ;;  %v4264_v25 = vld [vmem:[%s7734_s0 + $0x488] sm:$0xff] }
 0x103   :  { %v529_v33 = vadd.f32 %v528_v18, %v527_v24  ;;  %v1263_v18 = vsel %vm270_vm0, %v898_v57, 0.0  ;;  %v1262_v23 = vadd.f32 %v1261_v6, %v1260_v11  ;;  %v544_v24 = vsel %vm270_vm0, %v4184_v0, 0.0 }
 0x104   :  { %v907_v11 = vmul.f32 %v4004_v28, %v4004_v28  ;;  %v4274_v28 = vld [vmem:[%s7734_s0 + $0x490] sm:$0xff] }
 0x105   :  { %v531_v38 = vadd.f32 %v530_v27, %v529_v33  ;;  %v1265_v27 = vsel %vm270_vm0, %v899_v5, 0.0  ;;  %v1264_v32 = vadd.f32 %v1263_v18, %v1262_v23  ;;  %v546_v33 = vsel %vm270_vm0, %v4194_v3, 0.0 }
 0x106   :  { %v908_v23 = vmul.f32 %v4014_v31, %v4014_v31  ;;  %v4284_v31 = vld [vmem:[%s7734_s0 + $0x498] sm:$0xff] }
 0x107   :  { %v533_v45 = vadd.f32 %v532_v1, %v531_v38  ;;  %v1267_v1 = vsel %vm270_vm0, %v900_v15, 0.0  ;;  %v1266_v36 = vadd.f32 %v1265_v27, %v1264_v32  ;;  %v548_v38 = vsel %vm270_vm0, %v4204_v48, 0.0 }
 0x108   :  { %v909_v32 = vmul.f32 %v4024_v34, %v4024_v34  ;;  %v4294_v34 = vld [vmem:[%s7734_s0 + $0x4a0] sm:$0xff] }
 0x109   :  { %v535_v53 = vadd.f32 %v534_v41, %v533_v45  ;;  %v1269_v41 = vsel %vm270_vm0, %v901_v26, 0.0  ;;  %v1268_v44 = vadd.f32 %v1267_v1, %v1266_v36  ;;  %v550_v45 = vsel %vm270_vm0, %v4214_v10, 0.0 }
 0x10a   :  { %v910_v36 = vmul.f32 %v4034_v37, %v4034_v37  ;;  %v4304_v37 = vld [vmem:[%s7734_s0 + $0x4a8] sm:$0xff] }
 0x10b   :  { %v537_v60 = vadd.f32 %v536_v47, %v535_v53  ;;  %v1271_v47 = vsel %vm270_vm0, %v902_v35, 0.0  ;;  %v1270_v51 = vadd.f32 %v1269_v41, %v1268_v44  ;;  %v552_v53 = vsel %vm270_vm0, %v4224_v13, 0.0 }
 0x10c   :  { %v911_v44 = vmul.f32 %v4044_v40, %v4044_v40  ;;  %v4314_v40 = vld [vmem:[%s7734_s0 + $0x4b0] sm:$0xff] }
 0x10d   :  { %v539_v9 = vadd.f32 %v538_v56, %v537_v60  ;;  %v1273_v56 = vsel %vm270_vm0, %v903_v39, 0.0  ;;  %v1272_v59 = vadd.f32 %v1271_v47, %v1270_v51  ;;  %v554_v60 = vsel %vm270_vm0, %v4234_v16, 0.0 }
 0x10e   :  { %v912_v51 = vmul.f32 %v4054_v43, %v4054_v43  ;;  %v4324_v43 = vld [vmem:[%s7734_s0 + $0x4b8] sm:$0xff] }
 0x10f   :  { %v541_v20 = vadd.f32 %v540_v63, %v539_v9  ;;  %v1275_v63 = vsel %vm270_vm0, %v904_v7, 0.0  ;;  %v1274_v6 = vadd.f32 %v1273_v56, %v1272_v59  ;;  %v556_v9 = vsel %vm270_vm0, %v4244_v19, 0.0 }
 0x110   :  { %v913_v59 = vmul.f32 %v4064_v46, %v4064_v46  ;;  %v4334_v46 = vld [vmem:[%s7734_s0 + $0x4c0] sm:$0xff] }
 0x111   :  { %v543_v29 = vadd.f32 %v542_v14, %v541_v20  ;;  %v1277_v14 = vsel %vm270_vm0, %v905_v54, 0.0  ;;  %v1276_v18 = vadd.f32 %v1275_v63, %v1274_v6  ;;  %v558_v20 = vsel %vm270_vm0, %v4254_v22, 0.0 }
 0x112   :  { %v914_v6 = vmul.f32 %v4074_v49, %v4074_v49  ;;  %v4344_v49 = vld [vmem:[%s7734_s0 + $0x4c8] sm:$0xff] }
 0x113   :  { %v545_v2 = vadd.f32 %v544_v24, %v543_v29  ;;  %v1279_v24 = vsel %vm270_vm0, %v906_v62, 0.0  ;;  %v1278_v27 = vadd.f32 %v1277_v14, %v1276_v18  ;;  %v560_v29 = vsel %vm270_vm0, %v4264_v25, 0.0 }
 0x114   :  { %v915_v18 = vmul.f32 %v4084_v52, %v4084_v52  ;;  %v4354_v52 = vld [vmem:[%s7734_s0 + $0x4d0] sm:$0xff] }
 0x115   :  { %v547_v42 = vadd.f32 %v546_v33, %v545_v2  ;;  %v1281_v33 = vsel %vm270_vm0, %v907_v11, 0.0  ;;  %v1280_v1 = vadd.f32 %v1279_v24, %v1278_v27  ;;  %v562_v2 = vsel %vm270_vm0, %v4274_v28, 0.0 }
 0x116   :  { %v916_v27 = vmul.f32 %v4094_v55, %v4094_v55  ;;  %v4364_v55 = vld [vmem:[%s7734_s0 + $0x4d8] sm:$0xff] }
 0x117   :  { %v549_v50 = vadd.f32 %v548_v38, %v547_v42  ;;  %v1283_v38 = vsel %vm270_vm0, %v908_v23, 0.0  ;;  %v1282_v41 = vadd.f32 %v1281_v33, %v1280_v1  ;;  %v564_v42 = vsel %vm270_vm0, %v4284_v31, 0.0 }
 0x118   :  { %v917_v1 = vmul.f32 %v4104_v58, %v4104_v58  ;;  %v4374_v58 = vld [vmem:[%s7734_s0 + $0x4e0] sm:$0xff] }
 0x119   :  { %v551_v57 = vadd.f32 %v550_v45, %v549_v50  ;;  %v1285_v45 = vsel %vm270_vm0, %v909_v32, 0.0  ;;  %v1284_v47 = vadd.f32 %v1283_v38, %v1282_v41  ;;  %v566_v50 = vsel %vm270_vm0, %v4294_v34, 0.0 }
 0x11a   :  { %v918_v41 = vmul.f32 %v4114_v61, %v4114_v61  ;;  %v4384_v61 = vld [vmem:[%s7734_s0 + $0x4e8] sm:$0xff] }
 0x11b   :  { %v553_v5 = vadd.f32 %v552_v53, %v551_v57  ;;  %v1287_v53 = vsel %vm270_vm0, %v910_v36, 0.0  ;;  %v1286_v56 = vadd.f32 %v1285_v45, %v1284_v47  ;;  %v568_v57 = vsel %vm270_vm0, %v4304_v37, 0.0 }
 0x11c   :  { %v919_v47 = vmul.f32 %v4124_v4, %v4124_v4  ;;  %v4394_v4 = vld [vmem:[%s7734_s0 + $0x4f0] sm:$0xff] }
 0x11d   :  { %v555_v15 = vadd.f32 %v554_v60, %v553_v5  ;;  %v1289_v60 = vsel %vm270_vm0, %v911_v44, 0.0  ;;  %v1288_v63 = vadd.f32 %v1287_v53, %v1286_v56  ;;  %v570_v5 = vsel %vm270_vm0, %v4314_v40, 0.0 }
 0x11e   :  { %v920_v56 = vmul.f32 %v4134_v8, %v4134_v8  ;;  %v4404_v8 = vld [vmem:[%s7734_s0 + $0x4f8] sm:$0xff] }
 0x11f   :  { %v557_v26 = vadd.f32 %v556_v9, %v555_v15  ;;  %v1291_v9 = vsel %vm270_vm0, %v912_v51, 0.0  ;;  %v1290_v14 = vadd.f32 %v1289_v60, %v1288_v63  ;;  %v572_v15 = vsel %vm270_vm0, %v4324_v43, 0.0 }
 0x120   :  { %v921_v63 = vmul.f32 %v4144_v12, %v4144_v12  ;;  %v4414_v12 = vld [vmem:[%s7734_s0 + $0x500] sm:$0xff] }
 0x121   :  { %v559_v35 = vadd.f32 %v558_v20, %v557_v26  ;;  %v1293_v20 = vsel %vm270_vm0, %v913_v59, 0.0  ;;  %v1292_v24 = vadd.f32 %v1291_v9, %v1290_v14  ;;  %v574_v26 = vsel %vm270_vm0, %v4334_v46, 0.0 }
 0x122   :  { %v922_v14 = vmul.f32 %v4154_v17, %v4154_v17  ;;  %v4424_v17 = vld [vmem:[%s7734_s0 + $0x508] sm:$0xff] }
 0x123   :  { %v561_v39 = vadd.f32 %v560_v29, %v559_v35  ;;  %v1295_v29 = vsel %vm270_vm0, %v914_v6, 0.0  ;;  %v1294_v33 = vadd.f32 %v1293_v20, %v1292_v24  ;;  %v576_v35 = vsel %vm270_vm0, %v4344_v49, 0.0 }
 0x124   :  { %v923_v24 = vmul.f32 %v4164_v21, %v4164_v21  ;;  %v4434_v21 = vld [vmem:[%s7734_s0 + $0x510] sm:$0xff] }
 0x125   :  { %v563_v7 = vadd.f32 %v562_v2, %v561_v39  ;;  %v1297_v2 = vsel %vm270_vm0, %v915_v18, 0.0  ;;  %v1296_v38 = vadd.f32 %v1295_v29, %v1294_v33  ;;  %v578_v39 = vsel %vm270_vm0, %v4354_v52, 0.0 }
 0x126   :  { %v924_v33 = vmul.f32 %v4174_v30, %v4174_v30  ;;  %v4444_v30 = vld [vmem:[%s7734_s0 + $0x518] sm:$0xff] }
 0x127   :  { %v565_v54 = vadd.f32 %v564_v42, %v563_v7  ;;  %v1299_v42 = vsel %vm270_vm0, %v916_v27, 0.0  ;;  %v1298_v45 = vadd.f32 %v1297_v2, %v1296_v38  ;;  %v580_v7 = vsel %vm270_vm0, %v4364_v55, 0.0 }
 0x128   :  { %v925_v38 = vmul.f32 %v4184_v0, %v4184_v0  ;;  %v4454_v0 = vld [vmem:[%s7734_s0 + $0x520] sm:$0xff] }
 0x129   :  { %v567_v62 = vadd.f32 %v566_v50, %v565_v54  ;;  %v1301_v50 = vsel %vm270_vm0, %v917_v1, 0.0  ;;  %v1300_v53 = vadd.f32 %v1299_v42, %v1298_v45  ;;  %v582_v54 = vsel %vm270_vm0, %v4374_v58, 0.0 }
 0x12a   :  { %v926_v45 = vmul.f32 %v4194_v3, %v4194_v3  ;;  %v4464_v3 = vld [vmem:[%s7734_s0 + $0x528] sm:$0xff] }
 0x12b   :  { %v569_v11 = vadd.f32 %v568_v57, %v567_v62  ;;  %v1303_v57 = vsel %vm270_vm0, %v918_v41, 0.0  ;;  %v1302_v60 = vadd.f32 %v1301_v50, %v1300_v53  ;;  %v584_v62 = vsel %vm270_vm0, %v4384_v61, 0.0 }
 0x12c   :  { %v927_v53 = vmul.f32 %v4204_v48, %v4204_v48  ;;  %v4474_v48 = vld [vmem:[%s7734_s0 + $0x530] sm:$0xff] }
 0x12d   :  { %v571_v23 = vadd.f32 %v570_v5, %v569_v11  ;;  %v1305_v5 = vsel %vm270_vm0, %v919_v47, 0.0  ;;  %v1304_v9 = vadd.f32 %v1303_v57, %v1302_v60  ;;  %v586_v11 = vsel %vm270_vm0, %v4394_v4, 0.0 }
 0x12e   :  { %v928_v60 = vmul.f32 %v4214_v10, %v4214_v10  ;;  %v4484_v10 = vld [vmem:[%s7734_s0 + $0x538] sm:$0xff] }
 0x12f   :  { %v573_v32 = vadd.f32 %v572_v15, %v571_v23  ;;  %v1307_v15 = vsel %vm270_vm0, %v920_v56, 0.0  ;;  %v1306_v20 = vadd.f32 %v1305_v5, %v1304_v9  ;;  %v588_v23 = vsel %vm270_vm0, %v4404_v8, 0.0 }
 0x130   :  { %v929_v9 = vmul.f32 %v4224_v13, %v4224_v13  ;;  %v4494_v13 = vld [vmem:[%s7734_s0 + $0x540] sm:$0xff] }
 0x131   :  { %v575_v36 = vadd.f32 %v574_v26, %v573_v32  ;;  %v1309_v26 = vsel %vm270_vm0, %v921_v63, 0.0  ;;  %v1308_v29 = vadd.f32 %v1307_v15, %v1306_v20  ;;  %v590_v32 = vsel %vm270_vm0, %v4414_v12, 0.0 }
 0x132   :  { %v930_v20 = vmul.f32 %v4234_v16, %v4234_v16  ;;  %v4504_v16 = vld [vmem:[%s7734_s0 + $0x548] sm:$0xff] }
 0x133   :  { %v577_v44 = vadd.f32 %v576_v35, %v575_v36  ;;  %v1311_v35 = vsel %vm270_vm0, %v922_v14, 0.0  ;;  %v1310_v2 = vadd.f32 %v1309_v26, %v1308_v29  ;;  %v592_v36 = vsel %vm270_vm0, %v4424_v17, 0.0 }
 0x134   :  { %v931_v29 = vmul.f32 %v4244_v19, %v4244_v19  ;;  %v4514_v19 = vld [vmem:[%s7734_s0 + $0x550] sm:$0xff] }
 0x135   :  { %v579_v51 = vadd.f32 %v578_v39, %v577_v44  ;;  %v1313_v39 = vsel %vm270_vm0, %v923_v24, 0.0  ;;  %v1312_v42 = vadd.f32 %v1311_v35, %v1310_v2  ;;  %v594_v44 = vsel %vm270_vm0, %v4434_v21, 0.0 }
 0x136   :  { %v932_v2 = vmul.f32 %v4254_v22, %v4254_v22  ;;  %v4524_v22 = vld [vmem:[%s7734_s0 + $0x558] sm:$0xff] }
 0x137   :  { %v581_v59 = vadd.f32 %v580_v7, %v579_v51  ;;  %v1315_v7 = vsel %vm270_vm0, %v924_v33, 0.0  ;;  %v1314_v50 = vadd.f32 %v1313_v39, %v1312_v42  ;;  %v596_v51 = vsel %vm270_vm0, %v4444_v30, 0.0 }
 0x138   :  { %v933_v42 = vmul.f32 %v4264_v25, %v4264_v25  ;;  %v4534_v25 = vld [vmem:[%s7734_s0 + $0x560] sm:$0xff] }
 0x139   :  { %v583_v6 = vadd.f32 %v582_v54, %v581_v59  ;;  %v1317_v54 = vsel %vm270_vm0, %v925_v38, 0.0  ;;  %v1316_v57 = vadd.f32 %v1315_v7, %v1314_v50  ;;  %v598_v59 = vsel %vm270_vm0, %v4454_v0, 0.0 }
 0x13a   :  { %v934_v50 = vmul.f32 %v4274_v28, %v4274_v28  ;;  %v4544_v28 = vld [vmem:[%s7734_s0 + $0x568] sm:$0xff] }
 0x13b   :  { %v585_v18 = vadd.f32 %v584_v62, %v583_v6  ;;  %v1319_v62 = vsel %vm270_vm0, %v926_v45, 0.0  ;;  %v1318_v5 = vadd.f32 %v1317_v54, %v1316_v57  ;;  %v600_v6 = vsel %vm270_vm0, %v4464_v3, 0.0 }
 0x13c   :  { %v935_v57 = vmul.f32 %v4284_v31, %v4284_v31  ;;  %v4554_v31 = vld [vmem:[%s7734_s0 + $0x570] sm:$0xff] }
 0x13d   :  { %v587_v27 = vadd.f32 %v586_v11, %v585_v18  ;;  %v1321_v11 = vsel %vm270_vm0, %v927_v53, 0.0  ;;  %v1320_v15 = vadd.f32 %v1319_v62, %v1318_v5  ;;  %v602_v18 = vsel %vm270_vm0, %v4474_v48, 0.0 }
 0x13e   :  { %v936_v5 = vmul.f32 %v4294_v34, %v4294_v34  ;;  %v4564_v34 = vld [vmem:[%s7734_s0 + $0x578] sm:$0xff] }
 0x13f   :  { %v589_v1 = vadd.f32 %v588_v23, %v587_v27  ;;  %v1323_v23 = vsel %vm270_vm0, %v928_v60, 0.0  ;;  %v1322_v26 = vadd.f32 %v1321_v11, %v1320_v15  ;;  %v604_v27 = vsel %vm270_vm0, %v4484_v10, 0.0 }
 0x140   :  { %v937_v15 = vmul.f32 %v4304_v37, %v4304_v37  ;;  %v4574_v37 = vld [vmem:[%s7734_s0 + $0x580] sm:$0xff] }
 0x141   :  { %v591_v41 = vadd.f32 %v590_v32, %v589_v1  ;;  %v1325_v32 = vsel %vm270_vm0, %v929_v9, 0.0  ;;  %v1324_v35 = vadd.f32 %v1323_v23, %v1322_v26  ;;  %v606_v1 = vsel %vm270_vm0, %v4494_v13, 0.0 }
 0x142   :  { %v938_v26 = vmul.f32 %v4314_v40, %v4314_v40  ;;  %v4584_v40 = vld [vmem:[%s7734_s0 + $0x588] sm:$0xff] }
 0x143   :  { %v593_v47 = vadd.f32 %v592_v36, %v591_v41  ;;  %v1327_v36 = vsel %vm270_vm0, %v930_v20, 0.0  ;;  %v1326_v39 = vadd.f32 %v1325_v32, %v1324_v35  ;;  %v608_v41 = vsel %vm270_vm0, %v4504_v16, 0.0 }
 0x144   :  { %v939_v35 = vmul.f32 %v4324_v43, %v4324_v43  ;;  %v4594_v43 = vld [vmem:[%s7734_s0 + $0x590] sm:$0xff] }
 0x145   :  { %v595_v56 = vadd.f32 %v594_v44, %v593_v47  ;;  %v1329_v44 = vsel %vm270_vm0, %v931_v29, 0.0  ;;  %v1328_v7 = vadd.f32 %v1327_v36, %v1326_v39  ;;  %v610_v47 = vsel %vm270_vm0, %v4514_v19, 0.0 }
 0x146   :  { %v940_v39 = vmul.f32 %v4334_v46, %v4334_v46  ;;  %v4604_v46 = vld [vmem:[%s7734_s0 + $0x598] sm:$0xff] }
 0x147   :  { %v597_v63 = vadd.f32 %v596_v51, %v595_v56  ;;  %v1331_v51 = vsel %vm270_vm0, %v932_v2, 0.0  ;;  %v1330_v54 = vadd.f32 %v1329_v44, %v1328_v7  ;;  %v612_v56 = vsel %vm270_vm0, %v4524_v22, 0.0 }
 0x148   :  { %v941_v7 = vmul.f32 %v4344_v49, %v4344_v49  ;;  %v4614_v49 = vld [vmem:[%s7734_s0 + $0x5a0] sm:$0xff] }
 0x149   :  { %v599_v14 = vadd.f32 %v598_v59, %v597_v63  ;;  %v1333_v59 = vsel %vm270_vm0, %v933_v42, 0.0  ;;  %v1332_v62 = vadd.f32 %v1331_v51, %v1330_v54  ;;  %v614_v63 = vsel %vm270_vm0, %v4534_v25, 0.0 }
 0x14a   :  { %v942_v54 = vmul.f32 %v4354_v52, %v4354_v52  ;;  %v4624_v52 = vld [vmem:[%s7734_s0 + $0x5a8] sm:$0xff] }
 0x14b   :  { %v601_v24 = vadd.f32 %v600_v6, %v599_v14  ;;  %v1335_v6 = vsel %vm270_vm0, %v934_v50, 0.0  ;;  %v1334_v11 = vadd.f32 %v1333_v59, %v1332_v62  ;;  %v616_v14 = vsel %vm270_vm0, %v4544_v28, 0.0 }
 0x14c   :  { %v943_v62 = vmul.f32 %v4364_v55, %v4364_v55  ;;  %v4634_v55 = vld [vmem:[%s7734_s0 + $0x5b0] sm:$0xff] }
 0x14d   :  { %v603_v33 = vadd.f32 %v602_v18, %v601_v24  ;;  %v1337_v18 = vsel %vm270_vm0, %v935_v57, 0.0  ;;  %v1336_v23 = vadd.f32 %v1335_v6, %v1334_v11  ;;  %v618_v24 = vsel %vm270_vm0, %v4554_v31, 0.0 }
 0x14e   :  { %v944_v11 = vmul.f32 %v4374_v58, %v4374_v58  ;;  %v4644_v58 = vld [vmem:[%s7734_s0 + $0x5b8] sm:$0xff] }
 0x14f   :  { %v605_v38 = vadd.f32 %v604_v27, %v603_v33  ;;  %v1339_v27 = vsel %vm270_vm0, %v936_v5, 0.0  ;;  %v1338_v32 = vadd.f32 %v1337_v18, %v1336_v23  ;;  %v620_v33 = vsel %vm270_vm0, %v4564_v34, 0.0 }
 0x150   :  { %v945_v23 = vmul.f32 %v4384_v61, %v4384_v61  ;;  %v4654_v61 = vld [vmem:[%s7734_s0 + $0x5c0] sm:$0xff] }
 0x151   :  { %v607_v45 = vadd.f32 %v606_v1, %v605_v38  ;;  %v1341_v1 = vsel %vm270_vm0, %v937_v15, 0.0  ;;  %v1340_v36 = vadd.f32 %v1339_v27, %v1338_v32  ;;  %v622_v38 = vsel %vm270_vm0, %v4574_v37, 0.0 }
 0x152   :  { %v946_v32 = vmul.f32 %v4394_v4, %v4394_v4  ;;  %v4664_v4 = vld [vmem:[%s7734_s0 + $0x5c8] sm:$0xff] }
 0x153   :  { %v609_v53 = vadd.f32 %v608_v41, %v607_v45  ;;  %v1343_v41 = vsel %vm270_vm0, %v938_v26, 0.0  ;;  %v1342_v44 = vadd.f32 %v1341_v1, %v1340_v36  ;;  %v624_v45 = vsel %vm270_vm0, %v4584_v40, 0.0 }
 0x154   :  { %v947_v36 = vmul.f32 %v4404_v8, %v4404_v8  ;;  %v4674_v8 = vld [vmem:[%s7734_s0 + $0x5d0] sm:$0xff] }
 0x155   :  { %v611_v60 = vadd.f32 %v610_v47, %v609_v53  ;;  %v1345_v47 = vsel %vm270_vm0, %v939_v35, 0.0  ;;  %v1344_v51 = vadd.f32 %v1343_v41, %v1342_v44  ;;  %v626_v53 = vsel %vm270_vm0, %v4594_v43, 0.0 }
 0x156   :  { %v948_v44 = vmul.f32 %v4414_v12, %v4414_v12  ;;  %v4684_v12 = vld [vmem:[%s7734_s0 + $0x5d8] sm:$0xff] }
 0x157   :  { %v613_v9 = vadd.f32 %v612_v56, %v611_v60  ;;  %v1347_v56 = vsel %vm270_vm0, %v940_v39, 0.0  ;;  %v1346_v59 = vadd.f32 %v1345_v47, %v1344_v51  ;;  %v628_v60 = vsel %vm270_vm0, %v4604_v46, 0.0 }
 0x158   :  { %v949_v51 = vmul.f32 %v4424_v17, %v4424_v17  ;;  %v4694_v17 = vld [vmem:[%s7734_s0 + $0x5e0] sm:$0xff] }
 0x159   :  { %v615_v20 = vadd.f32 %v614_v63, %v613_v9  ;;  %v1349_v63 = vsel %vm270_vm0, %v941_v7, 0.0  ;;  %v1348_v6 = vadd.f32 %v1347_v56, %v1346_v59  ;;  %v630_v9 = vsel %vm270_vm0, %v4614_v49, 0.0 }
 0x15a   :  { %v950_v59 = vmul.f32 %v4434_v21, %v4434_v21  ;;  %v4704_v21 = vld [vmem:[%s7734_s0 + $0x5e8] sm:$0xff] }
 0x15b   :  { %v617_v29 = vadd.f32 %v616_v14, %v615_v20  ;;  %v1351_v14 = vsel %vm270_vm0, %v942_v54, 0.0  ;;  %v1350_v18 = vadd.f32 %v1349_v63, %v1348_v6  ;;  %v632_v20 = vsel %vm270_vm0, %v4624_v52, 0.0 }
 0x15c   :  { %v951_v6 = vmul.f32 %v4444_v30, %v4444_v30  ;;  %v4714_v30 = vld [vmem:[%s7734_s0 + $0x5f0] sm:$0xff] }
 0x15d   :  { %v619_v2 = vadd.f32 %v618_v24, %v617_v29  ;;  %v1353_v24 = vsel %vm270_vm0, %v943_v62, 0.0  ;;  %v1352_v27 = vadd.f32 %v1351_v14, %v1350_v18  ;;  %v634_v29 = vsel %vm270_vm0, %v4634_v55, 0.0 }
 0x15e   :  { %v952_v18 = vmul.f32 %v4454_v0, %v4454_v0  ;;  %v4724_v0 = vld [vmem:[%s7734_s0 + $0x5f8] sm:$0xff] }
 0x15f   :  { %v621_v42 = vadd.f32 %v620_v33, %v619_v2  ;;  %v1355_v33 = vsel %vm270_vm0, %v944_v11, 0.0  ;;  %v1354_v1 = vadd.f32 %v1353_v24, %v1352_v27  ;;  %v636_v2 = vsel %vm270_vm0, %v4644_v58, 0.0 }
 0x160   :  { %v953_v27 = vmul.f32 %v4464_v3, %v4464_v3  ;;  %v4734_v3 = vld [vmem:[%s7734_s0 + $0x600] sm:$0xff] }
 0x161   :  { %v623_v50 = vadd.f32 %v622_v38, %v621_v42  ;;  %v1357_v38 = vsel %vm270_vm0, %v945_v23, 0.0  ;;  %v1356_v41 = vadd.f32 %v1355_v33, %v1354_v1  ;;  %v638_v42 = vsel %vm270_vm0, %v4654_v61, 0.0 }
 0x162   :  { %v954_v1 = vmul.f32 %v4474_v48, %v4474_v48  ;;  %v4744_v48 = vld [vmem:[%s7734_s0 + $0x608] sm:$0xff] }
 0x163   :  { %v625_v57 = vadd.f32 %v624_v45, %v623_v50  ;;  %v1359_v45 = vsel %vm270_vm0, %v946_v32, 0.0  ;;  %v1358_v47 = vadd.f32 %v1357_v38, %v1356_v41  ;;  %v640_v50 = vsel %vm270_vm0, %v4664_v4, 0.0 }
 0x164   :  { %v955_v41 = vmul.f32 %v4484_v10, %v4484_v10  ;;  %v4754_v10 = vld [vmem:[%s7734_s0 + $0x610] sm:$0xff] }
 0x165   :  { %v627_v5 = vadd.f32 %v626_v53, %v625_v57  ;;  %v1361_v53 = vsel %vm270_vm0, %v947_v36, 0.0  ;;  %v1360_v56 = vadd.f32 %v1359_v45, %v1358_v47  ;;  %v642_v57 = vsel %vm270_vm0, %v4674_v8, 0.0 }
 0x166   :  { %v956_v47 = vmul.f32 %v4494_v13, %v4494_v13  ;;  %v4764_v13 = vld [vmem:[%s7734_s0 + $0x618] sm:$0xff] }
 0x167   :  { %v629_v15 = vadd.f32 %v628_v60, %v627_v5  ;;  %v1363_v60 = vsel %vm270_vm0, %v948_v44, 0.0  ;;  %v1362_v63 = vadd.f32 %v1361_v53, %v1360_v56  ;;  %v644_v5 = vsel %vm270_vm0, %v4684_v12, 0.0 }
 0x168   :  { %v957_v56 = vmul.f32 %v4504_v16, %v4504_v16  ;;  %v4774_v16 = vld [vmem:[%s7734_s0 + $0x620] sm:$0xff] }
 0x169   :  { %v631_v26 = vadd.f32 %v630_v9, %v629_v15  ;;  %v1365_v9 = vsel %vm270_vm0, %v949_v51, 0.0  ;;  %v1364_v14 = vadd.f32 %v1363_v60, %v1362_v63  ;;  %v646_v15 = vsel %vm270_vm0, %v4694_v17, 0.0 }
 0x16a   :  { %v958_v63 = vmul.f32 %v4514_v19, %v4514_v19  ;;  %v4784_v19 = vld [vmem:[%s7734_s0 + $0x628] sm:$0xff] }
 0x16b   :  { %v633_v35 = vadd.f32 %v632_v20, %v631_v26  ;;  %v1367_v20 = vsel %vm270_vm0, %v950_v59, 0.0  ;;  %v1366_v24 = vadd.f32 %v1365_v9, %v1364_v14  ;;  %v648_v26 = vsel %vm270_vm0, %v4704_v21, 0.0 }
 0x16c   :  { %v959_v14 = vmul.f32 %v4524_v22, %v4524_v22  ;;  %v4794_v22 = vld [vmem:[%s7734_s0 + $0x630] sm:$0xff] }
 0x16d   :  { %v635_v39 = vadd.f32 %v634_v29, %v633_v35  ;;  %v1369_v29 = vsel %vm270_vm0, %v951_v6, 0.0  ;;  %v1368_v33 = vadd.f32 %v1367_v20, %v1366_v24  ;;  %v650_v35 = vsel %vm270_vm0, %v4714_v30, 0.0 }
 0x16e   :  { %v960_v24 = vmul.f32 %v4534_v25, %v4534_v25  ;;  %v4804_v25 = vld [vmem:[%s7734_s0 + $0x638] sm:$0xff] }
 0x16f   :  { %v637_v7 = vadd.f32 %v636_v2, %v635_v39  ;;  %v1371_v2 = vsel %vm270_vm0, %v952_v18, 0.0  ;;  %v1370_v38 = vadd.f32 %v1369_v29, %v1368_v33  ;;  %v652_v39 = vsel %vm270_vm0, %v4724_v0, 0.0 }
 0x170   :  { %v961_v33 = vmul.f32 %v4544_v28, %v4544_v28  ;;  %v4814_v28 = vld [vmem:[%s7734_s0 + $0x640] sm:$0xff] }
 0x171   :  { %v639_v54 = vadd.f32 %v638_v42, %v637_v7  ;;  %v1373_v42 = vsel %vm270_vm0, %v953_v27, 0.0  ;;  %v1372_v45 = vadd.f32 %v1371_v2, %v1370_v38  ;;  %v654_v7 = vsel %vm270_vm0, %v4734_v3, 0.0 }
 0x172   :  { %v962_v38 = vmul.f32 %v4554_v31, %v4554_v31  ;;  %v4824_v31 = vld [vmem:[%s7734_s0 + $0x648] sm:$0xff] }
 0x173   :  { %v641_v62 = vadd.f32 %v640_v50, %v639_v54  ;;  %v1375_v50 = vsel %vm270_vm0, %v954_v1, 0.0  ;;  %v1374_v53 = vadd.f32 %v1373_v42, %v1372_v45  ;;  %v656_v54 = vsel %vm270_vm0, %v4744_v48, 0.0 }
 0x174   :  { %v963_v45 = vmul.f32 %v4564_v34, %v4564_v34  ;;  %v4834_v34 = vld [vmem:[%s7734_s0 + $0x650] sm:$0xff] }
 0x175   :  { %v643_v11 = vadd.f32 %v642_v57, %v641_v62  ;;  %v1377_v57 = vsel %vm270_vm0, %v955_v41, 0.0  ;;  %v1376_v60 = vadd.f32 %v1375_v50, %v1374_v53  ;;  %v658_v62 = vsel %vm270_vm0, %v4754_v10, 0.0 }
 0x176   :  { %v964_v53 = vmul.f32 %v4574_v37, %v4574_v37  ;;  %v4844_v37 = vld [vmem:[%s7734_s0 + $0x658] sm:$0xff] }
 0x177   :  { %v645_v23 = vadd.f32 %v644_v5, %v643_v11  ;;  %v1379_v5 = vsel %vm270_vm0, %v956_v47, 0.0  ;;  %v1378_v9 = vadd.f32 %v1377_v57, %v1376_v60  ;;  %v660_v11 = vsel %vm270_vm0, %v4764_v13, 0.0 }
 0x178   :  { %v965_v60 = vmul.f32 %v4584_v40, %v4584_v40  ;;  %v4854_v40 = vld [vmem:[%s7734_s0 + $0x660] sm:$0xff] }
 0x179   :  { %v647_v32 = vadd.f32 %v646_v15, %v645_v23  ;;  %v1381_v15 = vsel %vm270_vm0, %v957_v56, 0.0  ;;  %v1380_v20 = vadd.f32 %v1379_v5, %v1378_v9  ;;  %v662_v23 = vsel %vm270_vm0, %v4774_v16, 0.0 }
 0x17a   :  { %v966_v9 = vmul.f32 %v4594_v43, %v4594_v43  ;;  %v4864_v43 = vld [vmem:[%s7734_s0 + $0x668] sm:$0xff] }
 0x17b   :  { %v649_v36 = vadd.f32 %v648_v26, %v647_v32  ;;  %v1383_v26 = vsel %vm270_vm0, %v958_v63, 0.0  ;;  %v1382_v29 = vadd.f32 %v1381_v15, %v1380_v20  ;;  %v664_v32 = vsel %vm270_vm0, %v4784_v19, 0.0 }
 0x17c   :  { %v967_v20 = vmul.f32 %v4604_v46, %v4604_v46  ;;  %v4874_v46 = vld [vmem:[%s7734_s0 + $0x670] sm:$0xff] }
 0x17d   :  { %v651_v44 = vadd.f32 %v650_v35, %v649_v36  ;;  %v1385_v35 = vsel %vm270_vm0, %v959_v14, 0.0  ;;  %v1384_v2 = vadd.f32 %v1383_v26, %v1382_v29  ;;  %v666_v36 = vsel %vm270_vm0, %v4794_v22, 0.0 }
 0x17e   :  { %v968_v29 = vmul.f32 %v4614_v49, %v4614_v49  ;;  %v4884_v49 = vld [vmem:[%s7734_s0 + $0x678] sm:$0xff] }
 0x17f   :  { %v653_v51 = vadd.f32 %v652_v39, %v651_v44  ;;  %v1387_v39 = vsel %vm270_vm0, %v960_v24, 0.0  ;;  %v1386_v42 = vadd.f32 %v1385_v35, %v1384_v2  ;;  %v668_v44 = vsel %vm270_vm0, %v4804_v25, 0.0 }
 0x180   :  { %v969_v2 = vmul.f32 %v4624_v52, %v4624_v52  ;;  %v4894_v52 = vld [vmem:[%s7734_s0 + $0x680] sm:$0xff] }
 0x181   :  { %v655_v59 = vadd.f32 %v654_v7, %v653_v51  ;;  %v1389_v7 = vsel %vm270_vm0, %v961_v33, 0.0  ;;  %v1388_v50 = vadd.f32 %v1387_v39, %v1386_v42  ;;  %v670_v51 = vsel %vm270_vm0, %v4814_v28, 0.0 }
 0x182   :  { %v970_v42 = vmul.f32 %v4634_v55, %v4634_v55  ;;  %v4904_v55 = vld [vmem:[%s7734_s0 + $0x688] sm:$0xff] }
 0x183   :  { %v657_v6 = vadd.f32 %v656_v54, %v655_v59  ;;  %v1391_v54 = vsel %vm270_vm0, %v962_v38, 0.0  ;;  %v1390_v57 = vadd.f32 %v1389_v7, %v1388_v50  ;;  %v672_v59 = vsel %vm270_vm0, %v4824_v31, 0.0 }
 0x184   :  { %v971_v50 = vmul.f32 %v4644_v58, %v4644_v58  ;;  %v4914_v58 = vld [vmem:[%s7734_s0 + $0x690] sm:$0xff] }
 0x185   :  { %v659_v18 = vadd.f32 %v658_v62, %v657_v6  ;;  %v1393_v62 = vsel %vm270_vm0, %v963_v45, 0.0  ;;  %v1392_v5 = vadd.f32 %v1391_v54, %v1390_v57  ;;  %v674_v6 = vsel %vm270_vm0, %v4834_v34, 0.0 }
 0x186   :  { %v972_v57 = vmul.f32 %v4654_v61, %v4654_v61  ;;  %v4924_v61 = vld [vmem:[%s7734_s0 + $0x698] sm:$0xff] }
 0x187   :  { %v661_v27 = vadd.f32 %v660_v11, %v659_v18  ;;  %v1395_v11 = vsel %vm270_vm0, %v964_v53, 0.0  ;;  %v1394_v15 = vadd.f32 %v1393_v62, %v1392_v5  ;;  %v676_v18 = vsel %vm270_vm0, %v4844_v37, 0.0 }
 0x188   :  { %v973_v5 = vmul.f32 %v4664_v4, %v4664_v4  ;;  %v4934_v4 = vld [vmem:[%s7734_s0 + $0x6a0] sm:$0xff] }
 0x189   :  { %v663_v1 = vadd.f32 %v662_v23, %v661_v27  ;;  %v1397_v23 = vsel %vm270_vm0, %v965_v60, 0.0  ;;  %v1396_v26 = vadd.f32 %v1395_v11, %v1394_v15  ;;  %v678_v27 = vsel %vm270_vm0, %v4854_v40, 0.0 }
 0x18a   :  { %v974_v15 = vmul.f32 %v4674_v8, %v4674_v8  ;;  %v4944_v8 = vld [vmem:[%s7734_s0 + $0x6a8] sm:$0xff] }
 0x18b   :  { %v665_v41 = vadd.f32 %v664_v32, %v663_v1  ;;  %v1399_v32 = vsel %vm270_vm0, %v966_v9, 0.0  ;;  %v1398_v35 = vadd.f32 %v1397_v23, %v1396_v26  ;;  %v680_v1 = vsel %vm270_vm0, %v4864_v43, 0.0 }
 0x18c   :  { %v975_v26 = vmul.f32 %v4684_v12, %v4684_v12  ;;  %v4954_v12 = vld [vmem:[%s7734_s0 + $0x6b0] sm:$0xff] }
 0x18d   :  { %v667_v47 = vadd.f32 %v666_v36, %v665_v41  ;;  %v1401_v36 = vsel %vm270_vm0, %v967_v20, 0.0  ;;  %v1400_v39 = vadd.f32 %v1399_v32, %v1398_v35  ;;  %v682_v41 = vsel %vm270_vm0, %v4874_v46, 0.0 }
 0x18e   :  { %v976_v35 = vmul.f32 %v4694_v17, %v4694_v17  ;;  %v4964_v17 = vld [vmem:[%s7734_s0 + $0x6b8] sm:$0xff] }
 0x18f   :  { %v669_v56 = vadd.f32 %v668_v44, %v667_v47  ;;  %v1403_v44 = vsel %vm270_vm0, %v968_v29, 0.0  ;;  %v1402_v7 = vadd.f32 %v1401_v36, %v1400_v39  ;;  %v684_v47 = vsel %vm270_vm0, %v4884_v49, 0.0 }
 0x190   :  { %v977_v39 = vmul.f32 %v4704_v21, %v4704_v21  ;;  %v4974_v21 = vld [vmem:[%s7734_s0 + $0x6c0] sm:$0xff] }
 0x191   :  { %v671_v63 = vadd.f32 %v670_v51, %v669_v56  ;;  %v1405_v51 = vsel %vm270_vm0, %v969_v2, 0.0  ;;  %v1404_v54 = vadd.f32 %v1403_v44, %v1402_v7  ;;  %v686_v56 = vsel %vm270_vm0, %v4894_v52, 0.0 }
 0x192   :  { %v978_v7 = vmul.f32 %v4714_v30, %v4714_v30  ;;  %v4984_v30 = vld [vmem:[%s7734_s0 + $0x6c8] sm:$0xff] }
 0x193   :  { %v673_v14 = vadd.f32 %v672_v59, %v671_v63  ;;  %v1407_v59 = vsel %vm270_vm0, %v970_v42, 0.0  ;;  %v1406_v62 = vadd.f32 %v1405_v51, %v1404_v54  ;;  %v688_v63 = vsel %vm270_vm0, %v4904_v55, 0.0 }
 0x194   :  { %v979_v54 = vmul.f32 %v4724_v0, %v4724_v0  ;;  %v4994_v0 = vld [vmem:[%s7734_s0 + $0x6d0] sm:$0xff] }
 0x195   :  { %v675_v24 = vadd.f32 %v674_v6, %v673_v14  ;;  %v1409_v6 = vsel %vm270_vm0, %v971_v50, 0.0  ;;  %v1408_v11 = vadd.f32 %v1407_v59, %v1406_v62  ;;  %v690_v14 = vsel %vm270_vm0, %v4914_v58, 0.0 }
 0x196   :  { %v980_v62 = vmul.f32 %v4734_v3, %v4734_v3  ;;  %v5004_v3 = vld [vmem:[%s7734_s0 + $0x6d8] sm:$0xff] }
 0x197   :  { %v677_v33 = vadd.f32 %v676_v18, %v675_v24  ;;  %v1411_v18 = vsel %vm270_vm0, %v972_v57, 0.0  ;;  %v1410_v23 = vadd.f32 %v1409_v6, %v1408_v11  ;;  %v692_v24 = vsel %vm270_vm0, %v4924_v61, 0.0 }
 0x198   :  { %v981_v11 = vmul.f32 %v4744_v48, %v4744_v48  ;;  %v5014_v48 = vld [vmem:[%s7734_s0 + $0x6e0] sm:$0xff] }
 0x199   :  { %v679_v38 = vadd.f32 %v678_v27, %v677_v33  ;;  %v1413_v27 = vsel %vm270_vm0, %v973_v5, 0.0  ;;  %v1412_v32 = vadd.f32 %v1411_v18, %v1410_v23  ;;  %v694_v33 = vsel %vm270_vm0, %v4934_v4, 0.0 }
 0x19a   :  { %v982_v23 = vmul.f32 %v4754_v10, %v4754_v10  ;;  %v5024_v10 = vld [vmem:[%s7734_s0 + $0x6e8] sm:$0xff] }
 0x19b   :  { %v681_v45 = vadd.f32 %v680_v1, %v679_v38  ;;  %v1415_v1 = vsel %vm270_vm0, %v974_v15, 0.0  ;;  %v1414_v36 = vadd.f32 %v1413_v27, %v1412_v32  ;;  %v696_v38 = vsel %vm270_vm0, %v4944_v8, 0.0 }
 0x19c   :  { %v983_v32 = vmul.f32 %v4764_v13, %v4764_v13  ;;  %v5034_v13 = vld [vmem:[%s7734_s0 + $0x6f0] sm:$0xff] }
 0x19d   :  { %v683_v53 = vadd.f32 %v682_v41, %v681_v45  ;;  %v1417_v41 = vsel %vm270_vm0, %v975_v26, 0.0  ;;  %v1416_v44 = vadd.f32 %v1415_v1, %v1414_v36  ;;  %v698_v45 = vsel %vm270_vm0, %v4954_v12, 0.0 }
 0x19e   :  { %v984_v36 = vmul.f32 %v4774_v16, %v4774_v16  ;;  %v5044_v16 = vld [vmem:[%s7734_s0 + $0x6f8] sm:$0xff] }
 0x19f   :  { %v685_v60 = vadd.f32 %v684_v47, %v683_v53  ;;  %v1419_v47 = vsel %vm270_vm0, %v976_v35, 0.0  ;;  %v1418_v51 = vadd.f32 %v1417_v41, %v1416_v44  ;;  %v700_v53 = vsel %vm270_vm0, %v4964_v17, 0.0 }
 0x1a0   :  { %v985_v44 = vmul.f32 %v4784_v19, %v4784_v19  ;;  %v5054_v19 = vld [vmem:[%s7734_s0 + $0x700] sm:$0xff] }
 0x1a1   :  { %v687_v9 = vadd.f32 %v686_v56, %v685_v60  ;;  %v1421_v56 = vsel %vm270_vm0, %v977_v39, 0.0  ;;  %v1420_v59 = vadd.f32 %v1419_v47, %v1418_v51  ;;  %v702_v60 = vsel %vm270_vm0, %v4974_v21, 0.0 }
 0x1a2   :  { %v986_v51 = vmul.f32 %v4794_v22, %v4794_v22  ;;  %v5064_v22 = vld [vmem:[%s7734_s0 + $0x708] sm:$0xff] }
 0x1a3   :  { %v689_v20 = vadd.f32 %v688_v63, %v687_v9  ;;  %v1423_v63 = vsel %vm270_vm0, %v978_v7, 0.0  ;;  %v1422_v6 = vadd.f32 %v1421_v56, %v1420_v59  ;;  %v704_v9 = vsel %vm270_vm0, %v4984_v30, 0.0 }
 0x1a4   :  { %v987_v59 = vmul.f32 %v4804_v25, %v4804_v25  ;;  %v5074_v25 = vld [vmem:[%s7734_s0 + $0x710] sm:$0xff] }
 0x1a5   :  { %v691_v29 = vadd.f32 %v690_v14, %v689_v20  ;;  %v1425_v14 = vsel %vm270_vm0, %v979_v54, 0.0  ;;  %v1424_v18 = vadd.f32 %v1423_v63, %v1422_v6  ;;  %v706_v20 = vsel %vm270_vm0, %v4994_v0, 0.0 }
 0x1a6   :  { %v988_v6 = vmul.f32 %v4814_v28, %v4814_v28  ;;  %v5084_v28 = vld [vmem:[%s7734_s0 + $0x718] sm:$0xff] }
 0x1a7   :  { %v693_v2 = vadd.f32 %v692_v24, %v691_v29  ;;  %v1427_v24 = vsel %vm270_vm0, %v980_v62, 0.0  ;;  %v1426_v27 = vadd.f32 %v1425_v14, %v1424_v18  ;;  %v708_v29 = vsel %vm270_vm0, %v5004_v3, 0.0 }
 0x1a8   :  { %v989_v18 = vmul.f32 %v4824_v31, %v4824_v31  ;;  %v5094_v31 = vld [vmem:[%s7734_s0 + $0x720] sm:$0xff] }
 0x1a9   :  { %v695_v42 = vadd.f32 %v694_v33, %v693_v2  ;;  %v1429_v33 = vsel %vm270_vm0, %v981_v11, 0.0  ;;  %v1428_v1 = vadd.f32 %v1427_v24, %v1426_v27  ;;  %v710_v2 = vsel %vm270_vm0, %v5014_v48, 0.0 }
 0x1aa   :  { %v990_v27 = vmul.f32 %v4834_v34, %v4834_v34  ;;  %v5104_v34 = vld [vmem:[%s7734_s0 + $0x728] sm:$0xff] }
 0x1ab   :  { %v697_v50 = vadd.f32 %v696_v38, %v695_v42  ;;  %v1431_v38 = vsel %vm270_vm0, %v982_v23, 0.0  ;;  %v1430_v41 = vadd.f32 %v1429_v33, %v1428_v1  ;;  %v712_v42 = vsel %vm270_vm0, %v5024_v10, 0.0 }
 0x1ac   :  { %v991_v1 = vmul.f32 %v4844_v37, %v4844_v37  ;;  %v5114_v37 = vld [vmem:[%s7734_s0 + $0x730] sm:$0xff] }
 0x1ad   :  { %v699_v57 = vadd.f32 %v698_v45, %v697_v50  ;;  %v1433_v45 = vsel %vm270_vm0, %v983_v32, 0.0  ;;  %v1432_v47 = vadd.f32 %v1431_v38, %v1430_v41  ;;  %v714_v50 = vsel %vm270_vm0, %v5034_v13, 0.0 }
 0x1ae   :  { %v992_v41 = vmul.f32 %v4854_v40, %v4854_v40  ;;  %v5124_v40 = vld [vmem:[%s7734_s0 + $0x738] sm:$0xff] }
 0x1af   :  { %v701_v5 = vadd.f32 %v700_v53, %v699_v57  ;;  %v1435_v53 = vsel %vm270_vm0, %v984_v36, 0.0  ;;  %v1434_v56 = vadd.f32 %v1433_v45, %v1432_v47  ;;  %v716_v57 = vsel %vm270_vm0, %v5044_v16, 0.0 }
 0x1b0   :  { %v993_v47 = vmul.f32 %v4864_v43, %v4864_v43  ;;  %v5134_v43 = vld [vmem:[%s7734_s0 + $0x740] sm:$0xff] }
 0x1b1   :  { %v703_v15 = vadd.f32 %v702_v60, %v701_v5  ;;  %v1437_v60 = vsel %vm270_vm0, %v985_v44, 0.0  ;;  %v1436_v63 = vadd.f32 %v1435_v53, %v1434_v56  ;;  %v718_v5 = vsel %vm270_vm0, %v5054_v19, 0.0 }
 0x1b2   :  { %v994_v56 = vmul.f32 %v4874_v46, %v4874_v46  ;;  %v5144_v46 = vld [vmem:[%s7734_s0 + $0x748] sm:$0xff] }
 0x1b3   :  { %v705_v26 = vadd.f32 %v704_v9, %v703_v15  ;;  %v1439_v9 = vsel %vm270_vm0, %v986_v51, 0.0  ;;  %v1438_v14 = vadd.f32 %v1437_v60, %v1436_v63  ;;  %v720_v15 = vsel %vm270_vm0, %v5064_v22, 0.0 }
 0x1b4   :  { %v995_v63 = vmul.f32 %v4884_v49, %v4884_v49  ;;  %v5154_v49 = vld [vmem:[%s7734_s0 + $0x750] sm:$0xff] }
 0x1b5   :  { %v707_v35 = vadd.f32 %v706_v20, %v705_v26  ;;  %v1441_v20 = vsel %vm270_vm0, %v987_v59, 0.0  ;;  %v1440_v24 = vadd.f32 %v1439_v9, %v1438_v14  ;;  %v722_v26 = vsel %vm270_vm0, %v5074_v25, 0.0 }
 0x1b6   :  { %v996_v14 = vmul.f32 %v4894_v52, %v4894_v52  ;;  %v5164_v52 = vld [vmem:[%s7734_s0 + $0x758] sm:$0xff] }
 0x1b7   :  { %v709_v39 = vadd.f32 %v708_v29, %v707_v35  ;;  %v1443_v29 = vsel %vm270_vm0, %v988_v6, 0.0  ;;  %v1442_v33 = vadd.f32 %v1441_v20, %v1440_v24  ;;  %v724_v35 = vsel %vm270_vm0, %v5084_v28, 0.0 }
 0x1b8   :  { %v997_v24 = vmul.f32 %v4904_v55, %v4904_v55  ;;  %v5174_v55 = vld [vmem:[%s7734_s0 + $0x760] sm:$0xff] }
 0x1b9   :  { %v711_v7 = vadd.f32 %v710_v2, %v709_v39  ;;  %v1445_v2 = vsel %vm270_vm0, %v989_v18, 0.0  ;;  %v1444_v38 = vadd.f32 %v1443_v29, %v1442_v33  ;;  %v726_v39 = vsel %vm270_vm0, %v5094_v31, 0.0 }
 0x1ba   :  { %v998_v33 = vmul.f32 %v4914_v58, %v4914_v58  ;;  %v5184_v58 = vld [vmem:[%s7734_s0 + $0x768] sm:$0xff] }
 0x1bb   :  { %v713_v54 = vadd.f32 %v712_v42, %v711_v7  ;;  %v1447_v42 = vsel %vm270_vm0, %v990_v27, 0.0  ;;  %v1446_v45 = vadd.f32 %v1445_v2, %v1444_v38  ;;  %v728_v7 = vsel %vm270_vm0, %v5104_v34, 0.0 }
 0x1bc   :  { %v999_v38 = vmul.f32 %v4924_v61, %v4924_v61  ;;  %v5194_v61 = vld [vmem:[%s7734_s0 + $0x770] sm:$0xff] }
 0x1bd   :  { %v715_v62 = vadd.f32 %v714_v50, %v713_v54  ;;  %v1449_v50 = vsel %vm270_vm0, %v991_v1, 0.0  ;;  %v1448_v53 = vadd.f32 %v1447_v42, %v1446_v45  ;;  %v730_v54 = vsel %vm270_vm0, %v5114_v37, 0.0 }
 0x1be   :  { %v1000_v45 = vmul.f32 %v4934_v4, %v4934_v4  ;;  %v5204_v4 = vld [vmem:[%s7734_s0 + $0x778] sm:$0xff] }
 0x1bf   :  { %v717_v11 = vadd.f32 %v716_v57, %v715_v62  ;;  %v1451_v57 = vsel %vm270_vm0, %v992_v41, 0.0  ;;  %v1450_v60 = vadd.f32 %v1449_v50, %v1448_v53  ;;  %v732_v62 = vsel %vm270_vm0, %v5124_v40, 0.0 }
 0x1c0   :  { %v1001_v53 = vmul.f32 %v4944_v8, %v4944_v8  ;;  %v748_v8 = vsel %vm270_vm0, %v5204_v4, 0.0 }
 0x1c1   :  { %v719_v23 = vadd.f32 %v718_v5, %v717_v11  ;;  %v1453_v5 = vsel %vm270_vm0, %v993_v47, 0.0  ;;  %v1452_v9 = vadd.f32 %v1451_v57, %v1450_v60  ;;  %v734_v11 = vsel %vm270_vm0, %v5134_v43, 0.0 }
 0x1c2   :  { %v1002_v60 = vmul.f32 %v4954_v12, %v4954_v12  ;;  %v1004_v12 = vmul.f32 %v4974_v21, %v4974_v21  ;;  %v1006_v21 = vmul.f32 %v4994_v0, %v4994_v0  ;;  %v1008_v0 = vmul.f32 %v5014_v48, %v5014_v48 }
 0x1c3   :  { %v721_v32 = vadd.f32 %v720_v15, %v719_v23  ;;  %v1455_v15 = vsel %vm270_vm0, %v994_v56, 0.0  ;;  %v1454_v20 = vadd.f32 %v1453_v5, %v1452_v9  ;;  %v736_v23 = vsel %vm270_vm0, %v5144_v46, 0.0 }
 0x1c4   :  { %v1469_v9 = vsel %vm270_vm0, %v1001_v53, 0.0  ;;  %v1010_v48 = vmul.f32 %v5034_v13, %v5034_v13  ;;  %v1012_v13 = vmul.f32 %v5054_v19, %v5054_v19  ;;  %v1014_v19 = vmul.f32 %v5074_v25, %v5074_v25 }
 0x1c5   :  { %v723_v36 = vadd.f32 %v722_v26, %v721_v32  ;;  %v1457_v26 = vsel %vm270_vm0, %v995_v63, 0.0  ;;  %v1456_v29 = vadd.f32 %v1455_v15, %v1454_v20  ;;  %v738_v32 = vsel %vm270_vm0, %v5154_v49, 0.0 }
 0x1c6   :  { %v1016_v25 = vmul.f32 %v5094_v31, %v5094_v31  ;;  %v1018_v31 = vmul.f32 %v5114_v37, %v5114_v37  ;;  %v1020_v37 = vmul.f32 %v5134_v43, %v5134_v43  ;;  %v1022_v43 = vmul.f32 %v5154_v49, %v5154_v49 }
 0x1c7   :  { %v725_v44 = vadd.f32 %v724_v35, %v723_v36  ;;  %v1459_v35 = vsel %vm270_vm0, %v996_v14, 0.0  ;;  %v1458_v2 = vadd.f32 %v1457_v26, %v1456_v29  ;;  %v740_v36 = vsel %vm270_vm0, %v5164_v52, 0.0 }
 0x1c8   :  { %v1024_v49 = vmul.f32 %v5174_v55, %v5174_v55 }
 0x1c9   :  { %v727_v51 = vadd.f32 %v726_v39, %v725_v44  ;;  %v1461_v39 = vsel %vm270_vm0, %v997_v24, 0.0  ;;  %v1460_v42 = vadd.f32 %v1459_v35, %v1458_v2  ;;  %v742_v44 = vsel %vm270_vm0, %v5174_v55, 0.0 }
 0x1ca   :  { %v1515_v55 = vsel %vm270_vm0, %v1024_v49, 0.0 }
 0x1cb   :  { %v729_v59 = vadd.f32 %v728_v7, %v727_v51  ;;  %v1463_v7 = vsel %vm270_vm0, %v998_v33, 0.0  ;;  %v1462_v50 = vadd.f32 %v1461_v39, %v1460_v42  ;;  %v744_v51 = vsel %vm270_vm0, %v5184_v58, 0.0 }
 0x1cc   :  { %v1479_v39 = vsel %vm270_vm0, %v1006_v21, 0.0 }
 0x1cd   :  { %v731_v6 = vadd.f32 %v730_v54, %v729_v59  ;;  %v1465_v54 = vsel %vm270_vm0, %v999_v38, 0.0  ;;  %v1464_v57 = vadd.f32 %v1463_v7, %v1462_v50  ;;  %v746_v59 = vsel %vm270_vm0, %v5194_v61, 0.0  ;;  %v5258_v7 = vld [vmem:[%s7734_s0 + $0x798] sm:$0xff] }
 0x1ce   :  { %v1483_v50 = vsel %vm270_vm0, %v1008_v0, 0.0 }
 0x1cf   :  { %v733_v18 = vadd.f32 %v732_v62, %v731_v6  ;;  %v1467_v62 = vsel %vm270_vm0, %v1000_v45, 0.0  ;;  %v1466_v5 = vadd.f32 %v1465_v54, %v1464_v57  ;;  %v1003_v6 = vmul.f32 %v4964_v17, %v4964_v17  ;;  %v5271_v57 = vld [vmem:[%s7734_s0 + $0x7a0] sm:$0xff] }
 0x1d0   :  { %v1005_v17 = vmul.f32 %v4984_v30, %v4984_v30  ;;  %v1007_v30 = vmul.f32 %v5004_v3, %v5004_v3  ;;  %v1009_v3 = vmul.f32 %v5024_v10, %v5024_v10  ;;  %v756_v54 = vsel %vm270_vm0, %v5258_v7, 0.0 }
 0x1d1   :  { %v735_v27 = vadd.f32 %v734_v11, %v733_v18  ;;  %v5219_v11 = vld [vmem:[%s7734_s0 + $0x780] sm:$0xff]  ;;  %v1468_v15 = vadd.f32 %v1467_v62, %v1466_v5  ;;  %v1471_v18 = vsel %vm270_vm0, %v1002_v60, 0.0  ;;  %v1473_v26 = vsel %vm270_vm0, %v1003_v6, 0.0  ;;  %v5284_v6 = vld [vmem:[%s7734_s0 + $0x7a8] sm:$0xff] }
 0x1d2   :  { %v750_v24 = vsel %vm270_vm0, %v5219_v11, 0.0  ;;  %v1477_v2 = vsel %vm270_vm0, %v1005_v17, 0.0  ;;  %v1481_v45 = vsel %vm270_vm0, %v1007_v30, 0.0  ;;  %v1011_v10 = vmul.f32 %v5044_v16, %v5044_v16 }
 0x1d3   :  { %v737_v1 = vadd.f32 %v736_v23, %v735_v27  ;;  %v1470_v23 = vadd.f32 %v1469_v9, %v1468_v15  ;;  %v5232_v27 = vld [vmem:[%s7734_s0 + $0x788] sm:$0xff]  ;;  %v1487_v60 = vsel %vm270_vm0, %v1010_v48, 0.0  ;;  %v758_v5 = vsel %vm270_vm0, %v5271_v57, 0.0 }
 0x1d4   :  { %v1013_v16 = vmul.f32 %v5064_v22, %v5064_v22  ;;  %v1015_v22 = vmul.f32 %v5084_v28, %v5084_v28  ;;  %v1495_v17 = vsel %vm270_vm0, %v1014_v19, 0.0  ;;  %v1017_v28 = vmul.f32 %v5104_v34, %v5104_v34  ;;  %v5336_v48 = vld [vmem:[%s7734_s0 + $0x7c8] sm:$0xff] }
 0x1d5   :  { %v739_v41 = vadd.f32 %v738_v32, %v737_v1  ;;  %v1472_v29 = vadd.f32 %v1471_v18, %v1470_v23  ;;  %v1475_v32 = vsel %vm270_vm0, %v1004_v12, 0.0  ;;  %v752_v1 = vsel %vm270_vm0, %v5232_v27, 0.0  ;;  %v5297_v23 = vld [vmem:[%s7734_s0 + $0x7b0] sm:$0xff] }
 0x1d6   :  { %v760_v18 = vsel %vm270_vm0, %v5284_v6, 0.0  ;;  %v762_v21 = vsel %vm270_vm0, %v5297_v23, 0.0  ;;  %v1019_v34 = vmul.f32 %v5124_v40, %v5124_v40  ;;  %v1501_v0 = vsel %vm270_vm0, %v1017_v28, 0.0 }
 0x1d7   :  { %v741_v47 = vadd.f32 %v740_v36, %v739_v41  ;;  %v1474_v35 = vadd.f32 %v1473_v26, %v1472_v29  ;;  %v5245_v36 = vld [vmem:[%s7734_s0 + $0x790] sm:$0xff]  ;;  %v1021_v40 = vmul.f32 %v5144_v46, %v5144_v46  ;;  %v1023_v46 = vmul.f32 %v5164_v52, %v5164_v52 }
 0x1d8   :  { %v1026_v19 = vmul.f32 %v5194_v61, %v5194_v61 }
 0x1d9   :  { %v743_v56 = vadd.f32 %v742_v44, %v741_v47  ;;  %v1476_v38 = vadd.f32 %v1475_v32, %v1474_v35  ;;  %v754_v44 = vsel %vm270_vm0, %v5245_v36, 0.0  ;;  %v1497_v32 = vsel %vm270_vm0, %v1015_v22, 0.0  ;;  %v266_v22 = vld [vmem:[%s7734_s0 + $0x7e0] sm:$0xff] }
 0x1da   :  { %v1513_v52 = vsel %vm270_vm0, %v1023_v46, 0.0  ;;  %v1519_v61 = vsel %vm270_vm0, %v1026_v19, 0.0 }
 0x1db   :  { %v745_v63 = vadd.f32 %v744_v51, %v743_v56  ;;  %v1478_v42 = vadd.f32 %v1477_v2, %v1476_v38  ;;  %v1485_v56 = vsel %vm270_vm0, %v1009_v3, 0.0 }
 0x1dd   :  { %v747_v14 = vadd.f32 %v746_v59, %v745_v63  ;;  %v1480_v47 = vadd.f32 %v1479_v39, %v1478_v42  ;;  %v5323_v39 = vld [vmem:[%s7734_s0 + $0x7c0] sm:$0xff]  ;;  %v1503_v42 = vsel %vm270_vm0, %v1018_v31, 0.0 }
 0x1df   :  { %v749_v20 = vadd.f32 %v748_v8, %v747_v14  ;;  %v1482_v53 = vadd.f32 %v1481_v45, %v1480_v47  ;;  %v1489_v8 = vsel %vm270_vm0, %v1011_v10, 0.0  ;;  %v1491_v14 = vsel %vm270_vm0, %v1012_v13, 0.0 }
 0x1e0   :  { %v766_v45 = vsel %vm270_vm0, %v5323_v39, 0.0  ;;  %v1505_v47 = vsel %vm270_vm0, %v1019_v34, 0.0  ;;  %v768_v10 = vsel %vm270_vm0, %v5336_v48, 0.0  ;;  %v1032_v34 = vmul.f32 %v5271_v57, %v5271_v57 }
 0x1e1   :  { %v751_v33 = vadd.f32 %v750_v24, %v749_v20  ;;  %v1484_v59 = vadd.f32 %v1483_v50, %v1482_v53  ;;  %v1493_v20 = vsel %vm270_vm0, %v1013_v16, 0.0  ;;  %v1025_v16 = vmul.f32 %v5184_v58, %v5184_v58 }
 0x1e2   :  { %v1531_v57 = vsel %vm270_vm0, %v1032_v34, 0.0  ;;  %v1573_v34 = vlaneseq }
 0x1e3   :  { %v753_v41 = vadd.f32 %v752_v1, %v751_v33  ;;  %v1486_v63 = vadd.f32 %v1485_v56, %v1484_v59  ;;  %v5310_v33 = vld [vmem:[%s7734_s0 + $0x7b8] sm:$0xff]  ;;  %v1499_v1 = vsel %vm270_vm0, %v1016_v25, 0.0  ;;  %v1509_v56 = vsel %vm270_vm0, %v1021_v40, 0.0  ;;  %v264_v59 = vld [vmem:[%s7734_s0 + $0x7d0] sm:$0xff] }
 0x1e4   :  { %v764_v38 = vsel %vm270_vm0, %v5310_v33, 0.0  ;;  %v1517_v58 = vsel %vm270_vm0, %v1025_v16, 0.0  ;;  %v1038_v49 = vmul.f32 %v264_v59, %v264_v59 }
 0x1e5   :  { %v755_v51 = vadd.f32 %v754_v44, %v753_v41  ;;  %v1488_v9 = vadd.f32 %v1487_v60, %v1486_v63  ;;  %v1511_v60 = vsel %vm270_vm0, %v1022_v43, 0.0  ;;  %v1035_v43 = vmul.f32 %v5310_v33, %v5310_v33 }
 0x1e7   :  { %v757_v62 = vadd.f32 %v756_v54, %v755_v51  ;;  %v1490_v12 = vadd.f32 %v1489_v8, %v1488_v9  ;;  %v1507_v51 = vsel %vm270_vm0, %v1020_v37, 0.0  ;;  %v265_v8 = vld [vmem:[%s7734_s0 + $0x7d8] sm:$0xff] }
 0x1e9   :  { %v759_v15 = vadd.f32 %v758_v5, %v757_v62  ;;  %v1492_v24 = vadd.f32 %v1491_v14, %v1490_v12  ;;  %v770_v5 = vsel %vm270_vm0, %v264_v59, 0.0  ;;  %v772_v12 = vsel %vm270_vm0, %v265_v8, 0.0 }
 0x1eb   :  { %v761_v26 = vadd.f32 %v760_v18, %v759_v15  ;;  %v1494_v29 = vadd.f32 %v1493_v20, %v1492_v24  ;;  %v1027_v18 = vmul.f32 %v5204_v4, %v5204_v4  ;;  %v1028_v24 = vmul.f32 %v5219_v11, %v5219_v11 }
 0x1ed   :  { %v1496_v35 = vadd.f32 %v1495_v17, %v1494_v29  ;;  %v763_v30 = vadd.f32 %v762_v21, %v761_v26  ;;  %v774_v26 = vsel %vm270_vm0, %v266_v22, 0.0  ;;  %v1029_v29 = vmul.f32 %v5232_v27, %v5232_v27  ;;  %v267_v21 = vld [vmem:[%s7734_s0 + $0x7e8] sm:$0xff] }
 0x1ee   :  { %v1521_v4 = vsel %vm270_vm0, %v1027_v18, 0.0  ;;  %v1523_v11 = vsel %vm270_vm0, %v1028_v24, 0.0 }
 0x1ef   :  { %v1498_v2 = vadd.f32 %v1497_v32, %v1496_v35  ;;  %v765_v44 = vadd.f32 %v764_v38, %v763_v30  ;;  %v1030_v32 = vmul.f32 %v5245_v36, %v5245_v36  ;;  %v1031_v30 = vmul.f32 %v5258_v7, %v5258_v7 }
 0x1f0   :  { %v1525_v27 = vsel %vm270_vm0, %v1029_v29, 0.0 }
 0x1f1   :  { %v1500_v41 = vadd.f32 %v1499_v1, %v1498_v2  ;;  %v767_v53 = vadd.f32 %v766_v45, %v765_v44  ;;  %v776_v1 = vsel %vm270_vm0, %v267_v21, 0.0  ;;  %v268_v2 = vld [vmem:[%s7734_s0 + $0x7f0] sm:$0xff]  ;;  %v1527_v36 = vsel %vm270_vm0, %v1030_v32, 0.0  ;;  %v269_v44 = vld [vmem:[%s7734_s0 + $0x7f8] sm:$0xff] }
 0x1f2   :  { %v778_v37 = vsel %vm270_vm0, %v268_v2, 0.0  ;;  %v1529_v7 = vsel %vm270_vm0, %v1031_v30, 0.0  ;;  %v1034_v45 = vmul.f32 %v5297_v23, %v5297_v23  ;;  %v1037_v23 = vmul.f32 %v5336_v48, %v5336_v48 }
 0x1f3   :  { %v1502_v3 = vadd.f32 %v1501_v0, %v1500_v41  ;;  %v769_v62 = vadd.f32 %v768_v10, %v767_v53  ;;  %v1036_v53 = vmul.f32 %v5323_v39, %v5323_v39  ;;  %v1040_v39 = vmul.f32 %v266_v22, %v266_v22 }
 0x1f5   :  { %v1504_v50 = vadd.f32 %v1503_v42, %v1502_v3  ;;  %v771_v14 = vadd.f32 %v770_v5, %v769_v62  ;;  %v1033_v42 = vmul.f32 %v5284_v6, %v5284_v6  ;;  %v1541_v5 = vsel %vm270_vm0, %v1037_v23, 0.0 }
 0x1f6   :  { %v1547_v59 = vsel %vm270_vm0, %v1040_v39, 0.0  ;;  %v2624_v39 = vld [vmem:[%s7734_s0 + $0x50] sm:$0xff] }
 0x1f7   :  { %v1506_v54 = vadd.f32 %v1505_v47, %v1504_v50  ;;  %v773_v25 = vadd.f32 %v772_v12, %v771_v14  ;;  %v780_v50 = vsel %vm270_vm0, %v269_v44, 0.0  ;;  %v1533_v6 = vsel %vm270_vm0, %v1033_v42, 0.0 }
 0x1f9   :  { %v1508_v13 = vadd.f32 %v1507_v51, %v1506_v54  ;;  %v775_v35 = vadd.f32 %v774_v26, %v773_v25  ;;  %v1535_v54 = vsel %vm270_vm0, %v1034_v45, 0.0 }
 0x1fb   :  { %v1510_v63 = vadd.f32 %v1509_v56, %v1508_v13  ;;  %v777_v0 = vadd.f32 %v776_v1, %v775_v35  ;;  %v1537_v56 = vsel %vm270_vm0, %v1035_v43, 0.0  ;;  %v2616_v43 = vld [vmem:[%s7734_s0 + $0x10] sm:$0xff] }
 0x1fd   :  { %v1512_v9 = vadd.f32 %v1511_v60, %v1510_v63  ;;  %v779_v40 = vadd.f32 %v778_v37, %v777_v0  ;;  %v1539_v60 = vsel %vm270_vm0, %v1036_v53, 0.0  ;;  %v1039_v63 = vmul.f32 %v265_v8, %v265_v8  ;;  %v1565_v0 = vld [vmem:[%s7735_s1] sm:$0x1] }
 0x1ff   :  { %v1514_v15 = vadd.f32 %v1513_v52, %v1512_v9  ;;  %v781_v10 = vadd.f32 %v780_v50, %v779_v40  ;;  %v1543_v52 = vsel %vm270_vm0, %v1038_v49, 0.0  ;;  %v1545_v48 = vsel %vm270_vm0, %v1039_v63, 0.0 }
 0x201   :  { %v1516_v20 = vadd.f32 %v1515_v55, %v1514_v15  ;;  %v782_v33 = vrot.slane %v781_v10, 4  ;;  %v1041_v55 = vmul.f32 %v267_v21, %v267_v21  ;;  %v1042_v15 = vmul.f32 %v268_v2, %v268_v2 }
 0x203   :  { %v1518_v17 = vadd.f32 %v1517_v58, %v1516_v20  ;;  %v783_v9 = vadd.f32 %v782_v33, %v781_v10  ;;  %v1043_v58 = vmul.f32 %v269_v44, %v269_v44  ;;  %v1549_v8 = vsel %vm270_vm0, %v1041_v55, 0.0  ;;  %v2626_v55 = vld [vmem:[%s7734_s0 + $0x60] sm:$0xff] }
 0x204   :  { %v1551_v24 = vsel %vm270_vm0, %v1042_v15, 0.0 }
 0x205   :  { %v1520_v28 = vadd.f32 %v1519_v61, %v1518_v17  ;;  %v784_v12 = vrot.slane %v783_v9, 2  ;;  %v1553_v25 = vsel %vm270_vm0, %v1043_v58, 0.0 }
 0x207   :  { %v1522_v31 = vadd.f32 %v1521_v4, %v1520_v28  ;;  %v785_v22 = vadd.f32 %v784_v12, %v783_v9  ;;  %v2625_v9 = vld [vmem:[%s7734_s0 + $0x58] sm:$0xff] }
 0x209   :  { %v1524_v38 = vadd.f32 %v1523_v11, %v1522_v31  ;;  %v786_v26 = vrot.slane %v785_v22, 1 }
 0x20b   :  { %v1526_v41 = vadd.f32 %v1525_v27, %v1524_v38  ;;  %v787_v21 = vadd.f32 %v786_v26, %v785_v22 }
 0x20d   :  { %v1528_v3 = vadd.f32 %v1527_v36, %v1526_v41  ;;  %v1561_v35 = vmul.f32 0.00048828125, %v787_v21  ;;  %v1574_v36 = vshrl.u32 %v1573_v34, 7 }
 0x20f   :  { %v1530_v47 = vadd.f32 %v1529_v7, %v1528_v3  ;;  %v1563_v30 = vmul.f32 %v1561_v35, %v1561_v35  ;;  %v1575_v41 = vsub.s32 0, %v1574_v36  ;;  %v1569_v7 = vld [vmem:[%s7736_s2] sm:$0x1] }
 0x211   :  { %v1532_v51 = vadd.f32 %v1531_v57, %v1530_v47  ;;  %v2614_v57 = vld [vmem:[%s7734_s0] sm:$0xff]  ;;  %v2615_v47 = vld [vmem:[%s7734_s0 + $0x8] sm:$0xff] }
 0x213   :  { %v1534_v46 = vadd.f32 %v1533_v6, %v1532_v51  ;;  %v2617_v51 = vld [vmem:[%s7734_s0 + $0x18] sm:$0xff] }
 0x215   :  { %v1536_v13 = vadd.f32 %v1535_v54, %v1534_v46  ;;  %v2618_v54 = vld [vmem:[%s7734_s0 + $0x20] sm:$0xff]  ;;  %v2619_v46 = vld [vmem:[%s7734_s0 + $0x28] sm:$0xff] }
 0x217   :  { %v1538_v62 = vadd.f32 %v1537_v56, %v1536_v13  ;;  %v2620_v56 = vld [vmem:[%s7734_s0 + $0x30] sm:$0xff] }
 0x219   :  { %v1540_v16 = vadd.f32 %v1539_v60, %v1538_v62  ;;  %v2621_v60 = vld [vmem:[%s7734_s0 + $0x38] sm:$0xff]  ;;  %v2622_v62 = vld [vmem:[%s7734_s0 + $0x40] sm:$0xff] }
 0x21b   :  { %v1542_v19 = vadd.f32 %v1541_v5, %v1540_v16  ;;  %v2623_v5 = vld [vmem:[%s7734_s0 + $0x48] sm:$0xff] }
 0x21d   :  { %v1544_v14 = vadd.f32 %v1543_v52, %v1542_v19 }
 0x21f   :  { %v1546_v18 = vadd.f32 %v1545_v48, %v1544_v14  ;;  %v2627_v14 = vld [vmem:[%s7734_s0 + $0x68] sm:$0xff] }
 0x221   :  { %v1548_v20 = vadd.f32 %v1547_v59, %v1546_v18 }
 0x223   :  { %v1550_v61 = vadd.f32 %v1549_v8, %v1548_v20 }
 0x225   :  { %v1552_v17 = vadd.f32 %v1551_v24, %v1550_v61 }
 0x227   :  { %v1554_v29 = vadd.f32 %v1553_v25, %v1552_v17 }
 0x229   :  { %v1555_v4 = vrot.slane %v1554_v29, 4 }
 0x22b   :  { %v1556_v28 = vadd.f32 %v1555_v4, %v1554_v29 }
 0x22d   :  { %v1557_v32 = vrot.slane %v1556_v28, 2 }
 0x22f   :  { %v1558_v11 = vadd.f32 %v1557_v32, %v1556_v28 }
 0x231   :  { %v1559_v31 = vrot.slane %v1558_v11, 1 }
 0x233   :  { %v1560_v1 = vadd.f32 %v1559_v31, %v1558_v11 }
 0x235   :  { %v1562_v27 = vmul.f32 0.00048828125, %v1560_v1 }
 0x237   :  { %v1564_v2 = vsub.f32 %v1562_v27, %v1563_v30  ;;  %v2628_v27 = vld [vmem:[%s7734_s0 + $0x70] sm:$0xff] }
 0x239   :  { %v1566_v38 = vadd.f32 1e-05, %v1564_v2 }
 0x23b   :  { %2612 = vrsqrt.f32 %v1566_v38  ;;  %v2629_v38 = vld [vmem:[%s7734_s0 + $0x78] sm:$0xff] }
 0x245   :  { %v2613_v37 = vpop.eup %2612 }
 0x246   :  { %v1568_v42 = vmul.f32 %v2613_v37, %v1565_v0 }
 0x248   :  { %v1570_v44 = vmul.f32 %v1568_v42, %v1561_v35  ;;  %v5426_v3 = vrot.slane %v1568_v42, %v1575_v41 }
 0x24a   :  { %v1571_v45 = vsub.f32 %v1569_v7, %v1570_v44  ;;  %v1578_v40 = vmul.f32 %v2614_v57, %v5426_v3  ;;  %v1579_v50 = vmul.f32 %v2615_v47, %v5426_v3  ;;  %v1580_v6 = vmul.f32 %v2616_v43, %v5426_v3  ;;  %v2630_v57 = vld [vmem:[%s7734_s0 + $0x80] sm:$0xff]  ;;  %v2631_v47 = vld [vmem:[%s7734_s0 + $0x88] sm:$0xff]  ;;  %v2632_v43 = vld [vmem:[%s7734_s0 + $0x90] sm:$0xff] }
 0x24b   :  { %v1581_v53 = vmul.f32 %v2617_v51, %v5426_v3  ;;  %v1582_v10 = vmul.f32 %v2618_v54, %v5426_v3  ;;  %v1583_v23 = vmul.f32 %v2619_v46, %v5426_v3  ;;  %v1584_v13 = vmul.f32 %v2620_v56, %v5426_v3  ;;  %v2633_v51 = vld [vmem:[%s7734_s0 + $0x98] sm:$0xff]  ;;  %v2634_v46 = vld [vmem:[%s7734_s0 + $0xa0] sm:$0xff]  ;;  %v2635_v56 = vld [vmem:[%s7734_s0 + $0xa8] sm:$0xff] }
 0x24c   :  { %v5456_v49 = vrot.slane %v1571_v45, %v1575_v41  ;;  %v1585_v33 = vmul.f32 %v2621_v60, %v5426_v3  ;;  %v1586_v63 = vmul.f32 %v2622_v62, %v5426_v3  ;;  %v1587_v16 = vmul.f32 %v2623_v5, %v5426_v3 }
 0x24d   :  { %v1588_v52 = vmul.f32 %v2624_v39, %v5426_v3  ;;  %v1589_v19 = vmul.f32 %v2625_v9, %v5426_v3  ;;  %v1590_v48 = vmul.f32 %v2626_v55, %v5426_v3  ;;  %v1591_v15 = vmul.f32 %v2627_v14, %v5426_v3  ;;  %v2636_v39 = vld [vmem:[%s7734_s0 + $0xb0] sm:$0xff]  ;;  %v2637_v9 = vld [vmem:[%s7734_s0 + $0xb8] sm:$0xff] }
 0x24e   :  { %v1840_v59 = vadd.f32 %v5456_v49, %v1578_v40  ;;  %v1841_v12 = vadd.f32 %v5456_v49, %v1579_v50  ;;  %v1842_v18 = vadd.f32 %v5456_v49, %v1580_v6  ;;  %v1843_v58 = vadd.f32 %v5456_v49, %v1581_v53 }
 0x24f   :  { %v1844_v8 = vadd.f32 %v5456_v49, %v1582_v10  ;;  %v1845_v20 = vadd.f32 %v5456_v49, %v1583_v23  ;;  %v1846_v24 = vadd.f32 %v5456_v49, %v1584_v13  ;;  %v1847_v22 = vadd.f32 %v5456_v49, %v1585_v33 }
 0x250   :  { %v2096_v61 = vmax.f32 %v1840_v59, 0.0  ;;  %v2097_v25 = vmax.f32 %v1841_v12, 0.0  ;;  %v2098_v17 = vmax.f32 %v1842_v18, 0.0  ;;  %v2099_v26 = vmax.f32 %v1843_v58, 0.0 }
 0x251   :  { %v2100_v29 = vmax.f32 %v1844_v8, 0.0  ;;  %v2101_v4 = vmax.f32 %v1845_v20, 0.0  ;;  %v2102_v21 = vmax.f32 %v1846_v24, 0.0  ;;  %v2103_v28 = vmax.f32 %v1847_v22, 0.0  ;;  %v2638_v8 = vld [vmem:[%s7734_s0 + $0xc0] sm:$0xff]  ;;  %v2639_v24 = vld [vmem:[%s7734_s0 + $0xc8] sm:$0xff] }
 0x252   :  { %2352 = vst.msk [vmem:[%s7737_s3] sm:$0xff] %vm270_vm0, %v2096_v61  ;;  %2353 = vst.msk [vmem:[%s7737_s3 + $0x8] sm:$0xff] %vm270_vm0, %v2097_v25  ;;  %v1848_v32 = vadd.f32 %v5456_v49, %v1586_v63  ;;  %v1849_v11 = vadd.f32 %v5456_v49, %v1587_v16  ;;  %v1850_v35 = vadd.f32 %v5456_v49, %v1588_v52  ;;  %v2640_v61 = vld [vmem:[%s7734_s0 + $0xd0] sm:$0xff] }
 0x253   :  { %2354 = vst.msk [vmem:[%s7737_s3 + $0x10] sm:$0xff] %vm270_vm0, %v2098_v17  ;;  %2355 = vst.msk [vmem:[%s7737_s3 + $0x18] sm:$0xff] %vm270_vm0, %v2099_v26  ;;  %v1851_v31 = vadd.f32 %v5456_v49, %v1589_v19  ;;  %v1852_v1 = vadd.f32 %v5456_v49, %v1590_v48  ;;  %v1853_v30 = vadd.f32 %v5456_v49, %v1591_v15  ;;  %v2641_v17 = vld [vmem:[%s7734_s0 + $0xd8] sm:$0xff] }
 0x254   :  { %2356 = vst.msk [vmem:[%s7737_s3 + $0x20] sm:$0xff] %vm270_vm0, %v2100_v29  ;;  %2357 = vst.msk [vmem:[%s7737_s3 + $0x28] sm:$0xff] %vm270_vm0, %v2101_v4  ;;  %v1592_v2 = vmul.f32 %v2628_v27, %v5426_v3  ;;  %v1593_v34 = vmul.f32 %v2629_v38, %v5426_v3  ;;  %v2104_v36 = vmax.f32 %v1848_v32, 0.0  ;;  %v2105_v0 = vmax.f32 %v1849_v11, 0.0  ;;  %v2643_v32 = vld [vmem:[%s7734_s0 + $0xe8] sm:$0xff]  ;;  %v2644_v38 = vld [vmem:[%s7734_s0 + $0xf0] sm:$0xff] }
 0x255   :  { %2358 = vst.msk [vmem:[%s7737_s3 + $0x30] sm:$0xff] %vm270_vm0, %v2102_v21  ;;  %2359 = vst.msk [vmem:[%s7737_s3 + $0x38] sm:$0xff] %vm270_vm0, %v2103_v28  ;;  %v2106_v41 = vmax.f32 %v1850_v35, 0.0  ;;  %v2107_v37 = vmax.f32 %v1851_v31, 0.0  ;;  %v2108_v42 = vmax.f32 %v1852_v1, 0.0  ;;  %v2109_v7 = vmax.f32 %v1853_v30, 0.0 }
 0x256   :  { %v1854_v44 = vadd.f32 %v5456_v49, %v1592_v2  ;;  %v1855_v45 = vadd.f32 %v5456_v49, %v1593_v34  ;;  %2360 = vst.msk [vmem:[%s7737_s3 + $0x40] sm:$0xff] %vm270_vm0, %v2104_v36  ;;  %2361 = vst.msk [vmem:[%s7737_s3 + $0x48] sm:$0xff] %vm270_vm0, %v2105_v0  ;;  %v1594_v40 = vmul.f32 %v2630_v57, %v5426_v3  ;;  %v2642_v21 = vld [vmem:[%s7734_s0 + $0xe0] sm:$0xff]  ;;  %v2645_v36 = vld [vmem:[%s7734_s0 + $0xf8] sm:$0xff] }
 0x257   :  { %2362 = vst.msk [vmem:[%s7737_s3 + $0x50] sm:$0xff] %vm270_vm0, %v2106_v41  ;;  %2363 = vst.msk [vmem:[%s7737_s3 + $0x58] sm:$0xff] %vm270_vm0, %v2107_v37  ;;  %v1595_v50 = vmul.f32 %v2631_v47, %v5426_v3  ;;  %v1596_v6 = vmul.f32 %v2632_v43, %v5426_v3  ;;  %v1597_v53 = vmul.f32 %v2633_v51, %v5426_v3  ;;  %v2646_v47 = vld [vmem:[%s7734_s0 + $0x100] sm:$0xff]  ;;  %v2647_v43 = vld [vmem:[%s7734_s0 + $0x108] sm:$0xff] }
 0x258   :  { %2364 = vst.msk [vmem:[%s7737_s3 + $0x60] sm:$0xff] %vm270_vm0, %v2108_v42  ;;  %2365 = vst.msk [vmem:[%s7737_s3 + $0x68] sm:$0xff] %vm270_vm0, %v2109_v7  ;;  %v2110_v54 = vmax.f32 %v1854_v44, 0.0  ;;  %v2111_v10 = vmax.f32 %v1855_v45, 0.0  ;;  %v1598_v23 = vmul.f32 %v2634_v46, %v5426_v3  ;;  %v1599_v13 = vmul.f32 %v2635_v56, %v5426_v3  ;;  %v2648_v51 = vld [vmem:[%s7734_s0 + $0x110] sm:$0xff]  ;;  %v2650_v56 = vld [vmem:[%s7734_s0 + $0x120] sm:$0xff] }
 0x259   :  { %v1856_v60 = vadd.f32 %v5456_v49, %v1594_v40  ;;  %v1857_v33 = vadd.f32 %v5456_v49, %v1595_v50  ;;  %v1858_v62 = vadd.f32 %v5456_v49, %v1596_v6  ;;  %v1859_v63 = vadd.f32 %v5456_v49, %v1597_v53 }
 0x25a   :  { %2366 = vst.msk [vmem:[%s7737_s3 + $0x70] sm:$0xff] %vm270_vm0, %v2110_v54  ;;  %2367 = vst.msk [vmem:[%s7737_s3 + $0x78] sm:$0xff] %vm270_vm0, %v2111_v10  ;;  %v1860_v5 = vadd.f32 %v5456_v49, %v1598_v23  ;;  %v1861_v16 = vadd.f32 %v5456_v49, %v1599_v13  ;;  %v1600_v52 = vmul.f32 %v2636_v39, %v5426_v3  ;;  %v2649_v54 = vld [vmem:[%s7734_s0 + $0x118] sm:$0xff] }
 0x25b   :  { %v1601_v19 = vmul.f32 %v2637_v9, %v5426_v3  ;;  %v2112_v55 = vmax.f32 %v1856_v60, 0.0  ;;  %v2113_v48 = vmax.f32 %v1857_v33, 0.0  ;;  %v2114_v14 = vmax.f32 %v1858_v62, 0.0  ;;  %v2651_v60 = vld [vmem:[%s7734_s0 + $0x128] sm:$0xff]  ;;  %v2652_v9 = vld [vmem:[%s7734_s0 + $0x130] sm:$0xff] }
 0x25c   :  { %v2115_v15 = vmax.f32 %v1859_v63, 0.0  ;;  %v2116_v59 = vmax.f32 %v1860_v5, 0.0  ;;  %v2117_v12 = vmax.f32 %v1861_v16, 0.0  ;;  %v1862_v18 = vadd.f32 %v5456_v49, %v1600_v52 }
 0x25d   :  { %v1863_v58 = vadd.f32 %v5456_v49, %v1601_v19  ;;  %2368 = vst.msk [vmem:[%s7737_s3 + $0x80] sm:$0xff] %vm270_vm0, %v2112_v55  ;;  %2369 = vst.msk [vmem:[%s7737_s3 + $0x88] sm:$0xff] %vm270_vm0, %v2113_v48  ;;  %v1602_v20 = vmul.f32 %v2638_v8, %v5426_v3  ;;  %v1603_v22 = vmul.f32 %v2639_v24, %v5426_v3  ;;  %v2653_v55 = vld [vmem:[%s7734_s0 + $0x138] sm:$0xff]  ;;  %v2654_v24 = vld [vmem:[%s7734_s0 + $0x140] sm:$0xff] }
 0x25e   :  { %2370 = vst.msk [vmem:[%s7737_s3 + $0x90] sm:$0xff] %vm270_vm0, %v2114_v14  ;;  %2371 = vst.msk [vmem:[%s7737_s3 + $0x98] sm:$0xff] %vm270_vm0, %v2115_v15  ;;  %v1604_v25 = vmul.f32 %v2640_v61, %v5426_v3  ;;  %v1605_v26 = vmul.f32 %v2641_v17, %v5426_v3  ;;  %v2118_v29 = vmax.f32 %v1862_v18, 0.0  ;;  %v1606_v28 = vmul.f32 %v2642_v21, %v5426_v3  ;;  %v2655_v61 = vld [vmem:[%s7734_s0 + $0x148] sm:$0xff]  ;;  %v2656_v17 = vld [vmem:[%s7734_s0 + $0x150] sm:$0xff] }
 0x25f   :  { %2372 = vst.msk [vmem:[%s7737_s3 + $0xa0] sm:$0xff] %vm270_vm0, %v2116_v59  ;;  %2373 = vst.msk [vmem:[%s7737_s3 + $0xa8] sm:$0xff] %vm270_vm0, %v2117_v12  ;;  %v2119_v4 = vmax.f32 %v1863_v58, 0.0  ;;  %v1607_v11 = vmul.f32 %v2643_v32, %v5426_v3  ;;  %v1864_v35 = vadd.f32 %v5456_v49, %v1602_v20  ;;  %v1865_v31 = vadd.f32 %v5456_v49, %v1603_v22  ;;  %v2658_v32 = vld [vmem:[%s7734_s0 + $0x160] sm:$0xff] }
 0x260   :  { %v1866_v1 = vadd.f32 %v5456_v49, %v1604_v25  ;;  %v1867_v30 = vadd.f32 %v5456_v49, %v1605_v26  ;;  %2374 = vst.msk [vmem:[%s7737_s3 + $0xb0] sm:$0xff] %vm270_vm0, %v2118_v29  ;;  %v1868_v27 = vadd.f32 %v5456_v49, %v1606_v28  ;;  %v1608_v34 = vmul.f32 %v2644_v38, %v5426_v3  ;;  %v2657_v29 = vld [vmem:[%s7734_s0 + $0x158] sm:$0xff] }
 0x261   :  { %2375 = vst.msk [vmem:[%s7737_s3 + $0xb8] sm:$0xff] %vm270_vm0, %v2119_v4  ;;  %v1869_v2 = vadd.f32 %v5456_v49, %v1607_v11  ;;  %v1609_v0 = vmul.f32 %v2645_v36, %v5426_v3  ;;  %v2120_v41 = vmax.f32 %v1864_v35, 0.0  ;;  %v2121_v37 = vmax.f32 %v1865_v31, 0.0  ;;  %v2659_v35 = vld [vmem:[%s7734_s0 + $0x168] sm:$0xff]  ;;  %v2660_v36 = vld [vmem:[%s7734_s0 + $0x170] sm:$0xff] }
 0x262   :  { %v2122_v42 = vmax.f32 %v1866_v1, 0.0  ;;  %v2123_v7 = vmax.f32 %v1867_v30, 0.0  ;;  %v2124_v44 = vmax.f32 %v1868_v27, 0.0  ;;  %v1870_v57 = vadd.f32 %v5456_v49, %v1608_v34 }
 0x263   :  { %v2125_v45 = vmax.f32 %v1869_v2, 0.0  ;;  %v1871_v40 = vadd.f32 %v5456_v49, %v1609_v0  ;;  %2376 = vst.msk [vmem:[%s7737_s3 + $0xc0] sm:$0xff] %vm270_vm0, %v2120_v41  ;;  %2377 = vst.msk [vmem:[%s7737_s3 + $0xc8] sm:$0xff] %vm270_vm0, %v2121_v37  ;;  %v1610_v50 = vmul.f32 %v2646_v47, %v5426_v3  ;;  %v1611_v6 = vmul.f32 %v2647_v43, %v5426_v3  ;;  %v2661_v41 = vld [vmem:[%s7734_s0 + $0x178] sm:$0xff]  ;;  %v2662_v43 = vld [vmem:[%s7734_s0 + $0x180] sm:$0xff] }
 0x264   :  { %2378 = vst.msk [vmem:[%s7737_s3 + $0xd0] sm:$0xff] %vm270_vm0, %v2122_v42  ;;  %2379 = vst.msk [vmem:[%s7737_s3 + $0xd8] sm:$0xff] %vm270_vm0, %v2123_v7  ;;  %v1612_v53 = vmul.f32 %v2648_v51, %v5426_v3  ;;  %v1613_v10 = vmul.f32 %v2649_v54, %v5426_v3  ;;  %v2126_v46 = vmax.f32 %v1870_v57, 0.0  ;;  %v1614_v13 = vmul.f32 %v2650_v56, %v5426_v3  ;;  %v2663_v51 = vld [vmem:[%s7734_s0 + $0x188] sm:$0xff]  ;;  %v2664_v54 = vld [vmem:[%s7734_s0 + $0x190] sm:$0xff] }
 0x265   :  { %2380 = vst.msk [vmem:[%s7737_s3 + $0xe0] sm:$0xff] %vm270_vm0, %v2124_v44  ;;  %2381 = vst.msk [vmem:[%s7737_s3 + $0xe8] sm:$0xff] %vm270_vm0, %v2125_v45  ;;  %v2127_v23 = vmax.f32 %v1871_v40, 0.0  ;;  %v1615_v33 = vmul.f32 %v2651_v60, %v5426_v3  ;;  %v1872_v62 = vadd.f32 %v5456_v49, %v1610_v50  ;;  %v1873_v63 = vadd.f32 %v5456_v49, %v1611_v6  ;;  %v2666_v60 = vld [vmem:[%s7734_s0 + $0x1a0] sm:$0xff] }
 0x266   :  { %v1874_v5 = vadd.f32 %v5456_v49, %v1612_v53  ;;  %v1875_v16 = vadd.f32 %v5456_v49, %v1613_v10  ;;  %2382 = vst.msk [vmem:[%s7737_s3 + $0xf0] sm:$0xff] %vm270_vm0, %v2126_v46  ;;  %v1876_v39 = vadd.f32 %v5456_v49, %v1614_v13  ;;  %v1616_v19 = vmul.f32 %v2652_v9, %v5426_v3  ;;  %v2665_v46 = vld [vmem:[%s7734_s0 + $0x198] sm:$0xff] }
 0x267   :  { %2383 = vst.msk [vmem:[%s7737_s3 + $0xf8] sm:$0xff] %vm270_vm0, %v2127_v23  ;;  %v1877_v52 = vadd.f32 %v5456_v49, %v1615_v33  ;;  %v1617_v48 = vmul.f32 %v2653_v55, %v5426_v3  ;;  %v2128_v14 = vmax.f32 %v1872_v62, 0.0  ;;  %v2129_v15 = vmax.f32 %v1873_v63, 0.0  ;;  %v2667_v62 = vld [vmem:[%s7734_s0 + $0x1a8] sm:$0xff]  ;;  %v2668_v55 = vld [vmem:[%s7734_s0 + $0x1b0] sm:$0xff] }
 0x268   :  { %v2130_v59 = vmax.f32 %v1874_v5, 0.0  ;;  %v2131_v12 = vmax.f32 %v1875_v16, 0.0  ;;  %v2132_v18 = vmax.f32 %v1876_v39, 0.0  ;;  %v1878_v8 = vadd.f32 %v5456_v49, %v1616_v19 }
 0x269   :  { %v2133_v58 = vmax.f32 %v1877_v52, 0.0  ;;  %v1879_v20 = vadd.f32 %v5456_v49, %v1617_v48  ;;  %2384 = vst.msk [vmem:[%s7737_s3 + $0x100] sm:$0xff] %vm270_vm0, %v2128_v14  ;;  %2385 = vst.msk [vmem:[%s7737_s3 + $0x108] sm:$0xff] %vm270_vm0, %v2129_v15  ;;  %v1618_v22 = vmul.f32 %v2654_v24, %v5426_v3  ;;  %v1619_v25 = vmul.f32 %v2655_v61, %v5426_v3  ;;  %v2669_v14 = vld [vmem:[%s7734_s0 + $0x1b8] sm:$0xff]  ;;  %v2670_v61 = vld [vmem:[%s7734_s0 + $0x1c0] sm:$0xff] }
 0x26a   :  { %2386 = vst.msk [vmem:[%s7737_s3 + $0x110] sm:$0xff] %vm270_vm0, %v2130_v59  ;;  %2387 = vst.msk [vmem:[%s7737_s3 + $0x118] sm:$0xff] %vm270_vm0, %v2131_v12  ;;  %v1620_v26 = vmul.f32 %v2656_v17, %v5426_v3  ;;  %v1621_v4 = vmul.f32 %v2657_v29, %v5426_v3  ;;  %v2134_v21 = vmax.f32 %v1878_v8, 0.0  ;;  %v1622_v11 = vmul.f32 %v2658_v32, %v5426_v3  ;;  %v2671_v17 = vld [vmem:[%s7734_s0 + $0x1c8] sm:$0xff]  ;;  %v2672_v29 = vld [vmem:[%s7734_s0 + $0x1d0] sm:$0xff] }
 0x26b   :  { %2388 = vst.msk [vmem:[%s7737_s3 + $0x120] sm:$0xff] %vm270_vm0, %v2132_v18  ;;  %2389 = vst.msk [vmem:[%s7737_s3 + $0x128] sm:$0xff] %vm270_vm0, %v2133_v58  ;;  %v2135_v28 = vmax.f32 %v1879_v20, 0.0  ;;  %v1623_v31 = vmul.f32 %v2659_v35, %v5426_v3  ;;  %v1880_v1 = vadd.f32 %v5456_v49, %v1618_v22  ;;  %v1881_v30 = vadd.f32 %v5456_v49, %v1619_v25  ;;  %v2674_v35 = vld [vmem:[%s7734_s0 + $0x1e0] sm:$0xff] }
 0x26c   :  { %v1882_v27 = vadd.f32 %v5456_v49, %v1620_v26  ;;  %v1883_v2 = vadd.f32 %v5456_v49, %v1621_v4  ;;  %2390 = vst.msk [vmem:[%s7737_s3 + $0x130] sm:$0xff] %vm270_vm0, %v2134_v21  ;;  %v1884_v38 = vadd.f32 %v5456_v49, %v1622_v11  ;;  %v1624_v0 = vmul.f32 %v2660_v36, %v5426_v3  ;;  %v2673_v21 = vld [vmem:[%s7734_s0 + $0x1d8] sm:$0xff] }
 0x26d   :  { %2391 = vst.msk [vmem:[%s7737_s3 + $0x138] sm:$0xff] %vm270_vm0, %v2135_v28  ;;  %v1885_v34 = vadd.f32 %v5456_v49, %v1623_v31  ;;  %v1625_v37 = vmul.f32 %v2661_v41, %v5426_v3  ;;  %v2136_v42 = vmax.f32 %v1880_v1, 0.0  ;;  %v2137_v7 = vmax.f32 %v1881_v30, 0.0  ;;  %v2675_v1 = vld [vmem:[%s7734_s0 + $0x1e8] sm:$0xff]  ;;  %v2676_v41 = vld [vmem:[%s7734_s0 + $0x1f0] sm:$0xff] }
 0x26e   :  { %v2138_v44 = vmax.f32 %v1882_v27, 0.0  ;;  %v2139_v45 = vmax.f32 %v1883_v2, 0.0  ;;  %v2140_v57 = vmax.f32 %v1884_v38, 0.0  ;;  %v1886_v47 = vadd.f32 %v5456_v49, %v1624_v0 }
 0x26f   :  { %v2141_v40 = vmax.f32 %v1885_v34, 0.0  ;;  %v1887_v50 = vadd.f32 %v5456_v49, %v1625_v37  ;;  %2392 = vst.msk [vmem:[%s7737_s3 + $0x140] sm:$0xff] %vm270_vm0, %v2136_v42  ;;  %2393 = vst.msk [vmem:[%s7737_s3 + $0x148] sm:$0xff] %vm270_vm0, %v2137_v7  ;;  %v1626_v6 = vmul.f32 %v2662_v43, %v5426_v3  ;;  %v1627_v53 = vmul.f32 %v2663_v51, %v5426_v3  ;;  %v2677_v42 = vld [vmem:[%s7734_s0 + $0x1f8] sm:$0xff]  ;;  %v2678_v51 = vld [vmem:[%s7734_s0 + $0x200] sm:$0xff] }
 0x270   :  { %2394 = vst.msk [vmem:[%s7737_s3 + $0x150] sm:$0xff] %vm270_vm0, %v2138_v44  ;;  %2395 = vst.msk [vmem:[%s7737_s3 + $0x158] sm:$0xff] %vm270_vm0, %v2139_v45  ;;  %v1628_v10 = vmul.f32 %v2664_v54, %v5426_v3  ;;  %v1629_v23 = vmul.f32 %v2665_v46, %v5426_v3  ;;  %v2142_v56 = vmax.f32 %v1886_v47, 0.0  ;;  %v1630_v33 = vmul.f32 %v2666_v60, %v5426_v3  ;;  %v2679_v54 = vld [vmem:[%s7734_s0 + $0x208] sm:$0xff]  ;;  %v2680_v46 = vld [vmem:[%s7734_s0 + $0x210] sm:$0xff] }
 0x271   :  { %2396 = vst.msk [vmem:[%s7737_s3 + $0x160] sm:$0xff] %vm270_vm0, %v2140_v57  ;;  %2397 = vst.msk [vmem:[%s7737_s3 + $0x168] sm:$0xff] %vm270_vm0, %v2141_v40  ;;  %v2143_v13 = vmax.f32 %v1887_v50, 0.0  ;;  %v1631_v63 = vmul.f32 %v2667_v62, %v5426_v3  ;;  %v1888_v5 = vadd.f32 %v5456_v49, %v1626_v6  ;;  %v1889_v16 = vadd.f32 %v5456_v49, %v1627_v53  ;;  %v2682_v62 = vld [vmem:[%s7734_s0 + $0x220] sm:$0xff] }
 0x272   :  { %v1890_v39 = vadd.f32 %v5456_v49, %v1628_v10  ;;  %v1891_v52 = vadd.f32 %v5456_v49, %v1629_v23  ;;  %2398 = vst.msk [vmem:[%s7737_s3 + $0x170] sm:$0xff] %vm270_vm0, %v2142_v56  ;;  %v1892_v9 = vadd.f32 %v5456_v49, %v1630_v33  ;;  %v1632_v48 = vmul.f32 %v2668_v55, %v5426_v3  ;;  %v2681_v56 = vld [vmem:[%s7734_s0 + $0x218] sm:$0xff] }
 0x273   :  { %2399 = vst.msk [vmem:[%s7737_s3 + $0x178] sm:$0xff] %vm270_vm0, %v2143_v13  ;;  %v1893_v19 = vadd.f32 %v5456_v49, %v1631_v63  ;;  %v1633_v15 = vmul.f32 %v2669_v14, %v5426_v3  ;;  %v2144_v59 = vmax.f32 %v1888_v5, 0.0  ;;  %v2145_v12 = vmax.f32 %v1889_v16, 0.0  ;;  %v2683_v5 = vld [vmem:[%s7734_s0 + $0x228] sm:$0xff]  ;;  %v2684_v14 = vld [vmem:[%s7734_s0 + $0x230] sm:$0xff] }
 0x274   :  { %v2146_v18 = vmax.f32 %v1890_v39, 0.0  ;;  %v2147_v58 = vmax.f32 %v1891_v52, 0.0  ;;  %v2148_v8 = vmax.f32 %v1892_v9, 0.0  ;;  %v1894_v24 = vadd.f32 %v5456_v49, %v1632_v48 }
 0x275   :  { %v2149_v20 = vmax.f32 %v1893_v19, 0.0  ;;  %v1895_v22 = vadd.f32 %v5456_v49, %v1633_v15  ;;  %2400 = vst.msk [vmem:[%s7737_s3 + $0x180] sm:$0xff] %vm270_vm0, %v2144_v59  ;;  %2401 = vst.msk [vmem:[%s7737_s3 + $0x188] sm:$0xff] %vm270_vm0, %v2145_v12  ;;  %v1634_v25 = vmul.f32 %v2670_v61, %v5426_v3  ;;  %v1635_v26 = vmul.f32 %v2671_v17, %v5426_v3  ;;  %v2685_v59 = vld [vmem:[%s7734_s0 + $0x238] sm:$0xff]  ;;  %v2686_v17 = vld [vmem:[%s7734_s0 + $0x240] sm:$0xff] }
 0x276   :  { %2402 = vst.msk [vmem:[%s7737_s3 + $0x190] sm:$0xff] %vm270_vm0, %v2146_v18  ;;  %2403 = vst.msk [vmem:[%s7737_s3 + $0x198] sm:$0xff] %vm270_vm0, %v2147_v58  ;;  %v1636_v4 = vmul.f32 %v2672_v29, %v5426_v3  ;;  %v1637_v28 = vmul.f32 %v2673_v21, %v5426_v3  ;;  %v2150_v32 = vmax.f32 %v1894_v24, 0.0  ;;  %v1638_v31 = vmul.f32 %v2674_v35, %v5426_v3  ;;  %v2687_v29 = vld [vmem:[%s7734_s0 + $0x248] sm:$0xff]  ;;  %v2688_v21 = vld [vmem:[%s7734_s0 + $0x250] sm:$0xff] }
 0x277   :  { %2404 = vst.msk [vmem:[%s7737_s3 + $0x1a0] sm:$0xff] %vm270_vm0, %v2148_v8  ;;  %2405 = vst.msk [vmem:[%s7737_s3 + $0x1a8] sm:$0xff] %vm270_vm0, %v2149_v20  ;;  %v2151_v11 = vmax.f32 %v1895_v22, 0.0  ;;  %v1639_v30 = vmul.f32 %v2675_v1, %v5426_v3  ;;  %v1896_v27 = vadd.f32 %v5456_v49, %v1634_v25  ;;  %v1897_v2 = vadd.f32 %v5456_v49, %v1635_v26  ;;  %v2690_v1 = vld [vmem:[%s7734_s0 + $0x260] sm:$0xff] }
 0x278   :  { %v1898_v38 = vadd.f32 %v5456_v49, %v1636_v4  ;;  %v1899_v34 = vadd.f32 %v5456_v49, %v1637_v28  ;;  %2406 = vst.msk [vmem:[%s7737_s3 + $0x1b0] sm:$0xff] %vm270_vm0, %v2150_v32  ;;  %v1900_v36 = vadd.f32 %v5456_v49, %v1638_v31  ;;  %v1640_v37 = vmul.f32 %v2676_v41, %v5426_v3  ;;  %v2689_v32 = vld [vmem:[%s7734_s0 + $0x258] sm:$0xff] }
 0x279   :  { %2407 = vst.msk [vmem:[%s7737_s3 + $0x1b8] sm:$0xff] %vm270_vm0, %v2151_v11  ;;  %v1901_v0 = vadd.f32 %v5456_v49, %v1639_v30  ;;  %v1641_v7 = vmul.f32 %v2677_v42, %v5426_v3  ;;  %v2152_v44 = vmax.f32 %v1896_v27, 0.0  ;;  %v2153_v45 = vmax.f32 %v1897_v2, 0.0  ;;  %v2691_v27 = vld [vmem:[%s7734_s0 + $0x268] sm:$0xff]  ;;  %v2692_v42 = vld [vmem:[%s7734_s0 + $0x270] sm:$0xff] }
 0x27a   :  { %v2154_v57 = vmax.f32 %v1898_v38, 0.0  ;;  %v2155_v40 = vmax.f32 %v1899_v34, 0.0  ;;  %v2156_v47 = vmax.f32 %v1900_v36, 0.0  ;;  %v1902_v43 = vadd.f32 %v5456_v49, %v1640_v37 }
 0x27b   :  { %v2157_v50 = vmax.f32 %v1901_v0, 0.0  ;;  %v1903_v6 = vadd.f32 %v5456_v49, %v1641_v7  ;;  %2408 = vst.msk [vmem:[%s7737_s3 + $0x1c0] sm:$0xff] %vm270_vm0, %v2152_v44  ;;  %2409 = vst.msk [vmem:[%s7737_s3 + $0x1c8] sm:$0xff] %vm270_vm0, %v2153_v45  ;;  %v1642_v53 = vmul.f32 %v2678_v51, %v5426_v3  ;;  %v1643_v10 = vmul.f32 %v2679_v54, %v5426_v3  ;;  %v2693_v44 = vld [vmem:[%s7734_s0 + $0x278] sm:$0xff]  ;;  %v2694_v54 = vld [vmem:[%s7734_s0 + $0x280] sm:$0xff] }
 0x27c   :  { %2410 = vst.msk [vmem:[%s7737_s3 + $0x1d0] sm:$0xff] %vm270_vm0, %v2154_v57  ;;  %2411 = vst.msk [vmem:[%s7737_s3 + $0x1d8] sm:$0xff] %vm270_vm0, %v2155_v40  ;;  %v1644_v23 = vmul.f32 %v2680_v46, %v5426_v3  ;;  %v1645_v13 = vmul.f32 %v2681_v56, %v5426_v3  ;;  %v2158_v60 = vmax.f32 %v1902_v43, 0.0  ;;  %v1646_v63 = vmul.f32 %v2682_v62, %v5426_v3  ;;  %v2695_v46 = vld [vmem:[%s7734_s0 + $0x288] sm:$0xff]  ;;  %v2696_v56 = vld [vmem:[%s7734_s0 + $0x290] sm:$0xff] }
 0x27d   :  { %2412 = vst.msk [vmem:[%s7737_s3 + $0x1e0] sm:$0xff] %vm270_vm0, %v2156_v47  ;;  %2413 = vst.msk [vmem:[%s7737_s3 + $0x1e8] sm:$0xff] %vm270_vm0, %v2157_v50  ;;  %v2159_v33 = vmax.f32 %v1903_v6, 0.0  ;;  %v1647_v16 = vmul.f32 %v2683_v5, %v5426_v3  ;;  %v1904_v39 = vadd.f32 %v5456_v49, %v1642_v53  ;;  %v1905_v52 = vadd.f32 %v5456_v49, %v1643_v10  ;;  %v2698_v5 = vld [vmem:[%s7734_s0 + $0x2a0] sm:$0xff] }
 0x27e   :  { %v1906_v9 = vadd.f32 %v5456_v49, %v1644_v23  ;;  %v1907_v19 = vadd.f32 %v5456_v49, %v1645_v13  ;;  %2414 = vst.msk [vmem:[%s7737_s3 + $0x1f0] sm:$0xff] %vm270_vm0, %v2158_v60  ;;  %v1908_v55 = vadd.f32 %v5456_v49, %v1646_v63  ;;  %v1648_v15 = vmul.f32 %v2684_v14, %v5426_v3  ;;  %v2697_v60 = vld [vmem:[%s7734_s0 + $0x298] sm:$0xff] }
 0x27f   :  { %2415 = vst.msk [vmem:[%s7737_s3 + $0x1f8] sm:$0xff] %vm270_vm0, %v2159_v33  ;;  %v1909_v48 = vadd.f32 %v5456_v49, %v1647_v16  ;;  %v1649_v12 = vmul.f32 %v2685_v59, %v5426_v3  ;;  %v2160_v18 = vmax.f32 %v1904_v39, 0.0  ;;  %v2161_v58 = vmax.f32 %v1905_v52, 0.0  ;;  %v2699_v39 = vld [vmem:[%s7734_s0 + $0x2a8] sm:$0xff]  ;;  %v2700_v59 = vld [vmem:[%s7734_s0 + $0x2b0] sm:$0xff] }
 0x280   :  { %v2162_v8 = vmax.f32 %v1906_v9, 0.0  ;;  %v2163_v20 = vmax.f32 %v1907_v19, 0.0  ;;  %v2164_v24 = vmax.f32 %v1908_v55, 0.0  ;;  %v1910_v61 = vadd.f32 %v5456_v49, %v1648_v15 }
 0x281   :  { %v2165_v22 = vmax.f32 %v1909_v48, 0.0  ;;  %v1911_v25 = vadd.f32 %v5456_v49, %v1649_v12  ;;  %2416 = vst.msk [vmem:[%s7737_s3 + $0x200] sm:$0xff] %vm270_vm0, %v2160_v18  ;;  %2417 = vst.msk [vmem:[%s7737_s3 + $0x208] sm:$0xff] %vm270_vm0, %v2161_v58  ;;  %v1650_v26 = vmul.f32 %v2686_v17, %v5426_v3  ;;  %v1651_v4 = vmul.f32 %v2687_v29, %v5426_v3  ;;  %v2701_v18 = vld [vmem:[%s7734_s0 + $0x2b8] sm:$0xff]  ;;  %v2702_v29 = vld [vmem:[%s7734_s0 + $0x2c0] sm:$0xff] }
 0x282   :  { %2418 = vst.msk [vmem:[%s7737_s3 + $0x210] sm:$0xff] %vm270_vm0, %v2162_v8  ;;  %2419 = vst.msk [vmem:[%s7737_s3 + $0x218] sm:$0xff] %vm270_vm0, %v2163_v20  ;;  %v1652_v28 = vmul.f32 %v2688_v21, %v5426_v3  ;;  %v1653_v11 = vmul.f32 %v2689_v32, %v5426_v3  ;;  %v2166_v35 = vmax.f32 %v1910_v61, 0.0  ;;  %v1654_v30 = vmul.f32 %v2690_v1, %v5426_v3  ;;  %v2703_v21 = vld [vmem:[%s7734_s0 + $0x2c8] sm:$0xff]  ;;  %v2704_v32 = vld [vmem:[%s7734_s0 + $0x2d0] sm:$0xff] }
 0x283   :  { %2420 = vst.msk [vmem:[%s7737_s3 + $0x220] sm:$0xff] %vm270_vm0, %v2164_v24  ;;  %2421 = vst.msk [vmem:[%s7737_s3 + $0x228] sm:$0xff] %vm270_vm0, %v2165_v22  ;;  %v2167_v31 = vmax.f32 %v1911_v25, 0.0  ;;  %v1655_v2 = vmul.f32 %v2691_v27, %v5426_v3  ;;  %v1912_v38 = vadd.f32 %v5456_v49, %v1650_v26  ;;  %v1913_v34 = vadd.f32 %v5456_v49, %v1651_v4  ;;  %v2706_v27 = vld [vmem:[%s7734_s0 + $0x2e0] sm:$0xff] }
 0x284   :  { %v1914_v36 = vadd.f32 %v5456_v49, %v1652_v28  ;;  %v1915_v0 = vadd.f32 %v5456_v49, %v1653_v11  ;;  %2422 = vst.msk [vmem:[%s7737_s3 + $0x230] sm:$0xff] %vm270_vm0, %v2166_v35  ;;  %v1916_v41 = vadd.f32 %v5456_v49, %v1654_v30  ;;  %v1656_v7 = vmul.f32 %v2692_v42, %v5426_v3  ;;  %v2705_v35 = vld [vmem:[%s7734_s0 + $0x2d8] sm:$0xff] }
 0x285   :  { %2423 = vst.msk [vmem:[%s7737_s3 + $0x238] sm:$0xff] %vm270_vm0, %v2167_v31  ;;  %v1917_v37 = vadd.f32 %v5456_v49, %v1655_v2  ;;  %v1657_v45 = vmul.f32 %v2693_v44, %v5426_v3  ;;  %v2168_v57 = vmax.f32 %v1912_v38, 0.0  ;;  %v2169_v40 = vmax.f32 %v1913_v34, 0.0  ;;  %v2707_v38 = vld [vmem:[%s7734_s0 + $0x2e8] sm:$0xff]  ;;  %v2708_v44 = vld [vmem:[%s7734_s0 + $0x2f0] sm:$0xff] }
 0x286   :  { %v2170_v47 = vmax.f32 %v1914_v36, 0.0  ;;  %v2171_v50 = vmax.f32 %v1915_v0, 0.0  ;;  %v2172_v43 = vmax.f32 %v1916_v41, 0.0  ;;  %v1918_v51 = vadd.f32 %v5456_v49, %v1656_v7 }
 0x287   :  { %v2173_v6 = vmax.f32 %v1917_v37, 0.0  ;;  %v1919_v53 = vadd.f32 %v5456_v49, %v1657_v45  ;;  %2424 = vst.msk [vmem:[%s7737_s3 + $0x240] sm:$0xff] %vm270_vm0, %v2168_v57  ;;  %2425 = vst.msk [vmem:[%s7737_s3 + $0x248] sm:$0xff] %vm270_vm0, %v2169_v40  ;;  %v1658_v10 = vmul.f32 %v2694_v54, %v5426_v3  ;;  %v1659_v23 = vmul.f32 %v2695_v46, %v5426_v3  ;;  %v2709_v57 = vld [vmem:[%s7734_s0 + $0x2f8] sm:$0xff]  ;;  %v2710_v46 = vld [vmem:[%s7734_s0 + $0x300] sm:$0xff] }
 0x288   :  { %2426 = vst.msk [vmem:[%s7737_s3 + $0x250] sm:$0xff] %vm270_vm0, %v2170_v47  ;;  %2427 = vst.msk [vmem:[%s7737_s3 + $0x258] sm:$0xff] %vm270_vm0, %v2171_v50  ;;  %v1660_v13 = vmul.f32 %v2696_v56, %v5426_v3  ;;  %v1661_v33 = vmul.f32 %v2697_v60, %v5426_v3  ;;  %v2174_v62 = vmax.f32 %v1918_v51, 0.0  ;;  %v1662_v16 = vmul.f32 %v2698_v5, %v5426_v3  ;;  %v2711_v56 = vld [vmem:[%s7734_s0 + $0x308] sm:$0xff]  ;;  %v2712_v60 = vld [vmem:[%s7734_s0 + $0x310] sm:$0xff] }
 0x289   :  { %2428 = vst.msk [vmem:[%s7737_s3 + $0x260] sm:$0xff] %vm270_vm0, %v2172_v43  ;;  %2429 = vst.msk [vmem:[%s7737_s3 + $0x268] sm:$0xff] %vm270_vm0, %v2173_v6  ;;  %v2175_v63 = vmax.f32 %v1919_v53, 0.0  ;;  %v1663_v52 = vmul.f32 %v2699_v39, %v5426_v3  ;;  %v1920_v9 = vadd.f32 %v5456_v49, %v1658_v10  ;;  %v1921_v19 = vadd.f32 %v5456_v49, %v1659_v23  ;;  %v2714_v39 = vld [vmem:[%s7734_s0 + $0x320] sm:$0xff] }
 0x28a   :  { %v1922_v55 = vadd.f32 %v5456_v49, %v1660_v13  ;;  %v1923_v48 = vadd.f32 %v5456_v49, %v1661_v33  ;;  %2430 = vst.msk [vmem:[%s7737_s3 + $0x270] sm:$0xff] %vm270_vm0, %v2174_v62  ;;  %v1924_v14 = vadd.f32 %v5456_v49, %v1662_v16  ;;  %v1664_v12 = vmul.f32 %v2700_v59, %v5426_v3  ;;  %v2713_v62 = vld [vmem:[%s7734_s0 + $0x318] sm:$0xff] }
 0x28b   :  { %2431 = vst.msk [vmem:[%s7737_s3 + $0x278] sm:$0xff] %vm270_vm0, %v2175_v63  ;;  %v1925_v15 = vadd.f32 %v5456_v49, %v1663_v52  ;;  %v1665_v58 = vmul.f32 %v2701_v18, %v5426_v3  ;;  %v2176_v8 = vmax.f32 %v1920_v9, 0.0  ;;  %v2177_v20 = vmax.f32 %v1921_v19, 0.0  ;;  %v2715_v9 = vld [vmem:[%s7734_s0 + $0x328] sm:$0xff]  ;;  %v2716_v18 = vld [vmem:[%s7734_s0 + $0x330] sm:$0xff] }
 0x28c   :  { %v2178_v24 = vmax.f32 %v1922_v55, 0.0  ;;  %v2179_v22 = vmax.f32 %v1923_v48, 0.0  ;;  %v2180_v61 = vmax.f32 %v1924_v14, 0.0  ;;  %v1926_v17 = vadd.f32 %v5456_v49, %v1664_v12 }
 0x28d   :  { %v2181_v25 = vmax.f32 %v1925_v15, 0.0  ;;  %v1927_v26 = vadd.f32 %v5456_v49, %v1665_v58  ;;  %2432 = vst.msk [vmem:[%s7737_s3 + $0x280] sm:$0xff] %vm270_vm0, %v2176_v8  ;;  %2433 = vst.msk [vmem:[%s7737_s3 + $0x288] sm:$0xff] %vm270_vm0, %v2177_v20  ;;  %v1666_v4 = vmul.f32 %v2702_v29, %v5426_v3  ;;  %v1667_v28 = vmul.f32 %v2703_v21, %v5426_v3  ;;  %v2717_v8 = vld [vmem:[%s7734_s0 + $0x338] sm:$0xff]  ;;  %v2718_v21 = vld [vmem:[%s7734_s0 + $0x340] sm:$0xff] }
 0x28e   :  { %2434 = vst.msk [vmem:[%s7737_s3 + $0x290] sm:$0xff] %vm270_vm0, %v2178_v24  ;;  %2435 = vst.msk [vmem:[%s7737_s3 + $0x298] sm:$0xff] %vm270_vm0, %v2179_v22  ;;  %v1668_v11 = vmul.f32 %v2704_v32, %v5426_v3  ;;  %v1669_v31 = vmul.f32 %v2705_v35, %v5426_v3  ;;  %v2182_v1 = vmax.f32 %v1926_v17, 0.0  ;;  %v1670_v2 = vmul.f32 %v2706_v27, %v5426_v3  ;;  %v2719_v32 = vld [vmem:[%s7734_s0 + $0x348] sm:$0xff]  ;;  %v2720_v35 = vld [vmem:[%s7734_s0 + $0x350] sm:$0xff] }
 0x28f   :  { %2436 = vst.msk [vmem:[%s7737_s3 + $0x2a0] sm:$0xff] %vm270_vm0, %v2180_v61  ;;  %2437 = vst.msk [vmem:[%s7737_s3 + $0x2a8] sm:$0xff] %vm270_vm0, %v2181_v25  ;;  %v2183_v30 = vmax.f32 %v1927_v26, 0.0  ;;  %v1671_v34 = vmul.f32 %v2707_v38, %v5426_v3  ;;  %v1928_v36 = vadd.f32 %v5456_v49, %v1666_v4  ;;  %v1929_v0 = vadd.f32 %v5456_v49, %v1667_v28  ;;  %v2722_v38 = vld [vmem:[%s7734_s0 + $0x360] sm:$0xff] }
 0x290   :  { %v1930_v41 = vadd.f32 %v5456_v49, %v1668_v11  ;;  %v1931_v37 = vadd.f32 %v5456_v49, %v1669_v31  ;;  %2438 = vst.msk [vmem:[%s7737_s3 + $0x2b0] sm:$0xff] %vm270_vm0, %v2182_v1  ;;  %v1932_v42 = vadd.f32 %v5456_v49, %v1670_v2  ;;  %v1672_v45 = vmul.f32 %v2708_v44, %v5426_v3  ;;  %v2721_v1 = vld [vmem:[%s7734_s0 + $0x358] sm:$0xff] }
 0x291   :  { %2439 = vst.msk [vmem:[%s7737_s3 + $0x2b8] sm:$0xff] %vm270_vm0, %v2183_v30  ;;  %v1933_v7 = vadd.f32 %v5456_v49, %v1671_v34  ;;  %v1673_v40 = vmul.f32 %v2709_v57, %v5426_v3  ;;  %v2184_v47 = vmax.f32 %v1928_v36, 0.0  ;;  %v2185_v50 = vmax.f32 %v1929_v0, 0.0  ;;  %v2723_v36 = vld [vmem:[%s7734_s0 + $0x368] sm:$0xff]  ;;  %v2724_v57 = vld [vmem:[%s7734_s0 + $0x370] sm:$0xff] }
 0x292   :  { %v2186_v43 = vmax.f32 %v1930_v41, 0.0  ;;  %v2187_v6 = vmax.f32 %v1931_v37, 0.0  ;;  %v2188_v51 = vmax.f32 %v1932_v42, 0.0  ;;  %v1934_v54 = vadd.f32 %v5456_v49, %v1672_v45 }
 0x293   :  { %v2189_v53 = vmax.f32 %v1933_v7, 0.0  ;;  %v1935_v10 = vadd.f32 %v5456_v49, %v1673_v40  ;;  %2440 = vst.msk [vmem:[%s7737_s3 + $0x2c0] sm:$0xff] %vm270_vm0, %v2184_v47  ;;  %2441 = vst.msk [vmem:[%s7737_s3 + $0x2c8] sm:$0xff] %vm270_vm0, %v2185_v50  ;;  %v1674_v23 = vmul.f32 %v2710_v46, %v5426_v3  ;;  %v1675_v13 = vmul.f32 %v2711_v56, %v5426_v3  ;;  %v2725_v47 = vld [vmem:[%s7734_s0 + $0x378] sm:$0xff]  ;;  %v2726_v56 = vld [vmem:[%s7734_s0 + $0x380] sm:$0xff] }
 0x294   :  { %2442 = vst.msk [vmem:[%s7737_s3 + $0x2d0] sm:$0xff] %vm270_vm0, %v2186_v43  ;;  %2443 = vst.msk [vmem:[%s7737_s3 + $0x2d8] sm:$0xff] %vm270_vm0, %v2187_v6  ;;  %v1676_v33 = vmul.f32 %v2712_v60, %v5426_v3  ;;  %v1677_v63 = vmul.f32 %v2713_v62, %v5426_v3  ;;  %v2190_v5 = vmax.f32 %v1934_v54, 0.0  ;;  %v1678_v52 = vmul.f32 %v2714_v39, %v5426_v3  ;;  %v2727_v60 = vld [vmem:[%s7734_s0 + $0x388] sm:$0xff]  ;;  %v2728_v62 = vld [vmem:[%s7734_s0 + $0x390] sm:$0xff] }
 0x295   :  { %2444 = vst.msk [vmem:[%s7737_s3 + $0x2e0] sm:$0xff] %vm270_vm0, %v2188_v51  ;;  %2445 = vst.msk [vmem:[%s7737_s3 + $0x2e8] sm:$0xff] %vm270_vm0, %v2189_v53  ;;  %v2191_v16 = vmax.f32 %v1935_v10, 0.0  ;;  %v1679_v19 = vmul.f32 %v2715_v9, %v5426_v3  ;;  %v1936_v55 = vadd.f32 %v5456_v49, %v1674_v23  ;;  %v1937_v48 = vadd.f32 %v5456_v49, %v1675_v13  ;;  %v2730_v9 = vld [vmem:[%s7734_s0 + $0x3a0] sm:$0xff] }
 0x296   :  { %v1938_v14 = vadd.f32 %v5456_v49, %v1676_v33  ;;  %v1939_v15 = vadd.f32 %v5456_v49, %v1677_v63  ;;  %2446 = vst.msk [vmem:[%s7737_s3 + $0x2f0] sm:$0xff] %vm270_vm0, %v2190_v5  ;;  %v1940_v59 = vadd.f32 %v5456_v49, %v1678_v52  ;;  %v1680_v58 = vmul.f32 %v2716_v18, %v5426_v3  ;;  %v2729_v5 = vld [vmem:[%s7734_s0 + $0x398] sm:$0xff] }
 0x297   :  { %2447 = vst.msk [vmem:[%s7737_s3 + $0x2f8] sm:$0xff] %vm270_vm0, %v2191_v16  ;;  %v1941_v12 = vadd.f32 %v5456_v49, %v1679_v19  ;;  %v1681_v20 = vmul.f32 %v2717_v8, %v5426_v3  ;;  %v2192_v24 = vmax.f32 %v1936_v55, 0.0  ;;  %v2193_v22 = vmax.f32 %v1937_v48, 0.0  ;;  %v2731_v55 = vld [vmem:[%s7734_s0 + $0x3a8] sm:$0xff]  ;;  %v2732_v8 = vld [vmem:[%s7734_s0 + $0x3b0] sm:$0xff] }
 0x298   :  { %v2194_v61 = vmax.f32 %v1938_v14, 0.0  ;;  %v2195_v25 = vmax.f32 %v1939_v15, 0.0  ;;  %v2196_v17 = vmax.f32 %v1940_v59, 0.0  ;;  %v1942_v29 = vadd.f32 %v5456_v49, %v1680_v58 }
 0x299   :  { %v2197_v26 = vmax.f32 %v1941_v12, 0.0  ;;  %v1943_v4 = vadd.f32 %v5456_v49, %v1681_v20  ;;  %2448 = vst.msk [vmem:[%s7737_s3 + $0x300] sm:$0xff] %vm270_vm0, %v2192_v24  ;;  %2449 = vst.msk [vmem:[%s7737_s3 + $0x308] sm:$0xff] %vm270_vm0, %v2193_v22  ;;  %v1682_v28 = vmul.f32 %v2718_v21, %v5426_v3  ;;  %v1683_v11 = vmul.f32 %v2719_v32, %v5426_v3  ;;  %v2733_v24 = vld [vmem:[%s7734_s0 + $0x3b8] sm:$0xff]  ;;  %v2734_v32 = vld [vmem:[%s7734_s0 + $0x3c0] sm:$0xff] }
 0x29a   :  { %2450 = vst.msk [vmem:[%s7737_s3 + $0x310] sm:$0xff] %vm270_vm0, %v2194_v61  ;;  %2451 = vst.msk [vmem:[%s7737_s3 + $0x318] sm:$0xff] %vm270_vm0, %v2195_v25  ;;  %v1684_v31 = vmul.f32 %v2720_v35, %v5426_v3  ;;  %v1685_v30 = vmul.f32 %v2721_v1, %v5426_v3  ;;  %v2198_v27 = vmax.f32 %v1942_v29, 0.0  ;;  %v1686_v34 = vmul.f32 %v2722_v38, %v5426_v3  ;;  %v2735_v35 = vld [vmem:[%s7734_s0 + $0x3c8] sm:$0xff]  ;;  %v2736_v1 = vld [vmem:[%s7734_s0 + $0x3d0] sm:$0xff] }
 0x29b   :  { %2452 = vst.msk [vmem:[%s7737_s3 + $0x320] sm:$0xff] %vm270_vm0, %v2196_v17  ;;  %2453 = vst.msk [vmem:[%s7737_s3 + $0x328] sm:$0xff] %vm270_vm0, %v2197_v26  ;;  %v2199_v2 = vmax.f32 %v1943_v4, 0.0  ;;  %v1687_v0 = vmul.f32 %v2723_v36, %v5426_v3  ;;  %v1944_v41 = vadd.f32 %v5456_v49, %v1682_v28  ;;  %v1945_v37 = vadd.f32 %v5456_v49, %v1683_v11  ;;  %v2738_v36 = vld [vmem:[%s7734_s0 + $0x3e0] sm:$0xff] }
 0x29c   :  { %v1946_v42 = vadd.f32 %v5456_v49, %v1684_v31  ;;  %v1947_v7 = vadd.f32 %v5456_v49, %v1685_v30  ;;  %2454 = vst.msk [vmem:[%s7737_s3 + $0x330] sm:$0xff] %vm270_vm0, %v2198_v27  ;;  %v1948_v44 = vadd.f32 %v5456_v49, %v1686_v34  ;;  %v1688_v40 = vmul.f32 %v2724_v57, %v5426_v3  ;;  %v2737_v27 = vld [vmem:[%s7734_s0 + $0x3d8] sm:$0xff] }
 0x29d   :  { %2455 = vst.msk [vmem:[%s7737_s3 + $0x338] sm:$0xff] %vm270_vm0, %v2199_v2  ;;  %v1949_v45 = vadd.f32 %v5456_v49, %v1687_v0  ;;  %v1689_v50 = vmul.f32 %v2725_v47, %v5426_v3  ;;  %v2200_v43 = vmax.f32 %v1944_v41, 0.0  ;;  %v2201_v6 = vmax.f32 %v1945_v37, 0.0  ;;  %v2739_v41 = vld [vmem:[%s7734_s0 + $0x3e8] sm:$0xff]  ;;  %v2740_v47 = vld [vmem:[%s7734_s0 + $0x3f0] sm:$0xff] }
 0x29e   :  { %v2202_v51 = vmax.f32 %v1946_v42, 0.0  ;;  %v2203_v53 = vmax.f32 %v1947_v7, 0.0  ;;  %v2204_v54 = vmax.f32 %v1948_v44, 0.0  ;;  %v1950_v46 = vadd.f32 %v5456_v49, %v1688_v40 }
 0x29f   :  { %v2205_v10 = vmax.f32 %v1949_v45, 0.0  ;;  %v1951_v23 = vadd.f32 %v5456_v49, %v1689_v50  ;;  %2456 = vst.msk [vmem:[%s7737_s3 + $0x340] sm:$0xff] %vm270_vm0, %v2200_v43  ;;  %2457 = vst.msk [vmem:[%s7737_s3 + $0x348] sm:$0xff] %vm270_vm0, %v2201_v6  ;;  %v1690_v13 = vmul.f32 %v2726_v56, %v5426_v3  ;;  %v1691_v33 = vmul.f32 %v2727_v60, %v5426_v3  ;;  %v2741_v43 = vld [vmem:[%s7734_s0 + $0x3f8] sm:$0xff]  ;;  %v2742_v60 = vld [vmem:[%s7734_s0 + $0x400] sm:$0xff] }
 0x2a0   :  { %2458 = vst.msk [vmem:[%s7737_s3 + $0x350] sm:$0xff] %vm270_vm0, %v2202_v51  ;;  %2459 = vst.msk [vmem:[%s7737_s3 + $0x358] sm:$0xff] %vm270_vm0, %v2203_v53  ;;  %v1692_v63 = vmul.f32 %v2728_v62, %v5426_v3  ;;  %v1693_v16 = vmul.f32 %v2729_v5, %v5426_v3  ;;  %v2206_v39 = vmax.f32 %v1950_v46, 0.0  ;;  %v1694_v19 = vmul.f32 %v2730_v9, %v5426_v3  ;;  %v2743_v62 = vld [vmem:[%s7734_s0 + $0x408] sm:$0xff]  ;;  %v2744_v5 = vld [vmem:[%s7734_s0 + $0x410] sm:$0xff] }
 0x2a1   :  { %2460 = vst.msk [vmem:[%s7737_s3 + $0x360] sm:$0xff] %vm270_vm0, %v2204_v54  ;;  %2461 = vst.msk [vmem:[%s7737_s3 + $0x368] sm:$0xff] %vm270_vm0, %v2205_v10  ;;  %v2207_v52 = vmax.f32 %v1951_v23, 0.0  ;;  %v1695_v48 = vmul.f32 %v2731_v55, %v5426_v3  ;;  %v1952_v14 = vadd.f32 %v5456_v49, %v1690_v13  ;;  %v1953_v15 = vadd.f32 %v5456_v49, %v1691_v33  ;;  %v2746_v55 = vld [vmem:[%s7734_s0 + $0x420] sm:$0xff] }
 0x2a2   :  { %v1954_v59 = vadd.f32 %v5456_v49, %v1692_v63  ;;  %v1955_v12 = vadd.f32 %v5456_v49, %v1693_v16  ;;  %2462 = vst.msk [vmem:[%s7737_s3 + $0x370] sm:$0xff] %vm270_vm0, %v2206_v39  ;;  %v1956_v18 = vadd.f32 %v5456_v49, %v1694_v19  ;;  %v1696_v20 = vmul.f32 %v2732_v8, %v5426_v3  ;;  %v2745_v39 = vld [vmem:[%s7734_s0 + $0x418] sm:$0xff] }
 0x2a3   :  { %2463 = vst.msk [vmem:[%s7737_s3 + $0x378] sm:$0xff] %vm270_vm0, %v2207_v52  ;;  %v1957_v58 = vadd.f32 %v5456_v49, %v1695_v48  ;;  %v1697_v22 = vmul.f32 %v2733_v24, %v5426_v3  ;;  %v2208_v61 = vmax.f32 %v1952_v14, 0.0  ;;  %v2209_v25 = vmax.f32 %v1953_v15, 0.0  ;;  %v2747_v14 = vld [vmem:[%s7734_s0 + $0x428] sm:$0xff]  ;;  %v2748_v24 = vld [vmem:[%s7734_s0 + $0x430] sm:$0xff] }
 0x2a4   :  { %v2210_v17 = vmax.f32 %v1954_v59, 0.0  ;;  %v2211_v26 = vmax.f32 %v1955_v12, 0.0  ;;  %v2212_v29 = vmax.f32 %v1956_v18, 0.0  ;;  %v1958_v21 = vadd.f32 %v5456_v49, %v1696_v20 }
 0x2a5   :  { %v2213_v4 = vmax.f32 %v1957_v58, 0.0  ;;  %v1959_v28 = vadd.f32 %v5456_v49, %v1697_v22  ;;  %2464 = vst.msk [vmem:[%s7737_s3 + $0x380] sm:$0xff] %vm270_vm0, %v2208_v61  ;;  %2465 = vst.msk [vmem:[%s7737_s3 + $0x388] sm:$0xff] %vm270_vm0, %v2209_v25  ;;  %v1698_v11 = vmul.f32 %v2734_v32, %v5426_v3  ;;  %v1699_v31 = vmul.f32 %v2735_v35, %v5426_v3  ;;  %v2749_v61 = vld [vmem:[%s7734_s0 + $0x438] sm:$0xff]  ;;  %v2750_v35 = vld [vmem:[%s7734_s0 + $0x440] sm:$0xff] }
 0x2a6   :  { %2466 = vst.msk [vmem:[%s7737_s3 + $0x390] sm:$0xff] %vm270_vm0, %v2210_v17  ;;  %2467 = vst.msk [vmem:[%s7737_s3 + $0x398] sm:$0xff] %vm270_vm0, %v2211_v26  ;;  %v1700_v30 = vmul.f32 %v2736_v1, %v5426_v3  ;;  %v1701_v2 = vmul.f32 %v2737_v27, %v5426_v3  ;;  %v2214_v38 = vmax.f32 %v1958_v21, 0.0  ;;  %v1702_v0 = vmul.f32 %v2738_v36, %v5426_v3  ;;  %v2751_v1 = vld [vmem:[%s7734_s0 + $0x448] sm:$0xff]  ;;  %v2752_v27 = vld [vmem:[%s7734_s0 + $0x450] sm:$0xff] }
 0x2a7   :  { %2468 = vst.msk [vmem:[%s7737_s3 + $0x3a0] sm:$0xff] %vm270_vm0, %v2212_v29  ;;  %2469 = vst.msk [vmem:[%s7737_s3 + $0x3a8] sm:$0xff] %vm270_vm0, %v2213_v4  ;;  %v2215_v34 = vmax.f32 %v1959_v28, 0.0  ;;  %v1703_v37 = vmul.f32 %v2739_v41, %v5426_v3  ;;  %v1960_v42 = vadd.f32 %v5456_v49, %v1698_v11  ;;  %v1961_v7 = vadd.f32 %v5456_v49, %v1699_v31  ;;  %v2754_v41 = vld [vmem:[%s7734_s0 + $0x460] sm:$0xff] }
 0x2a8   :  { %v1962_v44 = vadd.f32 %v5456_v49, %v1700_v30  ;;  %v1963_v45 = vadd.f32 %v5456_v49, %v1701_v2  ;;  %2470 = vst.msk [vmem:[%s7737_s3 + $0x3b0] sm:$0xff] %vm270_vm0, %v2214_v38  ;;  %v1964_v57 = vadd.f32 %v5456_v49, %v1702_v0  ;;  %v1704_v50 = vmul.f32 %v2740_v47, %v5426_v3  ;;  %v2753_v38 = vld [vmem:[%s7734_s0 + $0x458] sm:$0xff] }
 0x2a9   :  { %2471 = vst.msk [vmem:[%s7737_s3 + $0x3b8] sm:$0xff] %vm270_vm0, %v2215_v34  ;;  %v1965_v40 = vadd.f32 %v5456_v49, %v1703_v37  ;;  %v1705_v6 = vmul.f32 %v2741_v43, %v5426_v3  ;;  %v2216_v51 = vmax.f32 %v1960_v42, 0.0  ;;  %v2217_v53 = vmax.f32 %v1961_v7, 0.0  ;;  %v2755_v42 = vld [vmem:[%s7734_s0 + $0x468] sm:$0xff]  ;;  %v2756_v43 = vld [vmem:[%s7734_s0 + $0x470] sm:$0xff] }
 0x2aa   :  { %v2218_v54 = vmax.f32 %v1962_v44, 0.0  ;;  %v2219_v10 = vmax.f32 %v1963_v45, 0.0  ;;  %v2220_v46 = vmax.f32 %v1964_v57, 0.0  ;;  %v1966_v56 = vadd.f32 %v5456_v49, %v1704_v50 }
 0x2ab   :  { %v2221_v23 = vmax.f32 %v1965_v40, 0.0  ;;  %v1967_v13 = vadd.f32 %v5456_v49, %v1705_v6  ;;  %2472 = vst.msk [vmem:[%s7737_s3 + $0x3c0] sm:$0xff] %vm270_vm0, %v2216_v51  ;;  %2473 = vst.msk [vmem:[%s7737_s3 + $0x3c8] sm:$0xff] %vm270_vm0, %v2217_v53  ;;  %v1706_v33 = vmul.f32 %v2742_v60, %v5426_v3  ;;  %v1707_v63 = vmul.f32 %v2743_v62, %v5426_v3  ;;  %v2757_v51 = vld [vmem:[%s7734_s0 + $0x478] sm:$0xff]  ;;  %v2758_v62 = vld [vmem:[%s7734_s0 + $0x480] sm:$0xff] }
 0x2ac   :  { %2474 = vst.msk [vmem:[%s7737_s3 + $0x3d0] sm:$0xff] %vm270_vm0, %v2218_v54  ;;  %2475 = vst.msk [vmem:[%s7737_s3 + $0x3d8] sm:$0xff] %vm270_vm0, %v2219_v10  ;;  %v1708_v16 = vmul.f32 %v2744_v5, %v5426_v3  ;;  %v1709_v52 = vmul.f32 %v2745_v39, %v5426_v3  ;;  %v2222_v9 = vmax.f32 %v1966_v56, 0.0  ;;  %v1710_v48 = vmul.f32 %v2746_v55, %v5426_v3  ;;  %v2759_v5 = vld [vmem:[%s7734_s0 + $0x488] sm:$0xff]  ;;  %v2760_v39 = vld [vmem:[%s7734_s0 + $0x490] sm:$0xff] }
 0x2ad   :  { %2476 = vst.msk [vmem:[%s7737_s3 + $0x3e0] sm:$0xff] %vm270_vm0, %v2220_v46  ;;  %2477 = vst.msk [vmem:[%s7737_s3 + $0x3e8] sm:$0xff] %vm270_vm0, %v2221_v23  ;;  %v2223_v19 = vmax.f32 %v1967_v13, 0.0  ;;  %v1711_v15 = vmul.f32 %v2747_v14, %v5426_v3  ;;  %v1968_v59 = vadd.f32 %v5456_v49, %v1706_v33  ;;  %v1969_v12 = vadd.f32 %v5456_v49, %v1707_v63  ;;  %v2762_v14 = vld [vmem:[%s7734_s0 + $0x4a0] sm:$0xff] }
 0x2ae   :  { %v1970_v18 = vadd.f32 %v5456_v49, %v1708_v16  ;;  %v1971_v58 = vadd.f32 %v5456_v49, %v1709_v52  ;;  %2478 = vst.msk [vmem:[%s7737_s3 + $0x3f0] sm:$0xff] %vm270_vm0, %v2222_v9  ;;  %v1972_v8 = vadd.f32 %v5456_v49, %v1710_v48  ;;  %v1712_v22 = vmul.f32 %v2748_v24, %v5426_v3  ;;  %v2761_v9 = vld [vmem:[%s7734_s0 + $0x498] sm:$0xff] }
 0x2af   :  { %2479 = vst.msk [vmem:[%s7737_s3 + $0x3f8] sm:$0xff] %vm270_vm0, %v2223_v19  ;;  %v1973_v20 = vadd.f32 %v5456_v49, %v1711_v15  ;;  %v1713_v25 = vmul.f32 %v2749_v61, %v5426_v3  ;;  %v2224_v17 = vmax.f32 %v1968_v59, 0.0  ;;  %v2225_v26 = vmax.f32 %v1969_v12, 0.0  ;;  %v2763_v59 = vld [vmem:[%s7734_s0 + $0x4a8] sm:$0xff]  ;;  %v2764_v61 = vld [vmem:[%s7734_s0 + $0x4b0] sm:$0xff] }
 0x2b0   :  { %v2226_v29 = vmax.f32 %v1970_v18, 0.0  ;;  %v2227_v4 = vmax.f32 %v1971_v58, 0.0  ;;  %v2228_v21 = vmax.f32 %v1972_v8, 0.0  ;;  %v1974_v32 = vadd.f32 %v5456_v49, %v1712_v22 }
 0x2b1   :  { %v2229_v28 = vmax.f32 %v1973_v20, 0.0  ;;  %v1975_v11 = vadd.f32 %v5456_v49, %v1713_v25  ;;  %2480 = vst.msk [vmem:[%s7737_s3 + $0x400] sm:$0xff] %vm270_vm0, %v2224_v17  ;;  %2481 = vst.msk [vmem:[%s7737_s3 + $0x408] sm:$0xff] %vm270_vm0, %v2225_v26  ;;  %v1714_v31 = vmul.f32 %v2750_v35, %v5426_v3  ;;  %v1715_v30 = vmul.f32 %v2751_v1, %v5426_v3  ;;  %v2765_v17 = vld [vmem:[%s7734_s0 + $0x4b8] sm:$0xff]  ;;  %v2766_v1 = vld [vmem:[%s7734_s0 + $0x4c0] sm:$0xff] }
 0x2b2   :  { %2482 = vst.msk [vmem:[%s7737_s3 + $0x410] sm:$0xff] %vm270_vm0, %v2226_v29  ;;  %2483 = vst.msk [vmem:[%s7737_s3 + $0x418] sm:$0xff] %vm270_vm0, %v2227_v4  ;;  %v1716_v2 = vmul.f32 %v2752_v27, %v5426_v3  ;;  %v1717_v34 = vmul.f32 %v2753_v38, %v5426_v3  ;;  %v2230_v36 = vmax.f32 %v1974_v32, 0.0  ;;  %v1718_v37 = vmul.f32 %v2754_v41, %v5426_v3  ;;  %v2767_v27 = vld [vmem:[%s7734_s0 + $0x4c8] sm:$0xff]  ;;  %v2768_v38 = vld [vmem:[%s7734_s0 + $0x4d0] sm:$0xff] }
 0x2b3   :  { %2484 = vst.msk [vmem:[%s7737_s3 + $0x420] sm:$0xff] %vm270_vm0, %v2228_v21  ;;  %2485 = vst.msk [vmem:[%s7737_s3 + $0x428] sm:$0xff] %vm270_vm0, %v2229_v28  ;;  %v2231_v0 = vmax.f32 %v1975_v11, 0.0  ;;  %v1719_v7 = vmul.f32 %v2755_v42, %v5426_v3  ;;  %v1976_v44 = vadd.f32 %v5456_v49, %v1714_v31  ;;  %v1977_v45 = vadd.f32 %v5456_v49, %v1715_v30  ;;  %v2770_v42 = vld [vmem:[%s7734_s0 + $0x4e0] sm:$0xff] }
 0x2b4   :  { %v1978_v57 = vadd.f32 %v5456_v49, %v1716_v2  ;;  %v1979_v40 = vadd.f32 %v5456_v49, %v1717_v34  ;;  %2486 = vst.msk [vmem:[%s7737_s3 + $0x430] sm:$0xff] %vm270_vm0, %v2230_v36  ;;  %v1980_v47 = vadd.f32 %v5456_v49, %v1718_v37  ;;  %v1720_v6 = vmul.f32 %v2756_v43, %v5426_v3  ;;  %v2769_v36 = vld [vmem:[%s7734_s0 + $0x4d8] sm:$0xff] }
 0x2b5   :  { %2487 = vst.msk [vmem:[%s7737_s3 + $0x438] sm:$0xff] %vm270_vm0, %v2231_v0  ;;  %v1981_v50 = vadd.f32 %v5456_v49, %v1719_v7  ;;  %v1721_v53 = vmul.f32 %v2757_v51, %v5426_v3  ;;  %v2232_v54 = vmax.f32 %v1976_v44, 0.0  ;;  %v2233_v10 = vmax.f32 %v1977_v45, 0.0  ;;  %v2771_v44 = vld [vmem:[%s7734_s0 + $0x4e8] sm:$0xff]  ;;  %v2772_v51 = vld [vmem:[%s7734_s0 + $0x4f0] sm:$0xff] }
 0x2b6   :  { %v2234_v46 = vmax.f32 %v1978_v57, 0.0  ;;  %v2235_v23 = vmax.f32 %v1979_v40, 0.0  ;;  %v2236_v56 = vmax.f32 %v1980_v47, 0.0  ;;  %v1982_v60 = vadd.f32 %v5456_v49, %v1720_v6 }
 0x2b7   :  { %v2237_v13 = vmax.f32 %v1981_v50, 0.0  ;;  %v1983_v33 = vadd.f32 %v5456_v49, %v1721_v53  ;;  %2488 = vst.msk [vmem:[%s7737_s3 + $0x440] sm:$0xff] %vm270_vm0, %v2232_v54  ;;  %2489 = vst.msk [vmem:[%s7737_s3 + $0x448] sm:$0xff] %vm270_vm0, %v2233_v10  ;;  %v1722_v63 = vmul.f32 %v2758_v62, %v5426_v3  ;;  %v1723_v16 = vmul.f32 %v2759_v5, %v5426_v3  ;;  %v2773_v54 = vld [vmem:[%s7734_s0 + $0x4f8] sm:$0xff]  ;;  %v2774_v5 = vld [vmem:[%s7734_s0 + $0x500] sm:$0xff] }
 0x2b8   :  { %2490 = vst.msk [vmem:[%s7737_s3 + $0x450] sm:$0xff] %vm270_vm0, %v2234_v46  ;;  %2491 = vst.msk [vmem:[%s7737_s3 + $0x458] sm:$0xff] %vm270_vm0, %v2235_v23  ;;  %v1724_v52 = vmul.f32 %v2760_v39, %v5426_v3  ;;  %v1725_v19 = vmul.f32 %v2761_v9, %v5426_v3  ;;  %v2238_v55 = vmax.f32 %v1982_v60, 0.0  ;;  %v1726_v15 = vmul.f32 %v2762_v14, %v5426_v3  ;;  %v2775_v39 = vld [vmem:[%s7734_s0 + $0x508] sm:$0xff]  ;;  %v2776_v9 = vld [vmem:[%s7734_s0 + $0x510] sm:$0xff] }
 0x2b9   :  { %2492 = vst.msk [vmem:[%s7737_s3 + $0x460] sm:$0xff] %vm270_vm0, %v2236_v56  ;;  %2493 = vst.msk [vmem:[%s7737_s3 + $0x468] sm:$0xff] %vm270_vm0, %v2237_v13  ;;  %v2239_v48 = vmax.f32 %v1983_v33, 0.0  ;;  %v1727_v12 = vmul.f32 %v2763_v59, %v5426_v3  ;;  %v1984_v18 = vadd.f32 %v5456_v49, %v1722_v63  ;;  %v1985_v58 = vadd.f32 %v5456_v49, %v1723_v16  ;;  %v2778_v59 = vld [vmem:[%s7734_s0 + $0x520] sm:$0xff] }
 0x2ba   :  { %v1986_v8 = vadd.f32 %v5456_v49, %v1724_v52  ;;  %v1987_v20 = vadd.f32 %v5456_v49, %v1725_v19  ;;  %2494 = vst.msk [vmem:[%s7737_s3 + $0x470] sm:$0xff] %vm270_vm0, %v2238_v55  ;;  %v1988_v24 = vadd.f32 %v5456_v49, %v1726_v15  ;;  %v1728_v25 = vmul.f32 %v2764_v61, %v5426_v3  ;;  %v2777_v55 = vld [vmem:[%s7734_s0 + $0x518] sm:$0xff] }
 0x2bb   :  { %2495 = vst.msk [vmem:[%s7737_s3 + $0x478] sm:$0xff] %vm270_vm0, %v2239_v48  ;;  %v1989_v22 = vadd.f32 %v5456_v49, %v1727_v12  ;;  %v1729_v26 = vmul.f32 %v2765_v17, %v5426_v3  ;;  %v2240_v29 = vmax.f32 %v1984_v18, 0.0  ;;  %v2241_v4 = vmax.f32 %v1985_v58, 0.0  ;;  %v2779_v18 = vld [vmem:[%s7734_s0 + $0x528] sm:$0xff]  ;;  %v2780_v17 = vld [vmem:[%s7734_s0 + $0x530] sm:$0xff] }
 0x2bc   :  { %v2242_v21 = vmax.f32 %v1986_v8, 0.0  ;;  %v2243_v28 = vmax.f32 %v1987_v20, 0.0  ;;  %v2244_v32 = vmax.f32 %v1988_v24, 0.0  ;;  %v1990_v35 = vadd.f32 %v5456_v49, %v1728_v25 }
 0x2bd   :  { %v2245_v11 = vmax.f32 %v1989_v22, 0.0  ;;  %v1991_v31 = vadd.f32 %v5456_v49, %v1729_v26  ;;  %2496 = vst.msk [vmem:[%s7737_s3 + $0x480] sm:$0xff] %vm270_vm0, %v2240_v29  ;;  %2497 = vst.msk [vmem:[%s7737_s3 + $0x488] sm:$0xff] %vm270_vm0, %v2241_v4  ;;  %v1730_v30 = vmul.f32 %v2766_v1, %v5426_v3  ;;  %v1731_v2 = vmul.f32 %v2767_v27, %v5426_v3  ;;  %v2781_v29 = vld [vmem:[%s7734_s0 + $0x538] sm:$0xff]  ;;  %v2782_v27 = vld [vmem:[%s7734_s0 + $0x540] sm:$0xff] }
 0x2be   :  { %2498 = vst.msk [vmem:[%s7737_s3 + $0x490] sm:$0xff] %vm270_vm0, %v2242_v21  ;;  %2499 = vst.msk [vmem:[%s7737_s3 + $0x498] sm:$0xff] %vm270_vm0, %v2243_v28  ;;  %v1732_v34 = vmul.f32 %v2768_v38, %v5426_v3  ;;  %v1733_v0 = vmul.f32 %v2769_v36, %v5426_v3  ;;  %v2246_v41 = vmax.f32 %v1990_v35, 0.0  ;;  %v1734_v7 = vmul.f32 %v2770_v42, %v5426_v3  ;;  %v2783_v38 = vld [vmem:[%s7734_s0 + $0x548] sm:$0xff]  ;;  %v2784_v36 = vld [vmem:[%s7734_s0 + $0x550] sm:$0xff] }
 0x2bf   :  { %2500 = vst.msk [vmem:[%s7737_s3 + $0x4a0] sm:$0xff] %vm270_vm0, %v2244_v32  ;;  %2501 = vst.msk [vmem:[%s7737_s3 + $0x4a8] sm:$0xff] %vm270_vm0, %v2245_v11  ;;  %v2247_v37 = vmax.f32 %v1991_v31, 0.0  ;;  %v1735_v45 = vmul.f32 %v2771_v44, %v5426_v3  ;;  %v1992_v57 = vadd.f32 %v5456_v49, %v1730_v30  ;;  %v1993_v40 = vadd.f32 %v5456_v49, %v1731_v2  ;;  %v2786_v44 = vld [vmem:[%s7734_s0 + $0x560] sm:$0xff] }
 0x2c0   :  { %v1994_v47 = vadd.f32 %v5456_v49, %v1732_v34  ;;  %v1995_v50 = vadd.f32 %v5456_v49, %v1733_v0  ;;  %2502 = vst.msk [vmem:[%s7737_s3 + $0x4b0] sm:$0xff] %vm270_vm0, %v2246_v41  ;;  %v1996_v43 = vadd.f32 %v5456_v49, %v1734_v7  ;;  %v1736_v53 = vmul.f32 %v2772_v51, %v5426_v3  ;;  %v2785_v41 = vld [vmem:[%s7734_s0 + $0x558] sm:$0xff] }
 0x2c1   :  { %2503 = vst.msk [vmem:[%s7737_s3 + $0x4b8] sm:$0xff] %vm270_vm0, %v2247_v37  ;;  %v1997_v6 = vadd.f32 %v5456_v49, %v1735_v45  ;;  %v1737_v10 = vmul.f32 %v2773_v54, %v5426_v3  ;;  %v2248_v46 = vmax.f32 %v1992_v57, 0.0  ;;  %v2249_v23 = vmax.f32 %v1993_v40, 0.0  ;;  %v2787_v57 = vld [vmem:[%s7734_s0 + $0x568] sm:$0xff]  ;;  %v2788_v54 = vld [vmem:[%s7734_s0 + $0x570] sm:$0xff] }
 0x2c2   :  { %v2250_v56 = vmax.f32 %v1994_v47, 0.0  ;;  %v2251_v13 = vmax.f32 %v1995_v50, 0.0  ;;  %v2252_v60 = vmax.f32 %v1996_v43, 0.0  ;;  %v1998_v62 = vadd.f32 %v5456_v49, %v1736_v53 }
 0x2c3   :  { %v2253_v33 = vmax.f32 %v1997_v6, 0.0  ;;  %v1999_v63 = vadd.f32 %v5456_v49, %v1737_v10  ;;  %2504 = vst.msk [vmem:[%s7737_s3 + $0x4c0] sm:$0xff] %vm270_vm0, %v2248_v46  ;;  %2505 = vst.msk [vmem:[%s7737_s3 + $0x4c8] sm:$0xff] %vm270_vm0, %v2249_v23  ;;  %v1738_v16 = vmul.f32 %v2774_v5, %v5426_v3  ;;  %v1739_v52 = vmul.f32 %v2775_v39, %v5426_v3  ;;  %v2789_v46 = vld [vmem:[%s7734_s0 + $0x578] sm:$0xff]  ;;  %v2790_v39 = vld [vmem:[%s7734_s0 + $0x580] sm:$0xff] }
 0x2c4   :  { %2506 = vst.msk [vmem:[%s7737_s3 + $0x4d0] sm:$0xff] %vm270_vm0, %v2250_v56  ;;  %2507 = vst.msk [vmem:[%s7737_s3 + $0x4d8] sm:$0xff] %vm270_vm0, %v2251_v13  ;;  %v1740_v19 = vmul.f32 %v2776_v9, %v5426_v3  ;;  %v1741_v48 = vmul.f32 %v2777_v55, %v5426_v3  ;;  %v2254_v14 = vmax.f32 %v1998_v62, 0.0  ;;  %v1742_v12 = vmul.f32 %v2778_v59, %v5426_v3  ;;  %v2791_v9 = vld [vmem:[%s7734_s0 + $0x588] sm:$0xff]  ;;  %v2792_v55 = vld [vmem:[%s7734_s0 + $0x590] sm:$0xff] }
 0x2c5   :  { %2508 = vst.msk [vmem:[%s7737_s3 + $0x4e0] sm:$0xff] %vm270_vm0, %v2252_v60  ;;  %2509 = vst.msk [vmem:[%s7737_s3 + $0x4e8] sm:$0xff] %vm270_vm0, %v2253_v33  ;;  %v2255_v15 = vmax.f32 %v1999_v63, 0.0  ;;  %v1743_v58 = vmul.f32 %v2779_v18, %v5426_v3  ;;  %v2000_v8 = vadd.f32 %v5456_v49, %v1738_v16  ;;  %v2001_v20 = vadd.f32 %v5456_v49, %v1739_v52  ;;  %v2794_v18 = vld [vmem:[%s7734_s0 + $0x5a0] sm:$0xff] }
 0x2c6   :  { %v2002_v24 = vadd.f32 %v5456_v49, %v1740_v19  ;;  %v2003_v22 = vadd.f32 %v5456_v49, %v1741_v48  ;;  %2510 = vst.msk [vmem:[%s7737_s3 + $0x4f0] sm:$0xff] %vm270_vm0, %v2254_v14  ;;  %v2004_v61 = vadd.f32 %v5456_v49, %v1742_v12  ;;  %v1744_v26 = vmul.f32 %v2780_v17, %v5426_v3  ;;  %v2793_v14 = vld [vmem:[%s7734_s0 + $0x598] sm:$0xff] }
 0x2c7   :  { %2511 = vst.msk [vmem:[%s7737_s3 + $0x4f8] sm:$0xff] %vm270_vm0, %v2255_v15  ;;  %v2005_v25 = vadd.f32 %v5456_v49, %v1743_v58  ;;  %v1745_v4 = vmul.f32 %v2781_v29, %v5426_v3  ;;  %v2256_v21 = vmax.f32 %v2000_v8, 0.0  ;;  %v2257_v28 = vmax.f32 %v2001_v20, 0.0  ;;  %v2795_v8 = vld [vmem:[%s7734_s0 + $0x5a8] sm:$0xff]  ;;  %v2796_v29 = vld [vmem:[%s7734_s0 + $0x5b0] sm:$0xff] }
 0x2c8   :  { %v2258_v32 = vmax.f32 %v2002_v24, 0.0  ;;  %v2259_v11 = vmax.f32 %v2003_v22, 0.0  ;;  %v2260_v35 = vmax.f32 %v2004_v61, 0.0  ;;  %v2006_v1 = vadd.f32 %v5456_v49, %v1744_v26 }
 0x2c9   :  { %v2261_v31 = vmax.f32 %v2005_v25, 0.0  ;;  %v2007_v30 = vadd.f32 %v5456_v49, %v1745_v4  ;;  %2512 = vst.msk [vmem:[%s7737_s3 + $0x500] sm:$0xff] %vm270_vm0, %v2256_v21  ;;  %2513 = vst.msk [vmem:[%s7737_s3 + $0x508] sm:$0xff] %vm270_vm0, %v2257_v28  ;;  %v1746_v2 = vmul.f32 %v2782_v27, %v5426_v3  ;;  %v1747_v34 = vmul.f32 %v2783_v38, %v5426_v3  ;;  %v2797_v21 = vld [vmem:[%s7734_s0 + $0x5b8] sm:$0xff]  ;;  %v2798_v38 = vld [vmem:[%s7734_s0 + $0x5c0] sm:$0xff] }
 0x2ca   :  { %2514 = vst.msk [vmem:[%s7737_s3 + $0x510] sm:$0xff] %vm270_vm0, %v2258_v32  ;;  %2515 = vst.msk [vmem:[%s7737_s3 + $0x518] sm:$0xff] %vm270_vm0, %v2259_v11  ;;  %v1748_v0 = vmul.f32 %v2784_v36, %v5426_v3  ;;  %v1749_v37 = vmul.f32 %v2785_v41, %v5426_v3  ;;  %v2262_v42 = vmax.f32 %v2006_v1, 0.0  ;;  %v1750_v45 = vmul.f32 %v2786_v44, %v5426_v3  ;;  %v2799_v36 = vld [vmem:[%s7734_s0 + $0x5c8] sm:$0xff]  ;;  %v2800_v41 = vld [vmem:[%s7734_s0 + $0x5d0] sm:$0xff] }
 0x2cb   :  { %2516 = vst.msk [vmem:[%s7737_s3 + $0x520] sm:$0xff] %vm270_vm0, %v2260_v35  ;;  %2517 = vst.msk [vmem:[%s7737_s3 + $0x528] sm:$0xff] %vm270_vm0, %v2261_v31  ;;  %v2263_v7 = vmax.f32 %v2007_v30, 0.0  ;;  %v1751_v40 = vmul.f32 %v2787_v57, %v5426_v3  ;;  %v2008_v47 = vadd.f32 %v5456_v49, %v1746_v2  ;;  %v2009_v50 = vadd.f32 %v5456_v49, %v1747_v34  ;;  %v2802_v57 = vld [vmem:[%s7734_s0 + $0x5e0] sm:$0xff] }
 0x2cc   :  { %v2010_v43 = vadd.f32 %v5456_v49, %v1748_v0  ;;  %v2011_v6 = vadd.f32 %v5456_v49, %v1749_v37  ;;  %2518 = vst.msk [vmem:[%s7737_s3 + $0x530] sm:$0xff] %vm270_vm0, %v2262_v42  ;;  %v2012_v51 = vadd.f32 %v5456_v49, %v1750_v45  ;;  %v1752_v10 = vmul.f32 %v2788_v54, %v5426_v3  ;;  %v2801_v42 = vld [vmem:[%s7734_s0 + $0x5d8] sm:$0xff] }
 0x2cd   :  { %2519 = vst.msk [vmem:[%s7737_s3 + $0x538] sm:$0xff] %vm270_vm0, %v2263_v7  ;;  %v2013_v53 = vadd.f32 %v5456_v49, %v1751_v40  ;;  %v1753_v23 = vmul.f32 %v2789_v46, %v5426_v3  ;;  %v2264_v56 = vmax.f32 %v2008_v47, 0.0  ;;  %v2265_v13 = vmax.f32 %v2009_v50, 0.0  ;;  %v2803_v47 = vld [vmem:[%s7734_s0 + $0x5e8] sm:$0xff]  ;;  %v2804_v46 = vld [vmem:[%s7734_s0 + $0x5f0] sm:$0xff] }
 0x2ce   :  { %v2266_v60 = vmax.f32 %v2010_v43, 0.0  ;;  %v2267_v33 = vmax.f32 %v2011_v6, 0.0  ;;  %v2268_v62 = vmax.f32 %v2012_v51, 0.0  ;;  %v2014_v5 = vadd.f32 %v5456_v49, %v1752_v10 }
 0x2cf   :  { %v2269_v63 = vmax.f32 %v2013_v53, 0.0  ;;  %v2015_v16 = vadd.f32 %v5456_v49, %v1753_v23  ;;  %2520 = vst.msk [vmem:[%s7737_s3 + $0x540] sm:$0xff] %vm270_vm0, %v2264_v56  ;;  %2521 = vst.msk [vmem:[%s7737_s3 + $0x548] sm:$0xff] %vm270_vm0, %v2265_v13  ;;  %v1754_v52 = vmul.f32 %v2790_v39, %v5426_v3  ;;  %v1755_v19 = vmul.f32 %v2791_v9, %v5426_v3  ;;  %v2805_v56 = vld [vmem:[%s7734_s0 + $0x5f8] sm:$0xff]  ;;  %v2806_v9 = vld [vmem:[%s7734_s0 + $0x600] sm:$0xff] }
 0x2d0   :  { %2522 = vst.msk [vmem:[%s7737_s3 + $0x550] sm:$0xff] %vm270_vm0, %v2266_v60  ;;  %2523 = vst.msk [vmem:[%s7737_s3 + $0x558] sm:$0xff] %vm270_vm0, %v2267_v33  ;;  %v1756_v48 = vmul.f32 %v2792_v55, %v5426_v3  ;;  %v1757_v15 = vmul.f32 %v2793_v14, %v5426_v3  ;;  %v2270_v59 = vmax.f32 %v2014_v5, 0.0  ;;  %v1758_v58 = vmul.f32 %v2794_v18, %v5426_v3  ;;  %v2807_v55 = vld [vmem:[%s7734_s0 + $0x608] sm:$0xff]  ;;  %v2808_v14 = vld [vmem:[%s7734_s0 + $0x610] sm:$0xff] }
 0x2d1   :  { %2524 = vst.msk [vmem:[%s7737_s3 + $0x560] sm:$0xff] %vm270_vm0, %v2268_v62  ;;  %2525 = vst.msk [vmem:[%s7737_s3 + $0x568] sm:$0xff] %vm270_vm0, %v2269_v63  ;;  %v2271_v12 = vmax.f32 %v2015_v16, 0.0  ;;  %v1759_v20 = vmul.f32 %v2795_v8, %v5426_v3  ;;  %v2016_v24 = vadd.f32 %v5456_v49, %v1754_v52  ;;  %v2017_v22 = vadd.f32 %v5456_v49, %v1755_v19  ;;  %v2810_v8 = vld [vmem:[%s7734_s0 + $0x620] sm:$0xff] }
 0x2d2   :  { %v2018_v61 = vadd.f32 %v5456_v49, %v1756_v48  ;;  %v2019_v25 = vadd.f32 %v5456_v49, %v1757_v15  ;;  %2526 = vst.msk [vmem:[%s7737_s3 + $0x570] sm:$0xff] %vm270_vm0, %v2270_v59  ;;  %v2020_v17 = vadd.f32 %v5456_v49, %v1758_v58  ;;  %v1760_v4 = vmul.f32 %v2796_v29, %v5426_v3  ;;  %v2809_v59 = vld [vmem:[%s7734_s0 + $0x618] sm:$0xff] }
 0x2d3   :  { %2527 = vst.msk [vmem:[%s7737_s3 + $0x578] sm:$0xff] %vm270_vm0, %v2271_v12  ;;  %v2021_v26 = vadd.f32 %v5456_v49, %v1759_v20  ;;  %v1761_v28 = vmul.f32 %v2797_v21, %v5426_v3  ;;  %v2272_v32 = vmax.f32 %v2016_v24, 0.0  ;;  %v2273_v11 = vmax.f32 %v2017_v22, 0.0  ;;  %v2811_v24 = vld [vmem:[%s7734_s0 + $0x628] sm:$0xff]  ;;  %v2812_v21 = vld [vmem:[%s7734_s0 + $0x630] sm:$0xff] }
 0x2d4   :  { %v2274_v35 = vmax.f32 %v2018_v61, 0.0  ;;  %v2275_v31 = vmax.f32 %v2019_v25, 0.0  ;;  %v2276_v1 = vmax.f32 %v2020_v17, 0.0  ;;  %v2022_v27 = vadd.f32 %v5456_v49, %v1760_v4 }
 0x2d5   :  { %v2277_v30 = vmax.f32 %v2021_v26, 0.0  ;;  %v2023_v2 = vadd.f32 %v5456_v49, %v1761_v28  ;;  %2528 = vst.msk [vmem:[%s7737_s3 + $0x580] sm:$0xff] %vm270_vm0, %v2272_v32  ;;  %2529 = vst.msk [vmem:[%s7737_s3 + $0x588] sm:$0xff] %vm270_vm0, %v2273_v11  ;;  %v1762_v34 = vmul.f32 %v2798_v38, %v5426_v3  ;;  %v1763_v0 = vmul.f32 %v2799_v36, %v5426_v3  ;;  %v2813_v32 = vld [vmem:[%s7734_s0 + $0x638] sm:$0xff]  ;;  %v2814_v36 = vld [vmem:[%s7734_s0 + $0x640] sm:$0xff] }
 0x2d6   :  { %2530 = vst.msk [vmem:[%s7737_s3 + $0x590] sm:$0xff] %vm270_vm0, %v2274_v35  ;;  %2531 = vst.msk [vmem:[%s7737_s3 + $0x598] sm:$0xff] %vm270_vm0, %v2275_v31  ;;  %v1764_v37 = vmul.f32 %v2800_v41, %v5426_v3  ;;  %v1765_v7 = vmul.f32 %v2801_v42, %v5426_v3  ;;  %v2278_v44 = vmax.f32 %v2022_v27, 0.0  ;;  %v1766_v40 = vmul.f32 %v2802_v57, %v5426_v3  ;;  %v2815_v41 = vld [vmem:[%s7734_s0 + $0x648] sm:$0xff]  ;;  %v2816_v42 = vld [vmem:[%s7734_s0 + $0x650] sm:$0xff] }
 0x2d7   :  { %2532 = vst.msk [vmem:[%s7737_s3 + $0x5a0] sm:$0xff] %vm270_vm0, %v2276_v1  ;;  %2533 = vst.msk [vmem:[%s7737_s3 + $0x5a8] sm:$0xff] %vm270_vm0, %v2277_v30  ;;  %v2279_v45 = vmax.f32 %v2023_v2, 0.0  ;;  %v1767_v50 = vmul.f32 %v2803_v47, %v5426_v3  ;;  %v2024_v43 = vadd.f32 %v5456_v49, %v1762_v34  ;;  %v2025_v6 = vadd.f32 %v5456_v49, %v1763_v0  ;;  %v2818_v47 = vld [vmem:[%s7734_s0 + $0x660] sm:$0xff] }
 0x2d8   :  { %v2026_v51 = vadd.f32 %v5456_v49, %v1764_v37  ;;  %v2027_v53 = vadd.f32 %v5456_v49, %v1765_v7  ;;  %2534 = vst.msk [vmem:[%s7737_s3 + $0x5b0] sm:$0xff] %vm270_vm0, %v2278_v44  ;;  %v2028_v54 = vadd.f32 %v5456_v49, %v1766_v40  ;;  %v1768_v23 = vmul.f32 %v2804_v46, %v5426_v3  ;;  %v2817_v44 = vld [vmem:[%s7734_s0 + $0x658] sm:$0xff] }
 0x2d9   :  { %2535 = vst.msk [vmem:[%s7737_s3 + $0x5b8] sm:$0xff] %vm270_vm0, %v2279_v45  ;;  %v2029_v10 = vadd.f32 %v5456_v49, %v1767_v50  ;;  %v1769_v13 = vmul.f32 %v2805_v56, %v5426_v3  ;;  %v2280_v60 = vmax.f32 %v2024_v43, 0.0  ;;  %v2281_v33 = vmax.f32 %v2025_v6, 0.0  ;;  %v2819_v43 = vld [vmem:[%s7734_s0 + $0x668] sm:$0xff]  ;;  %v2820_v56 = vld [vmem:[%s7734_s0 + $0x670] sm:$0xff] }
 0x2da   :  { %v2282_v62 = vmax.f32 %v2026_v51, 0.0  ;;  %v2283_v63 = vmax.f32 %v2027_v53, 0.0  ;;  %v2284_v5 = vmax.f32 %v2028_v54, 0.0  ;;  %v2030_v39 = vadd.f32 %v5456_v49, %v1768_v23 }
 0x2db   :  { %v2285_v16 = vmax.f32 %v2029_v10, 0.0  ;;  %v2031_v52 = vadd.f32 %v5456_v49, %v1769_v13  ;;  %2536 = vst.msk [vmem:[%s7737_s3 + $0x5c0] sm:$0xff] %vm270_vm0, %v2280_v60  ;;  %2537 = vst.msk [vmem:[%s7737_s3 + $0x5c8] sm:$0xff] %vm270_vm0, %v2281_v33  ;;  %v1770_v19 = vmul.f32 %v2806_v9, %v5426_v3  ;;  %v1771_v48 = vmul.f32 %v2807_v55, %v5426_v3  ;;  %v2821_v60 = vld [vmem:[%s7734_s0 + $0x678] sm:$0xff]  ;;  %v2822_v55 = vld [vmem:[%s7734_s0 + $0x680] sm:$0xff] }
 0x2dc   :  { %2538 = vst.msk [vmem:[%s7737_s3 + $0x5d0] sm:$0xff] %vm270_vm0, %v2282_v62  ;;  %2539 = vst.msk [vmem:[%s7737_s3 + $0x5d8] sm:$0xff] %vm270_vm0, %v2283_v63  ;;  %v1772_v15 = vmul.f32 %v2808_v14, %v5426_v3  ;;  %v1773_v12 = vmul.f32 %v2809_v59, %v5426_v3  ;;  %v2286_v18 = vmax.f32 %v2030_v39, 0.0  ;;  %v1774_v20 = vmul.f32 %v2810_v8, %v5426_v3  ;;  %v2823_v14 = vld [vmem:[%s7734_s0 + $0x688] sm:$0xff]  ;;  %v2824_v59 = vld [vmem:[%s7734_s0 + $0x690] sm:$0xff] }
 0x2dd   :  { %2540 = vst.msk [vmem:[%s7737_s3 + $0x5e0] sm:$0xff] %vm270_vm0, %v2284_v5  ;;  %2541 = vst.msk [vmem:[%s7737_s3 + $0x5e8] sm:$0xff] %vm270_vm0, %v2285_v16  ;;  %v2287_v58 = vmax.f32 %v2031_v52, 0.0  ;;  %v1775_v22 = vmul.f32 %v2811_v24, %v5426_v3  ;;  %v2032_v61 = vadd.f32 %v5456_v49, %v1770_v19  ;;  %v2033_v25 = vadd.f32 %v5456_v49, %v1771_v48  ;;  %v2826_v24 = vld [vmem:[%s7734_s0 + $0x6a0] sm:$0xff] }
 0x2de   :  { %v2034_v17 = vadd.f32 %v5456_v49, %v1772_v15  ;;  %v2035_v26 = vadd.f32 %v5456_v49, %v1773_v12  ;;  %2542 = vst.msk [vmem:[%s7737_s3 + $0x5f0] sm:$0xff] %vm270_vm0, %v2286_v18  ;;  %v2036_v29 = vadd.f32 %v5456_v49, %v1774_v20  ;;  %v1776_v28 = vmul.f32 %v2812_v21, %v5426_v3  ;;  %v2825_v18 = vld [vmem:[%s7734_s0 + $0x698] sm:$0xff] }
 0x2df   :  { %2543 = vst.msk [vmem:[%s7737_s3 + $0x5f8] sm:$0xff] %vm270_vm0, %v2287_v58  ;;  %v2037_v4 = vadd.f32 %v5456_v49, %v1775_v22  ;;  %v1777_v11 = vmul.f32 %v2813_v32, %v5426_v3  ;;  %v2288_v35 = vmax.f32 %v2032_v61, 0.0  ;;  %v2289_v31 = vmax.f32 %v2033_v25, 0.0  ;;  %v2827_v61 = vld [vmem:[%s7734_s0 + $0x6a8] sm:$0xff]  ;;  %v2828_v32 = vld [vmem:[%s7734_s0 + $0x6b0] sm:$0xff] }
 0x2e0   :  { %v2290_v1 = vmax.f32 %v2034_v17, 0.0  ;;  %v2291_v30 = vmax.f32 %v2035_v26, 0.0  ;;  %v2292_v27 = vmax.f32 %v2036_v29, 0.0  ;;  %v2038_v38 = vadd.f32 %v5456_v49, %v1776_v28 }
 0x2e1   :  { %v2293_v2 = vmax.f32 %v2037_v4, 0.0  ;;  %v2039_v34 = vadd.f32 %v5456_v49, %v1777_v11  ;;  %2544 = vst.msk [vmem:[%s7737_s3 + $0x600] sm:$0xff] %vm270_vm0, %v2288_v35  ;;  %2545 = vst.msk [vmem:[%s7737_s3 + $0x608] sm:$0xff] %vm270_vm0, %v2289_v31  ;;  %v1778_v0 = vmul.f32 %v2814_v36, %v5426_v3  ;;  %v1779_v37 = vmul.f32 %v2815_v41, %v5426_v3  ;;  %v2829_v35 = vld [vmem:[%s7734_s0 + $0x6b8] sm:$0xff]  ;;  %v2830_v41 = vld [vmem:[%s7734_s0 + $0x6c0] sm:$0xff] }
 0x2e2   :  { %2546 = vst.msk [vmem:[%s7737_s3 + $0x610] sm:$0xff] %vm270_vm0, %v2290_v1  ;;  %2547 = vst.msk [vmem:[%s7737_s3 + $0x618] sm:$0xff] %vm270_vm0, %v2291_v30  ;;  %v1780_v7 = vmul.f32 %v2816_v42, %v5426_v3  ;;  %v1781_v45 = vmul.f32 %v2817_v44, %v5426_v3  ;;  %v2294_v57 = vmax.f32 %v2038_v38, 0.0  ;;  %v1782_v50 = vmul.f32 %v2818_v47, %v5426_v3  ;;  %v2831_v42 = vld [vmem:[%s7734_s0 + $0x6c8] sm:$0xff]  ;;  %v2832_v44 = vld [vmem:[%s7734_s0 + $0x6d0] sm:$0xff] }
 0x2e3   :  { %2548 = vst.msk [vmem:[%s7737_s3 + $0x620] sm:$0xff] %vm270_vm0, %v2292_v27  ;;  %2549 = vst.msk [vmem:[%s7737_s3 + $0x628] sm:$0xff] %vm270_vm0, %v2293_v2  ;;  %v2295_v40 = vmax.f32 %v2039_v34, 0.0  ;;  %v1783_v6 = vmul.f32 %v2819_v43, %v5426_v3  ;;  %v2040_v51 = vadd.f32 %v5456_v49, %v1778_v0  ;;  %v2041_v53 = vadd.f32 %v5456_v49, %v1779_v37  ;;  %v2834_v43 = vld [vmem:[%s7734_s0 + $0x6e0] sm:$0xff] }
 0x2e4   :  { %v2042_v54 = vadd.f32 %v5456_v49, %v1780_v7  ;;  %v2043_v10 = vadd.f32 %v5456_v49, %v1781_v45  ;;  %2550 = vst.msk [vmem:[%s7737_s3 + $0x630] sm:$0xff] %vm270_vm0, %v2294_v57  ;;  %v2044_v46 = vadd.f32 %v5456_v49, %v1782_v50  ;;  %v1784_v13 = vmul.f32 %v2820_v56, %v5426_v3  ;;  %v2833_v57 = vld [vmem:[%s7734_s0 + $0x6d8] sm:$0xff] }
 0x2e5   :  { %2551 = vst.msk [vmem:[%s7737_s3 + $0x638] sm:$0xff] %vm270_vm0, %v2295_v40  ;;  %v2045_v23 = vadd.f32 %v5456_v49, %v1783_v6  ;;  %v1785_v33 = vmul.f32 %v2821_v60, %v5426_v3  ;;  %v2296_v62 = vmax.f32 %v2040_v51, 0.0  ;;  %v2297_v63 = vmax.f32 %v2041_v53, 0.0  ;;  %v2835_v51 = vld [vmem:[%s7734_s0 + $0x6e8] sm:$0xff]  ;;  %v2836_v60 = vld [vmem:[%s7734_s0 + $0x6f0] sm:$0xff] }
 0x2e6   :  { %v2298_v5 = vmax.f32 %v2042_v54, 0.0  ;;  %v2299_v16 = vmax.f32 %v2043_v10, 0.0  ;;  %v2300_v39 = vmax.f32 %v2044_v46, 0.0  ;;  %v2046_v9 = vadd.f32 %v5456_v49, %v1784_v13 }
 0x2e7   :  { %v2301_v52 = vmax.f32 %v2045_v23, 0.0  ;;  %v2047_v19 = vadd.f32 %v5456_v49, %v1785_v33  ;;  %2552 = vst.msk [vmem:[%s7737_s3 + $0x640] sm:$0xff] %vm270_vm0, %v2296_v62  ;;  %2553 = vst.msk [vmem:[%s7737_s3 + $0x648] sm:$0xff] %vm270_vm0, %v2297_v63  ;;  %v1786_v48 = vmul.f32 %v2822_v55, %v5426_v3  ;;  %v1787_v15 = vmul.f32 %v2823_v14, %v5426_v3  ;;  %v2837_v62 = vld [vmem:[%s7734_s0 + $0x6f8] sm:$0xff]  ;;  %v2838_v14 = vld [vmem:[%s7734_s0 + $0x700] sm:$0xff] }
 0x2e8   :  { %2554 = vst.msk [vmem:[%s7737_s3 + $0x650] sm:$0xff] %vm270_vm0, %v2298_v5  ;;  %2555 = vst.msk [vmem:[%s7737_s3 + $0x658] sm:$0xff] %vm270_vm0, %v2299_v16  ;;  %v1788_v12 = vmul.f32 %v2824_v59, %v5426_v3  ;;  %v1789_v58 = vmul.f32 %v2825_v18, %v5426_v3  ;;  %v2302_v8 = vmax.f32 %v2046_v9, 0.0  ;;  %v1790_v22 = vmul.f32 %v2826_v24, %v5426_v3  ;;  %v2839_v59 = vld [vmem:[%s7734_s0 + $0x708] sm:$0xff]  ;;  %v2840_v18 = vld [vmem:[%s7734_s0 + $0x710] sm:$0xff] }
 0x2e9   :  { %2556 = vst.msk [vmem:[%s7737_s3 + $0x660] sm:$0xff] %vm270_vm0, %v2300_v39  ;;  %2557 = vst.msk [vmem:[%s7737_s3 + $0x668] sm:$0xff] %vm270_vm0, %v2301_v52  ;;  %v2303_v20 = vmax.f32 %v2047_v19, 0.0  ;;  %v1791_v25 = vmul.f32 %v2827_v61, %v5426_v3  ;;  %v2048_v17 = vadd.f32 %v5456_v49, %v1786_v48  ;;  %v2049_v26 = vadd.f32 %v5456_v49, %v1787_v15  ;;  %v2842_v61 = vld [vmem:[%s7734_s0 + $0x720] sm:$0xff] }
 0x2ea   :  { %v2050_v29 = vadd.f32 %v5456_v49, %v1788_v12  ;;  %v2051_v4 = vadd.f32 %v5456_v49, %v1789_v58  ;;  %2558 = vst.msk [vmem:[%s7737_s3 + $0x670] sm:$0xff] %vm270_vm0, %v2302_v8  ;;  %v2052_v21 = vadd.f32 %v5456_v49, %v1790_v22  ;;  %v1792_v11 = vmul.f32 %v2828_v32, %v5426_v3  ;;  %v2841_v8 = vld [vmem:[%s7734_s0 + $0x718] sm:$0xff] }
 0x2eb   :  { %2559 = vst.msk [vmem:[%s7737_s3 + $0x678] sm:$0xff] %vm270_vm0, %v2303_v20  ;;  %v2053_v28 = vadd.f32 %v5456_v49, %v1791_v25  ;;  %v1793_v31 = vmul.f32 %v2829_v35, %v5426_v3  ;;  %v2304_v1 = vmax.f32 %v2048_v17, 0.0  ;;  %v2305_v30 = vmax.f32 %v2049_v26, 0.0  ;;  %v2843_v17 = vld [vmem:[%s7734_s0 + $0x728] sm:$0xff]  ;;  %v2844_v35 = vld [vmem:[%s7734_s0 + $0x730] sm:$0xff] }
 0x2ec   :  { %v2306_v27 = vmax.f32 %v2050_v29, 0.0  ;;  %v2307_v2 = vmax.f32 %v2051_v4, 0.0  ;;  %v2308_v38 = vmax.f32 %v2052_v21, 0.0  ;;  %v2054_v36 = vadd.f32 %v5456_v49, %v1792_v11 }
 0x2ed   :  { %v2309_v34 = vmax.f32 %v2053_v28, 0.0  ;;  %v2055_v0 = vadd.f32 %v5456_v49, %v1793_v31  ;;  %2560 = vst.msk [vmem:[%s7737_s3 + $0x680] sm:$0xff] %vm270_vm0, %v2304_v1  ;;  %2561 = vst.msk [vmem:[%s7737_s3 + $0x688] sm:$0xff] %vm270_vm0, %v2305_v30  ;;  %v1794_v37 = vmul.f32 %v2830_v41, %v5426_v3  ;;  %v1795_v7 = vmul.f32 %v2831_v42, %v5426_v3  ;;  %v2845_v1 = vld [vmem:[%s7734_s0 + $0x738] sm:$0xff]  ;;  %v2846_v42 = vld [vmem:[%s7734_s0 + $0x740] sm:$0xff] }
 0x2ee   :  { %2562 = vst.msk [vmem:[%s7737_s3 + $0x690] sm:$0xff] %vm270_vm0, %v2306_v27  ;;  %2563 = vst.msk [vmem:[%s7737_s3 + $0x698] sm:$0xff] %vm270_vm0, %v2307_v2  ;;  %v1796_v45 = vmul.f32 %v2832_v44, %v5426_v3  ;;  %v1797_v40 = vmul.f32 %v2833_v57, %v5426_v3  ;;  %v2310_v47 = vmax.f32 %v2054_v36, 0.0  ;;  %v1798_v6 = vmul.f32 %v2834_v43, %v5426_v3  ;;  %v2847_v44 = vld [vmem:[%s7734_s0 + $0x748] sm:$0xff]  ;;  %v2848_v57 = vld [vmem:[%s7734_s0 + $0x750] sm:$0xff] }
 0x2ef   :  { %2564 = vst.msk [vmem:[%s7737_s3 + $0x6a0] sm:$0xff] %vm270_vm0, %v2308_v38  ;;  %2565 = vst.msk [vmem:[%s7737_s3 + $0x6a8] sm:$0xff] %vm270_vm0, %v2309_v34  ;;  %v2311_v50 = vmax.f32 %v2055_v0, 0.0  ;;  %v1799_v53 = vmul.f32 %v2835_v51, %v5426_v3  ;;  %v2056_v54 = vadd.f32 %v5456_v49, %v1794_v37  ;;  %v2057_v10 = vadd.f32 %v5456_v49, %v1795_v7  ;;  %v2850_v51 = vld [vmem:[%s7734_s0 + $0x760] sm:$0xff] }
 0x2f0   :  { %v2058_v46 = vadd.f32 %v5456_v49, %v1796_v45  ;;  %v2059_v23 = vadd.f32 %v5456_v49, %v1797_v40  ;;  %2566 = vst.msk [vmem:[%s7737_s3 + $0x6b0] sm:$0xff] %vm270_vm0, %v2310_v47  ;;  %v2060_v56 = vadd.f32 %v5456_v49, %v1798_v6  ;;  %v1800_v33 = vmul.f32 %v2836_v60, %v5426_v3  ;;  %v2849_v47 = vld [vmem:[%s7734_s0 + $0x758] sm:$0xff] }
 0x2f1   :  { %2567 = vst.msk [vmem:[%s7737_s3 + $0x6b8] sm:$0xff] %vm270_vm0, %v2311_v50  ;;  %v2061_v13 = vadd.f32 %v5456_v49, %v1799_v53  ;;  %v1801_v63 = vmul.f32 %v2837_v62, %v5426_v3  ;;  %v2312_v5 = vmax.f32 %v2056_v54, 0.0  ;;  %v2313_v16 = vmax.f32 %v2057_v10, 0.0  ;;  %v2851_v54 = vld [vmem:[%s7734_s0 + $0x768] sm:$0xff]  ;;  %v2852_v62 = vld [vmem:[%s7734_s0 + $0x770] sm:$0xff] }
 0x2f2   :  { %v2314_v39 = vmax.f32 %v2058_v46, 0.0  ;;  %v2315_v52 = vmax.f32 %v2059_v23, 0.0  ;;  %v2316_v9 = vmax.f32 %v2060_v56, 0.0  ;;  %v2062_v55 = vadd.f32 %v5456_v49, %v1800_v33 }
 0x2f3   :  { %v2317_v19 = vmax.f32 %v2061_v13, 0.0  ;;  %v2063_v48 = vadd.f32 %v5456_v49, %v1801_v63  ;;  %2568 = vst.msk [vmem:[%s7737_s3 + $0x6c0] sm:$0xff] %vm270_vm0, %v2312_v5  ;;  %2569 = vst.msk [vmem:[%s7737_s3 + $0x6c8] sm:$0xff] %vm270_vm0, %v2313_v16  ;;  %v1802_v15 = vmul.f32 %v2838_v14, %v5426_v3  ;;  %v1803_v12 = vmul.f32 %v2839_v59, %v5426_v3  ;;  %v2853_v5 = vld [vmem:[%s7734_s0 + $0x778] sm:$0xff]  ;;  %v2854_v59 = vld [vmem:[%s7734_s0 + $0x780] sm:$0xff] }
 0x2f4   :  { %2570 = vst.msk [vmem:[%s7737_s3 + $0x6d0] sm:$0xff] %vm270_vm0, %v2314_v39  ;;  %2571 = vst.msk [vmem:[%s7737_s3 + $0x6d8] sm:$0xff] %vm270_vm0, %v2315_v52  ;;  %v1804_v58 = vmul.f32 %v2840_v18, %v5426_v3  ;;  %v1805_v20 = vmul.f32 %v2841_v8, %v5426_v3  ;;  %v2318_v24 = vmax.f32 %v2062_v55, 0.0  ;;  %v1806_v25 = vmul.f32 %v2842_v61, %v5426_v3  ;;  %v2855_v18 = vld [vmem:[%s7734_s0 + $0x788] sm:$0xff]  ;;  %v2856_v8 = vld [vmem:[%s7734_s0 + $0x790] sm:$0xff] }
 0x2f5   :  { %2572 = vst.msk [vmem:[%s7737_s3 + $0x6e0] sm:$0xff] %vm270_vm0, %v2316_v9  ;;  %2573 = vst.msk [vmem:[%s7737_s3 + $0x6e8] sm:$0xff] %vm270_vm0, %v2317_v19  ;;  %v2319_v22 = vmax.f32 %v2063_v48, 0.0  ;;  %v1807_v26 = vmul.f32 %v2843_v17, %v5426_v3  ;;  %v2064_v29 = vadd.f32 %v5456_v49, %v1802_v15  ;;  %v2065_v4 = vadd.f32 %v5456_v49, %v1803_v12  ;;  %v2858_v17 = vld [vmem:[%s7734_s0 + $0x7a0] sm:$0xff] }
 0x2f6   :  { %v2066_v21 = vadd.f32 %v5456_v49, %v1804_v58  ;;  %v2067_v28 = vadd.f32 %v5456_v49, %v1805_v20  ;;  %2574 = vst.msk [vmem:[%s7737_s3 + $0x6f0] sm:$0xff] %vm270_vm0, %v2318_v24  ;;  %v2068_v32 = vadd.f32 %v5456_v49, %v1806_v25  ;;  %v1808_v31 = vmul.f32 %v2844_v35, %v5426_v3  ;;  %v2857_v24 = vld [vmem:[%s7734_s0 + $0x798] sm:$0xff] }
 0x2f7   :  { %2575 = vst.msk [vmem:[%s7737_s3 + $0x6f8] sm:$0xff] %vm270_vm0, %v2319_v22  ;;  %v2069_v11 = vadd.f32 %v5456_v49, %v1807_v26  ;;  %v1809_v30 = vmul.f32 %v2845_v1, %v5426_v3  ;;  %v2320_v27 = vmax.f32 %v2064_v29, 0.0  ;;  %v2321_v2 = vmax.f32 %v2065_v4, 0.0  ;;  %v2859_v29 = vld [vmem:[%s7734_s0 + $0x7a8] sm:$0xff]  ;;  %v2860_v1 = vld [vmem:[%s7734_s0 + $0x7b0] sm:$0xff] }
 0x2f8   :  { %v2322_v38 = vmax.f32 %v2066_v21, 0.0  ;;  %v2323_v34 = vmax.f32 %v2067_v28, 0.0  ;;  %v2324_v36 = vmax.f32 %v2068_v32, 0.0  ;;  %v2070_v41 = vadd.f32 %v5456_v49, %v1808_v31 }
 0x2f9   :  { %v2325_v0 = vmax.f32 %v2069_v11, 0.0  ;;  %v2071_v37 = vadd.f32 %v5456_v49, %v1809_v30  ;;  %2576 = vst.msk [vmem:[%s7737_s3 + $0x700] sm:$0xff] %vm270_vm0, %v2320_v27  ;;  %2577 = vst.msk [vmem:[%s7737_s3 + $0x708] sm:$0xff] %vm270_vm0, %v2321_v2  ;;  %v1810_v7 = vmul.f32 %v2846_v42, %v5426_v3  ;;  %v1811_v45 = vmul.f32 %v2847_v44, %v5426_v3  ;;  %v2861_v27 = vld [vmem:[%s7734_s0 + $0x7b8] sm:$0xff]  ;;  %v2862_v44 = vld [vmem:[%s7734_s0 + $0x7c0] sm:$0xff] }
 0x2fa   :  { %2578 = vst.msk [vmem:[%s7737_s3 + $0x710] sm:$0xff] %vm270_vm0, %v2322_v38  ;;  %2579 = vst.msk [vmem:[%s7737_s3 + $0x718] sm:$0xff] %vm270_vm0, %v2323_v34  ;;  %v1812_v40 = vmul.f32 %v2848_v57, %v5426_v3  ;;  %v1813_v50 = vmul.f32 %v2849_v47, %v5426_v3  ;;  %v2326_v43 = vmax.f32 %v2070_v41, 0.0  ;;  %v1814_v53 = vmul.f32 %v2850_v51, %v5426_v3  ;;  %v2863_v57 = vld [vmem:[%s7734_s0 + $0x7c8] sm:$0xff]  ;;  %v2864_v47 = vld [vmem:[%s7734_s0 + $0x7d0] sm:$0xff] }
 0x2fb   :  { %2580 = vst.msk [vmem:[%s7737_s3 + $0x720] sm:$0xff] %vm270_vm0, %v2324_v36  ;;  %2581 = vst.msk [vmem:[%s7737_s3 + $0x728] sm:$0xff] %vm270_vm0, %v2325_v0  ;;  %v2327_v6 = vmax.f32 %v2071_v37, 0.0  ;;  %v1815_v10 = vmul.f32 %v2851_v54, %v5426_v3  ;;  %v2072_v46 = vadd.f32 %v5456_v49, %v1810_v7  ;;  %v2073_v23 = vadd.f32 %v5456_v49, %v1811_v45  ;;  %v2866_v54 = vld [vmem:[%s7734_s0 + $0x7e0] sm:$0xff] }
 0x2fc   :  { %v2074_v56 = vadd.f32 %v5456_v49, %v1812_v40  ;;  %v2075_v13 = vadd.f32 %v5456_v49, %v1813_v50  ;;  %2582 = vst.msk [vmem:[%s7737_s3 + $0x730] sm:$0xff] %vm270_vm0, %v2326_v43  ;;  %v2076_v60 = vadd.f32 %v5456_v49, %v1814_v53  ;;  %v1816_v63 = vmul.f32 %v2852_v62, %v5426_v3  ;;  %v2865_v43 = vld [vmem:[%s7734_s0 + $0x7d8] sm:$0xff] }
 0x2fd   :  { %2583 = vst.msk [vmem:[%s7737_s3 + $0x738] sm:$0xff] %vm270_vm0, %v2327_v6  ;;  %v2077_v33 = vadd.f32 %v5456_v49, %v1815_v10  ;;  %v1817_v16 = vmul.f32 %v2853_v5, %v5426_v3  ;;  %v2328_v39 = vmax.f32 %v2072_v46, 0.0  ;;  %v2329_v52 = vmax.f32 %v2073_v23, 0.0  ;;  %v2867_v46 = vld [vmem:[%s7734_s0 + $0x7e8] sm:$0xff]  ;;  %v2868_v5 = vld [vmem:[%s7734_s0 + $0x7f0] sm:$0xff] }
 0x2fe   :  { %v2330_v9 = vmax.f32 %v2074_v56, 0.0  ;;  %v2331_v19 = vmax.f32 %v2075_v13, 0.0  ;;  %v2332_v55 = vmax.f32 %v2076_v60, 0.0  ;;  %v2078_v14 = vadd.f32 %v5456_v49, %v1816_v63 }
 0x2ff   :  { %v2333_v48 = vmax.f32 %v2077_v33, 0.0  ;;  %v2079_v15 = vadd.f32 %v5456_v49, %v1817_v16  ;;  %2584 = vst.msk [vmem:[%s7737_s3 + $0x740] sm:$0xff] %vm270_vm0, %v2328_v39  ;;  %2585 = vst.msk [vmem:[%s7737_s3 + $0x748] sm:$0xff] %vm270_vm0, %v2329_v52  ;;  %v1818_v12 = vmul.f32 %v2854_v59, %v5426_v3  ;;  %v1819_v58 = vmul.f32 %v2855_v18, %v5426_v3  ;;  %v2869_v39 = vld [vmem:[%s7734_s0 + $0x7f8] sm:$0xff] }
 0x300   :  { %2586 = vst.msk [vmem:[%s7737_s3 + $0x750] sm:$0xff] %vm270_vm0, %v2330_v9  ;;  %2587 = vst.msk [vmem:[%s7737_s3 + $0x758] sm:$0xff] %vm270_vm0, %v2331_v19  ;;  %v1820_v20 = vmul.f32 %v2856_v8, %v5426_v3  ;;  %v1821_v22 = vmul.f32 %v2857_v24, %v5426_v3  ;;  %v2334_v61 = vmax.f32 %v2078_v14, 0.0  ;;  %v1822_v26 = vmul.f32 %v2858_v17, %v5426_v3 }
 0x301   :  { %2588 = vst.msk [vmem:[%s7737_s3 + $0x760] sm:$0xff] %vm270_vm0, %v2332_v55  ;;  %2589 = vst.msk [vmem:[%s7737_s3 + $0x768] sm:$0xff] %vm270_vm0, %v2333_v48  ;;  %v2335_v25 = vmax.f32 %v2079_v15, 0.0  ;;  %v1823_v4 = vmul.f32 %v2859_v29, %v5426_v3  ;;  %v2080_v21 = vadd.f32 %v5456_v49, %v1818_v12  ;;  %v2081_v28 = vadd.f32 %v5456_v49, %v1819_v58 }
 0x302   :  { %v2082_v32 = vadd.f32 %v5456_v49, %v1820_v20  ;;  %v2083_v11 = vadd.f32 %v5456_v49, %v1821_v22  ;;  %2590 = vst.msk [vmem:[%s7737_s3 + $0x770] sm:$0xff] %vm270_vm0, %v2334_v61  ;;  %v2084_v35 = vadd.f32 %v5456_v49, %v1822_v26  ;;  %v1824_v30 = vmul.f32 %v2860_v1, %v5426_v3 }
 0x303   :  { %2591 = vst.msk [vmem:[%s7737_s3 + $0x778] sm:$0xff] %vm270_vm0, %v2335_v25  ;;  %v2085_v31 = vadd.f32 %v5456_v49, %v1823_v4  ;;  %v1825_v2 = vmul.f32 %v2861_v27, %v5426_v3  ;;  %v2336_v38 = vmax.f32 %v2080_v21, 0.0  ;;  %v2337_v34 = vmax.f32 %v2081_v28, 0.0 }
 0x304   :  { %v2338_v36 = vmax.f32 %v2082_v32, 0.0  ;;  %v2339_v0 = vmax.f32 %v2083_v11, 0.0  ;;  %v2340_v41 = vmax.f32 %v2084_v35, 0.0  ;;  %v2086_v42 = vadd.f32 %v5456_v49, %v1824_v30 }
 0x305   :  { %v2341_v37 = vmax.f32 %v2085_v31, 0.0  ;;  %v2087_v7 = vadd.f32 %v5456_v49, %v1825_v2  ;;  %2592 = vst.msk [vmem:[%s7737_s3 + $0x780] sm:$0xff] %vm270_vm0, %v2336_v38  ;;  %2593 = vst.msk [vmem:[%s7737_s3 + $0x788] sm:$0xff] %vm270_vm0, %v2337_v34  ;;  %v1826_v45 = vmul.f32 %v2862_v44, %v5426_v3  ;;  %v1827_v40 = vmul.f32 %v2863_v57, %v5426_v3 }
 0x306   :  { %2594 = vst.msk [vmem:[%s7737_s3 + $0x790] sm:$0xff] %vm270_vm0, %v2338_v36  ;;  %2595 = vst.msk [vmem:[%s7737_s3 + $0x798] sm:$0xff] %vm270_vm0, %v2339_v0  ;;  %v1828_v50 = vmul.f32 %v2864_v47, %v5426_v3  ;;  %v1829_v6 = vmul.f32 %v2865_v43, %v5426_v3  ;;  %v2342_v51 = vmax.f32 %v2086_v42, 0.0  ;;  %v1830_v10 = vmul.f32 %v2866_v54, %v5426_v3 }
 0x307   :  { %2596 = vst.msk [vmem:[%s7737_s3 + $0x7a0] sm:$0xff] %vm270_vm0, %v2340_v41  ;;  %2597 = vst.msk [vmem:[%s7737_s3 + $0x7a8] sm:$0xff] %vm270_vm0, %v2341_v37  ;;  %v2343_v53 = vmax.f32 %v2087_v7, 0.0  ;;  %v1831_v23 = vmul.f32 %v2867_v46, %v5426_v3  ;;  %v2088_v56 = vadd.f32 %v5456_v49, %v1826_v45  ;;  %v2089_v13 = vadd.f32 %v5456_v49, %v1827_v40 }
 0x308   :  { %v2090_v60 = vadd.f32 %v5456_v49, %v1828_v50  ;;  %v2091_v33 = vadd.f32 %v5456_v49, %v1829_v6  ;;  %2598 = vst.msk [vmem:[%s7737_s3 + $0x7b0] sm:$0xff] %vm270_vm0, %v2342_v51  ;;  %v2092_v62 = vadd.f32 %v5456_v49, %v1830_v10  ;;  %v1832_v16 = vmul.f32 %v2868_v5, %v5426_v3 }
 0x309   :  { %2599 = vst.msk [vmem:[%s7737_s3 + $0x7b8] sm:$0xff] %vm270_vm0, %v2343_v53  ;;  %v2093_v63 = vadd.f32 %v5456_v49, %v1831_v23  ;;  %v1833_v52 = vmul.f32 %v2869_v39, %v5426_v3  ;;  %v2344_v9 = vmax.f32 %v2088_v56, 0.0  ;;  %v2345_v19 = vmax.f32 %v2089_v13, 0.0 }
 0x30a   :  { %v2346_v55 = vmax.f32 %v2090_v60, 0.0  ;;  %v2347_v48 = vmax.f32 %v2091_v33, 0.0  ;;  %v2348_v14 = vmax.f32 %v2092_v62, 0.0  ;;  %v2094_v59 = vadd.f32 %v5456_v49, %v1832_v16 }
 0x30b   :  { %v2349_v15 = vmax.f32 %v2093_v63, 0.0  ;;  %v2095_v12 = vadd.f32 %v5456_v49, %v1833_v52  ;;  %2600 = vst.msk [vmem:[%s7737_s3 + $0x7c0] sm:$0xff] %vm270_vm0, %v2344_v9  ;;  %2601 = vst.msk [vmem:[%s7737_s3 + $0x7c8] sm:$0xff] %vm270_vm0, %v2345_v19 }
 0x30c   :  { %2602 = vst.msk [vmem:[%s7737_s3 + $0x7d0] sm:$0xff] %vm270_vm0, %v2346_v55  ;;  %2603 = vst.msk [vmem:[%s7737_s3 + $0x7d8] sm:$0xff] %vm270_vm0, %v2347_v48  ;;  %v2350_v3 = vmax.f32 %v2094_v59, 0.0 }
 0x30d   :  { %2604 = vst.msk [vmem:[%s7737_s3 + $0x7e0] sm:$0xff] %vm270_vm0, %v2348_v14  ;;  %2605 = vst.msk [vmem:[%s7737_s3 + $0x7e8] sm:$0xff] %vm270_vm0, %v2349_v15  ;;  %v2351_v49 = vmax.f32 %v2095_v12, 0.0 }
 0x30e   :  { %2606 = vst.msk [vmem:[%s7737_s3 + $0x7f0] sm:$0xff] %vm270_vm0, %v2350_v3 }
 0x30f   :  { %2607 = vst.msk [vmem:[%s7737_s3 + $0x7f8] sm:$0xff] %vm270_vm0, %v2351_v49 }

// kernel: _lambda_.18
= control target key start
LH: loop header
LB: loop body
LE: loop exit
PB: predicated region body
PF: predicated region fallthrough
CT: control target
= control target key end

     0   :  { %vm269_vm0 = vcmask 130048   ;;  %s5620_s1 = inlined_call_operand.vmem [shape: f32[16,16], index: 1, kind: input, shape index: {}]   ;;  %s5621_s0 = inlined_call_operand.vmem [shape: f32[2048,16], index: 0, kind: input, shape index: {}]   ;;  %s5622_s2 = inlined_call_operand.vmem [shape: f32[2048,16], index: 2, kind: output, shape index: {}]  }
   0x1   :  { %v267_v0 = vld [vmem:[%s5620_s1] sm:$0xff]  ;;  %v268_v1 = vld [vmem:[%s5620_s1 + $0x8] sm:$0xff]  ;;  %v13_v7 = vld [vmem:[%s5621_s0 + $0x10] sm:$0xff] }
   0x2   :  { %v11_v2 = vld [vmem:[%s5621_s0] sm:$0xff]  ;;  %v3545_v3 = vpack.c.bf16 %v268_v1, %v267_v0  ;;  %v12_v5 = vld [vmem:[%s5621_s0 + $0x8] sm:$0xff]  ;;  %v141_v8 = vld [vmem:[%s5621_s0 + $0x410] sm:$0xff] }
   0x3   :  { %3161 = vmatprep.mubr.msk.f32.mxu0 %vm269_vm0, %v11_v2  ;;  %v139_v4 = vld [vmem:[%s5621_s0 + $0x400] sm:$0xff]  ;;  %v140_v6 = vld [vmem:[%s5621_s0 + $0x408] sm:$0xff]  ;;  %v14_v9 = vld [vmem:[%s5621_s0 + $0x18] sm:$0xff] }
   0x4   :  { %3353 = vmatprep.mubr.msk.f32.mxu1 %vm269_vm0, %v139_v4  ;;  %3546 = vmatprep.subr.bf16.mxu0 %v3545_v3  ;;  %v142_v10 = vld [vmem:[%s5621_s0 + $0x418] sm:$0xff]  ;;  %v15_v11 = vld [vmem:[%s5621_s0 + $0x20] sm:$0xff]  ;;  %v16_v13 = vld [vmem:[%s5621_s0 + $0x28] sm:$0xff] }
   0x5   :  { %3549 = vmatprep.subr.bf16.mxu1 %v3545_v3  ;;  %3548 = vmatpush3.bf16.msra.mxu0 %v3545_v3  ;;  %v143_v12 = vld [vmem:[%s5621_s0 + $0x420] sm:$0xff]  ;;  %v144_v14 = vld [vmem:[%s5621_s0 + $0x428] sm:$0xff]  ;;  %v17_v15 = vld [vmem:[%s5621_s0 + $0x30] sm:$0xff] }
   0x6   :  { %3550 = vmatpush3.bf16.msra.mxu1 %v3545_v3  ;;  %v145_v16 = vld [vmem:[%s5621_s0 + $0x430] sm:$0xff]  ;;  %v18_v17 = vld [vmem:[%s5621_s0 + $0x38] sm:$0xff]  ;;  %v19_v19 = vld [vmem:[%s5621_s0 + $0x40] sm:$0xff] }
   0x7   :  { %v146_v18 = vld [vmem:[%s5621_s0 + $0x438] sm:$0xff]  ;;  %v147_v20 = vld [vmem:[%s5621_s0 + $0x440] sm:$0xff]  ;;  %v20_v21 = vld [vmem:[%s5621_s0 + $0x48] sm:$0xff] }
   0x8   :  { %3162 = vmatmul.mubr.msk.f32.vlgmr.msra.gmra.mrb[0].mxu0 %vm269_vm0, %v12_v5  ;;  %v148_v22 = vld [vmem:[%s5621_s0 + $0x448] sm:$0xff]  ;;  %v21_v23 = vld [vmem:[%s5621_s0 + $0x50] sm:$0xff]  ;;  %v22_v25 = vld [vmem:[%s5621_s0 + $0x58] sm:$0xff] }
   0x9   :  { %3354 = vmatmul.mubr.msk.f32.vlgmr.msra.gmra.mrb[0].mxu1 %vm269_vm0, %v140_v6  ;;  %3164 = vmatprep.mubr.msk.f32.mxu0 %vm269_vm0, %v13_v7  ;;  %v149_v24 = vld [vmem:[%s5621_s0 + $0x450] sm:$0xff]  ;;  %v150_v26 = vld [vmem:[%s5621_s0 + $0x458] sm:$0xff]  ;;  %v23_v27 = vld [vmem:[%s5621_s0 + $0x60] sm:$0xff] }
   0xa   :  { %3356 = vmatprep.mubr.msk.f32.mxu1 %vm269_vm0, %v141_v8  ;;  %v151_v28 = vld [vmem:[%s5621_s0 + $0x460] sm:$0xff]  ;;  %v24_v29 = vld [vmem:[%s5621_s0 + $0x68] sm:$0xff]  ;;  %v25_v31 = vld [vmem:[%s5621_s0 + $0x70] sm:$0xff] }
   0xb   :  { %v152_v30 = vld [vmem:[%s5621_s0 + $0x468] sm:$0xff]  ;;  %v153_v32 = vld [vmem:[%s5621_s0 + $0x470] sm:$0xff]  ;;  %v26_v33 = vld [vmem:[%s5621_s0 + $0x78] sm:$0xff] }
   0xc   :  { %3165 = vmatmul.mubr.msk.f32.gmra.mrb[2].mxu0 %vm269_vm0, %v14_v9  ;;  %v154_v34 = vld [vmem:[%s5621_s0 + $0x478] sm:$0xff]  ;;  %v27_v35 = vld [vmem:[%s5621_s0 + $0x80] sm:$0xff]  ;;  %v28_v37 = vld [vmem:[%s5621_s0 + $0x88] sm:$0xff] }
   0xd   :  { %3357 = vmatmul.mubr.msk.f32.gmra.mrb[2].mxu1 %vm269_vm0, %v142_v10  ;;  %3167 = vmatprep.mubr.msk.f32.mxu0 %vm269_vm0, %v15_v11  ;;  %v155_v36 = vld [vmem:[%s5621_s0 + $0x480] sm:$0xff]  ;;  %v156_v38 = vld [vmem:[%s5621_s0 + $0x488] sm:$0xff]  ;;  %v29_v39 = vld [vmem:[%s5621_s0 + $0x90] sm:$0xff] }
   0xe   :  { %3359 = vmatprep.mubr.msk.f32.mxu1 %vm269_vm0, %v143_v12  ;;  %v157_v40 = vld [vmem:[%s5621_s0 + $0x490] sm:$0xff]  ;;  %v30_v41 = vld [vmem:[%s5621_s0 + $0x98] sm:$0xff]  ;;  %v31_v43 = vld [vmem:[%s5621_s0 + $0xa0] sm:$0xff] }
   0xf   :  { %v158_v42 = vld [vmem:[%s5621_s0 + $0x498] sm:$0xff]  ;;  %v159_v44 = vld [vmem:[%s5621_s0 + $0x4a0] sm:$0xff]  ;;  %v32_v45 = vld [vmem:[%s5621_s0 + $0xa8] sm:$0xff] }
  0x10   :  { %3168 = vmatmul.mubr.msk.f32.gmra.mrb[4].mxu0 %vm269_vm0, %v16_v13  ;;  %v160_v46 = vld [vmem:[%s5621_s0 + $0x4a8] sm:$0xff]  ;;  %v33_v47 = vld [vmem:[%s5621_s0 + $0xb0] sm:$0xff]  ;;  %v34_v49 = vld [vmem:[%s5621_s0 + $0xb8] sm:$0xff] }
  0x11   :  { %3360 = vmatmul.mubr.msk.f32.gmra.mrb[4].mxu1 %vm269_vm0, %v144_v14  ;;  %3170 = vmatprep.mubr.msk.f32.mxu0 %vm269_vm0, %v17_v15  ;;  %v161_v48 = vld [vmem:[%s5621_s0 + $0x4b0] sm:$0xff]  ;;  %v162_v50 = vld [vmem:[%s5621_s0 + $0x4b8] sm:$0xff]  ;;  %v35_v51 = vld [vmem:[%s5621_s0 + $0xc0] sm:$0xff] }
  0x12   :  { %3362 = vmatprep.mubr.msk.f32.mxu1 %vm269_vm0, %v145_v16  ;;  %v163_v52 = vld [vmem:[%s5621_s0 + $0x4c0] sm:$0xff]  ;;  %v36_v53 = vld [vmem:[%s5621_s0 + $0xc8] sm:$0xff]  ;;  %v37_v55 = vld [vmem:[%s5621_s0 + $0xd0] sm:$0xff] }
  0x13   :  { %v164_v54 = vld [vmem:[%s5621_s0 + $0x4c8] sm:$0xff]  ;;  %v165_v56 = vld [vmem:[%s5621_s0 + $0x4d0] sm:$0xff]  ;;  %v38_v57 = vld [vmem:[%s5621_s0 + $0xd8] sm:$0xff] }
  0x14   :  { %3171 = vmatmul.mubr.msk.f32.gmra.mrb[6].mxu0 %vm269_vm0, %v18_v17  ;;  %v166_v58 = vld [vmem:[%s5621_s0 + $0x4d8] sm:$0xff]  ;;  %v39_v59 = vld [vmem:[%s5621_s0 + $0xe0] sm:$0xff]  ;;  %v40_v61 = vld [vmem:[%s5621_s0 + $0xe8] sm:$0xff] }
  0x15   :  { %3363 = vmatmul.mubr.msk.f32.gmra.mrb[6].mxu1 %vm269_vm0, %v146_v18  ;;  %3173 = vmatprep.mubr.msk.f32.mxu0 %vm269_vm0, %v19_v19  ;;  %v167_v60 = vld [vmem:[%s5621_s0 + $0x4e0] sm:$0xff]  ;;  %v168_v62 = vld [vmem:[%s5621_s0 + $0x4e8] sm:$0xff]  ;;  %v41_v63 = vld [vmem:[%s5621_s0 + $0xf0] sm:$0xff] }
  0x16   :  { %3365 = vmatprep.mubr.msk.f32.mxu1 %vm269_vm0, %v147_v20  ;;  %v169_v0 = vld [vmem:[%s5621_s0 + $0x4f0] sm:$0xff]  ;;  %v42_v1 = vld [vmem:[%s5621_s0 + $0xf8] sm:$0xff]  ;;  %v43_v3 = vld [vmem:[%s5621_s0 + $0x100] sm:$0xff] }
  0x17   :  { %v170_v2 = vld [vmem:[%s5621_s0 + $0x4f8] sm:$0xff]  ;;  %v171_v4 = vld [vmem:[%s5621_s0 + $0x500] sm:$0xff]  ;;  %v44_v5 = vld [vmem:[%s5621_s0 + $0x108] sm:$0xff] }
  0x18   :  { %3174 = vmatmul.mubr.msk.f32.gmra.mrb[8].mxu0 %vm269_vm0, %v20_v21  ;;  %v172_v6 = vld [vmem:[%s5621_s0 + $0x508] sm:$0xff]  ;;  %v45_v7 = vld [vmem:[%s5621_s0 + $0x110] sm:$0xff]  ;;  %v46_v9 = vld [vmem:[%s5621_s0 + $0x118] sm:$0xff] }
  0x19   :  { %3366 = vmatmul.mubr.msk.f32.gmra.mrb[8].mxu1 %vm269_vm0, %v148_v22  ;;  %3176 = vmatprep.mubr.msk.f32.mxu0 %vm269_vm0, %v21_v23  ;;  %v173_v8 = vld [vmem:[%s5621_s0 + $0x510] sm:$0xff]  ;;  %v174_v10 = vld [vmem:[%s5621_s0 + $0x518] sm:$0xff]  ;;  %v47_v11 = vld [vmem:[%s5621_s0 + $0x120] sm:$0xff] }
  0x1a   :  { %3368 = vmatprep.mubr.msk.f32.mxu1 %vm269_vm0, %v149_v24  ;;  %v175_v12 = vld [vmem:[%s5621_s0 + $0x520] sm:$0xff]  ;;  %v48_v13 = vld [vmem:[%s5621_s0 + $0x128] sm:$0xff]  ;;  %v49_v15 = vld [vmem:[%s5621_s0 + $0x130] sm:$0xff] }
  0x1b   :  { %v176_v14 = vld [vmem:[%s5621_s0 + $0x528] sm:$0xff]  ;;  %v177_v16 = vld [vmem:[%s5621_s0 + $0x530] sm:$0xff]  ;;  %v50_v17 = vld [vmem:[%s5621_s0 + $0x138] sm:$0xff] }
  0x1c   :  { %3177 = vmatmul.mubr.msk.f32.gmra.mrb[10].mxu0 %vm269_vm0, %v22_v25  ;;  %v178_v18 = vld [vmem:[%s5621_s0 + $0x538] sm:$0xff]  ;;  %v51_v19 = vld [vmem:[%s5621_s0 + $0x140] sm:$0xff]  ;;  %v52_v21 = vld [vmem:[%s5621_s0 + $0x148] sm:$0xff] }
  0x1d   :  { %3369 = vmatmul.mubr.msk.f32.gmra.mrb[10].mxu1 %vm269_vm0, %v150_v26  ;;  %3179 = vmatprep.mubr.msk.f32.mxu0 %vm269_vm0, %v23_v27  ;;  %v179_v20 = vld [vmem:[%s5621_s0 + $0x540] sm:$0xff]  ;;  %v180_v22 = vld [vmem:[%s5621_s0 + $0x548] sm:$0xff]  ;;  %v53_v23 = vld [vmem:[%s5621_s0 + $0x150] sm:$0xff] }
  0x1e   :  { %3371 = vmatprep.mubr.msk.f32.mxu1 %vm269_vm0, %v151_v28  ;;  %v181_v24 = vld [vmem:[%s5621_s0 + $0x550] sm:$0xff]  ;;  %v54_v25 = vld [vmem:[%s5621_s0 + $0x158] sm:$0xff]  ;;  %v55_v27 = vld [vmem:[%s5621_s0 + $0x160] sm:$0xff] }
  0x1f   :  { %v182_v26 = vld [vmem:[%s5621_s0 + $0x558] sm:$0xff]  ;;  %v183_v28 = vld [vmem:[%s5621_s0 + $0x560] sm:$0xff] }
  0x20   :  { %3180 = vmatmul.mubr.msk.f32.gmra.mrb[12].mxu0 %vm269_vm0, %v24_v29  ;;  %v56_v29 = vld [vmem:[%s5621_s0 + $0x168] sm:$0xff] }
  0x21   :  { %3372 = vmatmul.mubr.msk.f32.gmra.mrb[12].mxu1 %vm269_vm0, %v152_v30  ;;  %3182 = vmatprep.mubr.msk.f32.mxu0 %vm269_vm0, %v25_v31  ;;  %v184_v30 = vld [vmem:[%s5621_s0 + $0x568] sm:$0xff]  ;;  %v57_v31 = vld [vmem:[%s5621_s0 + $0x170] sm:$0xff] }
  0x22   :  { %3374 = vmatprep.mubr.msk.f32.mxu1 %vm269_vm0, %v153_v32  ;;  %v185_v32 = vld [vmem:[%s5621_s0 + $0x570] sm:$0xff] }
  0x24   :  { %3183 = vmatmul.mubr.msk.f32.gmra.mrb[14].mxu0 %vm269_vm0, %v26_v33  ;;  %v58_v33 = vld [vmem:[%s5621_s0 + $0x178] sm:$0xff] }
  0x25   :  { %3375 = vmatmul.mubr.msk.f32.gmra.mrb[14].mxu1 %vm269_vm0, %v154_v34  ;;  %3185 = vmatprep.mubr.msk.f32.mxu0 %vm269_vm0, %v27_v35  ;;  %v186_v34 = vld [vmem:[%s5621_s0 + $0x578] sm:$0xff]  ;;  %v59_v35 = vld [vmem:[%s5621_s0 + $0x180] sm:$0xff] }
  0x26   :  { %3377 = vmatprep.mubr.msk.f32.mxu1 %vm269_vm0, %v155_v36  ;;  %v187_v36 = vld [vmem:[%s5621_s0 + $0x580] sm:$0xff] }
  0x28   :  { %3186 = vmatmul.mubr.msk.f32.gmra.mrb[16].mxu0 %vm269_vm0, %v28_v37  ;;  %v60_v37 = vld [vmem:[%s5621_s0 + $0x188] sm:$0xff] }
  0x29   :  { %3378 = vmatmul.mubr.msk.f32.gmra.mrb[16].mxu1 %vm269_vm0, %v156_v38  ;;  %3188 = vmatprep.mubr.msk.f32.mxu0 %vm269_vm0, %v29_v39  ;;  %v188_v38 = vld [vmem:[%s5621_s0 + $0x588] sm:$0xff]  ;;  %v61_v39 = vld [vmem:[%s5621_s0 + $0x190] sm:$0xff] }
  0x2a   :  { %3380 = vmatprep.mubr.msk.f32.mxu1 %vm269_vm0, %v157_v40  ;;  %v189_v40 = vld [vmem:[%s5621_s0 + $0x590] sm:$0xff] }
  0x2c   :  { %3189 = vmatmul.mubr.msk.f32.gmra.mrb[18].mxu0 %vm269_vm0, %v30_v41  ;;  %v62_v41 = vld [vmem:[%s5621_s0 + $0x198] sm:$0xff] }
  0x2d   :  { %3381 = vmatmul.mubr.msk.f32.gmra.mrb[18].mxu1 %vm269_vm0, %v158_v42  ;;  %3191 = vmatprep.mubr.msk.f32.mxu0 %vm269_vm0, %v31_v43  ;;  %v190_v42 = vld [vmem:[%s5621_s0 + $0x598] sm:$0xff]  ;;  %v63_v43 = vld [vmem:[%s5621_s0 + $0x1a0] sm:$0xff] }
  0x2e   :  { %3383 = vmatprep.mubr.msk.f32.mxu1 %vm269_vm0, %v159_v44  ;;  %v191_v44 = vld [vmem:[%s5621_s0 + $0x5a0] sm:$0xff] }
  0x30   :  { %3192 = vmatmul.mubr.msk.f32.gmra.mrb[20].mxu0 %vm269_vm0, %v32_v45  ;;  %v64_v45 = vld [vmem:[%s5621_s0 + $0x1a8] sm:$0xff] }
  0x31   :  { %3384 = vmatmul.mubr.msk.f32.gmra.mrb[20].mxu1 %vm269_vm0, %v160_v46  ;;  %3194 = vmatprep.mubr.msk.f32.mxu0 %vm269_vm0, %v33_v47  ;;  %v192_v46 = vld [vmem:[%s5621_s0 + $0x5a8] sm:$0xff]  ;;  %v65_v47 = vld [vmem:[%s5621_s0 + $0x1b0] sm:$0xff] }
  0x32   :  { %3386 = vmatprep.mubr.msk.f32.mxu1 %vm269_vm0, %v161_v48  ;;  %v193_v48 = vld [vmem:[%s5621_s0 + $0x5b0] sm:$0xff] }
  0x34   :  { %3195 = vmatmul.mubr.msk.f32.gmra.mrb[22].mxu0 %vm269_vm0, %v34_v49  ;;  %v66_v49 = vld [vmem:[%s5621_s0 + $0x1b8] sm:$0xff] }
  0x35   :  { %3387 = vmatmul.mubr.msk.f32.gmra.mrb[22].mxu1 %vm269_vm0, %v162_v50  ;;  %3197 = vmatprep.mubr.msk.f32.mxu0 %vm269_vm0, %v35_v51  ;;  %v194_v50 = vld [vmem:[%s5621_s0 + $0x5b8] sm:$0xff]  ;;  %v67_v51 = vld [vmem:[%s5621_s0 + $0x1c0] sm:$0xff] }
  0x36   :  { %3389 = vmatprep.mubr.msk.f32.mxu1 %vm269_vm0, %v163_v52  ;;  %v195_v52 = vld [vmem:[%s5621_s0 + $0x5c0] sm:$0xff] }
  0x38   :  { %3198 = vmatmul.mubr.msk.f32.gmra.mrb[24].mxu0 %vm269_vm0, %v36_v53  ;;  %v68_v53 = vld [vmem:[%s5621_s0 + $0x1c8] sm:$0xff] }
  0x39   :  { %3390 = vmatmul.mubr.msk.f32.gmra.mrb[24].mxu1 %vm269_vm0, %v164_v54  ;;  %3200 = vmatprep.mubr.msk.f32.mxu0 %vm269_vm0, %v37_v55  ;;  %v196_v54 = vld [vmem:[%s5621_s0 + $0x5c8] sm:$0xff]  ;;  %v69_v55 = vld [vmem:[%s5621_s0 + $0x1d0] sm:$0xff] }
  0x3a   :  { %3392 = vmatprep.mubr.msk.f32.mxu1 %vm269_vm0, %v165_v56  ;;  %v197_v56 = vld [vmem:[%s5621_s0 + $0x5d0] sm:$0xff] }
  0x3c   :  { %3201 = vmatmul.mubr.msk.f32.gmra.mrb[26].mxu0 %vm269_vm0, %v38_v57  ;;  %v70_v57 = vld [vmem:[%s5621_s0 + $0x1d8] sm:$0xff] }
  0x3d   :  { %3393 = vmatmul.mubr.msk.f32.gmra.mrb[26].mxu1 %vm269_vm0, %v166_v58  ;;  %3203 = vmatprep.mubr.msk.f32.mxu0 %vm269_vm0, %v39_v59  ;;  %v198_v58 = vld [vmem:[%s5621_s0 + $0x5d8] sm:$0xff]  ;;  %v71_v59 = vld [vmem:[%s5621_s0 + $0x1e0] sm:$0xff] }
  0x3e   :  { %3395 = vmatprep.mubr.msk.f32.mxu1 %vm269_vm0, %v167_v60  ;;  %v199_v60 = vld [vmem:[%s5621_s0 + $0x5e0] sm:$0xff] }
  0x40   :  { %3204 = vmatmul.mubr.msk.f32.gmra.mrb[28].mxu0 %vm269_vm0, %v40_v61  ;;  %v72_v61 = vld [vmem:[%s5621_s0 + $0x1e8] sm:$0xff] }
  0x41   :  { %3396 = vmatmul.mubr.msk.f32.gmra.mrb[28].mxu1 %vm269_vm0, %v168_v62  ;;  %3206 = vmatprep.mubr.msk.f32.mxu0 %vm269_vm0, %v41_v63  ;;  %v200_v62 = vld [vmem:[%s5621_s0 + $0x5e8] sm:$0xff]  ;;  %v73_v63 = vld [vmem:[%s5621_s0 + $0x1f0] sm:$0xff] }
  0x42   :  { %3398 = vmatprep.mubr.msk.f32.mxu1 %vm269_vm0, %v169_v0  ;;  %v201_v0 = vld [vmem:[%s5621_s0 + $0x5f0] sm:$0xff] }
  0x44   :  { %3207 = vmatmul.mubr.msk.f32.gmra.mrb[30].mxu0 %vm269_vm0, %v42_v1  ;;  %v74_v1 = vld [vmem:[%s5621_s0 + $0x1f8] sm:$0xff] }
  0x45   :  { %3399 = vmatmul.mubr.msk.f32.gmra.mrb[30].mxu1 %vm269_vm0, %v170_v2  ;;  %3209 = vmatprep.mubr.msk.f32.mxu0 %vm269_vm0, %v43_v3  ;;  %v202_v2 = vld [vmem:[%s5621_s0 + $0x5f8] sm:$0xff]  ;;  %v75_v3 = vld [vmem:[%s5621_s0 + $0x200] sm:$0xff] }
  0x46   :  { %3401 = vmatprep.mubr.msk.f32.mxu1 %vm269_vm0, %v171_v4  ;;  %v203_v4 = vld [vmem:[%s5621_s0 + $0x600] sm:$0xff] }
  0x48   :  { %3210 = vmatmul.mubr.msk.f32.gmra.mrb[32].mxu0 %vm269_vm0, %v44_v5  ;;  %v76_v5 = vld [vmem:[%s5621_s0 + $0x208] sm:$0xff] }
  0x49   :  { %3402 = vmatmul.mubr.msk.f32.gmra.mrb[32].mxu1 %vm269_vm0, %v172_v6  ;;  %3212 = vmatprep.mubr.msk.f32.mxu0 %vm269_vm0, %v45_v7  ;;  %v204_v6 = vld [vmem:[%s5621_s0 + $0x608] sm:$0xff]  ;;  %v77_v7 = vld [vmem:[%s5621_s0 + $0x210] sm:$0xff] }
  0x4a   :  { %3404 = vmatprep.mubr.msk.f32.mxu1 %vm269_vm0, %v173_v8  ;;  %v205_v8 = vld [vmem:[%s5621_s0 + $0x610] sm:$0xff] }
  0x4c   :  { %3213 = vmatmul.mubr.msk.f32.gmra.mrb[34].mxu0 %vm269_vm0, %v46_v9  ;;  %v78_v9 = vld [vmem:[%s5621_s0 + $0x218] sm:$0xff] }
  0x4d   :  { %3405 = vmatmul.mubr.msk.f32.gmra.mrb[34].mxu1 %vm269_vm0, %v174_v10  ;;  %3215 = vmatprep.mubr.msk.f32.mxu0 %vm269_vm0, %v47_v11  ;;  %v206_v10 = vld [vmem:[%s5621_s0 + $0x618] sm:$0xff]  ;;  %v79_v11 = vld [vmem:[%s5621_s0 + $0x220] sm:$0xff] }
  0x4e   :  { %3407 = vmatprep.mubr.msk.f32.mxu1 %vm269_vm0, %v175_v12  ;;  %v207_v12 = vld [vmem:[%s5621_s0 + $0x620] sm:$0xff] }
  0x50   :  { %3216 = vmatmul.mubr.msk.f32.gmra.mrb[36].mxu0 %vm269_vm0, %v48_v13  ;;  %v80_v13 = vld [vmem:[%s5621_s0 + $0x228] sm:$0xff] }
  0x51   :  { %3408 = vmatmul.mubr.msk.f32.gmra.mrb[36].mxu1 %vm269_vm0, %v176_v14  ;;  %3218 = vmatprep.mubr.msk.f32.mxu0 %vm269_vm0, %v49_v15  ;;  %v208_v14 = vld [vmem:[%s5621_s0 + $0x628] sm:$0xff]  ;;  %v81_v15 = vld [vmem:[%s5621_s0 + $0x230] sm:$0xff] }
  0x52   :  { %3410 = vmatprep.mubr.msk.f32.mxu1 %vm269_vm0, %v177_v16  ;;  %v209_v16 = vld [vmem:[%s5621_s0 + $0x630] sm:$0xff] }
  0x54   :  { %3219 = vmatmul.mubr.msk.f32.gmra.mrb[38].mxu0 %vm269_vm0, %v50_v17  ;;  %v82_v17 = vld [vmem:[%s5621_s0 + $0x238] sm:$0xff] }
  0x55   :  { %3411 = vmatmul.mubr.msk.f32.gmra.mrb[38].mxu1 %vm269_vm0, %v178_v18  ;;  %3221 = vmatprep.mubr.msk.f32.mxu0 %vm269_vm0, %v51_v19  ;;  %v210_v18 = vld [vmem:[%s5621_s0 + $0x638] sm:$0xff]  ;;  %v83_v19 = vld [vmem:[%s5621_s0 + $0x240] sm:$0xff] }
  0x56   :  { %3413 = vmatprep.mubr.msk.f32.mxu1 %vm269_vm0, %v179_v20  ;;  %v211_v20 = vld [vmem:[%s5621_s0 + $0x640] sm:$0xff] }
  0x58   :  { %3222 = vmatmul.mubr.msk.f32.gmra.mrb[40].mxu0 %vm269_vm0, %v52_v21  ;;  %v84_v21 = vld [vmem:[%s5621_s0 + $0x248] sm:$0xff] }
  0x59   :  { %3414 = vmatmul.mubr.msk.f32.gmra.mrb[40].mxu1 %vm269_vm0, %v180_v22  ;;  %3224 = vmatprep.mubr.msk.f32.mxu0 %vm269_vm0, %v53_v23  ;;  %v212_v22 = vld [vmem:[%s5621_s0 + $0x648] sm:$0xff]  ;;  %v85_v23 = vld [vmem:[%s5621_s0 + $0x250] sm:$0xff] }
  0x5a   :  { %3416 = vmatprep.mubr.msk.f32.mxu1 %vm269_vm0, %v181_v24  ;;  %v213_v24 = vld [vmem:[%s5621_s0 + $0x650] sm:$0xff] }
  0x5c   :  { %3225 = vmatmul.mubr.msk.f32.gmra.mrb[42].mxu0 %vm269_vm0, %v54_v25  ;;  %v86_v25 = vld [vmem:[%s5621_s0 + $0x258] sm:$0xff] }
  0x5d   :  { %3417 = vmatmul.mubr.msk.f32.gmra.mrb[42].mxu1 %vm269_vm0, %v182_v26  ;;  %3227 = vmatprep.mubr.msk.f32.mxu0 %vm269_vm0, %v55_v27  ;;  %v214_v26 = vld [vmem:[%s5621_s0 + $0x658] sm:$0xff]  ;;  %v87_v27 = vld [vmem:[%s5621_s0 + $0x260] sm:$0xff] }
  0x5e   :  { %3419 = vmatprep.mubr.msk.f32.mxu1 %vm269_vm0, %v183_v28  ;;  %v215_v28 = vld [vmem:[%s5621_s0 + $0x660] sm:$0xff] }
  0x60   :  { %3228 = vmatmul.mubr.msk.f32.gmra.mrb[44].mxu0 %vm269_vm0, %v56_v29  ;;  %v88_v29 = vld [vmem:[%s5621_s0 + $0x268] sm:$0xff] }
  0x61   :  { %3420 = vmatmul.mubr.msk.f32.gmra.mrb[44].mxu1 %vm269_vm0, %v184_v30  ;;  %3230 = vmatprep.mubr.msk.f32.mxu0 %vm269_vm0, %v57_v31  ;;  %v216_v30 = vld [vmem:[%s5621_s0 + $0x668] sm:$0xff]  ;;  %v89_v31 = vld [vmem:[%s5621_s0 + $0x270] sm:$0xff] }
  0x62   :  { %3422 = vmatprep.mubr.msk.f32.mxu1 %vm269_vm0, %v185_v32  ;;  %v217_v32 = vld [vmem:[%s5621_s0 + $0x670] sm:$0xff] }
  0x64   :  { %3231 = vmatmul.mubr.msk.f32.gmra.mrb[46].mxu0 %vm269_vm0, %v58_v33  ;;  %v90_v33 = vld [vmem:[%s5621_s0 + $0x278] sm:$0xff] }
  0x65   :  { %3423 = vmatmul.mubr.msk.f32.gmra.mrb[46].mxu1 %vm269_vm0, %v186_v34  ;;  %3233 = vmatprep.mubr.msk.f32.mxu0 %vm269_vm0, %v59_v35  ;;  %v218_v34 = vld [vmem:[%s5621_s0 + $0x678] sm:$0xff]  ;;  %v91_v35 = vld [vmem:[%s5621_s0 + $0x280] sm:$0xff] }
  0x66   :  { %3425 = vmatprep.mubr.msk.f32.mxu1 %vm269_vm0, %v187_v36  ;;  %v219_v36 = vld [vmem:[%s5621_s0 + $0x680] sm:$0xff] }
  0x68   :  { %3234 = vmatmul.mubr.msk.f32.gmra.mrb[48].mxu0 %vm269_vm0, %v60_v37  ;;  %v92_v37 = vld [vmem:[%s5621_s0 + $0x288] sm:$0xff] }
  0x69   :  { %3426 = vmatmul.mubr.msk.f32.gmra.mrb[48].mxu1 %vm269_vm0, %v188_v38  ;;  %3236 = vmatprep.mubr.msk.f32.mxu0 %vm269_vm0, %v61_v39  ;;  %v220_v38 = vld [vmem:[%s5621_s0 + $0x688] sm:$0xff]  ;;  %v93_v39 = vld [vmem:[%s5621_s0 + $0x290] sm:$0xff] }
  0x6a   :  { %3428 = vmatprep.mubr.msk.f32.mxu1 %vm269_vm0, %v189_v40  ;;  %v221_v40 = vld [vmem:[%s5621_s0 + $0x690] sm:$0xff] }
  0x6c   :  { %3237 = vmatmul.mubr.msk.f32.gmra.mrb[50].mxu0 %vm269_vm0, %v62_v41  ;;  %v94_v41 = vld [vmem:[%s5621_s0 + $0x298] sm:$0xff] }
  0x6d   :  { %3429 = vmatmul.mubr.msk.f32.gmra.mrb[50].mxu1 %vm269_vm0, %v190_v42  ;;  %3239 = vmatprep.mubr.msk.f32.mxu0 %vm269_vm0, %v63_v43  ;;  %v222_v42 = vld [vmem:[%s5621_s0 + $0x698] sm:$0xff]  ;;  %v95_v43 = vld [vmem:[%s5621_s0 + $0x2a0] sm:$0xff] }
  0x6e   :  { %3431 = vmatprep.mubr.msk.f32.mxu1 %vm269_vm0, %v191_v44  ;;  %v223_v44 = vld [vmem:[%s5621_s0 + $0x6a0] sm:$0xff] }
  0x70   :  { %3240 = vmatmul.mubr.msk.f32.gmra.mrb[52].mxu0 %vm269_vm0, %v64_v45  ;;  %v96_v45 = vld [vmem:[%s5621_s0 + $0x2a8] sm:$0xff] }
  0x71   :  { %3432 = vmatmul.mubr.msk.f32.gmra.mrb[52].mxu1 %vm269_vm0, %v192_v46  ;;  %3242 = vmatprep.mubr.msk.f32.mxu0 %vm269_vm0, %v65_v47  ;;  %v224_v46 = vld [vmem:[%s5621_s0 + $0x6a8] sm:$0xff]  ;;  %v97_v47 = vld [vmem:[%s5621_s0 + $0x2b0] sm:$0xff] }
  0x72   :  { %3434 = vmatprep.mubr.msk.f32.mxu1 %vm269_vm0, %v193_v48  ;;  %v225_v48 = vld [vmem:[%s5621_s0 + $0x6b0] sm:$0xff] }
  0x74   :  { %3243 = vmatmul.mubr.msk.f32.gmra.mrb[54].mxu0 %vm269_vm0, %v66_v49  ;;  %v98_v49 = vld [vmem:[%s5621_s0 + $0x2b8] sm:$0xff] }
  0x75   :  { %3435 = vmatmul.mubr.msk.f32.gmra.mrb[54].mxu1 %vm269_vm0, %v194_v50  ;;  %3245 = vmatprep.mubr.msk.f32.mxu0 %vm269_vm0, %v67_v51  ;;  %v226_v50 = vld [vmem:[%s5621_s0 + $0x6b8] sm:$0xff]  ;;  %v99_v51 = vld [vmem:[%s5621_s0 + $0x2c0] sm:$0xff] }
  0x76   :  { %3437 = vmatprep.mubr.msk.f32.mxu1 %vm269_vm0, %v195_v52  ;;  %v227_v52 = vld [vmem:[%s5621_s0 + $0x6c0] sm:$0xff] }
  0x78   :  { %3246 = vmatmul.mubr.msk.f32.gmra.mrb[56].mxu0 %vm269_vm0, %v68_v53  ;;  %v100_v53 = vld [vmem:[%s5621_s0 + $0x2c8] sm:$0xff] }
  0x79   :  { %3438 = vmatmul.mubr.msk.f32.gmra.mrb[56].mxu1 %vm269_vm0, %v196_v54  ;;  %3248 = vmatprep.mubr.msk.f32.mxu0 %vm269_vm0, %v69_v55  ;;  %v228_v54 = vld [vmem:[%s5621_s0 + $0x6c8] sm:$0xff]  ;;  %v101_v55 = vld [vmem:[%s5621_s0 + $0x2d0] sm:$0xff] }
  0x7a   :  { %3440 = vmatprep.mubr.msk.f32.mxu1 %vm269_vm0, %v197_v56  ;;  %v229_v56 = vld [vmem:[%s5621_s0 + $0x6d0] sm:$0xff] }
  0x7c   :  { %3249 = vmatmul.mubr.msk.f32.gmra.mrb[58].mxu0 %vm269_vm0, %v70_v57  ;;  %v102_v57 = vld [vmem:[%s5621_s0 + $0x2d8] sm:$0xff] }
  0x7d   :  { %3441 = vmatmul.mubr.msk.f32.gmra.mrb[58].mxu1 %vm269_vm0, %v198_v58  ;;  %3251 = vmatprep.mubr.msk.f32.mxu0 %vm269_vm0, %v71_v59  ;;  %v230_v58 = vld [vmem:[%s5621_s0 + $0x6d8] sm:$0xff]  ;;  %v103_v59 = vld [vmem:[%s5621_s0 + $0x2e0] sm:$0xff] }
  0x7e   :  { %3443 = vmatprep.mubr.msk.f32.mxu1 %vm269_vm0, %v199_v60  ;;  %v231_v60 = vld [vmem:[%s5621_s0 + $0x6e0] sm:$0xff] }
  0x80   :  { %3252 = vmatmul.mubr.msk.f32.gmra.mrb[60].mxu0 %vm269_vm0, %v72_v61  ;;  %v104_v61 = vld [vmem:[%s5621_s0 + $0x2e8] sm:$0xff] }
  0x81   :  { %3444 = vmatmul.mubr.msk.f32.gmra.mrb[60].mxu1 %vm269_vm0, %v200_v62  ;;  %3254 = vmatprep.mubr.msk.f32.mxu0 %vm269_vm0, %v73_v63  ;;  %v232_v62 = vld [vmem:[%s5621_s0 + $0x6e8] sm:$0xff]  ;;  %v105_v63 = vld [vmem:[%s5621_s0 + $0x2f0] sm:$0xff] }
  0x82   :  { %3446 = vmatprep.mubr.msk.f32.mxu1 %vm269_vm0, %v201_v0  ;;  %v233_v0 = vld [vmem:[%s5621_s0 + $0x6f0] sm:$0xff] }
  0x84   :  { %3255 = vmatmul.mubr.msk.f32.gmra.mrb[62].mxu0 %vm269_vm0, %v74_v1  ;;  %v106_v1 = vld [vmem:[%s5621_s0 + $0x2f8] sm:$0xff] }
  0x85   :  { %3447 = vmatmul.mubr.msk.f32.gmra.mrb[62].mxu1 %vm269_vm0, %v202_v2  ;;  %3257 = vmatprep.mubr.msk.f32.mxu0 %vm269_vm0, %v75_v3  ;;  %v234_v2 = vld [vmem:[%s5621_s0 + $0x6f8] sm:$0xff]  ;;  %v107_v3 = vld [vmem:[%s5621_s0 + $0x300] sm:$0xff] }
  0x86   :  { %3449 = vmatprep.mubr.msk.f32.mxu1 %vm269_vm0, %v203_v4  ;;  %v235_v4 = vld [vmem:[%s5621_s0 + $0x700] sm:$0xff] }
  0x88   :  { %3258 = vmatmul.mubr.msk.f32.gmra.mrb[64].mxu0 %vm269_vm0, %v76_v5  ;;  %v108_v5 = vld [vmem:[%s5621_s0 + $0x308] sm:$0xff] }
  0x89   :  { %3450 = vmatmul.mubr.msk.f32.gmra.mrb[64].mxu1 %vm269_vm0, %v204_v6  ;;  %3260 = vmatprep.mubr.msk.f32.mxu0 %vm269_vm0, %v77_v7  ;;  %v236_v6 = vld [vmem:[%s5621_s0 + $0x708] sm:$0xff]  ;;  %v109_v7 = vld [vmem:[%s5621_s0 + $0x310] sm:$0xff] }
  0x8a   :  { %3452 = vmatprep.mubr.msk.f32.mxu1 %vm269_vm0, %v205_v8  ;;  %v237_v8 = vld [vmem:[%s5621_s0 + $0x710] sm:$0xff] }
  0x8c   :  { %3261 = vmatmul.mubr.msk.f32.gmra.mrb[66].mxu0 %vm269_vm0, %v78_v9  ;;  %v110_v9 = vld [vmem:[%s5621_s0 + $0x318] sm:$0xff] }
  0x8d   :  { %3453 = vmatmul.mubr.msk.f32.gmra.mrb[66].mxu1 %vm269_vm0, %v206_v10  ;;  %3263 = vmatprep.mubr.msk.f32.mxu0 %vm269_vm0, %v79_v11  ;;  %v238_v10 = vld [vmem:[%s5621_s0 + $0x718] sm:$0xff]  ;;  %v111_v11 = vld [vmem:[%s5621_s0 + $0x320] sm:$0xff] }
  0x8e   :  { %3455 = vmatprep.mubr.msk.f32.mxu1 %vm269_vm0, %v207_v12  ;;  %v239_v12 = vld [vmem:[%s5621_s0 + $0x720] sm:$0xff] }
  0x90   :  { %3264 = vmatmul.mubr.msk.f32.gmra.mrb[68].mxu0 %vm269_vm0, %v80_v13  ;;  %v112_v13 = vld [vmem:[%s5621_s0 + $0x328] sm:$0xff] }
  0x91   :  { %3456 = vmatmul.mubr.msk.f32.gmra.mrb[68].mxu1 %vm269_vm0, %v208_v14  ;;  %3266 = vmatprep.mubr.msk.f32.mxu0 %vm269_vm0, %v81_v15  ;;  %v240_v14 = vld [vmem:[%s5621_s0 + $0x728] sm:$0xff]  ;;  %v113_v15 = vld [vmem:[%s5621_s0 + $0x330] sm:$0xff] }
  0x92   :  { %3458 = vmatprep.mubr.msk.f32.mxu1 %vm269_vm0, %v209_v16  ;;  %v241_v16 = vld [vmem:[%s5621_s0 + $0x730] sm:$0xff] }
  0x94   :  { %3267 = vmatmul.mubr.msk.f32.gmra.mrb[70].mxu0 %vm269_vm0, %v82_v17  ;;  %v114_v17 = vld [vmem:[%s5621_s0 + $0x338] sm:$0xff] }
  0x95   :  { %3459 = vmatmul.mubr.msk.f32.gmra.mrb[70].mxu1 %vm269_vm0, %v210_v18  ;;  %3269 = vmatprep.mubr.msk.f32.mxu0 %vm269_vm0, %v83_v19  ;;  %v242_v18 = vld [vmem:[%s5621_s0 + $0x738] sm:$0xff]  ;;  %v115_v19 = vld [vmem:[%s5621_s0 + $0x340] sm:$0xff] }
  0x96   :  { %3461 = vmatprep.mubr.msk.f32.mxu1 %vm269_vm0, %v211_v20  ;;  %v243_v20 = vld [vmem:[%s5621_s0 + $0x740] sm:$0xff] }
  0x98   :  { %3270 = vmatmul.mubr.msk.f32.gmra.mrb[72].mxu0 %vm269_vm0, %v84_v21  ;;  %v116_v21 = vld [vmem:[%s5621_s0 + $0x348] sm:$0xff] }
  0x99   :  { %3462 = vmatmul.mubr.msk.f32.gmra.mrb[72].mxu1 %vm269_vm0, %v212_v22  ;;  %3272 = vmatprep.mubr.msk.f32.mxu0 %vm269_vm0, %v85_v23  ;;  %v244_v22 = vld [vmem:[%s5621_s0 + $0x748] sm:$0xff]  ;;  %v117_v23 = vld [vmem:[%s5621_s0 + $0x350] sm:$0xff] }
  0x9a   :  { %3464 = vmatprep.mubr.msk.f32.mxu1 %vm269_vm0, %v213_v24  ;;  %v245_v24 = vld [vmem:[%s5621_s0 + $0x750] sm:$0xff] }
  0x9c   :  { %3273 = vmatmul.mubr.msk.f32.gmra.mrb[74].mxu0 %vm269_vm0, %v86_v25  ;;  %v118_v25 = vld [vmem:[%s5621_s0 + $0x358] sm:$0xff] }
  0x9d   :  { %3465 = vmatmul.mubr.msk.f32.gmra.mrb[74].mxu1 %vm269_vm0, %v214_v26  ;;  %3275 = vmatprep.mubr.msk.f32.mxu0 %vm269_vm0, %v87_v27  ;;  %v246_v26 = vld [vmem:[%s5621_s0 + $0x758] sm:$0xff]  ;;  %v119_v27 = vld [vmem:[%s5621_s0 + $0x360] sm:$0xff] }
  0x9e   :  { %3467 = vmatprep.mubr.msk.f32.mxu1 %vm269_vm0, %v215_v28  ;;  %v247_v28 = vld [vmem:[%s5621_s0 + $0x760] sm:$0xff] }
  0xa0   :  { %3276 = vmatmul.mubr.msk.f32.gmra.mrb[76].mxu0 %vm269_vm0, %v88_v29 }
  0xa1   :  { %3468 = vmatmul.mubr.msk.f32.gmra.mrb[76].mxu1 %vm269_vm0, %v216_v30  ;;  %3278 = vmatprep.mubr.msk.f32.mxu0 %vm269_vm0, %v89_v31 }
  0xa2   :  { %3470 = vmatprep.mubr.msk.f32.mxu1 %vm269_vm0, %v217_v32 }
  0xa4   :  { %3279 = vmatmul.mubr.msk.f32.gmra.mrb[78].mxu0 %vm269_vm0, %v90_v33  ;;  %v120_v33 = vld [vmem:[%s5621_s0 + $0x368] sm:$0xff] }
  0xa5   :  { %3471 = vmatmul.mubr.msk.f32.gmra.mrb[78].mxu1 %vm269_vm0, %v218_v34  ;;  %3281 = vmatprep.mubr.msk.f32.mxu0 %vm269_vm0, %v91_v35  ;;  %v248_v34 = vld [vmem:[%s5621_s0 + $0x768] sm:$0xff]  ;;  %v121_v35 = vld [vmem:[%s5621_s0 + $0x370] sm:$0xff] }
  0xa6   :  { %3473 = vmatprep.mubr.msk.f32.mxu1 %vm269_vm0, %v219_v36  ;;  %v249_v36 = vld [vmem:[%s5621_s0 + $0x770] sm:$0xff] }
  0xa8   :  { %3282 = vmatmul.mubr.msk.f32.gmra.mrb[80].mxu0 %vm269_vm0, %v92_v37 }
  0xa9   :  { %3474 = vmatmul.mubr.msk.f32.gmra.mrb[80].mxu1 %vm269_vm0, %v220_v38  ;;  %3284 = vmatprep.mubr.msk.f32.mxu0 %vm269_vm0, %v93_v39 }
  0xaa   :  { %3476 = vmatprep.mubr.msk.f32.mxu1 %vm269_vm0, %v221_v40 }
  0xac   :  { %3285 = vmatmul.mubr.msk.f32.gmra.mrb[82].mxu0 %vm269_vm0, %v94_v41  ;;  %v122_v41 = vld [vmem:[%s5621_s0 + $0x378] sm:$0xff] }
  0xad   :  { %3477 = vmatmul.mubr.msk.f32.gmra.mrb[82].mxu1 %vm269_vm0, %v222_v42  ;;  %3287 = vmatprep.mubr.msk.f32.mxu0 %vm269_vm0, %v95_v43  ;;  %v250_v42 = vld [vmem:[%s5621_s0 + $0x778] sm:$0xff]  ;;  %v123_v43 = vld [vmem:[%s5621_s0 + $0x380] sm:$0xff] }
  0xae   :  { %3479 = vmatprep.mubr.msk.f32.mxu1 %vm269_vm0, %v223_v44  ;;  %v251_v44 = vld [vmem:[%s5621_s0 + $0x780] sm:$0xff] }
  0xb0   :  { %3288 = vmatmul.mubr.msk.f32.gmra.mrb[84].mxu0 %vm269_vm0, %v96_v45 }
  0xb1   :  { %3480 = vmatmul.mubr.msk.f32.gmra.mrb[84].mxu1 %vm269_vm0, %v224_v46  ;;  %3290 = vmatprep.mubr.msk.f32.mxu0 %vm269_vm0, %v97_v47 }
  0xb2   :  { %3482 = vmatprep.mubr.msk.f32.mxu1 %vm269_vm0, %v225_v48 }
  0xb4   :  { %3291 = vmatmul.mubr.msk.f32.gmra.mrb[86].mxu0 %vm269_vm0, %v98_v49  ;;  %v124_v49 = vld [vmem:[%s5621_s0 + $0x388] sm:$0xff] }
  0xb5   :  { %3483 = vmatmul.mubr.msk.f32.gmra.mrb[86].mxu1 %vm269_vm0, %v226_v50  ;;  %3293 = vmatprep.mubr.msk.f32.mxu0 %vm269_vm0, %v99_v51  ;;  %v252_v50 = vld [vmem:[%s5621_s0 + $0x788] sm:$0xff]  ;;  %v125_v51 = vld [vmem:[%s5621_s0 + $0x390] sm:$0xff] }
  0xb6   :  { %3485 = vmatprep.mubr.msk.f32.mxu1 %vm269_vm0, %v227_v52  ;;  %v253_v52 = vld [vmem:[%s5621_s0 + $0x790] sm:$0xff] }
  0xb8   :  { %3294 = vmatmul.mubr.msk.f32.gmra.mrb[88].mxu0 %vm269_vm0, %v100_v53 }
  0xb9   :  { %3486 = vmatmul.mubr.msk.f32.gmra.mrb[88].mxu1 %vm269_vm0, %v228_v54  ;;  %3296 = vmatprep.mubr.msk.f32.mxu0 %vm269_vm0, %v101_v55 }
  0xba   :  { %3488 = vmatprep.mubr.msk.f32.mxu1 %vm269_vm0, %v229_v56 }
  0xbc   :  { %3297 = vmatmul.mubr.msk.f32.gmra.mrb[90].mxu0 %vm269_vm0, %v102_v57  ;;  %v126_v57 = vld [vmem:[%s5621_s0 + $0x398] sm:$0xff] }
  0xbd   :  { %3489 = vmatmul.mubr.msk.f32.gmra.mrb[90].mxu1 %vm269_vm0, %v230_v58  ;;  %3299 = vmatprep.mubr.msk.f32.mxu0 %vm269_vm0, %v103_v59  ;;  %v254_v58 = vld [vmem:[%s5621_s0 + $0x798] sm:$0xff]  ;;  %v127_v59 = vld [vmem:[%s5621_s0 + $0x3a0] sm:$0xff] }
  0xbe   :  { %3491 = vmatprep.mubr.msk.f32.mxu1 %vm269_vm0, %v231_v60  ;;  %v255_v60 = vld [vmem:[%s5621_s0 + $0x7a0] sm:$0xff] }
  0xc0   :  { %3300 = vmatmul.mubr.msk.f32.gmra.mrb[92].mxu0 %vm269_vm0, %v104_v61 }
  0xc1   :  { %3492 = vmatmul.mubr.msk.f32.gmra.mrb[92].mxu1 %vm269_vm0, %v232_v62  ;;  %3302 = vmatprep.mubr.msk.f32.mxu0 %vm269_vm0, %v105_v63 }
  0xc2   :  { %3494 = vmatprep.mubr.msk.f32.mxu1 %vm269_vm0, %v233_v0 }
  0xc4   :  { %3303 = vmatmul.mubr.msk.f32.gmra.mrb[94].mxu0 %vm269_vm0, %v106_v1  ;;  %v128_v1 = vld [vmem:[%s5621_s0 + $0x3a8] sm:$0xff] }
  0xc5   :  { %3495 = vmatmul.mubr.msk.f32.gmra.mrb[94].mxu1 %vm269_vm0, %v234_v2  ;;  %3305 = vmatprep.mubr.msk.f32.mxu0 %vm269_vm0, %v107_v3  ;;  %v256_v2 = vld [vmem:[%s5621_s0 + $0x7a8] sm:$0xff]  ;;  %v129_v3 = vld [vmem:[%s5621_s0 + $0x3b0] sm:$0xff] }
  0xc6   :  { %3497 = vmatprep.mubr.msk.f32.mxu1 %vm269_vm0, %v235_v4  ;;  %v257_v4 = vld [vmem:[%s5621_s0 + $0x7b0] sm:$0xff] }
  0xc8   :  { %3306 = vmatmul.mubr.msk.f32.gmra.mrb[96].mxu0 %vm269_vm0, %v108_v5 }
  0xc9   :  { %3498 = vmatmul.mubr.msk.f32.gmra.mrb[96].mxu1 %vm269_vm0, %v236_v6  ;;  %3308 = vmatprep.mubr.msk.f32.mxu0 %vm269_vm0, %v109_v7 }
  0xca   :  { %3500 = vmatprep.mubr.msk.f32.mxu1 %vm269_vm0, %v237_v8 }
  0xcc   :  { %3309 = vmatmul.mubr.msk.f32.gmra.mrb[98].mxu0 %vm269_vm0, %v110_v9  ;;  %v130_v9 = vld [vmem:[%s5621_s0 + $0x3b8] sm:$0xff] }
  0xcd   :  { %3501 = vmatmul.mubr.msk.f32.gmra.mrb[98].mxu1 %vm269_vm0, %v238_v10  ;;  %3311 = vmatprep.mubr.msk.f32.mxu0 %vm269_vm0, %v111_v11  ;;  %v258_v10 = vld [vmem:[%s5621_s0 + $0x7b8] sm:$0xff]  ;;  %v131_v11 = vld [vmem:[%s5621_s0 + $0x3c0] sm:$0xff] }
  0xce   :  { %3503 = vmatprep.mubr.msk.f32.mxu1 %vm269_vm0, %v239_v12  ;;  %v259_v12 = vld [vmem:[%s5621_s0 + $0x7c0] sm:$0xff] }
  0xd0   :  { %3312 = vmatmul.mubr.msk.f32.gmra.mrb[100].mxu0 %vm269_vm0, %v112_v13 }
  0xd1   :  { %3504 = vmatmul.mubr.msk.f32.gmra.mrb[100].mxu1 %vm269_vm0, %v240_v14  ;;  %3314 = vmatprep.mubr.msk.f32.mxu0 %vm269_vm0, %v113_v15 }
  0xd2   :  { %3506 = vmatprep.mubr.msk.f32.mxu1 %vm269_vm0, %v241_v16 }
  0xd4   :  { %3315 = vmatmul.mubr.msk.f32.gmra.mrb[102].mxu0 %vm269_vm0, %v114_v17  ;;  %v132_v17 = vld [vmem:[%s5621_s0 + $0x3c8] sm:$0xff] }
  0xd5   :  { %3507 = vmatmul.mubr.msk.f32.gmra.mrb[102].mxu1 %vm269_vm0, %v242_v18  ;;  %3317 = vmatprep.mubr.msk.f32.mxu0 %vm269_vm0, %v115_v19  ;;  %v260_v18 = vld [vmem:[%s5621_s0 + $0x7c8] sm:$0xff]  ;;  %v133_v19 = vld [vmem:[%s5621_s0 + $0x3d0] sm:$0xff] }
  0xd6   :  { %3509 = vmatprep.mubr.msk.f32.mxu1 %vm269_vm0, %v243_v20  ;;  %v261_v20 = vld [vmem:[%s5621_s0 + $0x7d0] sm:$0xff] }
  0xd8   :  { %3318 = vmatmul.mubr.msk.f32.gmra.mrb[104].mxu0 %vm269_vm0, %v116_v21 }
  0xd9   :  { %3510 = vmatmul.mubr.msk.f32.gmra.mrb[104].mxu1 %vm269_vm0, %v244_v22  ;;  %3320 = vmatprep.mubr.msk.f32.mxu0 %vm269_vm0, %v117_v23 }
  0xda   :  { %3512 = vmatprep.mubr.msk.f32.mxu1 %vm269_vm0, %v245_v24 }
  0xdb   :  { %v3163_v29 = vpop.f32.mrb[0].mxu0 }
  0xdc   :  { %v3355_v30 = vpop.f32.mrb[0].mxu1  ;;  %2384 = vst.msk [vmem:[%s5622_s2 + $0x8] sm:$0xff] %vm269_vm0, %v3163_v29  ;;  %v1104_v31 = vpop.f32.mrb[1].mxu0  ;;  %3321 = vmatmul.mubr.msk.f32.gmra.mrb[106].mxu0 %vm269_vm0, %v118_v25  ;;  %v134_v25 = vld [vmem:[%s5621_s0 + $0x3d8] sm:$0xff] }
  0xdd   :  { %2512 = vst.msk [vmem:[%s5622_s2 + $0x408] sm:$0xff] %vm269_vm0, %v3355_v30  ;;  %v1744_v32 = vpop.f32.mrb[1].mxu1  ;;  %3513 = vmatmul.mubr.msk.f32.gmra.mrb[106].mxu1 %vm269_vm0, %v246_v26  ;;  %2383 = vst.msk [vmem:[%s5622_s2] sm:$0xff] %vm269_vm0, %v1104_v31  ;;  %3323 = vmatprep.mubr.msk.f32.mxu0 %vm269_vm0, %v119_v27  ;;  %v262_v26 = vld [vmem:[%s5621_s0 + $0x7d8] sm:$0xff]  ;;  %v135_v27 = vld [vmem:[%s5621_s0 + $0x3e0] sm:$0xff] }
  0xde   :  { %2511 = vst.msk [vmem:[%s5622_s2 + $0x400] sm:$0xff] %vm269_vm0, %v1744_v32  ;;  %3515 = vmatprep.mubr.msk.f32.mxu1 %vm269_vm0, %v247_v28  ;;  %v263_v28 = vld [vmem:[%s5621_s0 + $0x7e0] sm:$0xff] }
  0xdf   :  { %v3166_v37 = vpop.f32.mrb[2].mxu0 }
  0xe0   :  { %v3358_v38 = vpop.f32.mrb[2].mxu1  ;;  %2386 = vst.msk [vmem:[%s5622_s2 + $0x18] sm:$0xff] %vm269_vm0, %v3166_v37  ;;  %v1114_v39 = vpop.f32.mrb[3].mxu0  ;;  %3324 = vmatmul.mubr.msk.f32.gmra.mrb[108].mxu0 %vm269_vm0, %v120_v33  ;;  %v136_v33 = vld [vmem:[%s5621_s0 + $0x3e8] sm:$0xff] }
  0xe1   :  { %2514 = vst.msk [vmem:[%s5622_s2 + $0x418] sm:$0xff] %vm269_vm0, %v3358_v38  ;;  %v1754_v40 = vpop.f32.mrb[3].mxu1  ;;  %3516 = vmatmul.mubr.msk.f32.gmra.mrb[108].mxu1 %vm269_vm0, %v248_v34  ;;  %2385 = vst.msk [vmem:[%s5622_s2 + $0x10] sm:$0xff] %vm269_vm0, %v1114_v39  ;;  %3326 = vmatprep.mubr.msk.f32.mxu0 %vm269_vm0, %v121_v35  ;;  %v264_v34 = vld [vmem:[%s5621_s0 + $0x7e8] sm:$0xff]  ;;  %v137_v35 = vld [vmem:[%s5621_s0 + $0x3f0] sm:$0xff] }
  0xe2   :  { %2513 = vst.msk [vmem:[%s5622_s2 + $0x410] sm:$0xff] %vm269_vm0, %v1754_v40  ;;  %3518 = vmatprep.mubr.msk.f32.mxu1 %vm269_vm0, %v249_v36  ;;  %v265_v36 = vld [vmem:[%s5621_s0 + $0x7f0] sm:$0xff] }
  0xe3   :  { %v3169_v45 = vpop.f32.mrb[4].mxu0 }
  0xe4   :  { %v3361_v46 = vpop.f32.mrb[4].mxu1  ;;  %2388 = vst.msk [vmem:[%s5622_s2 + $0x28] sm:$0xff] %vm269_vm0, %v3169_v45  ;;  %v1124_v47 = vpop.f32.mrb[5].mxu0  ;;  %3327 = vmatmul.mubr.msk.f32.gmra.mrb[110].mxu0 %vm269_vm0, %v122_v41  ;;  %v138_v41 = vld [vmem:[%s5621_s0 + $0x3f8] sm:$0xff] }
  0xe5   :  { %2516 = vst.msk [vmem:[%s5622_s2 + $0x428] sm:$0xff] %vm269_vm0, %v3361_v46  ;;  %v1764_v48 = vpop.f32.mrb[5].mxu1  ;;  %3519 = vmatmul.mubr.msk.f32.gmra.mrb[110].mxu1 %vm269_vm0, %v250_v42  ;;  %2387 = vst.msk [vmem:[%s5622_s2 + $0x20] sm:$0xff] %vm269_vm0, %v1124_v47  ;;  %3329 = vmatprep.mubr.msk.f32.mxu0 %vm269_vm0, %v123_v43  ;;  %v266_v42 = vld [vmem:[%s5621_s0 + $0x7f8] sm:$0xff] }
  0xe6   :  { %2515 = vst.msk [vmem:[%s5622_s2 + $0x420] sm:$0xff] %vm269_vm0, %v1764_v48  ;;  %3521 = vmatprep.mubr.msk.f32.mxu1 %vm269_vm0, %v251_v44 }
  0xe7   :  { %v3172_v53 = vpop.f32.mrb[6].mxu0 }
  0xe8   :  { %v3364_v54 = vpop.f32.mrb[6].mxu1  ;;  %2390 = vst.msk [vmem:[%s5622_s2 + $0x38] sm:$0xff] %vm269_vm0, %v3172_v53  ;;  %v1134_v55 = vpop.f32.mrb[7].mxu0  ;;  %3330 = vmatmul.mubr.msk.f32.gmra.mrb[112].mxu0 %vm269_vm0, %v124_v49 }
  0xe9   :  { %2518 = vst.msk [vmem:[%s5622_s2 + $0x438] sm:$0xff] %vm269_vm0, %v3364_v54  ;;  %v1774_v56 = vpop.f32.mrb[7].mxu1  ;;  %3522 = vmatmul.mubr.msk.f32.gmra.mrb[112].mxu1 %vm269_vm0, %v252_v50  ;;  %2389 = vst.msk [vmem:[%s5622_s2 + $0x30] sm:$0xff] %vm269_vm0, %v1134_v55  ;;  %3332 = vmatprep.mubr.msk.f32.mxu0 %vm269_vm0, %v125_v51 }
  0xea   :  { %2517 = vst.msk [vmem:[%s5622_s2 + $0x430] sm:$0xff] %vm269_vm0, %v1774_v56  ;;  %3524 = vmatprep.mubr.msk.f32.mxu1 %vm269_vm0, %v253_v52 }
  0xeb   :  { %v3175_v61 = vpop.f32.mrb[8].mxu0 }
  0xec   :  { %v3367_v62 = vpop.f32.mrb[8].mxu1  ;;  %2392 = vst.msk [vmem:[%s5622_s2 + $0x48] sm:$0xff] %vm269_vm0, %v3175_v61  ;;  %v1144_v63 = vpop.f32.mrb[9].mxu0  ;;  %3333 = vmatmul.mubr.msk.f32.gmra.mrb[114].mxu0 %vm269_vm0, %v126_v57 }
  0xed   :  { %2520 = vst.msk [vmem:[%s5622_s2 + $0x448] sm:$0xff] %vm269_vm0, %v3367_v62  ;;  %v1784_v0 = vpop.f32.mrb[9].mxu1  ;;  %3525 = vmatmul.mubr.msk.f32.gmra.mrb[114].mxu1 %vm269_vm0, %v254_v58  ;;  %2391 = vst.msk [vmem:[%s5622_s2 + $0x40] sm:$0xff] %vm269_vm0, %v1144_v63  ;;  %3335 = vmatprep.mubr.msk.f32.mxu0 %vm269_vm0, %v127_v59 }
  0xee   :  { %2519 = vst.msk [vmem:[%s5622_s2 + $0x440] sm:$0xff] %vm269_vm0, %v1784_v0  ;;  %3527 = vmatprep.mubr.msk.f32.mxu1 %vm269_vm0, %v255_v60 }
  0xef   :  { %v3178_v5 = vpop.f32.mrb[10].mxu0 }
  0xf0   :  { %v3370_v6 = vpop.f32.mrb[10].mxu1  ;;  %2394 = vst.msk [vmem:[%s5622_s2 + $0x58] sm:$0xff] %vm269_vm0, %v3178_v5  ;;  %v1154_v7 = vpop.f32.mrb[11].mxu0  ;;  %3336 = vmatmul.mubr.msk.f32.gmra.mrb[116].mxu0 %vm269_vm0, %v128_v1 }
  0xf1   :  { %2522 = vst.msk [vmem:[%s5622_s2 + $0x458] sm:$0xff] %vm269_vm0, %v3370_v6  ;;  %v1794_v8 = vpop.f32.mrb[11].mxu1  ;;  %3528 = vmatmul.mubr.msk.f32.gmra.mrb[116].mxu1 %vm269_vm0, %v256_v2  ;;  %2393 = vst.msk [vmem:[%s5622_s2 + $0x50] sm:$0xff] %vm269_vm0, %v1154_v7  ;;  %3338 = vmatprep.mubr.msk.f32.mxu0 %vm269_vm0, %v129_v3 }
  0xf2   :  { %2521 = vst.msk [vmem:[%s5622_s2 + $0x450] sm:$0xff] %vm269_vm0, %v1794_v8  ;;  %3530 = vmatprep.mubr.msk.f32.mxu1 %vm269_vm0, %v257_v4 }
  0xf3   :  { %v3181_v13 = vpop.f32.mrb[12].mxu0 }
  0xf4   :  { %v3373_v14 = vpop.f32.mrb[12].mxu1  ;;  %2396 = vst.msk [vmem:[%s5622_s2 + $0x68] sm:$0xff] %vm269_vm0, %v3181_v13  ;;  %v1164_v15 = vpop.f32.mrb[13].mxu0  ;;  %3339 = vmatmul.mubr.msk.f32.gmra.mrb[118].mxu0 %vm269_vm0, %v130_v9 }
  0xf5   :  { %2524 = vst.msk [vmem:[%s5622_s2 + $0x468] sm:$0xff] %vm269_vm0, %v3373_v14  ;;  %v1804_v16 = vpop.f32.mrb[13].mxu1  ;;  %3531 = vmatmul.mubr.msk.f32.gmra.mrb[118].mxu1 %vm269_vm0, %v258_v10  ;;  %2395 = vst.msk [vmem:[%s5622_s2 + $0x60] sm:$0xff] %vm269_vm0, %v1164_v15  ;;  %3341 = vmatprep.mubr.msk.f32.mxu0 %vm269_vm0, %v131_v11 }
  0xf6   :  { %2523 = vst.msk [vmem:[%s5622_s2 + $0x460] sm:$0xff] %vm269_vm0, %v1804_v16  ;;  %3533 = vmatprep.mubr.msk.f32.mxu1 %vm269_vm0, %v259_v12 }
  0xf7   :  { %v3184_v21 = vpop.f32.mrb[14].mxu0 }
  0xf8   :  { %v3376_v22 = vpop.f32.mrb[14].mxu1  ;;  %2398 = vst.msk [vmem:[%s5622_s2 + $0x78] sm:$0xff] %vm269_vm0, %v3184_v21  ;;  %v1174_v23 = vpop.f32.mrb[15].mxu0  ;;  %3342 = vmatmul.mubr.msk.f32.gmra.mrb[120].mxu0 %vm269_vm0, %v132_v17 }
  0xf9   :  { %2526 = vst.msk [vmem:[%s5622_s2 + $0x478] sm:$0xff] %vm269_vm0, %v3376_v22  ;;  %v1814_v24 = vpop.f32.mrb[15].mxu1  ;;  %3534 = vmatmul.mubr.msk.f32.gmra.mrb[120].mxu1 %vm269_vm0, %v260_v18  ;;  %2397 = vst.msk [vmem:[%s5622_s2 + $0x70] sm:$0xff] %vm269_vm0, %v1174_v23  ;;  %3344 = vmatprep.mubr.msk.f32.mxu0 %vm269_vm0, %v133_v19 }
  0xfa   :  { %2525 = vst.msk [vmem:[%s5622_s2 + $0x470] sm:$0xff] %vm269_vm0, %v1814_v24  ;;  %3536 = vmatprep.mubr.msk.f32.mxu1 %vm269_vm0, %v261_v20 }
  0xfb   :  { %v3187_v29 = vpop.f32.mrb[16].mxu0 }
  0xfc   :  { %v3379_v30 = vpop.f32.mrb[16].mxu1  ;;  %2400 = vst.msk [vmem:[%s5622_s2 + $0x88] sm:$0xff] %vm269_vm0, %v3187_v29  ;;  %v1184_v31 = vpop.f32.mrb[17].mxu0  ;;  %3345 = vmatmul.mubr.msk.f32.gmra.mrb[122].mxu0 %vm269_vm0, %v134_v25 }
  0xfd   :  { %2528 = vst.msk [vmem:[%s5622_s2 + $0x488] sm:$0xff] %vm269_vm0, %v3379_v30  ;;  %v1824_v32 = vpop.f32.mrb[17].mxu1  ;;  %3537 = vmatmul.mubr.msk.f32.gmra.mrb[122].mxu1 %vm269_vm0, %v262_v26  ;;  %2399 = vst.msk [vmem:[%s5622_s2 + $0x80] sm:$0xff] %vm269_vm0, %v1184_v31  ;;  %3347 = vmatprep.mubr.msk.f32.mxu0 %vm269_vm0, %v135_v27 }
  0xfe   :  { %2527 = vst.msk [vmem:[%s5622_s2 + $0x480] sm:$0xff] %vm269_vm0, %v1824_v32  ;;  %3539 = vmatprep.mubr.msk.f32.mxu1 %vm269_vm0, %v263_v28 }
  0xff   :  { %v3190_v37 = vpop.f32.mrb[18].mxu0 }
 0x100   :  { %v3382_v38 = vpop.f32.mrb[18].mxu1  ;;  %2402 = vst.msk [vmem:[%s5622_s2 + $0x98] sm:$0xff] %vm269_vm0, %v3190_v37  ;;  %v1194_v39 = vpop.f32.mrb[19].mxu0  ;;  %3348 = vmatmul.mubr.msk.f32.gmra.mrb[124].mxu0 %vm269_vm0, %v136_v33 }
 0x101   :  { %2530 = vst.msk [vmem:[%s5622_s2 + $0x498] sm:$0xff] %vm269_vm0, %v3382_v38  ;;  %v1834_v40 = vpop.f32.mrb[19].mxu1  ;;  %3540 = vmatmul.mubr.msk.f32.gmra.mrb[124].mxu1 %vm269_vm0, %v264_v34  ;;  %2401 = vst.msk [vmem:[%s5622_s2 + $0x90] sm:$0xff] %vm269_vm0, %v1194_v39  ;;  %3350 = vmatprep.mubr.msk.f32.mxu0 %vm269_vm0, %v137_v35 }
 0x102   :  { %2529 = vst.msk [vmem:[%s5622_s2 + $0x490] sm:$0xff] %vm269_vm0, %v1834_v40  ;;  %3542 = vmatprep.mubr.msk.f32.mxu1 %vm269_vm0, %v265_v36 }
 0x103   :  { %v3193_v43 = vpop.f32.mrb[20].mxu0 }
 0x104   :  { %v3385_v44 = vpop.f32.mrb[20].mxu1  ;;  %2404 = vst.msk [vmem:[%s5622_s2 + $0xa8] sm:$0xff] %vm269_vm0, %v3193_v43  ;;  %v1204_v45 = vpop.f32.mrb[21].mxu0  ;;  %3351 = vmatmul.mubr.msk.f32.gmra.mrb[126].mxu0 %vm269_vm0, %v138_v41 }
 0x105   :  { %2532 = vst.msk [vmem:[%s5622_s2 + $0x4a8] sm:$0xff] %vm269_vm0, %v3385_v44  ;;  %v1844_v46 = vpop.f32.mrb[21].mxu1  ;;  %3543 = vmatmul.mubr.msk.f32.gmra.mrb[126].mxu1 %vm269_vm0, %v266_v42  ;;  %2403 = vst.msk [vmem:[%s5622_s2 + $0xa0] sm:$0xff] %vm269_vm0, %v1204_v45 }
 0x106   :  { %2531 = vst.msk [vmem:[%s5622_s2 + $0x4a0] sm:$0xff] %vm269_vm0, %v1844_v46 }
 0x107   :  { %v3196_v47 = vpop.f32.mrb[22].mxu0 }
 0x108   :  { %v3388_v48 = vpop.f32.mrb[22].mxu1  ;;  %2406 = vst.msk [vmem:[%s5622_s2 + $0xb8] sm:$0xff] %vm269_vm0, %v3196_v47  ;;  %v1214_v49 = vpop.f32.mrb[23].mxu0 }
 0x109   :  { %2534 = vst.msk [vmem:[%s5622_s2 + $0x4b8] sm:$0xff] %vm269_vm0, %v3388_v48  ;;  %v1854_v50 = vpop.f32.mrb[23].mxu1  ;;  %2405 = vst.msk [vmem:[%s5622_s2 + $0xb0] sm:$0xff] %vm269_vm0, %v1214_v49 }
 0x10a   :  { %2533 = vst.msk [vmem:[%s5622_s2 + $0x4b0] sm:$0xff] %vm269_vm0, %v1854_v50 }
 0x10b   :  { %v3199_v51 = vpop.f32.mrb[24].mxu0 }
 0x10c   :  { %v3391_v52 = vpop.f32.mrb[24].mxu1  ;;  %2408 = vst.msk [vmem:[%s5622_s2 + $0xc8] sm:$0xff] %vm269_vm0, %v3199_v51  ;;  %v1224_v53 = vpop.f32.mrb[25].mxu0 }
 0x10d   :  { %2536 = vst.msk [vmem:[%s5622_s2 + $0x4c8] sm:$0xff] %vm269_vm0, %v3391_v52  ;;  %v1864_v54 = vpop.f32.mrb[25].mxu1  ;;  %2407 = vst.msk [vmem:[%s5622_s2 + $0xc0] sm:$0xff] %vm269_vm0, %v1224_v53 }
 0x10e   :  { %2535 = vst.msk [vmem:[%s5622_s2 + $0x4c0] sm:$0xff] %vm269_vm0, %v1864_v54 }
 0x10f   :  { %v3202_v55 = vpop.f32.mrb[26].mxu0 }
 0x110   :  { %v3394_v56 = vpop.f32.mrb[26].mxu1  ;;  %2410 = vst.msk [vmem:[%s5622_s2 + $0xd8] sm:$0xff] %vm269_vm0, %v3202_v55  ;;  %v1234_v57 = vpop.f32.mrb[27].mxu0 }
 0x111   :  { %2538 = vst.msk [vmem:[%s5622_s2 + $0x4d8] sm:$0xff] %vm269_vm0, %v3394_v56  ;;  %v1874_v58 = vpop.f32.mrb[27].mxu1  ;;  %2409 = vst.msk [vmem:[%s5622_s2 + $0xd0] sm:$0xff] %vm269_vm0, %v1234_v57 }
 0x112   :  { %2537 = vst.msk [vmem:[%s5622_s2 + $0x4d0] sm:$0xff] %vm269_vm0, %v1874_v58 }
 0x113   :  { %v3205_v59 = vpop.f32.mrb[28].mxu0 }
 0x114   :  { %v3397_v60 = vpop.f32.mrb[28].mxu1  ;;  %2412 = vst.msk [vmem:[%s5622_s2 + $0xe8] sm:$0xff] %vm269_vm0, %v3205_v59  ;;  %v1244_v61 = vpop.f32.mrb[29].mxu0 }
 0x115   :  { %2540 = vst.msk [vmem:[%s5622_s2 + $0x4e8] sm:$0xff] %vm269_vm0, %v3397_v60  ;;  %v1884_v62 = vpop.f32.mrb[29].mxu1  ;;  %2411 = vst.msk [vmem:[%s5622_s2 + $0xe0] sm:$0xff] %vm269_vm0, %v1244_v61 }
 0x116   :  { %2539 = vst.msk [vmem:[%s5622_s2 + $0x4e0] sm:$0xff] %vm269_vm0, %v1884_v62 }
 0x117   :  { %v3208_v63 = vpop.f32.mrb[30].mxu0 }
 0x118   :  { %v3400_v0 = vpop.f32.mrb[30].mxu1  ;;  %2414 = vst.msk [vmem:[%s5622_s2 + $0xf8] sm:$0xff] %vm269_vm0, %v3208_v63  ;;  %v1254_v1 = vpop.f32.mrb[31].mxu0 }
 0x119   :  { %2542 = vst.msk [vmem:[%s5622_s2 + $0x4f8] sm:$0xff] %vm269_vm0, %v3400_v0  ;;  %v1894_v2 = vpop.f32.mrb[31].mxu1  ;;  %2413 = vst.msk [vmem:[%s5622_s2 + $0xf0] sm:$0xff] %vm269_vm0, %v1254_v1 }
 0x11a   :  { %2541 = vst.msk [vmem:[%s5622_s2 + $0x4f0] sm:$0xff] %vm269_vm0, %v1894_v2 }
 0x11b   :  { %v3211_v3 = vpop.f32.mrb[32].mxu0 }
 0x11c   :  { %v3403_v4 = vpop.f32.mrb[32].mxu1  ;;  %2416 = vst.msk [vmem:[%s5622_s2 + $0x108] sm:$0xff] %vm269_vm0, %v3211_v3  ;;  %v1264_v5 = vpop.f32.mrb[33].mxu0 }
 0x11d   :  { %2544 = vst.msk [vmem:[%s5622_s2 + $0x508] sm:$0xff] %vm269_vm0, %v3403_v4  ;;  %v1904_v6 = vpop.f32.mrb[33].mxu1  ;;  %2415 = vst.msk [vmem:[%s5622_s2 + $0x100] sm:$0xff] %vm269_vm0, %v1264_v5 }
 0x11e   :  { %2543 = vst.msk [vmem:[%s5622_s2 + $0x500] sm:$0xff] %vm269_vm0, %v1904_v6 }
 0x11f   :  { %v3214_v7 = vpop.f32.mrb[34].mxu0 }
 0x120   :  { %v3406_v8 = vpop.f32.mrb[34].mxu1  ;;  %2418 = vst.msk [vmem:[%s5622_s2 + $0x118] sm:$0xff] %vm269_vm0, %v3214_v7  ;;  %v1274_v9 = vpop.f32.mrb[35].mxu0 }
 0x121   :  { %2546 = vst.msk [vmem:[%s5622_s2 + $0x518] sm:$0xff] %vm269_vm0, %v3406_v8  ;;  %v1914_v10 = vpop.f32.mrb[35].mxu1  ;;  %2417 = vst.msk [vmem:[%s5622_s2 + $0x110] sm:$0xff] %vm269_vm0, %v1274_v9 }
 0x122   :  { %2545 = vst.msk [vmem:[%s5622_s2 + $0x510] sm:$0xff] %vm269_vm0, %v1914_v10 }
 0x123   :  { %v3217_v11 = vpop.f32.mrb[36].mxu0 }
 0x124   :  { %v3409_v12 = vpop.f32.mrb[36].mxu1  ;;  %2420 = vst.msk [vmem:[%s5622_s2 + $0x128] sm:$0xff] %vm269_vm0, %v3217_v11  ;;  %v1284_v13 = vpop.f32.mrb[37].mxu0 }
 0x125   :  { %2548 = vst.msk [vmem:[%s5622_s2 + $0x528] sm:$0xff] %vm269_vm0, %v3409_v12  ;;  %v1924_v14 = vpop.f32.mrb[37].mxu1  ;;  %2419 = vst.msk [vmem:[%s5622_s2 + $0x120] sm:$0xff] %vm269_vm0, %v1284_v13 }
 0x126   :  { %2547 = vst.msk [vmem:[%s5622_s2 + $0x520] sm:$0xff] %vm269_vm0, %v1924_v14 }
 0x127   :  { %v3220_v15 = vpop.f32.mrb[38].mxu0 }
 0x128   :  { %v3412_v16 = vpop.f32.mrb[38].mxu1  ;;  %2422 = vst.msk [vmem:[%s5622_s2 + $0x138] sm:$0xff] %vm269_vm0, %v3220_v15  ;;  %v1294_v17 = vpop.f32.mrb[39].mxu0 }
 0x129   :  { %2550 = vst.msk [vmem:[%s5622_s2 + $0x538] sm:$0xff] %vm269_vm0, %v3412_v16  ;;  %v1934_v18 = vpop.f32.mrb[39].mxu1  ;;  %2421 = vst.msk [vmem:[%s5622_s2 + $0x130] sm:$0xff] %vm269_vm0, %v1294_v17 }
 0x12a   :  { %2549 = vst.msk [vmem:[%s5622_s2 + $0x530] sm:$0xff] %vm269_vm0, %v1934_v18 }
 0x12b   :  { %v3223_v19 = vpop.f32.mrb[40].mxu0 }
 0x12c   :  { %v3415_v20 = vpop.f32.mrb[40].mxu1  ;;  %2424 = vst.msk [vmem:[%s5622_s2 + $0x148] sm:$0xff] %vm269_vm0, %v3223_v19  ;;  %v1304_v21 = vpop.f32.mrb[41].mxu0 }
 0x12d   :  { %2552 = vst.msk [vmem:[%s5622_s2 + $0x548] sm:$0xff] %vm269_vm0, %v3415_v20  ;;  %v1944_v22 = vpop.f32.mrb[41].mxu1  ;;  %2423 = vst.msk [vmem:[%s5622_s2 + $0x140] sm:$0xff] %vm269_vm0, %v1304_v21 }
 0x12e   :  { %2551 = vst.msk [vmem:[%s5622_s2 + $0x540] sm:$0xff] %vm269_vm0, %v1944_v22 }
 0x12f   :  { %v3226_v23 = vpop.f32.mrb[42].mxu0 }
 0x130   :  { %v3418_v24 = vpop.f32.mrb[42].mxu1  ;;  %2426 = vst.msk [vmem:[%s5622_s2 + $0x158] sm:$0xff] %vm269_vm0, %v3226_v23  ;;  %v1314_v25 = vpop.f32.mrb[43].mxu0 }
 0x131   :  { %2554 = vst.msk [vmem:[%s5622_s2 + $0x558] sm:$0xff] %vm269_vm0, %v3418_v24  ;;  %v1954_v26 = vpop.f32.mrb[43].mxu1  ;;  %2425 = vst.msk [vmem:[%s5622_s2 + $0x150] sm:$0xff] %vm269_vm0, %v1314_v25 }
 0x132   :  { %2553 = vst.msk [vmem:[%s5622_s2 + $0x550] sm:$0xff] %vm269_vm0, %v1954_v26 }
 0x133   :  { %v3229_v27 = vpop.f32.mrb[44].mxu0 }
 0x134   :  { %v3421_v28 = vpop.f32.mrb[44].mxu1  ;;  %2428 = vst.msk [vmem:[%s5622_s2 + $0x168] sm:$0xff] %vm269_vm0, %v3229_v27  ;;  %v1324_v29 = vpop.f32.mrb[45].mxu0 }
 0x135   :  { %2556 = vst.msk [vmem:[%s5622_s2 + $0x568] sm:$0xff] %vm269_vm0, %v3421_v28  ;;  %v1964_v30 = vpop.f32.mrb[45].mxu1  ;;  %2427 = vst.msk [vmem:[%s5622_s2 + $0x160] sm:$0xff] %vm269_vm0, %v1324_v29 }
 0x136   :  { %2555 = vst.msk [vmem:[%s5622_s2 + $0x560] sm:$0xff] %vm269_vm0, %v1964_v30 }
 0x137   :  { %v3232_v31 = vpop.f32.mrb[46].mxu0 }
 0x138   :  { %v3424_v32 = vpop.f32.mrb[46].mxu1  ;;  %2430 = vst.msk [vmem:[%s5622_s2 + $0x178] sm:$0xff] %vm269_vm0, %v3232_v31  ;;  %v1334_v33 = vpop.f32.mrb[47].mxu0 }
 0x139   :  { %2558 = vst.msk [vmem:[%s5622_s2 + $0x578] sm:$0xff] %vm269_vm0, %v3424_v32  ;;  %v1974_v34 = vpop.f32.mrb[47].mxu1  ;;  %2429 = vst.msk [vmem:[%s5622_s2 + $0x170] sm:$0xff] %vm269_vm0, %v1334_v33 }
 0x13a   :  { %2557 = vst.msk [vmem:[%s5622_s2 + $0x570] sm:$0xff] %vm269_vm0, %v1974_v34 }
 0x13b   :  { %v3235_v35 = vpop.f32.mrb[48].mxu0 }
 0x13c   :  { %v3427_v36 = vpop.f32.mrb[48].mxu1  ;;  %2432 = vst.msk [vmem:[%s5622_s2 + $0x188] sm:$0xff] %vm269_vm0, %v3235_v35  ;;  %v1344_v37 = vpop.f32.mrb[49].mxu0 }
 0x13d   :  { %2560 = vst.msk [vmem:[%s5622_s2 + $0x588] sm:$0xff] %vm269_vm0, %v3427_v36  ;;  %v1984_v38 = vpop.f32.mrb[49].mxu1  ;;  %2431 = vst.msk [vmem:[%s5622_s2 + $0x180] sm:$0xff] %vm269_vm0, %v1344_v37 }
 0x13e   :  { %2559 = vst.msk [vmem:[%s5622_s2 + $0x580] sm:$0xff] %vm269_vm0, %v1984_v38 }
 0x13f   :  { %v3238_v39 = vpop.f32.mrb[50].mxu0 }
 0x140   :  { %v3430_v40 = vpop.f32.mrb[50].mxu1  ;;  %2434 = vst.msk [vmem:[%s5622_s2 + $0x198] sm:$0xff] %vm269_vm0, %v3238_v39  ;;  %v1354_v41 = vpop.f32.mrb[51].mxu0 }
 0x141   :  { %2562 = vst.msk [vmem:[%s5622_s2 + $0x598] sm:$0xff] %vm269_vm0, %v3430_v40  ;;  %v1994_v42 = vpop.f32.mrb[51].mxu1  ;;  %2433 = vst.msk [vmem:[%s5622_s2 + $0x190] sm:$0xff] %vm269_vm0, %v1354_v41 }
 0x142   :  { %2561 = vst.msk [vmem:[%s5622_s2 + $0x590] sm:$0xff] %vm269_vm0, %v1994_v42 }
 0x143   :  { %v3241_v43 = vpop.f32.mrb[52].mxu0 }
 0x144   :  { %v3433_v44 = vpop.f32.mrb[52].mxu1  ;;  %2436 = vst.msk [vmem:[%s5622_s2 + $0x1a8] sm:$0xff] %vm269_vm0, %v3241_v43  ;;  %v1364_v45 = vpop.f32.mrb[53].mxu0 }
 0x145   :  { %2564 = vst.msk [vmem:[%s5622_s2 + $0x5a8] sm:$0xff] %vm269_vm0, %v3433_v44  ;;  %v2004_v46 = vpop.f32.mrb[53].mxu1  ;;  %2435 = vst.msk [vmem:[%s5622_s2 + $0x1a0] sm:$0xff] %vm269_vm0, %v1364_v45 }
 0x146   :  { %2563 = vst.msk [vmem:[%s5622_s2 + $0x5a0] sm:$0xff] %vm269_vm0, %v2004_v46 }
 0x147   :  { %v3244_v47 = vpop.f32.mrb[54].mxu0 }
 0x148   :  { %v3436_v48 = vpop.f32.mrb[54].mxu1  ;;  %2438 = vst.msk [vmem:[%s5622_s2 + $0x1b8] sm:$0xff] %vm269_vm0, %v3244_v47  ;;  %v1374_v49 = vpop.f32.mrb[55].mxu0 }
 0x149   :  { %2566 = vst.msk [vmem:[%s5622_s2 + $0x5b8] sm:$0xff] %vm269_vm0, %v3436_v48  ;;  %v2014_v50 = vpop.f32.mrb[55].mxu1  ;;  %2437 = vst.msk [vmem:[%s5622_s2 + $0x1b0] sm:$0xff] %vm269_vm0, %v1374_v49 }
 0x14a   :  { %2565 = vst.msk [vmem:[%s5622_s2 + $0x5b0] sm:$0xff] %vm269_vm0, %v2014_v50 }
 0x14b   :  { %v3247_v51 = vpop.f32.mrb[56].mxu0 }
 0x14c   :  { %v3439_v52 = vpop.f32.mrb[56].mxu1  ;;  %2440 = vst.msk [vmem:[%s5622_s2 + $0x1c8] sm:$0xff] %vm269_vm0, %v3247_v51  ;;  %v1384_v53 = vpop.f32.mrb[57].mxu0 }
 0x14d   :  { %2568 = vst.msk [vmem:[%s5622_s2 + $0x5c8] sm:$0xff] %vm269_vm0, %v3439_v52  ;;  %v2024_v54 = vpop.f32.mrb[57].mxu1  ;;  %2439 = vst.msk [vmem:[%s5622_s2 + $0x1c0] sm:$0xff] %vm269_vm0, %v1384_v53 }
 0x14e   :  { %2567 = vst.msk [vmem:[%s5622_s2 + $0x5c0] sm:$0xff] %vm269_vm0, %v2024_v54 }
 0x14f   :  { %v3250_v55 = vpop.f32.mrb[58].mxu0 }
 0x150   :  { %v3442_v56 = vpop.f32.mrb[58].mxu1  ;;  %2442 = vst.msk [vmem:[%s5622_s2 + $0x1d8] sm:$0xff] %vm269_vm0, %v3250_v55  ;;  %v1394_v57 = vpop.f32.mrb[59].mxu0 }
 0x151   :  { %2570 = vst.msk [vmem:[%s5622_s2 + $0x5d8] sm:$0xff] %vm269_vm0, %v3442_v56  ;;  %v2034_v58 = vpop.f32.mrb[59].mxu1  ;;  %2441 = vst.msk [vmem:[%s5622_s2 + $0x1d0] sm:$0xff] %vm269_vm0, %v1394_v57 }
 0x152   :  { %2569 = vst.msk [vmem:[%s5622_s2 + $0x5d0] sm:$0xff] %vm269_vm0, %v2034_v58 }
 0x153   :  { %v3253_v59 = vpop.f32.mrb[60].mxu0 }
 0x154   :  { %v3445_v60 = vpop.f32.mrb[60].mxu1  ;;  %2444 = vst.msk [vmem:[%s5622_s2 + $0x1e8] sm:$0xff] %vm269_vm0, %v3253_v59  ;;  %v1404_v61 = vpop.f32.mrb[61].mxu0 }
 0x155   :  { %2572 = vst.msk [vmem:[%s5622_s2 + $0x5e8] sm:$0xff] %vm269_vm0, %v3445_v60  ;;  %v2044_v62 = vpop.f32.mrb[61].mxu1  ;;  %2443 = vst.msk [vmem:[%s5622_s2 + $0x1e0] sm:$0xff] %vm269_vm0, %v1404_v61 }
 0x156   :  { %2571 = vst.msk [vmem:[%s5622_s2 + $0x5e0] sm:$0xff] %vm269_vm0, %v2044_v62 }
 0x157   :  { %v3256_v63 = vpop.f32.mrb[62].mxu0 }
 0x158   :  { %v3448_v0 = vpop.f32.mrb[62].mxu1  ;;  %2446 = vst.msk [vmem:[%s5622_s2 + $0x1f8] sm:$0xff] %vm269_vm0, %v3256_v63  ;;  %v1414_v1 = vpop.f32.mrb[63].mxu0 }
 0x159   :  { %2574 = vst.msk [vmem:[%s5622_s2 + $0x5f8] sm:$0xff] %vm269_vm0, %v3448_v0  ;;  %v2054_v2 = vpop.f32.mrb[63].mxu1  ;;  %2445 = vst.msk [vmem:[%s5622_s2 + $0x1f0] sm:$0xff] %vm269_vm0, %v1414_v1 }
 0x15a   :  { %2573 = vst.msk [vmem:[%s5622_s2 + $0x5f0] sm:$0xff] %vm269_vm0, %v2054_v2 }
 0x15b   :  { %v3259_v3 = vpop.f32.mrb[64].mxu0 }
 0x15c   :  { %v3451_v4 = vpop.f32.mrb[64].mxu1  ;;  %2448 = vst.msk [vmem:[%s5622_s2 + $0x208] sm:$0xff] %vm269_vm0, %v3259_v3  ;;  %v1424_v5 = vpop.f32.mrb[65].mxu0 }
 0x15d   :  { %2576 = vst.msk [vmem:[%s5622_s2 + $0x608] sm:$0xff] %vm269_vm0, %v3451_v4  ;;  %v2064_v6 = vpop.f32.mrb[65].mxu1  ;;  %2447 = vst.msk [vmem:[%s5622_s2 + $0x200] sm:$0xff] %vm269_vm0, %v1424_v5 }
 0x15e   :  { %2575 = vst.msk [vmem:[%s5622_s2 + $0x600] sm:$0xff] %vm269_vm0, %v2064_v6 }
 0x15f   :  { %v3262_v7 = vpop.f32.mrb[66].mxu0 }
 0x160   :  { %v3454_v8 = vpop.f32.mrb[66].mxu1  ;;  %2450 = vst.msk [vmem:[%s5622_s2 + $0x218] sm:$0xff] %vm269_vm0, %v3262_v7  ;;  %v1434_v9 = vpop.f32.mrb[67].mxu0 }
 0x161   :  { %2578 = vst.msk [vmem:[%s5622_s2 + $0x618] sm:$0xff] %vm269_vm0, %v3454_v8  ;;  %v2074_v10 = vpop.f32.mrb[67].mxu1  ;;  %2449 = vst.msk [vmem:[%s5622_s2 + $0x210] sm:$0xff] %vm269_vm0, %v1434_v9 }
 0x162   :  { %2577 = vst.msk [vmem:[%s5622_s2 + $0x610] sm:$0xff] %vm269_vm0, %v2074_v10 }
 0x163   :  { %v3265_v11 = vpop.f32.mrb[68].mxu0 }
 0x164   :  { %v3457_v12 = vpop.f32.mrb[68].mxu1  ;;  %2452 = vst.msk [vmem:[%s5622_s2 + $0x228] sm:$0xff] %vm269_vm0, %v3265_v11  ;;  %v1444_v13 = vpop.f32.mrb[69].mxu0 }
 0x165   :  { %2580 = vst.msk [vmem:[%s5622_s2 + $0x628] sm:$0xff] %vm269_vm0, %v3457_v12  ;;  %v2084_v14 = vpop.f32.mrb[69].mxu1  ;;  %2451 = vst.msk [vmem:[%s5622_s2 + $0x220] sm:$0xff] %vm269_vm0, %v1444_v13 }
 0x166   :  { %2579 = vst.msk [vmem:[%s5622_s2 + $0x620] sm:$0xff] %vm269_vm0, %v2084_v14 }
 0x167   :  { %v3268_v15 = vpop.f32.mrb[70].mxu0 }
 0x168   :  { %v3460_v16 = vpop.f32.mrb[70].mxu1  ;;  %2454 = vst.msk [vmem:[%s5622_s2 + $0x238] sm:$0xff] %vm269_vm0, %v3268_v15  ;;  %v1454_v17 = vpop.f32.mrb[71].mxu0 }
 0x169   :  { %2582 = vst.msk [vmem:[%s5622_s2 + $0x638] sm:$0xff] %vm269_vm0, %v3460_v16  ;;  %v2094_v18 = vpop.f32.mrb[71].mxu1  ;;  %2453 = vst.msk [vmem:[%s5622_s2 + $0x230] sm:$0xff] %vm269_vm0, %v1454_v17 }
 0x16a   :  { %2581 = vst.msk [vmem:[%s5622_s2 + $0x630] sm:$0xff] %vm269_vm0, %v2094_v18 }
 0x16b   :  { %v3271_v19 = vpop.f32.mrb[72].mxu0 }
 0x16c   :  { %v3463_v20 = vpop.f32.mrb[72].mxu1  ;;  %2456 = vst.msk [vmem:[%s5622_s2 + $0x248] sm:$0xff] %vm269_vm0, %v3271_v19  ;;  %v1464_v21 = vpop.f32.mrb[73].mxu0 }
 0x16d   :  { %2584 = vst.msk [vmem:[%s5622_s2 + $0x648] sm:$0xff] %vm269_vm0, %v3463_v20  ;;  %v2104_v22 = vpop.f32.mrb[73].mxu1  ;;  %2455 = vst.msk [vmem:[%s5622_s2 + $0x240] sm:$0xff] %vm269_vm0, %v1464_v21 }
 0x16e   :  { %2583 = vst.msk [vmem:[%s5622_s2 + $0x640] sm:$0xff] %vm269_vm0, %v2104_v22 }
 0x16f   :  { %v3274_v23 = vpop.f32.mrb[74].mxu0 }
 0x170   :  { %v3466_v24 = vpop.f32.mrb[74].mxu1  ;;  %2458 = vst.msk [vmem:[%s5622_s2 + $0x258] sm:$0xff] %vm269_vm0, %v3274_v23  ;;  %v1474_v25 = vpop.f32.mrb[75].mxu0 }
 0x171   :  { %2586 = vst.msk [vmem:[%s5622_s2 + $0x658] sm:$0xff] %vm269_vm0, %v3466_v24  ;;  %v2114_v26 = vpop.f32.mrb[75].mxu1  ;;  %2457 = vst.msk [vmem:[%s5622_s2 + $0x250] sm:$0xff] %vm269_vm0, %v1474_v25 }
 0x172   :  { %2585 = vst.msk [vmem:[%s5622_s2 + $0x650] sm:$0xff] %vm269_vm0, %v2114_v26 }
 0x173   :  { %v3277_v27 = vpop.f32.mrb[76].mxu0 }
 0x174   :  { %v3469_v28 = vpop.f32.mrb[76].mxu1  ;;  %2460 = vst.msk [vmem:[%s5622_s2 + $0x268] sm:$0xff] %vm269_vm0, %v3277_v27  ;;  %v1484_v29 = vpop.f32.mrb[77].mxu0 }
 0x175   :  { %2588 = vst.msk [vmem:[%s5622_s2 + $0x668] sm:$0xff] %vm269_vm0, %v3469_v28  ;;  %v2124_v30 = vpop.f32.mrb[77].mxu1  ;;  %2459 = vst.msk [vmem:[%s5622_s2 + $0x260] sm:$0xff] %vm269_vm0, %v1484_v29 }
 0x176   :  { %2587 = vst.msk [vmem:[%s5622_s2 + $0x660] sm:$0xff] %vm269_vm0, %v2124_v30 }
 0x177   :  { %v3280_v31 = vpop.f32.mrb[78].mxu0 }
 0x178   :  { %v3472_v32 = vpop.f32.mrb[78].mxu1  ;;  %2462 = vst.msk [vmem:[%s5622_s2 + $0x278] sm:$0xff] %vm269_vm0, %v3280_v31  ;;  %v1494_v33 = vpop.f32.mrb[79].mxu0 }
 0x179   :  { %2590 = vst.msk [vmem:[%s5622_s2 + $0x678] sm:$0xff] %vm269_vm0, %v3472_v32  ;;  %v2134_v34 = vpop.f32.mrb[79].mxu1  ;;  %2461 = vst.msk [vmem:[%s5622_s2 + $0x270] sm:$0xff] %vm269_vm0, %v1494_v33 }
 0x17a   :  { %2589 = vst.msk [vmem:[%s5622_s2 + $0x670] sm:$0xff] %vm269_vm0, %v2134_v34 }
 0x17b   :  { %v3283_v35 = vpop.f32.mrb[80].mxu0 }
 0x17c   :  { %v3475_v36 = vpop.f32.mrb[80].mxu1  ;;  %2464 = vst.msk [vmem:[%s5622_s2 + $0x288] sm:$0xff] %vm269_vm0, %v3283_v35  ;;  %v1504_v37 = vpop.f32.mrb[81].mxu0 }
 0x17d   :  { %2592 = vst.msk [vmem:[%s5622_s2 + $0x688] sm:$0xff] %vm269_vm0, %v3475_v36  ;;  %v2144_v38 = vpop.f32.mrb[81].mxu1  ;;  %2463 = vst.msk [vmem:[%s5622_s2 + $0x280] sm:$0xff] %vm269_vm0, %v1504_v37 }
 0x17e   :  { %2591 = vst.msk [vmem:[%s5622_s2 + $0x680] sm:$0xff] %vm269_vm0, %v2144_v38 }
 0x17f   :  { %v3286_v39 = vpop.f32.mrb[82].mxu0 }
 0x180   :  { %v3478_v40 = vpop.f32.mrb[82].mxu1  ;;  %2466 = vst.msk [vmem:[%s5622_s2 + $0x298] sm:$0xff] %vm269_vm0, %v3286_v39  ;;  %v1514_v41 = vpop.f32.mrb[83].mxu0 }
 0x181   :  { %2594 = vst.msk [vmem:[%s5622_s2 + $0x698] sm:$0xff] %vm269_vm0, %v3478_v40  ;;  %v2154_v42 = vpop.f32.mrb[83].mxu1  ;;  %2465 = vst.msk [vmem:[%s5622_s2 + $0x290] sm:$0xff] %vm269_vm0, %v1514_v41 }
 0x182   :  { %2593 = vst.msk [vmem:[%s5622_s2 + $0x690] sm:$0xff] %vm269_vm0, %v2154_v42 }
 0x183   :  { %v3289_v43 = vpop.f32.mrb[84].mxu0 }
 0x184   :  { %v3481_v44 = vpop.f32.mrb[84].mxu1  ;;  %2468 = vst.msk [vmem:[%s5622_s2 + $0x2a8] sm:$0xff] %vm269_vm0, %v3289_v43  ;;  %v1524_v45 = vpop.f32.mrb[85].mxu0 }
 0x185   :  { %2596 = vst.msk [vmem:[%s5622_s2 + $0x6a8] sm:$0xff] %vm269_vm0, %v3481_v44  ;;  %v2164_v46 = vpop.f32.mrb[85].mxu1  ;;  %2467 = vst.msk [vmem:[%s5622_s2 + $0x2a0] sm:$0xff] %vm269_vm0, %v1524_v45 }
 0x186   :  { %2595 = vst.msk [vmem:[%s5622_s2 + $0x6a0] sm:$0xff] %vm269_vm0, %v2164_v46 }
 0x187   :  { %v3292_v47 = vpop.f32.mrb[86].mxu0 }
 0x188   :  { %v3484_v48 = vpop.f32.mrb[86].mxu1  ;;  %2470 = vst.msk [vmem:[%s5622_s2 + $0x2b8] sm:$0xff] %vm269_vm0, %v3292_v47  ;;  %v1534_v49 = vpop.f32.mrb[87].mxu0 }
 0x189   :  { %2598 = vst.msk [vmem:[%s5622_s2 + $0x6b8] sm:$0xff] %vm269_vm0, %v3484_v48  ;;  %v2174_v50 = vpop.f32.mrb[87].mxu1  ;;  %2469 = vst.msk [vmem:[%s5622_s2 + $0x2b0] sm:$0xff] %vm269_vm0, %v1534_v49 }
 0x18a   :  { %2597 = vst.msk [vmem:[%s5622_s2 + $0x6b0] sm:$0xff] %vm269_vm0, %v2174_v50 }
 0x18b   :  { %v3295_v51 = vpop.f32.mrb[88].mxu0 }
 0x18c   :  { %v3487_v52 = vpop.f32.mrb[88].mxu1  ;;  %2472 = vst.msk [vmem:[%s5622_s2 + $0x2c8] sm:$0xff] %vm269_vm0, %v3295_v51  ;;  %v1544_v53 = vpop.f32.mrb[89].mxu0 }
 0x18d   :  { %2600 = vst.msk [vmem:[%s5622_s2 + $0x6c8] sm:$0xff] %vm269_vm0, %v3487_v52  ;;  %v2184_v54 = vpop.f32.mrb[89].mxu1  ;;  %2471 = vst.msk [vmem:[%s5622_s2 + $0x2c0] sm:$0xff] %vm269_vm0, %v1544_v53 }
 0x18e   :  { %2599 = vst.msk [vmem:[%s5622_s2 + $0x6c0] sm:$0xff] %vm269_vm0, %v2184_v54 }
 0x18f   :  { %v3298_v55 = vpop.f32.mrb[90].mxu0 }
 0x190   :  { %v3490_v56 = vpop.f32.mrb[90].mxu1  ;;  %2474 = vst.msk [vmem:[%s5622_s2 + $0x2d8] sm:$0xff] %vm269_vm0, %v3298_v55  ;;  %v1554_v57 = vpop.f32.mrb[91].mxu0 }
 0x191   :  { %2602 = vst.msk [vmem:[%s5622_s2 + $0x6d8] sm:$0xff] %vm269_vm0, %v3490_v56  ;;  %v2194_v58 = vpop.f32.mrb[91].mxu1  ;;  %2473 = vst.msk [vmem:[%s5622_s2 + $0x2d0] sm:$0xff] %vm269_vm0, %v1554_v57 }
 0x192   :  { %2601 = vst.msk [vmem:[%s5622_s2 + $0x6d0] sm:$0xff] %vm269_vm0, %v2194_v58 }
 0x193   :  { %v3301_v59 = vpop.f32.mrb[92].mxu0 }
 0x194   :  { %v3493_v60 = vpop.f32.mrb[92].mxu1  ;;  %2476 = vst.msk [vmem:[%s5622_s2 + $0x2e8] sm:$0xff] %vm269_vm0, %v3301_v59  ;;  %v1564_v61 = vpop.f32.mrb[93].mxu0 }
 0x195   :  { %2604 = vst.msk [vmem:[%s5622_s2 + $0x6e8] sm:$0xff] %vm269_vm0, %v3493_v60  ;;  %v2204_v62 = vpop.f32.mrb[93].mxu1  ;;  %2475 = vst.msk [vmem:[%s5622_s2 + $0x2e0] sm:$0xff] %vm269_vm0, %v1564_v61 }
 0x196   :  { %2603 = vst.msk [vmem:[%s5622_s2 + $0x6e0] sm:$0xff] %vm269_vm0, %v2204_v62 }
 0x197   :  { %v3304_v63 = vpop.f32.mrb[94].mxu0 }
 0x198   :  { %v3496_v0 = vpop.f32.mrb[94].mxu1  ;;  %2478 = vst.msk [vmem:[%s5622_s2 + $0x2f8] sm:$0xff] %vm269_vm0, %v3304_v63  ;;  %v1574_v1 = vpop.f32.mrb[95].mxu0 }
 0x199   :  { %2606 = vst.msk [vmem:[%s5622_s2 + $0x6f8] sm:$0xff] %vm269_vm0, %v3496_v0  ;;  %v2214_v2 = vpop.f32.mrb[95].mxu1  ;;  %2477 = vst.msk [vmem:[%s5622_s2 + $0x2f0] sm:$0xff] %vm269_vm0, %v1574_v1 }
 0x19a   :  { %2605 = vst.msk [vmem:[%s5622_s2 + $0x6f0] sm:$0xff] %vm269_vm0, %v2214_v2 }
 0x19b   :  { %v3307_v3 = vpop.f32.mrb[96].mxu0 }
 0x19c   :  { %v3499_v4 = vpop.f32.mrb[96].mxu1  ;;  %2480 = vst.msk [vmem:[%s5622_s2 + $0x308] sm:$0xff] %vm269_vm0, %v3307_v3  ;;  %v1584_v5 = vpop.f32.mrb[97].mxu0 }
 0x19d   :  { %2608 = vst.msk [vmem:[%s5622_s2 + $0x708] sm:$0xff] %vm269_vm0, %v3499_v4  ;;  %v2224_v6 = vpop.f32.mrb[97].mxu1  ;;  %2479 = vst.msk [vmem:[%s5622_s2 + $0x300] sm:$0xff] %vm269_vm0, %v1584_v5 }
 0x19e   :  { %2607 = vst.msk [vmem:[%s5622_s2 + $0x700] sm:$0xff] %vm269_vm0, %v2224_v6 }
 0x19f   :  { %v3310_v7 = vpop.f32.mrb[98].mxu0 }
 0x1a0   :  { %v3502_v8 = vpop.f32.mrb[98].mxu1  ;;  %2482 = vst.msk [vmem:[%s5622_s2 + $0x318] sm:$0xff] %vm269_vm0, %v3310_v7  ;;  %v1594_v9 = vpop.f32.mrb[99].mxu0 }
 0x1a1   :  { %2610 = vst.msk [vmem:[%s5622_s2 + $0x718] sm:$0xff] %vm269_vm0, %v3502_v8  ;;  %v2234_v10 = vpop.f32.mrb[99].mxu1  ;;  %2481 = vst.msk [vmem:[%s5622_s2 + $0x310] sm:$0xff] %vm269_vm0, %v1594_v9 }
 0x1a2   :  { %2609 = vst.msk [vmem:[%s5622_s2 + $0x710] sm:$0xff] %vm269_vm0, %v2234_v10 }
 0x1a3   :  { %v3313_v11 = vpop.f32.mrb[100].mxu0 }
 0x1a4   :  { %v3505_v12 = vpop.f32.mrb[100].mxu1  ;;  %2484 = vst.msk [vmem:[%s5622_s2 + $0x328] sm:$0xff] %vm269_vm0, %v3313_v11  ;;  %v1604_v13 = vpop.f32.mrb[101].mxu0 }
 0x1a5   :  { %2612 = vst.msk [vmem:[%s5622_s2 + $0x728] sm:$0xff] %vm269_vm0, %v3505_v12  ;;  %v2244_v14 = vpop.f32.mrb[101].mxu1  ;;  %2483 = vst.msk [vmem:[%s5622_s2 + $0x320] sm:$0xff] %vm269_vm0, %v1604_v13 }
 0x1a6   :  { %2611 = vst.msk [vmem:[%s5622_s2 + $0x720] sm:$0xff] %vm269_vm0, %v2244_v14 }
 0x1a7   :  { %v3316_v15 = vpop.f32.mrb[102].mxu0 }
 0x1a8   :  { %v3508_v16 = vpop.f32.mrb[102].mxu1  ;;  %2486 = vst.msk [vmem:[%s5622_s2 + $0x338] sm:$0xff] %vm269_vm0, %v3316_v15  ;;  %v1614_v17 = vpop.f32.mrb[103].mxu0 }
 0x1a9   :  { %2614 = vst.msk [vmem:[%s5622_s2 + $0x738] sm:$0xff] %vm269_vm0, %v3508_v16  ;;  %v2254_v18 = vpop.f32.mrb[103].mxu1  ;;  %2485 = vst.msk [vmem:[%s5622_s2 + $0x330] sm:$0xff] %vm269_vm0, %v1614_v17 }
 0x1aa   :  { %2613 = vst.msk [vmem:[%s5622_s2 + $0x730] sm:$0xff] %vm269_vm0, %v2254_v18 }
 0x1ab   :  { %v3319_v19 = vpop.f32.mrb[104].mxu0 }
 0x1ac   :  { %v3511_v20 = vpop.f32.mrb[104].mxu1  ;;  %2488 = vst.msk [vmem:[%s5622_s2 + $0x348] sm:$0xff] %vm269_vm0, %v3319_v19  ;;  %v1624_v21 = vpop.f32.mrb[105].mxu0 }
 0x1ad   :  { %2616 = vst.msk [vmem:[%s5622_s2 + $0x748] sm:$0xff] %vm269_vm0, %v3511_v20  ;;  %v2264_v22 = vpop.f32.mrb[105].mxu1  ;;  %2487 = vst.msk [vmem:[%s5622_s2 + $0x340] sm:$0xff] %vm269_vm0, %v1624_v21 }
 0x1ae   :  { %2615 = vst.msk [vmem:[%s5622_s2 + $0x740] sm:$0xff] %vm269_vm0, %v2264_v22 }
 0x1af   :  { %v3322_v23 = vpop.f32.mrb[106].mxu0 }
 0x1b0   :  { %v3514_v24 = vpop.f32.mrb[106].mxu1  ;;  %2490 = vst.msk [vmem:[%s5622_s2 + $0x358] sm:$0xff] %vm269_vm0, %v3322_v23  ;;  %v1634_v25 = vpop.f32.mrb[107].mxu0 }
 0x1b1   :  { %2618 = vst.msk [vmem:[%s5622_s2 + $0x758] sm:$0xff] %vm269_vm0, %v3514_v24  ;;  %v2274_v26 = vpop.f32.mrb[107].mxu1  ;;  %2489 = vst.msk [vmem:[%s5622_s2 + $0x350] sm:$0xff] %vm269_vm0, %v1634_v25 }
 0x1b2   :  { %2617 = vst.msk [vmem:[%s5622_s2 + $0x750] sm:$0xff] %vm269_vm0, %v2274_v26 }
 0x1b3   :  { %v3325_v27 = vpop.f32.mrb[108].mxu0 }
 0x1b4   :  { %v3517_v28 = vpop.f32.mrb[108].mxu1  ;;  %2492 = vst.msk [vmem:[%s5622_s2 + $0x368] sm:$0xff] %vm269_vm0, %v3325_v27  ;;  %v1644_v29 = vpop.f32.mrb[109].mxu0 }
 0x1b5   :  { %2620 = vst.msk [vmem:[%s5622_s2 + $0x768] sm:$0xff] %vm269_vm0, %v3517_v28  ;;  %v2284_v30 = vpop.f32.mrb[109].mxu1  ;;  %2491 = vst.msk [vmem:[%s5622_s2 + $0x360] sm:$0xff] %vm269_vm0, %v1644_v29 }
 0x1b6   :  { %2619 = vst.msk [vmem:[%s5622_s2 + $0x760] sm:$0xff] %vm269_vm0, %v2284_v30 }
 0x1b7   :  { %v3328_v31 = vpop.f32.mrb[110].mxu0 }
 0x1b8   :  { %v3520_v32 = vpop.f32.mrb[110].mxu1  ;;  %2494 = vst.msk [vmem:[%s5622_s2 + $0x378] sm:$0xff] %vm269_vm0, %v3328_v31  ;;  %v1654_v33 = vpop.f32.mrb[111].mxu0 }
 0x1b9   :  { %2622 = vst.msk [vmem:[%s5622_s2 + $0x778] sm:$0xff] %vm269_vm0, %v3520_v32  ;;  %v2294_v34 = vpop.f32.mrb[111].mxu1  ;;  %2493 = vst.msk [vmem:[%s5622_s2 + $0x370] sm:$0xff] %vm269_vm0, %v1654_v33 }
 0x1ba   :  { %2621 = vst.msk [vmem:[%s5622_s2 + $0x770] sm:$0xff] %vm269_vm0, %v2294_v34 }
 0x1bb   :  { %v3331_v35 = vpop.f32.mrb[112].mxu0 }
 0x1bc   :  { %v3523_v36 = vpop.f32.mrb[112].mxu1  ;;  %2496 = vst.msk [vmem:[%s5622_s2 + $0x388] sm:$0xff] %vm269_vm0, %v3331_v35  ;;  %v1664_v37 = vpop.f32.mrb[113].mxu0 }
 0x1bd   :  { %2624 = vst.msk [vmem:[%s5622_s2 + $0x788] sm:$0xff] %vm269_vm0, %v3523_v36  ;;  %v2304_v38 = vpop.f32.mrb[113].mxu1  ;;  %2495 = vst.msk [vmem:[%s5622_s2 + $0x380] sm:$0xff] %vm269_vm0, %v1664_v37 }
 0x1be   :  { %2623 = vst.msk [vmem:[%s5622_s2 + $0x780] sm:$0xff] %vm269_vm0, %v2304_v38 }
 0x1bf   :  { %v3334_v39 = vpop.f32.mrb[114].mxu0 }
 0x1c0   :  { %v3526_v40 = vpop.f32.mrb[114].mxu1  ;;  %2498 = vst.msk [vmem:[%s5622_s2 + $0x398] sm:$0xff] %vm269_vm0, %v3334_v39  ;;  %v1674_v41 = vpop.f32.mrb[115].mxu0 }
 0x1c1   :  { %2626 = vst.msk [vmem:[%s5622_s2 + $0x798] sm:$0xff] %vm269_vm0, %v3526_v40  ;;  %v2314_v42 = vpop.f32.mrb[115].mxu1  ;;  %2497 = vst.msk [vmem:[%s5622_s2 + $0x390] sm:$0xff] %vm269_vm0, %v1674_v41 }
 0x1c2   :  { %2625 = vst.msk [vmem:[%s5622_s2 + $0x790] sm:$0xff] %vm269_vm0, %v2314_v42 }
 0x1c3   :  { %v3337_v43 = vpop.f32.mrb[116].mxu0 }
 0x1c4   :  { %v3529_v44 = vpop.f32.mrb[116].mxu1  ;;  %2500 = vst.msk [vmem:[%s5622_s2 + $0x3a8] sm:$0xff] %vm269_vm0, %v3337_v43  ;;  %v1684_v45 = vpop.f32.mrb[117].mxu0 }
 0x1c5   :  { %2628 = vst.msk [vmem:[%s5622_s2 + $0x7a8] sm:$0xff] %vm269_vm0, %v3529_v44  ;;  %v2324_v46 = vpop.f32.mrb[117].mxu1  ;;  %2499 = vst.msk [vmem:[%s5622_s2 + $0x3a0] sm:$0xff] %vm269_vm0, %v1684_v45 }
 0x1c6   :  { %2627 = vst.msk [vmem:[%s5622_s2 + $0x7a0] sm:$0xff] %vm269_vm0, %v2324_v46 }
 0x1c7   :  { %v3340_v47 = vpop.f32.mrb[118].mxu0 }
 0x1c8   :  { %v3532_v48 = vpop.f32.mrb[118].mxu1  ;;  %2502 = vst.msk [vmem:[%s5622_s2 + $0x3b8] sm:$0xff] %vm269_vm0, %v3340_v47  ;;  %v1694_v49 = vpop.f32.mrb[119].mxu0 }
 0x1c9   :  { %2630 = vst.msk [vmem:[%s5622_s2 + $0x7b8] sm:$0xff] %vm269_vm0, %v3532_v48  ;;  %v2334_v50 = vpop.f32.mrb[119].mxu1  ;;  %2501 = vst.msk [vmem:[%s5622_s2 + $0x3b0] sm:$0xff] %vm269_vm0, %v1694_v49 }
 0x1ca   :  { %2629 = vst.msk [vmem:[%s5622_s2 + $0x7b0] sm:$0xff] %vm269_vm0, %v2334_v50 }
 0x1cb   :  { %v3343_v51 = vpop.f32.mrb[120].mxu0 }
 0x1cc   :  { %v3535_v52 = vpop.f32.mrb[120].mxu1  ;;  %2504 = vst.msk [vmem:[%s5622_s2 + $0x3c8] sm:$0xff] %vm269_vm0, %v3343_v51  ;;  %v1704_v53 = vpop.f32.mrb[121].mxu0 }
 0x1cd   :  { %2632 = vst.msk [vmem:[%s5622_s2 + $0x7c8] sm:$0xff] %vm269_vm0, %v3535_v52  ;;  %v2344_v54 = vpop.f32.mrb[121].mxu1  ;;  %2503 = vst.msk [vmem:[%s5622_s2 + $0x3c0] sm:$0xff] %vm269_vm0, %v1704_v53 }
 0x1ce   :  { %2631 = vst.msk [vmem:[%s5622_s2 + $0x7c0] sm:$0xff] %vm269_vm0, %v2344_v54 }
 0x1cf   :  { %v3346_v55 = vpop.f32.mrb[122].mxu0 }
 0x1d0   :  { %v3538_v56 = vpop.f32.mrb[122].mxu1  ;;  %2506 = vst.msk [vmem:[%s5622_s2 + $0x3d8] sm:$0xff] %vm269_vm0, %v3346_v55  ;;  %v1714_v57 = vpop.f32.mrb[123].mxu0 }
 0x1d1   :  { %2634 = vst.msk [vmem:[%s5622_s2 + $0x7d8] sm:$0xff] %vm269_vm0, %v3538_v56  ;;  %v2354_v58 = vpop.f32.mrb[123].mxu1  ;;  %2505 = vst.msk [vmem:[%s5622_s2 + $0x3d0] sm:$0xff] %vm269_vm0, %v1714_v57 }
 0x1d2   :  { %2633 = vst.msk [vmem:[%s5622_s2 + $0x7d0] sm:$0xff] %vm269_vm0, %v2354_v58 }
 0x1d3   :  { %v3349_v59 = vpop.f32.mrb[124].mxu0 }
 0x1d4   :  { %v3541_v60 = vpop.f32.mrb[124].mxu1  ;;  %2508 = vst.msk [vmem:[%s5622_s2 + $0x3e8] sm:$0xff] %vm269_vm0, %v3349_v59  ;;  %v1724_v61 = vpop.f32.mrb[125].mxu0 }
 0x1d5   :  { %2636 = vst.msk [vmem:[%s5622_s2 + $0x7e8] sm:$0xff] %vm269_vm0, %v3541_v60  ;;  %v2364_v62 = vpop.f32.mrb[125].mxu1  ;;  %2507 = vst.msk [vmem:[%s5622_s2 + $0x3e0] sm:$0xff] %vm269_vm0, %v1724_v61 }
 0x1d6   :  { %2635 = vst.msk [vmem:[%s5622_s2 + $0x7e0] sm:$0xff] %vm269_vm0, %v2364_v62 }
 0x1d7   :  { %v3352_v63 = vpop.f32.mrb[126].mxu0 }
 0x1d8   :  { %v3544_v0 = vpop.f32.mrb[126].mxu1  ;;  %2510 = vst.msk [vmem:[%s5622_s2 + $0x3f8] sm:$0xff] %vm269_vm0, %v3352_v63  ;;  %v1734_v1 = vpop.f32.mrb[127].mxu0 }
 0x1d9   :  { %2638 = vst.msk [vmem:[%s5622_s2 + $0x7f8] sm:$0xff] %vm269_vm0, %v3544_v0  ;;  %v2374_v2 = vpop.f32.mrb[127].mxu1  ;;  %2509 = vst.msk [vmem:[%s5622_s2 + $0x3f0] sm:$0xff] %vm269_vm0, %v1734_v1 }
 0x1da   :  { %2637 = vst.msk [vmem:[%s5622_s2 + $0x7f0] sm:$0xff] %vm269_vm0, %v2374_v2 }

// kernel: _lambda_.19
= control target key start
LH: loop header
LB: loop body
LE: loop exit
PB: predicated region body
PF: predicated region fallthrough
CT: control target
= control target key end

     0   :  { %s137_s0 = inlined_call_operand.vmem [shape: f32[64,128], index: 0, kind: input, shape index: {}]   ;;  %s138_s1 = inlined_call_operand.vmem [shape: f32[1,128], index: 1, kind: input, shape index: {}]   ;;  %s139_s2 = inlined_call_operand.vmem [shape: f32[64,128], index: 2, kind: output, shape index: {}]  }
   0x1   :  { %v11_v0 = vld [vmem:[%s137_s0] sm:$0xff]  ;;  %v12_v2 = vld [vmem:[%s137_s0 + $0x8] sm:$0xff]  ;;  %v13_v5 = vld [vmem:[%s137_s0 + $0x10] sm:$0xff] }
   0x2   :  { %v54_v1 = vld [vmem:[%s138_s1] ss:$0 sm:$0xff]  ;;  %v14_v6 = vld [vmem:[%s137_s0 + $0x18] sm:$0xff]  ;;  %v16_v10 = vld [vmem:[%s137_s0 + $0x28] sm:$0xff] }
   0x3   :  { %v26_v3 = vadd.f32 %v54_v1, %v11_v0  ;;  %v27_v4 = vadd.f32 %v54_v1, %v12_v2  ;;  %v15_v7 = vld [vmem:[%s137_s0 + $0x20] sm:$0xff]  ;;  %v28_v8 = vadd.f32 %v54_v1, %v13_v5  ;;  %v29_v9 = vadd.f32 %v54_v1, %v14_v6  ;;  %v17_v11 = vld [vmem:[%s137_s0 + $0x30] sm:$0xff]  ;;  %v18_v13 = vld [vmem:[%s137_s0 + $0x38] sm:$0xff] }
   0x4   :  { %v30_v12 = vadd.f32 %v54_v1, %v15_v7  ;;  %v31_v14 = vadd.f32 %v54_v1, %v16_v10  ;;  %v32_v15 = vadd.f32 %v54_v1, %v17_v11  ;;  %v33_v16 = vadd.f32 %v54_v1, %v18_v13 }
   0x5   :  { %55 = vtanh.f32 %v26_v3 }
   0x6   :  { %57 = vtanh.f32 %v27_v4 }
   0x7   :  { %59 = vtanh.f32 %v28_v8 }
   0x8   :  { %61 = vtanh.f32 %v29_v9 }
   0x9   :  { %63 = vtanh.f32 %v30_v12 }
   0xa   :  { %65 = vtanh.f32 %v31_v14 }
   0xb   :  { %67 = vtanh.f32 %v32_v15 }
   0xc   :  { %69 = vtanh.f32 %v33_v16 }
   0xf   :  { %v56_v17 = vpop.eup %55 }
  0x10   :  { %v58_v18 = vpop.eup %57  ;;  %42 = vst [vmem:[%s139_s2] sm:$0xff] %v56_v17 }
  0x11   :  { %v60_v19 = vpop.eup %59  ;;  %43 = vst [vmem:[%s139_s2 + $0x8] sm:$0xff] %v58_v18 }
  0x12   :  { %v62_v20 = vpop.eup %61  ;;  %44 = vst [vmem:[%s139_s2 + $0x10] sm:$0xff] %v60_v19 }
  0x13   :  { %v64_v21 = vpop.eup %63  ;;  %45 = vst [vmem:[%s139_s2 + $0x18] sm:$0xff] %v62_v20 }
  0x14   :  { %v66_v22 = vpop.eup %65  ;;  %46 = vst [vmem:[%s139_s2 + $0x20] sm:$0xff] %v64_v21 }
  0x15   :  { %v68_v23 = vpop.eup %67  ;;  %47 = vst [vmem:[%s139_s2 + $0x28] sm:$0xff] %v66_v22 }
  0x16   :  { %v70_v24 = vpop.eup %69  ;;  %48 = vst [vmem:[%s139_s2 + $0x30] sm:$0xff] %v68_v23 }
  0x17   :  { %49 = vst [vmem:[%s139_s2 + $0x38] sm:$0xff] %v70_v24 }

</bundles_post_ra>
